<compile_context>
chip_gen: v6e
topology: v6e:2x2x1
jax: 0.10.0
libtpu: 0.0.40
codegen_flags: <defaults>
</compile_context>

<pallas_src>
import functools
import math

import numpy as np

import jax
import jax.numpy as jnp
from jax.experimental import pallas as pl
from jax.experimental.pallas import tpu as pltpu


BATCH_BLOCK = 16  # images per grid step


# ----------------------------------------------------------------------------
# Fused forward kernel
# ----------------------------------------------------------------------------
def _cnn_kernel(x0_ref, x1_ref, x2_ref, x3_ref, x4_ref, x5_ref, x6_ref, x7_ref,
                s1_ref, b1t_ref, s2_ref, b2t_ref,
                wa1_ref, ba1_ref, wa2_ref, ba2_ref, wa3_ref, ba3_ref,
                o_ref, *, batch_block):
    f32 = jnp.float32
    s1 = s1_ref[...]      # (160, 256) conv1 band RHS (even cols @0, odd cols @128)
    s2 = s2_ref[...]      # (336, 224) conv2 band RHS (even cols @0, odd cols @128)
    b1t = b1t_ref[...]    # (1, 112)   conv1 bias tiled over pooled width
    b2t = b2t_ref[...]    # (1, 96)    conv2 bias tiled over pooled width

    # 8 stride-4 row classes of the zero-padded 36x32 image, batch-stacked:
    # row b*8 + t of class c holds padded image row 4*t + c of image b.
    xc = [x0_ref[...], x1_ref[...], x2_ref[...], x3_ref[...],
          x4_ref[...], x5_ref[...], x6_ref[...], x7_ref[...]]     # each (8B, 32)

    def pool_cols(y, width):
        # max over the two width-parity halves of a band-matmul result
        return jnp.maximum(y[:, 0:width], y[:, 128:128 + width])

    # ---- conv1 (k=5, pad=2): 4 batched band matmuls over the whole block ----
    # conv row 4t+g of image b lives at LHS/result row b*8 + t of group g.
    y = []
    for g in range(4):
        lhs = jnp.concatenate(
            [xc[g], xc[g + 1], xc[g + 2], xc[g + 3], xc[g + 4]], axis=-1)  # (8B, 160)
        y.append(jnp.dot(lhs, s1, preferred_element_type=f32))             # (8B, 256)

    # fused ReLU + 2x2 maxpool (bias/relu commute with max):
    # even pooled rows (2t) from groups 0,1; odd pooled rows (2t+1) from 2,3.
    p1e = jnp.maximum(jnp.maximum(pool_cols(y[0], 112), pool_cols(y[1], 112)) + b1t, 0.0)
    p1o = jnp.maximum(jnp.maximum(pool_cols(y[2], 112), pool_cols(y[3], 112)) + b1t, 0.0)

    # shift by one row (row i <- row i+1); only rows t=0..5 of each 8-row
    # image group are consumed downstream, so the filler row is harmless.
    zrow = jnp.zeros((1, 112), f32)
    p1e_s = jnp.concatenate([p1e[1:, :], zrow], axis=0)
    p1o_s = jnp.concatenate([p1o[1:, :], zrow], axis=0)

    # ---- conv2 (k=3, pad=0): 2 batched band matmuls -------------------------
    l2a = jnp.concatenate([p1e, p1o, p1e_s], axis=-1)              # (8B, 336)
    l2b = jnp.concatenate([p1o, p1e_s, p1o_s], axis=-1)
    za = jnp.dot(l2a, s2, preferred_element_type=f32)              # (8B, 224)
    zb = jnp.dot(l2b, s2, preferred_element_type=f32)
    p2 = jnp.maximum(jnp.maximum(pool_cols(za, 96), pool_cols(zb, 96)) + b2t, 0.0)  # (8B, 96)

    # ---- flatten (torch NCHW .view() order is baked into wa1's row perm) ----
    flat_rows = []
    for b in range(batch_block):
        base = b * 8
        flat_rows.append(jnp.concatenate(
            [p2[base + r:base + r + 1, :] for r in range(6)], axis=-1))    # (1, 576)
    flat = jnp.concatenate(flat_rows, axis=0)                              # (B, 576)

    # ---- fused MLP head ------------------------------------------------------
    h1 = jnp.maximum(jnp.dot(flat, wa1_ref[...], preferred_element_type=f32) + ba1_ref[...], 0.0)  # (B, 640)
    # TODO(synk): nn.Dropout is eval-mode identity here; training-mode RNG masking omitted.
    h2 = jnp.maximum(jnp.dot(h1, wa2_ref[...], preferred_element_type=f32) + ba2_ref[...], 0.0)    # (B, 128)
    logits = jnp.dot(h2, wa3_ref[...], preferred_element_type=f32) + ba3_ref[...]                  # (B, 128)

    # log-softmax over the 10 real classes (padded lanes masked out)
    lane = jax.lax.broadcasted_iota(jnp.int32, logits.shape, 1)
    logits = jnp.where(lane < 10, logits, -1e30)
    m = jnp.max(logits, axis=-1, keepdims=True)
    sh = logits - m
    lse = jnp.log(jnp.sum(jnp.exp(sh), axis=-1, keepdims=True))
    o_ref[...] = (sh - lse).astype(o_ref.dtype)


# ----------------------------------------------------------------------------
# Wrapper: layout plumbing (cheap XLA ops on the raw input only) + pallas_call
# ----------------------------------------------------------------------------
def cnn_forward(x, kp, batch_block=BATCH_BLOCK):
    """x: (N, 784) float32 -> (N, 10) log-probabilities."""
    n = x.shape[0]
    n_pad = ((n + batch_block - 1) // batch_block) * batch_block
    nblk = n_pad // batch_block

    img = x.reshape(n, 28, 28)
    imgp = jnp.pad(img, ((0, n_pad - n), (2, 6), (2, 2)))          # (n_pad, 36, 32)
    # 8 stride-4 row classes (classes 4..7 are the +1-row-shifted taps), each
    # flattened to (n_pad*8, 32) so every in-kernel tensor stays 2-D.
    xcls = [imgp[:, c::4, :][:, :8, :].reshape(n_pad * 8, 32) for c in range(8)]

    rows = batch_block * 8
    x_spec = pl.BlockSpec((rows, 32), lambda i: (i, 0))

    def full2d(a):
        return pl.BlockSpec(a.shape, lambda i: (0, 0))

    in_specs = [x_spec] * 8 + [
        full2d(kp["s1"]), full2d(kp["b1t"]),
        full2d(kp["s2"]), full2d(kp["b2t"]),
        full2d(kp["wa1"]), full2d(kp["ba1"]),
        full2d(kp["wa2"]), full2d(kp["ba2"]),
        full2d(kp["wa3"]), full2d(kp["ba3"]),
    ]

    out = pl.pallas_call(
        functools.partial(_cnn_kernel, batch_block=batch_block),
        out_shape=jax.ShapeDtypeStruct((n_pad, 128), jnp.float32),
        grid=(nblk,),
        in_specs=in_specs,
        out_specs=pl.BlockSpec((batch_block, 128), lambda i: (i, 0)),
        compiler_params=pltpu.CompilerParams(dimension_semantics=("parallel",)),
    )(*xcls, kp["s1"], kp["b1t"], kp["s2"], kp["b2t"],
      kp["wa1"], kp["ba1"], kp["wa2"], kp["ba2"], kp["wa3"], kp["ba3"])

    return out[:n, :10]


# ----------------------------------------------------------------------------
# Parameter init (PyTorch layouts/shapes) and one-time kernel-weight prep
# ----------------------------------------------------------------------------
def init_params(key):
    ks = jax.random.split(key, 10)

    def unif(k, shape, fan_in):
        bound = 1.0 / math.sqrt(fan_in)
        return jax.random.uniform(k, shape, jnp.float32, -bound, bound)

    return {
        "w1": unif(ks[0], (8, 1, 5, 5), 25),   "b1": unif(ks[1], (8,), 25),
        "w2": unif(ks[2], (16, 8, 3, 3), 72),  "b2": unif(ks[3], (16,), 72),
        "wa1": unif(ks[4], (600, 576), 576),   "ba1": unif(ks[5], (600,), 576),
        "wa2": unif(ks[6], (120, 600), 600),   "ba2": unif(ks[7], (120,), 600),
        "wa3": unif(ks[8], (10, 120), 120),    "ba3": unif(ks[9], (10,), 120),
    }


def prepare_kernel_params(p):
    """Build band-matrix conv RHS (channels folded into lanes, even/odd pooled
    columns in separate 128-aligned halves) and lane-padded affine weights."""
    w1 = np.asarray(p["w1"], np.float32)   # (8, 1, 5, 5)
    b1 = np.asarray(p["b1"], np.float32)
    w2 = np.asarray(p["w2"], np.float32)   # (16, 8, 3, 3)
    b2 = np.asarray(p["b2"], np.float32)

    # conv1: rows = ki*32 + padded_col, cols = half*128 + jj*8 + cout
    s1 = np.zeros((5 * 32, 256), np.float32)
    for ki in range(5):
        for kj in range(5):
            for half in range(2):
                for jj in range(14):
                    pcol = 2 * jj + half + kj
                    s1[ki * 32 + pcol, half * 128 + jj * 8:half * 128 + jj * 8 + 8] = w1[:, 0, ki, kj]
    b1t = np.tile(b1, 14).reshape(1, 112)

    # conv2: rows = ki*112 + jj*8 + cin, cols = half*128 + j3*16 + cout
    s2 = np.zeros((3 * 112, 224), np.float32)
    for ki in range(3):
        for kj in range(3):
            for half in range(2):
                for j3 in range(6):
                    jj = 2 * j3 + half + kj
                    for ci in range(8):
                        s2[ki * 112 + jj * 8 + ci,
                           half * 128 + j3 * 16:half * 128 + j3 * 16 + 16] = w2[:, ci, ki, kj]
    b2t = np.tile(b2, 6).reshape(1, 96)

    # affine1: kernel flatten index h*96 + w*16 + c  vs  torch NCHW index c*36 + h*6 + w
    wa1_t = np.asarray(p["wa1"], np.float32)        # (600, 576) torch (out, in)
    wa1 = np.zeros((576, 640), np.float32)
    for h in range(6):
        for w in range(6):
            for c in range(16):
                wa1[h * 96 + w * 16 + c, :600] = wa1_t[:, c * 36 + h * 6 + w]
    ba1 = np.zeros((1, 640), np.float32); ba1[0, :600] = np.asarray(p["ba1"])

    wa2 = np.zeros((640, 128), np.float32); wa2[:600, :120] = np.asarray(p["wa2"], np.float32).T
    ba2 = np.zeros((1, 128), np.float32);   ba2[0, :120] = np.asarray(p["ba2"])
    wa3 = np.zeros((128, 128), np.float32); wa3[:120, :10] = np.asarray(p["wa3"], np.float32).T
    ba3 = np.zeros((1, 128), np.float32);   ba3[0, :10] = np.asarray(p["ba3"])

    raw = dict(s1=s1, b1t=b1t, s2=s2, b2t=b2t,
               wa1=wa1, ba1=ba1, wa2=wa2, ba2=ba2, wa3=wa3, ba3=ba3)
    return {k: jnp.asarray(v) for k, v in raw.items()}


# ----------------------------------------------------------------------------
# Pure-JAX reference (mirrors the PyTorch module) for a correctness check
# ----------------------------------------------------------------------------
def reference_forward(x, p):
    n = x.shape[0]
    y = x.reshape(n, 28, 28, 1)
    y = jax.lax.conv_general_dilated(
        y, jnp.transpose(p["w1"], (2, 3, 1, 0)), window_strides=(1, 1),
        padding=((2, 2), (2, 2)), dimension_numbers=("NHWC", "HWIO", "NHWC"))
    y = jnp.maximum(y + p["b1"], 0.0)
    y = y.reshape(n, 14, 2, 14, 2, 8).max(axis=(2, 4))
    y = jax.lax.conv_general_dilated(
        y, jnp.transpose(p["w2"], (2, 3, 1, 0)), window_strides=(1, 1),
        padding="VALID", dimension_numbers=("NHWC", "HWIO", "NHWC"))
    y = jnp.maximum(y + p["b2"], 0.0)
    y = y.reshape(n, 6, 2, 6, 2, 16).max(axis=(2, 4))
    h = jnp.transpose(y, (0, 3, 1, 2)).reshape(n, 576)          # NCHW flatten, like torch .view()
    h = jnp.maximum(h @ p["wa1"].T + p["ba1"], 0.0)
    h = jnp.maximum(h @ p["wa2"].T + p["ba2"], 0.0)
    logits = h @ p["wa3"].T + p["ba3"]
    return jax.nn.log_softmax(logits, axis=-1)


if __name__ == "__main__":
    key = jax.random.PRNGKey(0)
    k_x, k_p = jax.random.split(key)
    x = jax.random.normal(k_x, (2, 784), dtype=jnp.float32)     # batch of 2 MNIST-sized inputs
    params = init_params(k_p)
    kparams = prepare_kernel_params(params)

    fwd = jax.jit(cnn_forward)
    out = jax.block_until_ready(fwd(x, kparams))

    assert out.shape == (2, 10)
    row_sums = jnp.exp(out).sum(axis=1)
    assert bool(jnp.allclose(row_sums, 1.0, atol=1e-4)), row_sums

    ref = reference_forward(x, params)
    max_err = float(jnp.max(jnp.abs(out - ref)))
    assert max_err < 5e-2, f"max abs error vs reference: {max_err}"

    print("KERNEL_OK")
</pallas_src>

<mosaic_0001>
module attributes {stable_mosaic.version = 11 : i64} {
  func.func @_cnn_kernel(%arg0: i32, %arg1: memref<128x32xf32, #tpu.memory_space<vmem>>, %arg2: memref<128x32xf32, #tpu.memory_space<vmem>>, %arg3: memref<128x32xf32, #tpu.memory_space<vmem>>, %arg4: memref<128x32xf32, #tpu.memory_space<vmem>>, %arg5: memref<128x32xf32, #tpu.memory_space<vmem>>, %arg6: memref<128x32xf32, #tpu.memory_space<vmem>>, %arg7: memref<128x32xf32, #tpu.memory_space<vmem>>, %arg8: memref<128x32xf32, #tpu.memory_space<vmem>>, %arg9: memref<160x256xf32, #tpu.memory_space<vmem>>, %arg10: memref<1x112xf32, #tpu.memory_space<vmem>>, %arg11: memref<336x224xf32, #tpu.memory_space<vmem>>, %arg12: memref<1x96xf32, #tpu.memory_space<vmem>>, %arg13: memref<576x640xf32, #tpu.memory_space<vmem>>, %arg14: memref<1x640xf32, #tpu.memory_space<vmem>>, %arg15: memref<640x128xf32, #tpu.memory_space<vmem>>, %arg16: memref<1x128xf32, #tpu.memory_space<vmem>>, %arg17: memref<128x128xf32, #tpu.memory_space<vmem>>, %arg18: memref<1x128xf32, #tpu.memory_space<vmem>>, %arg19: memref<16x128xf32, #tpu.memory_space<vmem>>) attributes {dimension_semantics = [#tpu.dimension_semantics<parallel>], iteration_bounds = array<i64: 1>, scalar_prefetch = 0 : i64, scratch_operands = 0 : i64, tpu.core_type = #tpu.core_type<tc>, window_params = [{transform_indices = @transform_0, window_bounds = array<i64: 128, 32>}, {transform_indices = @transform_1, window_bounds = array<i64: 128, 32>}, {transform_indices = @transform_2, window_bounds = array<i64: 128, 32>}, {transform_indices = @transform_3, window_bounds = array<i64: 128, 32>}, {transform_indices = @transform_4, window_bounds = array<i64: 128, 32>}, {transform_indices = @transform_5, window_bounds = array<i64: 128, 32>}, {transform_indices = @transform_6, window_bounds = array<i64: 128, 32>}, {transform_indices = @transform_7, window_bounds = array<i64: 128, 32>}, {pipeline_mode = #tpu.pipeline_mode<synchronous>, transform_indices = @transform_8, window_bounds = array<i64: 160, 256>}, {pipeline_mode = #tpu.pipeline_mode<synchronous>, transform_indices = @transform_9, window_bounds = array<i64: 1, 112>}, {pipeline_mode = #tpu.pipeline_mode<synchronous>, transform_indices = @transform_10, window_bounds = array<i64: 336, 224>}, {pipeline_mode = #tpu.pipeline_mode<synchronous>, transform_indices = @transform_11, window_bounds = array<i64: 1, 96>}, {pipeline_mode = #tpu.pipeline_mode<synchronous>, transform_indices = @transform_12, window_bounds = array<i64: 576, 640>}, {pipeline_mode = #tpu.pipeline_mode<synchronous>, transform_indices = @transform_13, window_bounds = array<i64: 1, 640>}, {pipeline_mode = #tpu.pipeline_mode<synchronous>, transform_indices = @transform_14, window_bounds = array<i64: 640, 128>}, {pipeline_mode = #tpu.pipeline_mode<synchronous>, transform_indices = @transform_15, window_bounds = array<i64: 1, 128>}, {pipeline_mode = #tpu.pipeline_mode<synchronous>, transform_indices = @transform_16, window_bounds = array<i64: 128, 128>}, {pipeline_mode = #tpu.pipeline_mode<synchronous>, transform_indices = @transform_17, window_bounds = array<i64: 1, 128>}, {transform_indices = @transform_18, window_bounds = array<i64: 16, 128>}]} {
    %c0 = arith.constant 0 : index
    %c0_0 = arith.constant 0 : index
    %0 = vector.load %arg9[%c0, %c0_0] : memref<160x256xf32, #tpu.memory_space<vmem>>, vector<160x256xf32>
    %c0_1 = arith.constant 0 : index
    %c0_2 = arith.constant 0 : index
    %1 = vector.load %arg11[%c0_1, %c0_2] : memref<336x224xf32, #tpu.memory_space<vmem>>, vector<336x224xf32>
    %c0_3 = arith.constant 0 : index
    %c0_4 = arith.constant 0 : index
    %2 = vector.load %arg10[%c0_3, %c0_4] : memref<1x112xf32, #tpu.memory_space<vmem>>, vector<1x112xf32>
    %c0_5 = arith.constant 0 : index
    %c0_6 = arith.constant 0 : index
    %3 = vector.load %arg12[%c0_5, %c0_6] : memref<1x96xf32, #tpu.memory_space<vmem>>, vector<1x96xf32>
    %c0_7 = arith.constant 0 : index
    %c0_8 = arith.constant 0 : index
    %4 = vector.load %arg1[%c0_7, %c0_8] : memref<128x32xf32, #tpu.memory_space<vmem>>, vector<128x32xf32>
    %c0_9 = arith.constant 0 : index
    %c0_10 = arith.constant 0 : index
    %5 = vector.load %arg2[%c0_9, %c0_10] : memref<128x32xf32, #tpu.memory_space<vmem>>, vector<128x32xf32>
    %c0_11 = arith.constant 0 : index
    %c0_12 = arith.constant 0 : index
    %6 = vector.load %arg3[%c0_11, %c0_12] : memref<128x32xf32, #tpu.memory_space<vmem>>, vector<128x32xf32>
    %c0_13 = arith.constant 0 : index
    %c0_14 = arith.constant 0 : index
    %7 = vector.load %arg4[%c0_13, %c0_14] : memref<128x32xf32, #tpu.memory_space<vmem>>, vector<128x32xf32>
    %c0_15 = arith.constant 0 : index
    %c0_16 = arith.constant 0 : index
    %8 = vector.load %arg5[%c0_15, %c0_16] : memref<128x32xf32, #tpu.memory_space<vmem>>, vector<128x32xf32>
    %c0_17 = arith.constant 0 : index
    %c0_18 = arith.constant 0 : index
    %9 = vector.load %arg6[%c0_17, %c0_18] : memref<128x32xf32, #tpu.memory_space<vmem>>, vector<128x32xf32>
    %c0_19 = arith.constant 0 : index
    %c0_20 = arith.constant 0 : index
    %10 = vector.load %arg7[%c0_19, %c0_20] : memref<128x32xf32, #tpu.memory_space<vmem>>, vector<128x32xf32>
    %c0_21 = arith.constant 0 : index
    %c0_22 = arith.constant 0 : index
    %11 = vector.load %arg8[%c0_21, %c0_22] : memref<128x32xf32, #tpu.memory_space<vmem>>, vector<128x32xf32>
    %12 = tpu.concatenate %4, %5, %6, %7, %8 in 1 : vector<128x32xf32>, vector<128x32xf32>, vector<128x32xf32>, vector<128x32xf32>, vector<128x32xf32> -> vector<128x160xf32>
    %cst = arith.constant dense<0.000000e+00> : vector<128x256xf32>
    %13 = tpu.matmul %12, %0, %cst {dimension_numbers = #tpu.dot_dimension_numbers<[1], [0], [0], [1], [0, 0, 1, 1], [], []>} : vector<128x160xf32>, vector<160x256xf32>, vector<128x256xf32> -> vector<128x256xf32>
    %14 = tpu.concatenate %5, %6, %7, %8, %9 in 1 : vector<128x32xf32>, vector<128x32xf32>, vector<128x32xf32>, vector<128x32xf32>, vector<128x32xf32> -> vector<128x160xf32>
    %cst_23 = arith.constant dense<0.000000e+00> : vector<128x256xf32>
    %15 = tpu.matmul %14, %0, %cst_23 {dimension_numbers = #tpu.dot_dimension_numbers<[1], [0], [0], [1], [0, 0, 1, 1], [], []>} : vector<128x160xf32>, vector<160x256xf32>, vector<128x256xf32> -> vector<128x256xf32>
    %16 = tpu.concatenate %6, %7, %8, %9, %10 in 1 : vector<128x32xf32>, vector<128x32xf32>, vector<128x32xf32>, vector<128x32xf32>, vector<128x32xf32> -> vector<128x160xf32>
    %cst_24 = arith.constant dense<0.000000e+00> : vector<128x256xf32>
    %17 = tpu.matmul %16, %0, %cst_24 {dimension_numbers = #tpu.dot_dimension_numbers<[1], [0], [0], [1], [0, 0, 1, 1], [], []>} : vector<128x160xf32>, vector<160x256xf32>, vector<128x256xf32> -> vector<128x256xf32>
    %18 = tpu.concatenate %7, %8, %9, %10, %11 in 1 : vector<128x32xf32>, vector<128x32xf32>, vector<128x32xf32>, vector<128x32xf32>, vector<128x32xf32> -> vector<128x160xf32>
    %cst_25 = arith.constant dense<0.000000e+00> : vector<128x256xf32>
    %19 = tpu.matmul %18, %0, %cst_25 {dimension_numbers = #tpu.dot_dimension_numbers<[1], [0], [0], [1], [0, 0, 1, 1], [], []>} : vector<128x160xf32>, vector<160x256xf32>, vector<128x256xf32> -> vector<128x256xf32>
    %20 = vector.extract_strided_slice %13 {offsets = [0, 0], sizes = [128, 112], strides = [1, 1]} : vector<128x256xf32> to vector<128x112xf32>
    %21 = vector.extract_strided_slice %13 {offsets = [0, 128], sizes = [128, 112], strides = [1, 1]} : vector<128x256xf32> to vector<128x112xf32>
    %22 = arith.maximumf %20, %21 : vector<128x112xf32>
    %23 = vector.extract_strided_slice %15 {offsets = [0, 0], sizes = [128, 112], strides = [1, 1]} : vector<128x256xf32> to vector<128x112xf32>
    %24 = vector.extract_strided_slice %15 {offsets = [0, 128], sizes = [128, 112], strides = [1, 1]} : vector<128x256xf32> to vector<128x112xf32>
    %25 = arith.maximumf %23, %24 : vector<128x112xf32>
    %26 = arith.maximumf %22, %25 : vector<128x112xf32>
    %27 = vector.broadcast %2 : vector<1x112xf32> to vector<128x112xf32>
    %28 = arith.addf %26, %27 : vector<128x112xf32>
    %cst_26 = arith.constant 0.000000e+00 : f32
    %29 = vector.broadcast %cst_26 : f32 to vector<128x112xf32>
    %30 = arith.maximumf %28, %29 : vector<128x112xf32>
    %31 = vector.extract_strided_slice %17 {offsets = [0, 0], sizes = [128, 112], strides = [1, 1]} : vector<128x256xf32> to vector<128x112xf32>
    %32 = vector.extract_strided_slice %17 {offsets = [0, 128], sizes = [128, 112], strides = [1, 1]} : vector<128x256xf32> to vector<128x112xf32>
    %33 = arith.maximumf %31, %32 : vector<128x112xf32>
    %34 = vector.extract_strided_slice %19 {offsets = [0, 0], sizes = [128, 112], strides = [1, 1]} : vector<128x256xf32> to vector<128x112xf32>
    %35 = vector.extract_strided_slice %19 {offsets = [0, 128], sizes = [128, 112], strides = [1, 1]} : vector<128x256xf32> to vector<128x112xf32>
    %36 = arith.maximumf %34, %35 : vector<128x112xf32>
    %37 = arith.maximumf %33, %36 : vector<128x112xf32>
    %38 = vector.broadcast %2 : vector<1x112xf32> to vector<128x112xf32>
    %39 = arith.addf %37, %38 : vector<128x112xf32>
    %cst_27 = arith.constant 0.000000e+00 : f32
    %40 = vector.broadcast %cst_27 : f32 to vector<128x112xf32>
    %41 = arith.maximumf %39, %40 : vector<128x112xf32>
    %cst_28 = arith.constant 0.000000e+00 : f32
    %42 = vector.broadcast %cst_28 : f32 to vector<1x112xf32>
    %43 = vector.extract_strided_slice %30 {offsets = [1, 0], sizes = [127, 112], strides = [1, 1]} : vector<128x112xf32> to vector<127x112xf32>
    %44 = tpu.concatenate %43, %42 in 0 : vector<127x112xf32>, vector<1x112xf32> -> vector<128x112xf32>
    %45 = vector.extract_strided_slice %41 {offsets = [1, 0], sizes = [127, 112], strides = [1, 1]} : vector<128x112xf32> to vector<127x112xf32>
    %46 = tpu.concatenate %45, %42 in 0 : vector<127x112xf32>, vector<1x112xf32> -> vector<128x112xf32>
    %47 = tpu.concatenate %30, %41, %44 in 1 : vector<128x112xf32>, vector<128x112xf32>, vector<128x112xf32> -> vector<128x336xf32>
    %48 = tpu.concatenate %41, %44, %46 in 1 : vector<128x112xf32>, vector<128x112xf32>, vector<128x112xf32> -> vector<128x336xf32>
    %cst_29 = arith.constant dense<0.000000e+00> : vector<128x224xf32>
    %49 = tpu.matmul %47, %1, %cst_29 {dimension_numbers = #tpu.dot_dimension_numbers<[1], [0], [0], [1], [0, 0, 1, 1], [], []>} : vector<128x336xf32>, vector<336x224xf32>, vector<128x224xf32> -> vector<128x224xf32>
    %cst_30 = arith.constant dense<0.000000e+00> : vector<128x224xf32>
    %50 = tpu.matmul %48, %1, %cst_30 {dimension_numbers = #tpu.dot_dimension_numbers<[1], [0], [0], [1], [0, 0, 1, 1], [], []>} : vector<128x336xf32>, vector<336x224xf32>, vector<128x224xf32> -> vector<128x224xf32>
    %51 = vector.extract_strided_slice %49 {offsets = [0, 0], sizes = [128, 96], strides = [1, 1]} : vector<128x224xf32> to vector<128x96xf32>
    %52 = vector.extract_strided_slice %49 {offsets = [0, 128], sizes = [128, 96], strides = [1, 1]} : vector<128x224xf32> to vector<128x96xf32>
    %53 = arith.maximumf %51, %52 : vector<128x96xf32>
    %54 = vector.extract_strided_slice %50 {offsets = [0, 0], sizes = [128, 96], strides = [1, 1]} : vector<128x224xf32> to vector<128x96xf32>
    %55 = vector.extract_strided_slice %50 {offsets = [0, 128], sizes = [128, 96], strides = [1, 1]} : vector<128x224xf32> to vector<128x96xf32>
    %56 = arith.maximumf %54, %55 : vector<128x96xf32>
    %57 = arith.maximumf %53, %56 : vector<128x96xf32>
    %58 = vector.broadcast %3 : vector<1x96xf32> to vector<128x96xf32>
    %59 = arith.addf %57, %58 : vector<128x96xf32>
    %cst_31 = arith.constant 0.000000e+00 : f32
    %60 = vector.broadcast %cst_31 : f32 to vector<128x96xf32>
    %61 = arith.maximumf %59, %60 : vector<128x96xf32>
    %62 = vector.extract_strided_slice %61 {offsets = [0, 0], sizes = [1, 96], strides = [1, 1]} : vector<128x96xf32> to vector<1x96xf32>
    %63 = vector.extract_strided_slice %61 {offsets = [1, 0], sizes = [1, 96], strides = [1, 1]} : vector<128x96xf32> to vector<1x96xf32>
    %64 = vector.extract_strided_slice %61 {offsets = [2, 0], sizes = [1, 96], strides = [1, 1]} : vector<128x96xf32> to vector<1x96xf32>
    %65 = vector.extract_strided_slice %61 {offsets = [3, 0], sizes = [1, 96], strides = [1, 1]} : vector<128x96xf32> to vector<1x96xf32>
    %66 = vector.extract_strided_slice %61 {offsets = [4, 0], sizes = [1, 96], strides = [1, 1]} : vector<128x96xf32> to vector<1x96xf32>
    %67 = vector.extract_strided_slice %61 {offsets = [5, 0], sizes = [1, 96], strides = [1, 1]} : vector<128x96xf32> to vector<1x96xf32>
    %68 = tpu.concatenate %62, %63, %64, %65, %66, %67 in 1 : vector<1x96xf32>, vector<1x96xf32>, vector<1x96xf32>, vector<1x96xf32>, vector<1x96xf32>, vector<1x96xf32> -> vector<1x576xf32>
    %69 = vector.extract_strided_slice %61 {offsets = [8, 0], sizes = [1, 96], strides = [1, 1]} : vector<128x96xf32> to vector<1x96xf32>
    %70 = vector.extract_strided_slice %61 {offsets = [9, 0], sizes = [1, 96], strides = [1, 1]} : vector<128x96xf32> to vector<1x96xf32>
    %71 = vector.extract_strided_slice %61 {offsets = [10, 0], sizes = [1, 96], strides = [1, 1]} : vector<128x96xf32> to vector<1x96xf32>
    %72 = vector.extract_strided_slice %61 {offsets = [11, 0], sizes = [1, 96], strides = [1, 1]} : vector<128x96xf32> to vector<1x96xf32>
    %73 = vector.extract_strided_slice %61 {offsets = [12, 0], sizes = [1, 96], strides = [1, 1]} : vector<128x96xf32> to vector<1x96xf32>
    %74 = vector.extract_strided_slice %61 {offsets = [13, 0], sizes = [1, 96], strides = [1, 1]} : vector<128x96xf32> to vector<1x96xf32>
    %75 = tpu.concatenate %69, %70, %71, %72, %73, %74 in 1 : vector<1x96xf32>, vector<1x96xf32>, vector<1x96xf32>, vector<1x96xf32>, vector<1x96xf32>, vector<1x96xf32> -> vector<1x576xf32>
    %76 = vector.extract_strided_slice %61 {offsets = [16, 0], sizes = [1, 96], strides = [1, 1]} : vector<128x96xf32> to vector<1x96xf32>
    %77 = vector.extract_strided_slice %61 {offsets = [17, 0], sizes = [1, 96], strides = [1, 1]} : vector<128x96xf32> to vector<1x96xf32>
    %78 = vector.extract_strided_slice %61 {offsets = [18, 0], sizes = [1, 96], strides = [1, 1]} : vector<128x96xf32> to vector<1x96xf32>
    %79 = vector.extract_strided_slice %61 {offsets = [19, 0], sizes = [1, 96], strides = [1, 1]} : vector<128x96xf32> to vector<1x96xf32>
    %80 = vector.extract_strided_slice %61 {offsets = [20, 0], sizes = [1, 96], strides = [1, 1]} : vector<128x96xf32> to vector<1x96xf32>
    %81 = vector.extract_strided_slice %61 {offsets = [21, 0], sizes = [1, 96], strides = [1, 1]} : vector<128x96xf32> to vector<1x96xf32>
    %82 = tpu.concatenate %76, %77, %78, %79, %80, %81 in 1 : vector<1x96xf32>, vector<1x96xf32>, vector<1x96xf32>, vector<1x96xf32>, vector<1x96xf32>, vector<1x96xf32> -> vector<1x576xf32>
    %83 = vector.extract_strided_slice %61 {offsets = [24, 0], sizes = [1, 96], strides = [1, 1]} : vector<128x96xf32> to vector<1x96xf32>
    %84 = vector.extract_strided_slice %61 {offsets = [25, 0], sizes = [1, 96], strides = [1, 1]} : vector<128x96xf32> to vector<1x96xf32>
    %85 = vector.extract_strided_slice %61 {offsets = [26, 0], sizes = [1, 96], strides = [1, 1]} : vector<128x96xf32> to vector<1x96xf32>
    %86 = vector.extract_strided_slice %61 {offsets = [27, 0], sizes = [1, 96], strides = [1, 1]} : vector<128x96xf32> to vector<1x96xf32>
    %87 = vector.extract_strided_slice %61 {offsets = [28, 0], sizes = [1, 96], strides = [1, 1]} : vector<128x96xf32> to vector<1x96xf32>
    %88 = vector.extract_strided_slice %61 {offsets = [29, 0], sizes = [1, 96], strides = [1, 1]} : vector<128x96xf32> to vector<1x96xf32>
    %89 = tpu.concatenate %83, %84, %85, %86, %87, %88 in 1 : vector<1x96xf32>, vector<1x96xf32>, vector<1x96xf32>, vector<1x96xf32>, vector<1x96xf32>, vector<1x96xf32> -> vector<1x576xf32>
    %90 = vector.extract_strided_slice %61 {offsets = [32, 0], sizes = [1, 96], strides = [1, 1]} : vector<128x96xf32> to vector<1x96xf32>
    %91 = vector.extract_strided_slice %61 {offsets = [33, 0], sizes = [1, 96], strides = [1, 1]} : vector<128x96xf32> to vector<1x96xf32>
    %92 = vector.extract_strided_slice %61 {offsets = [34, 0], sizes = [1, 96], strides = [1, 1]} : vector<128x96xf32> to vector<1x96xf32>
    %93 = vector.extract_strided_slice %61 {offsets = [35, 0], sizes = [1, 96], strides = [1, 1]} : vector<128x96xf32> to vector<1x96xf32>
    %94 = vector.extract_strided_slice %61 {offsets = [36, 0], sizes = [1, 96], strides = [1, 1]} : vector<128x96xf32> to vector<1x96xf32>
    %95 = vector.extract_strided_slice %61 {offsets = [37, 0], sizes = [1, 96], strides = [1, 1]} : vector<128x96xf32> to vector<1x96xf32>
    %96 = tpu.concatenate %90, %91, %92, %93, %94, %95 in 1 : vector<1x96xf32>, vector<1x96xf32>, vector<1x96xf32>, vector<1x96xf32>, vector<1x96xf32>, vector<1x96xf32> -> vector<1x576xf32>
    %97 = vector.extract_strided_slice %61 {offsets = [40, 0], sizes = [1, 96], strides = [1, 1]} : vector<128x96xf32> to vector<1x96xf32>
    %98 = vector.extract_strided_slice %61 {offsets = [41, 0], sizes = [1, 96], strides = [1, 1]} : vector<128x96xf32> to vector<1x96xf32>
    %99 = vector.extract_strided_slice %61 {offsets = [42, 0], sizes = [1, 96], strides = [1, 1]} : vector<128x96xf32> to vector<1x96xf32>
    %100 = vector.extract_strided_slice %61 {offsets = [43, 0], sizes = [1, 96], strides = [1, 1]} : vector<128x96xf32> to vector<1x96xf32>
    %101 = vector.extract_strided_slice %61 {offsets = [44, 0], sizes = [1, 96], strides = [1, 1]} : vector<128x96xf32> to vector<1x96xf32>
    %102 = vector.extract_strided_slice %61 {offsets = [45, 0], sizes = [1, 96], strides = [1, 1]} : vector<128x96xf32> to vector<1x96xf32>
    %103 = tpu.concatenate %97, %98, %99, %100, %101, %102 in 1 : vector<1x96xf32>, vector<1x96xf32>, vector<1x96xf32>, vector<1x96xf32>, vector<1x96xf32>, vector<1x96xf32> -> vector<1x576xf32>
    %104 = vector.extract_strided_slice %61 {offsets = [48, 0], sizes = [1, 96], strides = [1, 1]} : vector<128x96xf32> to vector<1x96xf32>
    %105 = vector.extract_strided_slice %61 {offsets = [49, 0], sizes = [1, 96], strides = [1, 1]} : vector<128x96xf32> to vector<1x96xf32>
    %106 = vector.extract_strided_slice %61 {offsets = [50, 0], sizes = [1, 96], strides = [1, 1]} : vector<128x96xf32> to vector<1x96xf32>
    %107 = vector.extract_strided_slice %61 {offsets = [51, 0], sizes = [1, 96], strides = [1, 1]} : vector<128x96xf32> to vector<1x96xf32>
    %108 = vector.extract_strided_slice %61 {offsets = [52, 0], sizes = [1, 96], strides = [1, 1]} : vector<128x96xf32> to vector<1x96xf32>
    %109 = vector.extract_strided_slice %61 {offsets = [53, 0], sizes = [1, 96], strides = [1, 1]} : vector<128x96xf32> to vector<1x96xf32>
    %110 = tpu.concatenate %104, %105, %106, %107, %108, %109 in 1 : vector<1x96xf32>, vector<1x96xf32>, vector<1x96xf32>, vector<1x96xf32>, vector<1x96xf32>, vector<1x96xf32> -> vector<1x576xf32>
    %111 = vector.extract_strided_slice %61 {offsets = [56, 0], sizes = [1, 96], strides = [1, 1]} : vector<128x96xf32> to vector<1x96xf32>
    %112 = vector.extract_strided_slice %61 {offsets = [57, 0], sizes = [1, 96], strides = [1, 1]} : vector<128x96xf32> to vector<1x96xf32>
    %113 = vector.extract_strided_slice %61 {offsets = [58, 0], sizes = [1, 96], strides = [1, 1]} : vector<128x96xf32> to vector<1x96xf32>
    %114 = vector.extract_strided_slice %61 {offsets = [59, 0], sizes = [1, 96], strides = [1, 1]} : vector<128x96xf32> to vector<1x96xf32>
    %115 = vector.extract_strided_slice %61 {offsets = [60, 0], sizes = [1, 96], strides = [1, 1]} : vector<128x96xf32> to vector<1x96xf32>
    %116 = vector.extract_strided_slice %61 {offsets = [61, 0], sizes = [1, 96], strides = [1, 1]} : vector<128x96xf32> to vector<1x96xf32>
    %117 = tpu.concatenate %111, %112, %113, %114, %115, %116 in 1 : vector<1x96xf32>, vector<1x96xf32>, vector<1x96xf32>, vector<1x96xf32>, vector<1x96xf32>, vector<1x96xf32> -> vector<1x576xf32>
    %118 = vector.extract_strided_slice %61 {offsets = [64, 0], sizes = [1, 96], strides = [1, 1]} : vector<128x96xf32> to vector<1x96xf32>
    %119 = vector.extract_strided_slice %61 {offsets = [65, 0], sizes = [1, 96], strides = [1, 1]} : vector<128x96xf32> to vector<1x96xf32>
    %120 = vector.extract_strided_slice %61 {offsets = [66, 0], sizes = [1, 96], strides = [1, 1]} : vector<128x96xf32> to vector<1x96xf32>
    %121 = vector.extract_strided_slice %61 {offsets = [67, 0], sizes = [1, 96], strides = [1, 1]} : vector<128x96xf32> to vector<1x96xf32>
    %122 = vector.extract_strided_slice %61 {offsets = [68, 0], sizes = [1, 96], strides = [1, 1]} : vector<128x96xf32> to vector<1x96xf32>
    %123 = vector.extract_strided_slice %61 {offsets = [69, 0], sizes = [1, 96], strides = [1, 1]} : vector<128x96xf32> to vector<1x96xf32>
    %124 = tpu.concatenate %118, %119, %120, %121, %122, %123 in 1 : vector<1x96xf32>, vector<1x96xf32>, vector<1x96xf32>, vector<1x96xf32>, vector<1x96xf32>, vector<1x96xf32> -> vector<1x576xf32>
    %125 = vector.extract_strided_slice %61 {offsets = [72, 0], sizes = [1, 96], strides = [1, 1]} : vector<128x96xf32> to vector<1x96xf32>
    %126 = vector.extract_strided_slice %61 {offsets = [73, 0], sizes = [1, 96], strides = [1, 1]} : vector<128x96xf32> to vector<1x96xf32>
    %127 = vector.extract_strided_slice %61 {offsets = [74, 0], sizes = [1, 96], strides = [1, 1]} : vector<128x96xf32> to vector<1x96xf32>
    %128 = vector.extract_strided_slice %61 {offsets = [75, 0], sizes = [1, 96], strides = [1, 1]} : vector<128x96xf32> to vector<1x96xf32>
    %129 = vector.extract_strided_slice %61 {offsets = [76, 0], sizes = [1, 96], strides = [1, 1]} : vector<128x96xf32> to vector<1x96xf32>
    %130 = vector.extract_strided_slice %61 {offsets = [77, 0], sizes = [1, 96], strides = [1, 1]} : vector<128x96xf32> to vector<1x96xf32>
    %131 = tpu.concatenate %125, %126, %127, %128, %129, %130 in 1 : vector<1x96xf32>, vector<1x96xf32>, vector<1x96xf32>, vector<1x96xf32>, vector<1x96xf32>, vector<1x96xf32> -> vector<1x576xf32>
    %132 = vector.extract_strided_slice %61 {offsets = [80, 0], sizes = [1, 96], strides = [1, 1]} : vector<128x96xf32> to vector<1x96xf32>
    %133 = vector.extract_strided_slice %61 {offsets = [81, 0], sizes = [1, 96], strides = [1, 1]} : vector<128x96xf32> to vector<1x96xf32>
    %134 = vector.extract_strided_slice %61 {offsets = [82, 0], sizes = [1, 96], strides = [1, 1]} : vector<128x96xf32> to vector<1x96xf32>
    %135 = vector.extract_strided_slice %61 {offsets = [83, 0], sizes = [1, 96], strides = [1, 1]} : vector<128x96xf32> to vector<1x96xf32>
    %136 = vector.extract_strided_slice %61 {offsets = [84, 0], sizes = [1, 96], strides = [1, 1]} : vector<128x96xf32> to vector<1x96xf32>
    %137 = vector.extract_strided_slice %61 {offsets = [85, 0], sizes = [1, 96], strides = [1, 1]} : vector<128x96xf32> to vector<1x96xf32>
    %138 = tpu.concatenate %132, %133, %134, %135, %136, %137 in 1 : vector<1x96xf32>, vector<1x96xf32>, vector<1x96xf32>, vector<1x96xf32>, vector<1x96xf32>, vector<1x96xf32> -> vector<1x576xf32>
    %139 = vector.extract_strided_slice %61 {offsets = [88, 0], sizes = [1, 96], strides = [1, 1]} : vector<128x96xf32> to vector<1x96xf32>
    %140 = vector.extract_strided_slice %61 {offsets = [89, 0], sizes = [1, 96], strides = [1, 1]} : vector<128x96xf32> to vector<1x96xf32>
    %141 = vector.extract_strided_slice %61 {offsets = [90, 0], sizes = [1, 96], strides = [1, 1]} : vector<128x96xf32> to vector<1x96xf32>
    %142 = vector.extract_strided_slice %61 {offsets = [91, 0], sizes = [1, 96], strides = [1, 1]} : vector<128x96xf32> to vector<1x96xf32>
    %143 = vector.extract_strided_slice %61 {offsets = [92, 0], sizes = [1, 96], strides = [1, 1]} : vector<128x96xf32> to vector<1x96xf32>
    %144 = vector.extract_strided_slice %61 {offsets = [93, 0], sizes = [1, 96], strides = [1, 1]} : vector<128x96xf32> to vector<1x96xf32>
    %145 = tpu.concatenate %139, %140, %141, %142, %143, %144 in 1 : vector<1x96xf32>, vector<1x96xf32>, vector<1x96xf32>, vector<1x96xf32>, vector<1x96xf32>, vector<1x96xf32> -> vector<1x576xf32>
    %146 = vector.extract_strided_slice %61 {offsets = [96, 0], sizes = [1, 96], strides = [1, 1]} : vector<128x96xf32> to vector<1x96xf32>
    %147 = vector.extract_strided_slice %61 {offsets = [97, 0], sizes = [1, 96], strides = [1, 1]} : vector<128x96xf32> to vector<1x96xf32>
    %148 = vector.extract_strided_slice %61 {offsets = [98, 0], sizes = [1, 96], strides = [1, 1]} : vector<128x96xf32> to vector<1x96xf32>
    %149 = vector.extract_strided_slice %61 {offsets = [99, 0], sizes = [1, 96], strides = [1, 1]} : vector<128x96xf32> to vector<1x96xf32>
    %150 = vector.extract_strided_slice %61 {offsets = [100, 0], sizes = [1, 96], strides = [1, 1]} : vector<128x96xf32> to vector<1x96xf32>
    %151 = vector.extract_strided_slice %61 {offsets = [101, 0], sizes = [1, 96], strides = [1, 1]} : vector<128x96xf32> to vector<1x96xf32>
    %152 = tpu.concatenate %146, %147, %148, %149, %150, %151 in 1 : vector<1x96xf32>, vector<1x96xf32>, vector<1x96xf32>, vector<1x96xf32>, vector<1x96xf32>, vector<1x96xf32> -> vector<1x576xf32>
    %153 = vector.extract_strided_slice %61 {offsets = [104, 0], sizes = [1, 96], strides = [1, 1]} : vector<128x96xf32> to vector<1x96xf32>
    %154 = vector.extract_strided_slice %61 {offsets = [105, 0], sizes = [1, 96], strides = [1, 1]} : vector<128x96xf32> to vector<1x96xf32>
    %155 = vector.extract_strided_slice %61 {offsets = [106, 0], sizes = [1, 96], strides = [1, 1]} : vector<128x96xf32> to vector<1x96xf32>
    %156 = vector.extract_strided_slice %61 {offsets = [107, 0], sizes = [1, 96], strides = [1, 1]} : vector<128x96xf32> to vector<1x96xf32>
    %157 = vector.extract_strided_slice %61 {offsets = [108, 0], sizes = [1, 96], strides = [1, 1]} : vector<128x96xf32> to vector<1x96xf32>
    %158 = vector.extract_strided_slice %61 {offsets = [109, 0], sizes = [1, 96], strides = [1, 1]} : vector<128x96xf32> to vector<1x96xf32>
    %159 = tpu.concatenate %153, %154, %155, %156, %157, %158 in 1 : vector<1x96xf32>, vector<1x96xf32>, vector<1x96xf32>, vector<1x96xf32>, vector<1x96xf32>, vector<1x96xf32> -> vector<1x576xf32>
    %160 = vector.extract_strided_slice %61 {offsets = [112, 0], sizes = [1, 96], strides = [1, 1]} : vector<128x96xf32> to vector<1x96xf32>
    %161 = vector.extract_strided_slice %61 {offsets = [113, 0], sizes = [1, 96], strides = [1, 1]} : vector<128x96xf32> to vector<1x96xf32>
    %162 = vector.extract_strided_slice %61 {offsets = [114, 0], sizes = [1, 96], strides = [1, 1]} : vector<128x96xf32> to vector<1x96xf32>
    %163 = vector.extract_strided_slice %61 {offsets = [115, 0], sizes = [1, 96], strides = [1, 1]} : vector<128x96xf32> to vector<1x96xf32>
    %164 = vector.extract_strided_slice %61 {offsets = [116, 0], sizes = [1, 96], strides = [1, 1]} : vector<128x96xf32> to vector<1x96xf32>
    %165 = vector.extract_strided_slice %61 {offsets = [117, 0], sizes = [1, 96], strides = [1, 1]} : vector<128x96xf32> to vector<1x96xf32>
    %166 = tpu.concatenate %160, %161, %162, %163, %164, %165 in 1 : vector<1x96xf32>, vector<1x96xf32>, vector<1x96xf32>, vector<1x96xf32>, vector<1x96xf32>, vector<1x96xf32> -> vector<1x576xf32>
    %167 = vector.extract_strided_slice %61 {offsets = [120, 0], sizes = [1, 96], strides = [1, 1]} : vector<128x96xf32> to vector<1x96xf32>
    %168 = vector.extract_strided_slice %61 {offsets = [121, 0], sizes = [1, 96], strides = [1, 1]} : vector<128x96xf32> to vector<1x96xf32>
    %169 = vector.extract_strided_slice %61 {offsets = [122, 0], sizes = [1, 96], strides = [1, 1]} : vector<128x96xf32> to vector<1x96xf32>
    %170 = vector.extract_strided_slice %61 {offsets = [123, 0], sizes = [1, 96], strides = [1, 1]} : vector<128x96xf32> to vector<1x96xf32>
    %171 = vector.extract_strided_slice %61 {offsets = [124, 0], sizes = [1, 96], strides = [1, 1]} : vector<128x96xf32> to vector<1x96xf32>
    %172 = vector.extract_strided_slice %61 {offsets = [125, 0], sizes = [1, 96], strides = [1, 1]} : vector<128x96xf32> to vector<1x96xf32>
    %173 = tpu.concatenate %167, %168, %169, %170, %171, %172 in 1 : vector<1x96xf32>, vector<1x96xf32>, vector<1x96xf32>, vector<1x96xf32>, vector<1x96xf32>, vector<1x96xf32> -> vector<1x576xf32>
    %174 = tpu.concatenate %68, %75, %82, %89, %96, %103, %110, %117, %124, %131, %138, %145, %152, %159, %166, %173 in 0 : vector<1x576xf32>, vector<1x576xf32>, vector<1x576xf32>, vector<1x576xf32>, vector<1x576xf32>, vector<1x576xf32>, vector<1x576xf32>, vector<1x576xf32>, vector<1x576xf32>, vector<1x576xf32>, vector<1x576xf32>, vector<1x576xf32>, vector<1x576xf32>, vector<1x576xf32>, vector<1x576xf32>, vector<1x576xf32> -> vector<16x576xf32>
    %c0_32 = arith.constant 0 : index
    %c0_33 = arith.constant 0 : index
    %175 = vector.load %arg13[%c0_32, %c0_33] : memref<576x640xf32, #tpu.memory_space<vmem>>, vector<576x640xf32>
    %cst_34 = arith.constant dense<0.000000e+00> : vector<16x640xf32>
    %176 = tpu.matmul %174, %175, %cst_34 {dimension_numbers = #tpu.dot_dimension_numbers<[1], [0], [0], [1], [0, 0, 1, 1], [], []>} : vector<16x576xf32>, vector<576x640xf32>, vector<16x640xf32> -> vector<16x640xf32>
    %c0_35 = arith.constant 0 : index
    %c0_36 = arith.constant 0 : index
    %177 = vector.load %arg14[%c0_35, %c0_36] : memref<1x640xf32, #tpu.memory_space<vmem>>, vector<1x640xf32>
    %178 = vector.broadcast %177 : vector<1x640xf32> to vector<16x640xf32>
    %179 = arith.addf %176, %178 : vector<16x640xf32>
    %cst_37 = arith.constant 0.000000e+00 : f32
    %180 = vector.broadcast %cst_37 : f32 to vector<16x640xf32>
    %181 = arith.maximumf %179, %180 : vector<16x640xf32>
    %c0_38 = arith.constant 0 : index
    %c0_39 = arith.constant 0 : index
    %182 = vector.load %arg15[%c0_38, %c0_39] : memref<640x128xf32, #tpu.memory_space<vmem>>, vector<640x128xf32>
    %cst_40 = arith.constant dense<0.000000e+00> : vector<16x128xf32>
    %183 = tpu.matmul %181, %182, %cst_40 {dimension_numbers = #tpu.dot_dimension_numbers<[1], [0], [0], [1], [0, 0, 1, 1], [], []>} : vector<16x640xf32>, vector<640x128xf32>, vector<16x128xf32> -> vector<16x128xf32>
    %c0_41 = arith.constant 0 : index
    %c0_42 = arith.constant 0 : index
    %184 = vector.load %arg16[%c0_41, %c0_42] : memref<1x128xf32, #tpu.memory_space<vmem>>, vector<1x128xf32>
    %185 = vector.broadcast %184 : vector<1x128xf32> to vector<16x128xf32>
    %186 = arith.addf %183, %185 : vector<16x128xf32>
    %cst_43 = arith.constant 0.000000e+00 : f32
    %187 = vector.broadcast %cst_43 : f32 to vector<16x128xf32>
    %188 = arith.maximumf %186, %187 : vector<16x128xf32>
    %c0_44 = arith.constant 0 : index
    %c0_45 = arith.constant 0 : index
    %189 = vector.load %arg17[%c0_44, %c0_45] : memref<128x128xf32, #tpu.memory_space<vmem>>, vector<128x128xf32>
    %cst_46 = arith.constant dense<0.000000e+00> : vector<16x128xf32>
    %190 = tpu.matmul %188, %189, %cst_46 {dimension_numbers = #tpu.dot_dimension_numbers<[1], [0], [0], [1], [0, 0, 1, 1], [], []>} : vector<16x128xf32>, vector<128x128xf32>, vector<16x128xf32> -> vector<16x128xf32>
    %c0_47 = arith.constant 0 : index
    %c0_48 = arith.constant 0 : index
    %191 = vector.load %arg18[%c0_47, %c0_48] : memref<1x128xf32, #tpu.memory_space<vmem>>, vector<1x128xf32>
    %192 = vector.broadcast %191 : vector<1x128xf32> to vector<16x128xf32>
    %193 = arith.addf %190, %192 : vector<16x128xf32>
    %194 = tpu.iota {dimensions = array<i32: 1>} : vector<16x128xi32>
    %c10_i32 = arith.constant 10 : i32
    %195 = vector.broadcast %c10_i32 : i32 to vector<16x128xi32>
    %196 = arith.cmpi slt, %194, %195 : vector<16x128xi32>
    %cst_49 = arith.constant -1.000000e+30 : f32
    %197 = vector.broadcast %cst_49 : f32 to vector<16x128xf32>
    %198 = arith.select %196, %193, %197 : vector<16x128xi1>, vector<16x128xf32>
    %cst_50 = arith.constant dense<0xFF800000> : vector<16xf32>
    %199 = vector.multi_reduction <maximumf>, %198, %cst_50 [1] : vector<16x128xf32> to vector<16xf32>
    %200 = vector.shape_cast %199 : vector<16xf32> to vector<16x1xf32>
    %201 = vector.broadcast %200 : vector<16x1xf32> to vector<16x128xf32>
    %202 = arith.subf %198, %201 : vector<16x128xf32>
    %203 = math.exp %202 : vector<16x128xf32>
    %cst_51 = arith.constant dense<0.000000e+00> : vector<16xf32>
    %204 = vector.multi_reduction <add>, %203, %cst_51 [1] : vector<16x128xf32> to vector<16xf32>
    %205 = vector.shape_cast %204 : vector<16xf32> to vector<16x1xf32>
    %206 = math.log %205 : vector<16x1xf32>
    %207 = vector.broadcast %206 : vector<16x1xf32> to vector<16x128xf32>
    %208 = arith.subf %202, %207 : vector<16x128xf32>
    %c0_52 = arith.constant 0 : index
    %c0_53 = arith.constant 0 : index
    %209 = vector.load %arg19[%c0_52, %c0_53] : memref<16x128xf32, #tpu.memory_space<vmem>>, vector<16x128xf32>
    tpu.vector_store %arg19[%c0_52, %c0_53], %208 {strides = array<i32>} : memref<16x128xf32, #tpu.memory_space<vmem>>, vector<16x128xf32>,
    return
  }
  func.func @transform_0(%arg0: i32) -> (i32, i32) {
    %c0_i32 = arith.constant 0 : i32
    %c0_i32_0 = arith.constant 0 : i32
    return %arg0, %c0_i32 : i32, i32
  }
  func.func @transform_1(%arg0: i32) -> (i32, i32) {
    %c0_i32 = arith.constant 0 : i32
    %c0_i32_0 = arith.constant 0 : i32
    return %arg0, %c0_i32 : i32, i32
  }
  func.func @transform_2(%arg0: i32) -> (i32, i32) {
    %c0_i32 = arith.constant 0 : i32
    %c0_i32_0 = arith.constant 0 : i32
    return %arg0, %c0_i32 : i32, i32
  }
  func.func @transform_3(%arg0: i32) -> (i32, i32) {
    %c0_i32 = arith.constant 0 : i32
    %c0_i32_0 = arith.constant 0 : i32
    return %arg0, %c0_i32 : i32, i32
  }
  func.func @transform_4(%arg0: i32) -> (i32, i32) {
    %c0_i32 = arith.constant 0 : i32
    %c0_i32_0 = arith.constant 0 : i32
    return %arg0, %c0_i32 : i32, i32
  }
  func.func @transform_5(%arg0: i32) -> (i32, i32) {
    %c0_i32 = arith.constant 0 : i32
    %c0_i32_0 = arith.constant 0 : i32
    return %arg0, %c0_i32 : i32, i32
  }
  func.func @transform_6(%arg0: i32) -> (i32, i32) {
    %c0_i32 = arith.constant 0 : i32
    %c0_i32_0 = arith.constant 0 : i32
    return %arg0, %c0_i32 : i32, i32
  }
  func.func @transform_7(%arg0: i32) -> (i32, i32) {
    %c0_i32 = arith.constant 0 : i32
    %c0_i32_0 = arith.constant 0 : i32
    return %arg0, %c0_i32 : i32, i32
  }
  func.func @transform_8(%arg0: i32) -> (i32, i32) {
    %c0_i32 = arith.constant 0 : i32
    %c0_i32_0 = arith.constant 0 : i32
    %c0_i32_1 = arith.constant 0 : i32
    return %c0_i32, %c0_i32_0 : i32, i32
  }
  func.func @transform_9(%arg0: i32) -> (i32, i32) {
    %c0_i32 = arith.constant 0 : i32
    %c0_i32_0 = arith.constant 0 : i32
    %c0_i32_1 = arith.constant 0 : i32
    return %c0_i32, %c0_i32_0 : i32, i32
  }
  func.func @transform_10(%arg0: i32) -> (i32, i32) {
    %c0_i32 = arith.constant 0 : i32
    %c0_i32_0 = arith.constant 0 : i32
    %c0_i32_1 = arith.constant 0 : i32
    return %c0_i32, %c0_i32_0 : i32, i32
  }
  func.func @transform_11(%arg0: i32) -> (i32, i32) {
    %c0_i32 = arith.constant 0 : i32
    %c0_i32_0 = arith.constant 0 : i32
    %c0_i32_1 = arith.constant 0 : i32
    return %c0_i32, %c0_i32_0 : i32, i32
  }
  func.func @transform_12(%arg0: i32) -> (i32, i32) {
    %c0_i32 = arith.constant 0 : i32
    %c0_i32_0 = arith.constant 0 : i32
    %c0_i32_1 = arith.constant 0 : i32
    return %c0_i32, %c0_i32_0 : i32, i32
  }
  func.func @transform_13(%arg0: i32) -> (i32, i32) {
    %c0_i32 = arith.constant 0 : i32
    %c0_i32_0 = arith.constant 0 : i32
    %c0_i32_1 = arith.constant 0 : i32
    return %c0_i32, %c0_i32_0 : i32, i32
  }
  func.func @transform_14(%arg0: i32) -> (i32, i32) {
    %c0_i32 = arith.constant 0 : i32
    %c0_i32_0 = arith.constant 0 : i32
    %c0_i32_1 = arith.constant 0 : i32
    return %c0_i32, %c0_i32_0 : i32, i32
  }
  func.func @transform_15(%arg0: i32) -> (i32, i32) {
    %c0_i32 = arith.constant 0 : i32
    %c0_i32_0 = arith.constant 0 : i32
    %c0_i32_1 = arith.constant 0 : i32
    return %c0_i32, %c0_i32_0 : i32, i32
  }
  func.func @transform_16(%arg0: i32) -> (i32, i32) {
    %c0_i32 = arith.constant 0 : i32
    %c0_i32_0 = arith.constant 0 : i32
    %c0_i32_1 = arith.constant 0 : i32
    return %c0_i32, %c0_i32_0 : i32, i32
  }
  func.func @transform_17(%arg0: i32) -> (i32, i32) {
    %c0_i32 = arith.constant 0 : i32
    %c0_i32_0 = arith.constant 0 : i32
    %c0_i32_1 = arith.constant 0 : i32
    return %c0_i32, %c0_i32_0 : i32, i32
  }
  func.func @transform_18(%arg0: i32) -> (i32, i32) {
    %c0_i32 = arith.constant 0 : i32
    %c0_i32_0 = arith.constant 0 : i32
    return %arg0, %c0_i32 : i32, i32
  }
}

</mosaic_0001>

<bundles_post_ra>
// kernel: cnn_forward.1
= control target key start
LH: loop header
LB: loop body
LE: loop exit
PB: predicated region body
PF: predicated region fallthrough
CT: control target
= control target key end

     0   :  { %vm505_vm0 = vcmask 261120   ;;  %s6565_s27 = smov 32   ;;  %s6566_s28 = smov 96   ;;  %vm522_vm1 = vcmask 523264   ;;  %vm539_vm2 = vcmask 785408   ;;  %vm2150_vm3 = vcmask 1046528   ;;  %s11506_s1 = inlined_call_operand.vmem [shape: f32[128,32], index: 1, kind: input, shape index: {}]   ;;  %s11507_s2 = inlined_call_operand.vmem [shape: f32[128,32], index: 2, kind: input, shape index: {}]   ;;  %s11508_s3 = inlined_call_operand.vmem [shape: f32[128,32], index: 3, kind: input, shape index: {}]   ;;  %s11509_s4 = inlined_call_operand.vmem [shape: f32[128,32], index: 4, kind: input, shape index: {}]   ;;  %s11510_s8 = inlined_call_operand.vmem [shape: f32[160,256], index: 8, kind: input, shape index: {}]   ;;  %s11511_s5 = inlined_call_operand.vmem [shape: f32[128,32], index: 5, kind: input, shape index: {}]   ;;  %s11512_s6 = inlined_call_operand.vmem [shape: f32[128,32], index: 6, kind: input, shape index: {}]   ;;  %s11513_s0 = inlined_call_operand.vmem [shape: f32[128,32], index: 0, kind: input, shape index: {}]   ;;  %s11514_s7 = inlined_call_operand.vmem [shape: f32[128,32], index: 7, kind: input, shape index: {}]   ;;  %s11515_s10 = inlined_call_operand.vmem [shape: f32[336,224], index: 10, kind: input, shape index: {}]   ;;  %s11516_s9 = inlined_call_operand.vmem [shape: f32[1,112], index: 9, kind: input, shape index: {}]   ;;  %s11517_s12 = inlined_call_operand.vmem [shape: f32[576,640], index: 12, kind: input, shape index: {}]   ;;  %s11518_s11 = inlined_call_operand.vmem [shape: f32[1,96], index: 11, kind: input, shape index: {}]   ;;  %s11519_s14 = inlined_call_operand.vmem [shape: f32[640,128], index: 14, kind: input, shape index: {}]   ;;  %s11520_s13 = inlined_call_operand.vmem [shape: f32[1,640], index: 13, kind: input, shape index: {}]   ;;  %s11521_s16 = inlined_call_operand.vmem [shape: f32[128,128], index: 16, kind: input, shape index: {}]   ;;  %s11522_s15 = inlined_call_operand.vmem [shape: f32[1,128], index: 15, kind: input, shape index: {}]   ;;  %s11523_s17 = inlined_call_operand.vmem [shape: f32[1,128], index: 17, kind: input, shape index: {}]   ;;  %s11524_s18 = inlined_call_operand.vmem [shape: f32[16,128], index: 18, kind: output, shape index: {}]  }
   0x1   :  { %11613 = sst [smem:[#allocation38_spill]] %s11506_s1  ;;  %v6680_v4 = vld [vmem:[%s11509_s4] sm:$0xff]  ;;  %v6705_v11 = vld [vmem:[%s11509_s4 + $0x8] sm:$0xff]  ;;  %s6567_s22 = smov 64   ;;  %v6730_v19 = vld [vmem:[%s11509_s4 + $0x10] sm:$0xff]  ;;  %vm2492_vm4 = vcmask 654336  }
   0x2   :  { %11614 = sst [smem:[#allocation39_spill]] %s11507_s2  ;;  %5460 = vmatprep.mubr.msk.f32.mxu0 %vm505_vm0, %v6680_v4  ;;  %v6752_v25 = vld [vmem:[%s11509_s4 + $0x18] sm:$0xff]  ;;  %v6770_v29 = vld [vmem:[%s11510_s8 + $0xf0] sm:$0xff]  ;;  %v6783_v32 = vld [vmem:[%s11510_s8 + $0xe8] sm:$0xff]  ;;  %s6569_s25 = smov 112   ;;  %vm2330_vm5 = vcmask 916480  }
   0x3   :  { %11615 = sst [smem:[#allocation40_spill]] %s11508_s3  ;;  %v6757_v26 = vld [vmem:[%s11510_s8 + $0xf8] sm:$0xff]  ;;  %v6788_v33 = vld [vmem:[%s11510_s8 + $0xe0] sm:$0xff]  ;;  %v6808_v37 = vld [vmem:[%s11510_s8 + $0xd0] sm:$0xff]  ;;  %vm3851_vm6 = vcmask 1040384   ;;  %vm3857_vm7 = vcmask 1041408  }
   0x4   :  { %s11616_s29 = sld [smem:[#allocation38_spill]]  ;;  %604 = vmatprep.subr.mxu0 %v6757_v26  ;;  %1005 = vmatprep.subr.mxu1 %v6757_v26  ;;  %v6800_v35 = vld [vmem:[%s11510_s8 + $0xd8] sm:$0xff]  ;;  %v6815_v39 = vld [vmem:[%s11509_s4 + $0x20] sm:$0xff]  ;;  %v6821_v40 = vld [vmem:[%s11510_s8 + $0xc8] sm:$0xff]  ;;  %vm3863_vm8 = vcmask 1042432   ;;  %vm3869_vm9 = vcmask 1043456  }
   0x5   :  { %s11617_s19 = sld [smem:[#allocation39_spill]]  ;;  %605 = vmatpush1.msra.mxu0 %v6770_v29  ;;  %1006 = vmatpush1.msra.mxu1 %v6770_v29  ;;  %v6838_v43 = vld [vmem:[%s11510_s8 + $0xc0] sm:$0xff]  ;;  %v6848_v45 = vld [vmem:[%s11510_s8 + $0xb8] sm:$0xff]  ;;  %v6859_v48 = vld [vmem:[%s11510_s8 + $0xb0] sm:$0xff]  ;;  %vm3875_vm10 = vcmask 1044480   ;;  %vm3881_vm11 = vcmask 1045504  }
   0x6   :  { %s11618_s21 = sld [smem:[#allocation40_spill]]  ;;  %606 = vmatprep.subr.mxu0 %v6783_v32  ;;  %1007 = vmatprep.subr.mxu1 %v6783_v32  ;;  %v6864_v49 = vld [vmem:[%s11509_s4 + $0x28] sm:$0xff]  ;;  %v6881_v52 = vld [vmem:[%s11510_s8 + $0xa0] sm:$0xff]  ;;  %v6899_v56 = vld [vmem:[%s11510_s8 + $0x98] sm:$0xff] }
   0x7   :  { %607 = vmatpush1.msra.mxu0 %v6788_v33  ;;  %1008 = vmatpush1.msra.mxu1 %v6788_v33  ;;  %v6873_v50 = vld [vmem:[%s11510_s8 + $0xa8] sm:$0xff]  ;;  %v6911_v58 = vld [vmem:[%s11510_s8 + $0x90] sm:$0xff]  ;;  %v6932_v63 = vld [vmem:[%s11510_s8 + $0x80] sm:$0xff] }
   0x8   :  { %608 = vmatprep.subr.mxu0 %v6800_v35  ;;  %1009 = vmatprep.subr.mxu1 %v6800_v35  ;;  %v6919_v60 = vld [vmem:[%s11510_s8 + $0x88] sm:$0xff]  ;;  %v6926_v62 = vld [vmem:[%s11509_s4 + $0x30] sm:$0xff] }
   0x9   :  { %609 = vmatpush1.msra.mxu0 %v6808_v37  ;;  %1010 = vmatpush1.msra.mxu1 %v6808_v37 }
   0xa   :  { %v6668_v0 = vld [vmem:[%s11616_s29] sm:$0xff]  ;;  %v6685_v5 = vld [vmem:[%s11616_s29 + $0x8] sm:$0xff]  ;;  %v6715_v14 = vld [vmem:[%s11616_s29 + $0x10] sm:$0xff]  ;;  %610 = vmatprep.subr.mxu0 %v6821_v40  ;;  %1011 = vmatprep.subr.mxu1 %v6821_v40 }
   0xb   :  { %v217_v1 = vld [vmem:[%s11617_s19] sm:$0xff]  ;;  %v218_v6 = vld [vmem:[%s11617_s19 + $0x8] sm:$0xff]  ;;  %v219_v15 = vld [vmem:[%s11617_s19 + $0x10] sm:$0xff]  ;;  %611 = vmatpush1.msra.mxu0 %v6838_v43  ;;  %1012 = vmatpush1.msra.mxu1 %v6838_v43 }
   0xc   :  { %v233_v2 = vld [vmem:[%s11618_s21] sm:$0xff]  ;;  %v5858_v3 = vpack.i.bf16 %v217_v1, %v6668_v0  ;;  %v5873_v9 = vpack.i.bf16 %v218_v6, %v6685_v5  ;;  %v234_v10 = vld [vmem:[%s11618_s21 + $0x8] sm:$0xff]  ;;  %v235_v16 = vld [vmem:[%s11618_s21 + $0x10] sm:$0xff]  ;;  %v5888_v17 = vpack.i.bf16 %v219_v15, %v6715_v14  ;;  %612 = vmatprep.subr.mxu0 %v6848_v45  ;;  %1013 = vmatprep.subr.mxu1 %v6848_v45 }
   0xd   :  { %v6691_v7 = vpack.i.bf16 %v6680_v4, %v233_v2  ;;  %v5863_v8 = vpack.i.bf16 %v233_v2, %v217_v1  ;;  %v5878_v12 = vpack.i.bf16 %v234_v10, %v218_v6  ;;  %v6710_v13 = vpack.i.bf16 %v6705_v11, %v234_v10  ;;  %v6735_v20 = vld [vmem:[%s11616_s29 + $0x18] sm:$0xff]  ;;  %v6764_v28 = vld [vmem:[%s11616_s29 + $0x20] sm:$0xff]  ;;  %v6826_v41 = vld [vmem:[%s11616_s29 + $0x28] sm:$0xff]  ;;  %613 = vmatpush1.msra.mxu0 %v6859_v48 }
   0xe   :  { %5859 = vrot.lane.b32.xlu0 %v5858_v3, %s6565_s27  ;;  %v5893_v18 = vpack.i.bf16 %v235_v16, %v219_v15  ;;  %v220_v21 = vld [vmem:[%s11617_s19 + $0x18] sm:$0xff]  ;;  %v6742_v22 = vpack.i.bf16 %v6730_v19, %v235_v16  ;;  %v221_v31 = vld [vmem:[%s11617_s19 + $0x20] sm:$0xff]  ;;  %v222_v42 = vld [vmem:[%s11617_s19 + $0x28] sm:$0xff]  ;;  %1014 = vmatpush1.msra.mxu1 %v6859_v48 }
   0xf   :  { %5869 = vrot.lane.b32.xlu1 %v6691_v7, %s6566_s28  ;;  %v5903_v23 = vpack.i.bf16 %v220_v21, %v6735_v20  ;;  %v236_v24 = vld [vmem:[%s11618_s21 + $0x18] sm:$0xff]  ;;  %v237_v34 = vld [vmem:[%s11618_s21 + $0x20] sm:$0xff]  ;;  %v5918_v36 = vpack.i.bf16 %v221_v31, %v6764_v28  ;;  %v5933_v46 = vpack.i.bf16 %v222_v42, %v6826_v41  ;;  %v238_v47 = vld [vmem:[%s11618_s21 + $0x28] sm:$0xff]  ;;  %614 = vmatprep.subr.mxu0 %v6873_v50 }
  0x10   :  { %v5908_v27 = vpack.i.bf16 %v236_v24, %v220_v21  ;;  %v6774_v30 = vpack.i.bf16 %v6752_v25, %v236_v24  ;;  %v5923_v38 = vpack.i.bf16 %v237_v34, %v221_v31  ;;  %v6842_v44 = vpack.i.bf16 %v6815_v39, %v237_v34  ;;  %v6890_v54 = vld [vmem:[%s11616_s29 + $0x30] sm:$0xff]  ;;  %1015 = vmatprep.subr.mxu1 %v6873_v50  ;;  %v6937_v1 = vld [vmem:[%s11616_s29 + $0x38] sm:$0xff]  ;;  %v6984_v16 = vld [vmem:[%s11510_s8 + $0x60] sm:$0xff] }
  0x11   :  { %v5938_v51 = vpack.i.bf16 %v238_v47, %v222_v42  ;;  %v6885_v53 = vpack.i.bf16 %v6864_v49, %v238_v47  ;;  %v223_v55 = vld [vmem:[%s11617_s19 + $0x30] sm:$0xff]  ;;  %615 = vmatpush1.msra.mxu0 %v6881_v52  ;;  %1016 = vmatpush1.msra.mxu1 %v6881_v52  ;;  %v224_v2 = vld [vmem:[%s11617_s19 + $0x38] sm:$0xff]  ;;  %11622 = vst [vmem:[#allocation5_spill] sm:$0xff] %v6984_v16  ;;  %v225_v24 = vld [vmem:[%s11617_s19 + $0x40] sm:$0xff] }
  0x12   :  { %5864 = vrot.lane.b32.xlu0 %v5863_v8, %s6567_s22  ;;  %v239_v57 = vld [vmem:[%s11618_s21 + $0x30] sm:$0xff]  ;;  %v5948_v59 = vpack.i.bf16 %v223_v55, %v6890_v54  ;;  %616 = vmatprep.subr.mxu0 %v6899_v56  ;;  %v6949_v3 = vld [vmem:[%s11510_s8 + $0x78] sm:$0xff]  ;;  %v241_v31 = vld [vmem:[%s11618_s21 + $0x40] sm:$0xff] }
  0x13   :  { %5874 = vrot.lane.b32.xlu1 %v5873_v9, %s6565_s27  ;;  %v5953_v61 = vpack.i.bf16 %v239_v57, %v223_v55  ;;  %1017 = vmatprep.subr.mxu1 %v6899_v56  ;;  %11619 = vst [vmem:[#allocation2_spill] sm:$0xff] %v6949_v3  ;;  %v6953_v6 = vpack.i.bf16 %v6926_v62, %v239_v57  ;;  %v6959_v8 = vld [vmem:[%s11510_s8 + $0x70] sm:$0xff]  ;;  %v240_v10 = vld [vmem:[%s11618_s21 + $0x38] sm:$0xff]  ;;  %v7022_v34 = vld [vmem:[%s11510_s8 + $0x48] sm:$0xff] }
  0x14   :  { %617 = vmatpush1.msra.mxu0 %v6911_v58  ;;  %1018 = vmatpush1.msra.mxu1 %v6911_v58  ;;  %11620 = vst [vmem:[#allocation3_spill] sm:$0xff] %v6959_v8  ;;  %v5963_v9 = vpack.i.bf16 %v224_v2, %v6937_v1  ;;  %v6975_v15 = vld [vmem:[%s11509_s4 + $0x38] sm:$0xff]  ;;  %11626 = vst [vmem:[#allocation9_spill] sm:$0xff] %v7022_v34  ;;  %v5983_v42 = vpack.i.bf16 %v241_v31, %v225_v24  ;;  %v226_v55 = vld [vmem:[%s11617_s19 + $0x48] sm:$0xff] }
  0x15   :  { %618 = vmatprep.subr.mxu0 %v6919_v60  ;;  %1019 = vmatprep.subr.mxu1 %v6919_v60  ;;  %v6996_v21 = vpack.i.bf16 %v6975_v15, %v240_v10  ;;  %v66_v47 = vld [vmem:[%s11510_s8 + $0x38] sm:$0xff]  ;;  %v65_v57 = vld [vmem:[%s11510_s8 + $0x30] sm:$0xff] }
  0x16   :  { %5879 = vrot.lane.b32.xlu0 %v5878_v12, %s6567_s22  ;;  %619 = vmatpush1.msra.mxu0 %v6932_v63  ;;  %v6970_v12 = vld [vmem:[%s11510_s8 + $0x68] sm:$0xff] }
  0x17   :  { %5884 = vrot.lane.b32.xlu1 %v6710_v13, %s6566_s28  ;;  %1020 = vmatpush1.msra.mxu1 %v6932_v63  ;;  %11621 = vst [vmem:[#allocation4_spill] sm:$0xff] %v6970_v12 }
  0x18   :  { %620 = vmatprep.subr.mxu0 %v6949_v3  ;;  %1021 = vmatprep.subr.mxu1 %v6949_v3  ;;  %v7341_v3 = vld [vmem:[%s11511_s5 + $0x28] sm:$0xff] }
  0x19   :  { %621 = vmatpush1.msra.mxu0 %v6959_v8  ;;  %1022 = vmatpush1.msra.mxu1 %v6959_v8 }
  0x1a   :  { %5889 = vrot.lane.b32.xlu0 %v5888_v17, %s6565_s27  ;;  %v5968_v17 = vpack.i.bf16 %v240_v10, %v224_v2  ;;  %622 = vmatprep.subr.mxu0 %v6970_v12  ;;  %v63_v10 = vld [vmem:[%s11510_s8 + $0x20] sm:$0xff] }
  0x1b   :  { %5894 = vrot.lane.b32.xlu1 %v5893_v18, %s6567_s22  ;;  %v6992_v18 = vld [vmem:[%s11510_s8 + $0x58] sm:$0xff]  ;;  %1023 = vmatprep.subr.mxu1 %v6970_v12 }
  0x1c   :  { %11623 = vst [vmem:[#allocation6_spill] sm:$0xff] %v6992_v18  ;;  %623 = vmatpush1.msra.mxu0 %v6984_v16  ;;  %1024 = vmatpush1.msra.mxu1 %v6984_v16  ;;  %v232_v16 = vld [vmem:[%s11617_s19 + $0x78] sm:$0xff] }
  0x1d   :  { %624 = vmatprep.subr.mxu0 %v6992_v18  ;;  %1025 = vmatprep.subr.mxu1 %v6992_v18  ;;  %v7182_v18 = vld [vmem:[%s11509_s4 + $0x60] sm:$0xff] }
  0x1e   :  { %5899 = vrot.lane.b32.xlu0 %v6742_v22, %s6566_s28  ;;  %11631 = vst [vmem:[#allocation14_spill] sm:$0xff] %v7182_v18 }
  0x1f   :  { %5904 = vrot.lane.b32.xlu1 %v5903_v23, %s6565_s27  ;;  %v7001_v23 = vld [vmem:[%s11616_s29 + $0x40] sm:$0xff] }
  0x20   :  { %11624 = vst [vmem:[#allocation7_spill] sm:$0xff] %v7001_v23 }
  0x22   :  { %5909 = vrot.lane.b32.xlu0 %v5908_v27, %s6567_s22  ;;  %v7010_v27 = vld [vmem:[%s11510_s8 + $0x50] sm:$0xff] }
  0x23   :  { %5914 = vrot.lane.b32.xlu1 %v6774_v30, %s6566_s28  ;;  %11625 = vst [vmem:[#allocation8_spill] sm:$0xff] %v7010_v27  ;;  %625 = vmatpush1.msra.mxu0 %v7010_v27 }
  0x24   :  { %1026 = vmatpush1.msra.mxu1 %v7010_v27  ;;  %626 = vmatprep.subr.mxu0 %v7022_v34 }
  0x25   :  { %1027 = vmatprep.subr.mxu1 %v7022_v34  ;;  %v228_v34 = vld [vmem:[%s11617_s19 + $0x58] sm:$0xff] }
  0x26   :  { %5919 = vrot.lane.b32.xlu0 %v5918_v36, %s6565_s27  ;;  %v5978_v36 = vpack.i.bf16 %v225_v24, %v7001_v23  ;;  %v62_v24 = vld [vmem:[%s11510_s8 + $0x18] sm:$0xff] }
  0x27   :  { %5924 = vrot.lane.b32.xlu1 %v5923_v38, %s6567_s22  ;;  %v67_v38 = vld [vmem:[%s11510_s8 + $0x40] sm:$0xff] }
  0x28   :  { %627 = vmatpush1.msra.mxu0 %v67_v38  ;;  %1028 = vmatpush1.msra.mxu1 %v67_v38 }
  0x29   :  { %628 = vmatprep.subr.mxu0 %v66_v47  ;;  %1029 = vmatprep.subr.mxu1 %v66_v47  ;;  %v227_v47 = vld [vmem:[%s11617_s19 + $0x50] sm:$0xff] }
  0x2a   :  { %5929 = vrot.lane.b32.xlu0 %v6842_v44, %s6566_s28  ;;  %629 = vmatpush1.msra.mxu0 %v65_v57 }
  0x2b   :  { %5934 = vrot.lane.b32.xlu1 %v5933_v46, %s6565_s27  ;;  %v7035_v46 = vld [vmem:[%s11509_s4 + $0x40] sm:$0xff]  ;;  %1030 = vmatpush1.msra.mxu1 %v65_v57  ;;  %v243_v57 = vld [vmem:[%s11618_s21 + $0x50] sm:$0xff] }
  0x2e   :  { %5939 = vrot.lane.b32.xlu0 %v5938_v51, %s6567_s22  ;;  %v7044_v51 = vld [vmem:[%s11616_s29 + $0x48] sm:$0xff] }
  0x2f   :  { %5944 = vrot.lane.b32.xlu1 %v6885_v53, %s6566_s28  ;;  %11627 = vst [vmem:[#allocation10_spill] sm:$0xff] %v7044_v51  ;;  %v5993_v2 = vpack.i.bf16 %v226_v55, %v7044_v51  ;;  %v7210_v51 = vld [vmem:[%s11509_s4 + $0x68] sm:$0xff] }
  0x30   :  { %11634 = vst [vmem:[#allocation17_spill] sm:$0xff] %v7210_v51 }
  0x32   :  { %5949 = vrot.lane.b32.xlu0 %v5948_v59, %s6565_s27  ;;  %v7056_v59 = vpack.i.bf16 %v7035_v46, %v241_v31 }
  0x33   :  { %5954 = vrot.lane.b32.xlu1 %v5953_v61, %s6567_s22  ;;  %v64_v61 = vld [vmem:[%s11510_s8 + $0x28] sm:$0xff] }
  0x34   :  { %630 = vmatprep.subr.mxu0 %v64_v61  ;;  %1031 = vmatprep.subr.mxu1 %v64_v61  ;;  %v59_v61 = vld [vmem:[%s11510_s8] sm:$0xff] }
  0x35   :  { %631 = vmatpush1.msra.mxu0 %v63_v10  ;;  %1032 = vmatpush1.msra.mxu1 %v63_v10  ;;  %v6013_v10 = vpack.i.bf16 %v243_v57, %v227_v47 }
  0x36   :  { %5959 = vrot.lane.b32.xlu0 %v6953_v6, %s6566_s28  ;;  %632 = vmatprep.subr.mxu0 %v62_v24 }
  0x37   :  { %5964 = vrot.lane.b32.xlu1 %v5963_v9, %s6565_s27  ;;  %v242_v9 = vld [vmem:[%s11618_s21 + $0x48] sm:$0xff]  ;;  %1033 = vmatprep.subr.mxu1 %v62_v24  ;;  %v7113_v24 = vld [vmem:[%s11509_s4 + $0x50] sm:$0xff] }
  0x38   :  { %v5998_v31 = vpack.i.bf16 %v242_v9, %v226_v55  ;;  %v60_v55 = vld [vmem:[%s11510_s8 + $0x8] sm:$0xff] }
  0x3a   :  { %5969 = vrot.lane.b32.xlu0 %v5968_v17, %s6567_s22  ;;  %v7072_v17 = vld [vmem:[%s11509_s4 + $0x48] sm:$0xff] }
  0x3b   :  { %5974 = vrot.lane.b32.xlu1 %v6996_v21, %s6566_s28  ;;  %v7084_v38 = vpack.i.bf16 %v7072_v17, %v242_v9  ;;  %v98_v9 = vld [vmem:[%s11510_s8 + $0x138] sm:$0xff] }
  0x3e   :  { %5979 = vrot.lane.b32.xlu0 %v5978_v36, %s6565_s27  ;;  %v61_v36 = vld [vmem:[%s11510_s8 + $0x10] sm:$0xff] }
  0x3f   :  { %5984 = vrot.lane.b32.xlu1 %v5983_v42, %s6567_s22  ;;  %v7089_v42 = vld [vmem:[%s11616_s29 + $0x50] sm:$0xff]  ;;  %633 = vmatpush1.msra.mxu0 %v61_v36 }
  0x40   :  { %11628 = vst [vmem:[#allocation11_spill] sm:$0xff] %v7089_v42  ;;  %1034 = vmatpush1.msra.mxu1 %v61_v36  ;;  %634 = vmatprep.subr.mxu0 %v60_v55  ;;  %v7121_v36 = vld [vmem:[%s11616_s29 + $0x58] sm:$0xff] }
  0x41   :  { %1035 = vmatprep.subr.mxu1 %v60_v55  ;;  %11629 = vst [vmem:[#allocation12_spill] sm:$0xff] %v7121_v36  ;;  %635 = vmatpush1.msra.mxu0 %v59_v61  ;;  %v7131_v55 = vpack.i.bf16 %v7113_v24, %v243_v57  ;;  %v7147_v57 = vld [vmem:[%s11509_s4 + $0x58] sm:$0xff] }
  0x42   :  { %5989 = vrot.lane.b32.xlu0 %v7056_v59, %s6566_s28  ;;  %1036 = vmatpush1.msra.mxu1 %v59_v61  ;;  %v6023_v61 = vpack.i.bf16 %v228_v34, %v7121_v36  ;;  %v92_v36 = vld [vmem:[%s11510_s8 + $0x108] sm:$0xff] }
  0x43   :  { %5994 = vrot.lane.b32.xlu1 %v5993_v2, %s6565_s27  ;;  %v6008_v2 = vpack.i.bf16 %v227_v47, %v7089_v42  ;;  %660 = vmatprep.subr.mxu0 %v98_v9  ;;  %v96_v47 = vld [vmem:[%s11510_s8 + $0x128] sm:$0xff]  ;;  %v95_v42 = vld [vmem:[%s11510_s8 + $0x120] sm:$0xff] }
  0x44   :  { %1061 = vmatprep.subr.mxu1 %v98_v9  ;;  %v244_v9 = vld [vmem:[%s11618_s21 + $0x58] sm:$0xff] }
  0x45   :  { %v7159_v27 = vpack.i.bf16 %v7147_v57, %v244_v9 }
  0x46   :  { %5999 = vrot.lane.b32.xlu0 %v5998_v31, %s6567_s22  ;;  %v97_v31 = vld [vmem:[%s11510_s8 + $0x130] sm:$0xff] }
  0x47   :  { %6004 = vrot.lane.b32.xlu1 %v7084_v38, %s6566_s28  ;;  %661 = vmatpush2.msra.mxu0 %v97_v31 }
  0x48   :  { %1062 = vmatpush2.msra.mxu1 %v97_v31  ;;  %662 = vmatprep.subr.mxu0 %v96_v47  ;;  %v6028_v31 = vpack.i.bf16 %v244_v9, %v228_v34  ;;  %v91_v34 = vld [vmem:[%s11510_s8 + $0x100] sm:$0xff] }
  0x49   :  { %1063 = vmatprep.subr.mxu1 %v96_v47  ;;  %663 = vmatpush2.msra.mxu0 %v95_v42  ;;  %v229_v47 = vld [vmem:[%s11617_s19 + $0x60] sm:$0xff] }
  0x4a   :  { %6009 = vrot.lane.b32.xlu0 %v6008_v2, %s6565_s27  ;;  %v94_v2 = vld [vmem:[%s11510_s8 + $0x118] sm:$0xff]  ;;  %1064 = vmatpush2.msra.mxu1 %v95_v42  ;;  %v7164_v42 = vld [vmem:[%s11616_s29 + $0x60] sm:$0xff] }
  0x4b   :  { %6014 = vrot.lane.b32.xlu1 %v6013_v10, %s6567_s22  ;;  %v93_v10 = vld [vmem:[%s11510_s8 + $0x110] sm:$0xff]  ;;  %664 = vmatprep.subr.mxu0 %v94_v2  ;;  %11630 = vst [vmem:[#allocation13_spill] sm:$0xff] %v7164_v42  ;;  %v6038_v9 = vpack.i.bf16 %v229_v47, %v7164_v42  ;;  %v246_v42 = vld [vmem:[%s11618_s21 + $0x68] sm:$0xff] }
  0x4c   :  { %1065 = vmatprep.subr.mxu1 %v94_v2  ;;  %665 = vmatpush2.msra.mxu0 %v93_v10 }
  0x4d   :  { %1066 = vmatpush2.msra.mxu1 %v93_v10  ;;  %666 = vmatprep.subr.mxu0 %v92_v36  ;;  %v265_v10 = vld [vmem:[%s11511_s5] sm:$0xff] }
  0x4e   :  { %6019 = vrot.lane.b32.xlu0 %v7131_v55, %s6566_s28  ;;  %1067 = vmatprep.subr.mxu1 %v92_v36  ;;  %v7190_v36 = vld [vmem:[%s11616_s29 + $0x68] sm:$0xff] }
  0x4f   :  { %6024 = vrot.lane.b32.xlu1 %v6023_v61, %s6565_s27  ;;  %v245_v61 = vld [vmem:[%s11618_s21 + $0x60] sm:$0xff]  ;;  %667 = vmatpush2.msra.mxu0 %v91_v34  ;;  %11632 = vst [vmem:[#allocation15_spill] sm:$0xff] %v7190_v36 }
  0x50   :  { %v6043_v2 = vpack.i.bf16 %v245_v61, %v229_v47  ;;  %1068 = vmatpush2.msra.mxu1 %v91_v34  ;;  %5476 = vmatprep.mubr.msk.f32.mxu1 %vm505_vm0, %v265_v10  ;;  %v7200_v47 = vpack.i.bf16 %v7182_v18, %v245_v61  ;;  %v7216_v61 = vpack.i.bf16 %v7210_v51, %v246_v42  ;;  %v216_v51 = vld [vmem:[%s11616_s29 + $0x78] sm:$0xff] }
  0x51   :  { %1406 = vmatprep.subr.mxu0 %v6757_v26  ;;  %1807 = vmatprep.subr.mxu1 %v6757_v26 }
  0x52   :  { %6029 = vrot.lane.b32.xlu0 %v6028_v31, %s6567_s22  ;;  %v230_v31 = vld [vmem:[%s11617_s19 + $0x68] sm:$0xff]  ;;  %11633 = vst [vmem:[#allocation16_spill] sm:$0xff] %v7200_v47  ;;  %11635 = vst [vmem:[#allocation18_spill] sm:$0xff] %v7216_v61 }
  0x53   :  { %6034 = vrot.lane.b32.xlu1 %v7159_v27, %s6566_s28  ;;  %v6053_v34 = vpack.i.bf16 %v230_v31, %v7190_v36  ;;  %v6058_v26 = vpack.i.bf16 %v246_v42, %v230_v31  ;;  %v247_v36 = vld [vmem:[%s11618_s21 + $0x70] sm:$0xff] }
  0x56   :  { %6039 = vrot.lane.b32.xlu0 %v6038_v9, %s6565_s27  ;;  %v7221_v9 = vld [vmem:[%s11616_s29 + $0x70] sm:$0xff] }
  0x57   :  { %6044 = vrot.lane.b32.xlu1 %v6043_v2, %s6567_s22  ;;  %11636 = vst [vmem:[#allocation19_spill] sm:$0xff] %v7221_v9  ;;  %v231_v2 = vld [vmem:[%s11617_s19 + $0x70] sm:$0xff] }
  0x58   :  { %v6068_v31 = vpack.i.bf16 %v231_v2, %v7221_v9  ;;  %v6073_v42 = vpack.i.bf16 %v247_v36, %v231_v2  ;;  %v6083_v2 = vpack.i.bf16 %v232_v16, %v216_v51  ;;  %v248_v9 = vld [vmem:[%s11618_s21 + $0x78] sm:$0xff]  ;;  %v6103_v51 = vpack.i.bf16 %v265_v10, %v6680_v4 }
  0x5a   :  { %6049 = vrot.lane.b32.xlu0 %v7200_v47, %s6566_s28  ;;  %v6088_v47 = vpack.i.bf16 %v248_v9, %v232_v16 }
  0x5b   :  { %6054 = vrot.lane.b32.xlu1 %v6053_v34, %s6565_s27  ;;  %v7236_v34 = vld [vmem:[%s11509_s4 + $0x70] sm:$0xff] }
  0x5c   :  { %11637 = vst [vmem:[#allocation20_spill] sm:$0xff] %v7236_v34 }
  0x5e   :  { %6059 = vrot.lane.b32.xlu0 %v6058_v26, %s6567_s22  ;;  %v7246_v26 = vpack.i.bf16 %v7236_v34, %v247_v36 }
  0x5f   :  { %6064 = vrot.lane.b32.xlu1 %v7216_v61, %s6566_s28  ;;  %v7255_v61 = vld [vmem:[%s11509_s4 + $0x78] sm:$0xff] }
  0x60   :  { %11638 = vst [vmem:[#allocation21_spill] sm:$0xff] %v7246_v26  ;;  %11639 = vst [vmem:[#allocation22_spill] sm:$0xff] %v7255_v61  ;;  %v7261_v36 = vpack.i.bf16 %v7255_v61, %v248_v9  ;;  %v7276_v9 = vld [vmem:[%s11511_s5 + $0x8] sm:$0xff] }
  0x61   :  { %v6118_v4 = vpack.i.bf16 %v7276_v9, %v6705_v11 }
  0x62   :  { %6069 = vrot.lane.b32.xlu0 %v6068_v31, %s6565_s27  ;;  %11640 = vst [vmem:[#allocation23_spill] sm:$0xff] %v7261_v36  ;;  %v281_v31 = vld [vmem:[%s11512_s6] sm:$0xff] }
  0x63   :  { %6074 = vrot.lane.b32.xlu1 %v6073_v42, %s6567_s22  ;;  %v6108_v16 = vpack.i.bf16 %v281_v31, %v265_v10  ;;  %v7290_v10 = vld [vmem:[%s11511_s5 + $0x10] sm:$0xff]  ;;  %v284_v31 = vld [vmem:[%s11512_s6 + $0x18] sm:$0xff] }
  0x64   :  { %v6133_v42 = vpack.i.bf16 %v7290_v10, %v6730_v19 }
  0x66   :  { %6079 = vrot.lane.b32.xlu0 %v7246_v26, %s6566_s28 }
  0x67   :  { %6084 = vrot.lane.b32.xlu1 %v6083_v2, %s6565_s27  ;;  %v283_v2 = vld [vmem:[%s11512_s6 + $0x10] sm:$0xff] }
  0x6a   :  { %6089 = vrot.lane.b32.xlu0 %v6088_v47, %s6567_s22  ;;  %v282_v47 = vld [vmem:[%s11512_s6 + $0x8] sm:$0xff] }
  0x6b   :  { %6094 = vrot.lane.b32.xlu1 %v7261_v36, %s6566_s28 }
  0x6e   :  { %6099 = vrot.lane.b32.xlu0 %v6691_v7, %s6565_s27  ;;  %v6123_v7 = vpack.i.bf16 %v282_v47, %v7276_v9 }
  0x6f   :  { %6104 = vrot.lane.b32.xlu1 %v6103_v51, %s6567_s22  ;;  %v7306_v51 = vld [vmem:[%s11511_s5 + $0x18] sm:$0xff] }
  0x72   :  { %6109 = vrot.lane.b32.xlu0 %v6108_v16, %s6566_s28  ;;  %v6148_v16 = vpack.i.bf16 %v7306_v51, %v6752_v25 }
  0x73   :  { %6114 = vrot.lane.b32.xlu1 %v6710_v13, %s6565_s27  ;;  %v6138_v13 = vpack.i.bf16 %v283_v2, %v7290_v10 }
  0x76   :  { %6119 = vrot.lane.b32.xlu0 %v6118_v4, %s6567_s22  ;;  %v7320_v4 = vld [vmem:[%s11511_s5 + $0x20] sm:$0xff] }
  0x77   :  { %6124 = vrot.lane.b32.xlu1 %v6123_v7, %s6566_s28 }
  0x7a   :  { %6129 = vrot.lane.b32.xlu0 %v6742_v22, %s6565_s27  ;;  %v6153_v22 = vpack.i.bf16 %v284_v31, %v7306_v51  ;;  %v185_v31 = vld [vmem:[%s11513_s0] sm:$0xff] }
  0x7b   :  { %6134 = vrot.lane.b32.xlu1 %v6133_v42, %s6567_s22  ;;  %v285_v42 = vld [vmem:[%s11512_s6 + $0x20] sm:$0xff] }
  0x7c   :  { %v6168_v61 = vpack.i.bf16 %v285_v42, %v7320_v4 }
  0x7e   :  { %6139 = vrot.lane.b32.xlu0 %v6138_v13, %s6566_s28 }
  0x7f   :  { %6144 = vrot.lane.b32.xlu1 %v6774_v30, %s6565_s27  ;;  %v6163_v30 = vpack.i.bf16 %v7320_v4, %v6815_v39 }
  0x80   :  { %v5860_v47 = vpop.permute.xlu0 %5859 }
  0x81   :  { %v5870_v7 = vpop.permute.xlu1 %5869  ;;  %v5862_v2 = vunpack.i.h.bf16 %v5860_v47  ;;  %v5861_v13 = vunpack.i.l.bf16 %v5860_v47 }
  0x82   :  { %6149 = vrot.lane.b32.xlu0 %v6148_v16, %s6567_s22  ;;  %v5872_v26 = vunpack.i.h.bf16 %v5870_v7  ;;  %v5871_v34 = vunpack.i.l.bf16 %v5870_v7 }
  0x83   :  { %6154 = vrot.lane.b32.xlu1 %v6153_v22, %s6566_s28  ;;  %v506_v22 = vsel %vm505_vm0, %v185_v31, %v5861_v13  ;;  %v909_v18 = vsel %vm505_vm0, %v6668_v0, %v5862_v2  ;;  %v286_v2 = vld [vmem:[%s11512_s6 + $0x28] sm:$0xff] }
  0x84   :  { %v5865_v36 = vpop.permute.xlu0 %5864 }
  0x85   :  { %v5867_v12 = vunpack.i.h.bf16 %v5865_v36  ;;  %v5866_v47 = vunpack.i.l.bf16 %v5865_v36  ;;  %v5875_v8 = vpop.permute.xlu1 %5874 }
  0x86   :  { %v5877_v16 = vunpack.i.h.bf16 %v5875_v8  ;;  %v5876_v23 = vunpack.i.l.bf16 %v5875_v8  ;;  %6159 = vrot.lane.b32.xlu0 %v6842_v44, %s6565_s27  ;;  %v186_v44 = vld [vmem:[%s11513_s0 + $0x8] sm:$0xff] }
  0x87   :  { %6164 = vrot.lane.b32.xlu1 %v6163_v30, %s6567_s22  ;;  %v523_v36 = vsel %vm522_vm1, %v506_v22, %v5866_v47  ;;  %v925_v7 = vsel %vm522_vm1, %v909_v18, %v5867_v12  ;;  %v6178_v12 = vpack.i.bf16 %v7341_v3, %v6864_v49 }
  0x88   :  { %v5880_v8 = vpop.permute.xlu0 %5879  ;;  %v540_v42 = vsel %vm539_vm2, %v523_v36, %v5871_v34  ;;  %v941_v0 = vsel %vm539_vm2, %v925_v7, %v5872_v26  ;;  %v507_v34 = vsel %vm505_vm0, %v186_v44, %v5876_v23  ;;  %v910_v26 = vsel %vm505_vm0, %v6685_v5, %v5877_v16  ;;  %v7374_v5 = vld [vmem:[%s11511_s5 + $0x30] sm:$0xff] }
  0x89   :  { %v5882_v13 = vunpack.i.h.bf16 %v5880_v8  ;;  %v5881_v31 = vunpack.i.l.bf16 %v5880_v8  ;;  %v5885_v30 = vpop.permute.xlu1 %5884  ;;  %669 = vmatmul.mubr.f32.vlgmr.msra.gmra.mxu0 %v540_v42  ;;  %1070 = vmatmul.mubr.f32.vlgmr.msra.gmra.mxu1 %v941_v0  ;;  %v287_v0 = vld [vmem:[%s11512_s6 + $0x30] sm:$0xff] }
  0x8a   :  { %v5887_v18 = vunpack.i.h.bf16 %v5885_v30  ;;  %v5886_v47 = vunpack.i.l.bf16 %v5885_v30  ;;  %6169 = vrot.lane.b32.xlu0 %v6168_v61, %s6566_s28  ;;  %5461 = vmatprep.mubr.msk.f32.mxu0 %vm505_vm0, %v6705_v11  ;;  %v6183_v61 = vpack.i.bf16 %v286_v2, %v7341_v3 }
  0x8b   :  { %6174 = vrot.lane.b32.xlu1 %v6885_v53, %s6565_s27  ;;  %5477 = vmatprep.mubr.msk.f32.mxu1 %vm505_vm0, %v7276_v9  ;;  %v524_v22 = vsel %vm522_vm1, %v507_v34, %v5881_v31  ;;  %v926_v36 = vsel %vm522_vm1, %v910_v26, %v5882_v13  ;;  %v187_v53 = vld [vmem:[%s11513_s0 + $0x10] sm:$0xff] }
  0x8c   :  { %v5890_v7 = vpop.permute.xlu0 %5889  ;;  %v541_v11 = vsel %vm539_vm2, %v524_v22, %v5886_v47  ;;  %v942_v23 = vsel %vm539_vm2, %v926_v36, %v5887_v18  ;;  %1407 = vmatpush1.msra.mxu0 %v6770_v29  ;;  %1808 = vmatpush1.msra.mxu1 %v6770_v29  ;;  %v6193_v29 = vpack.i.bf16 %v7374_v5, %v6926_v62  ;;  %v288_v36 = vld [vmem:[%s11512_s6 + $0x38] sm:$0xff] }
  0x8d   :  { %v5892_v9 = vunpack.i.h.bf16 %v5890_v7  ;;  %v5891_v16 = vunpack.i.l.bf16 %v5890_v7  ;;  %v5895_v44 = vpop.permute.xlu1 %5894  ;;  %675 = vmatmul.mubr.f32.gmra.mxu0 %v541_v11  ;;  %1076 = vmatmul.mubr.f32.gmra.mxu1 %v942_v23  ;;  %v6198_v18 = vpack.i.bf16 %v287_v0, %v7374_v5 }
  0x8e   :  { %v5897_v8 = vunpack.i.h.bf16 %v5895_v44  ;;  %v5896_v42 = vunpack.i.l.bf16 %v5895_v44  ;;  %6179 = vrot.lane.b32.xlu0 %v6178_v12, %s6567_s22  ;;  %5462 = vmatprep.mubr.msk.f32.mxu0 %vm505_vm0, %v6730_v19 }
  0x8f   :  { %6184 = vrot.lane.b32.xlu1 %v6183_v61, %s6566_s28  ;;  %5478 = vmatprep.mubr.msk.f32.mxu1 %vm505_vm0, %v7290_v10  ;;  %v508_v2 = vsel %vm505_vm0, %v187_v53, %v5891_v16  ;;  %v911_v13 = vsel %vm505_vm0, %v6715_v14, %v5892_v9 }
  0x90   :  { %v5900_v31 = vpop.permute.xlu0 %5899  ;;  %1408 = vmatprep.subr.mxu0 %v6783_v32  ;;  %1809 = vmatprep.subr.mxu1 %v6783_v32  ;;  %v525_v14 = vsel %vm522_vm1, %v508_v2, %v5896_v42  ;;  %v927_v34 = vsel %vm522_vm1, %v911_v13, %v5897_v8  ;;  %v7407_v32 = vld [vmem:[%s11511_s5 + $0x38] sm:$0xff] }
  0x91   :  { %v5902_v19 = vunpack.i.h.bf16 %v5900_v31  ;;  %v5901_v30 = vunpack.i.l.bf16 %v5900_v31  ;;  %v5905_v12 = vpop.permute.xlu1 %5904  ;;  %1409 = vmatpush1.msra.mxu0 %v6788_v33  ;;  %1810 = vmatpush1.msra.mxu1 %v6788_v33  ;;  %v6208_v23 = vpack.i.bf16 %v7407_v32, %v6975_v15  ;;  %v6213_v44 = vpack.i.bf16 %v288_v36, %v7407_v32 }
  0x92   :  { %v5907_v10 = vunpack.i.h.bf16 %v5905_v12  ;;  %v5906_v47 = vunpack.i.l.bf16 %v5905_v12  ;;  %6189 = vrot.lane.b32.xlu0 %v6953_v6, %s6565_s27  ;;  %1410 = vmatprep.subr.mxu0 %v6800_v35  ;;  %v188_v6 = vld [vmem:[%s11513_s0 + $0x18] sm:$0xff] }
  0x93   :  { %6194 = vrot.lane.b32.xlu1 %v6193_v29, %s6567_s22  ;;  %v542_v33 = vsel %vm539_vm2, %v525_v14, %v5901_v30  ;;  %v943_v26 = vsel %vm539_vm2, %v927_v34, %v5902_v19  ;;  %1811 = vmatprep.subr.mxu1 %v6800_v35  ;;  %v289_v19 = vld [vmem:[%s11512_s6 + $0x40] sm:$0xff] }
  0x94   :  { %v5910_v22 = vpop.permute.xlu0 %5909  ;;  %681 = vmatmul.mubr.f32.gmra.mxu0 %v542_v33  ;;  %1082 = vmatmul.mubr.f32.gmra.mxu1 %v943_v26  ;;  %v509_v9 = vsel %vm505_vm0, %v188_v6, %v5906_v47  ;;  %v912_v16 = vsel %vm505_vm0, %v6735_v20, %v5907_v10  ;;  %v7442_v20 = vld [vmem:[%s11511_s5 + $0x40] sm:$0xff] }
  0x95   :  { %v5912_v61 = vunpack.i.h.bf16 %v5910_v22  ;;  %v5911_v7 = vunpack.i.l.bf16 %v5910_v22  ;;  %v5915_v11 = vpop.permute.xlu1 %5914  ;;  %5463 = vmatprep.mubr.msk.f32.mxu0 %vm505_vm0, %v6752_v25  ;;  %5479 = vmatprep.mubr.msk.f32.mxu1 %vm505_vm0, %v7306_v51  ;;  %v6228_v14 = vpack.i.bf16 %v289_v19, %v7442_v20  ;;  %v290_v22 = vld [vmem:[%s11512_s6 + $0x48] sm:$0xff] }
  0x96   :  { %v5917_v35 = vunpack.i.h.bf16 %v5915_v11  ;;  %v5916_v53 = vunpack.i.l.bf16 %v5915_v11  ;;  %6199 = vrot.lane.b32.xlu0 %v6198_v18, %s6566_s28  ;;  %1411 = vmatpush1.msra.mxu0 %v6808_v37 }
  0x97   :  { %6204 = vrot.lane.b32.xlu1 %v6996_v21, %s6565_s27  ;;  %v526_v25 = vsel %vm522_vm1, %v509_v9, %v5911_v7  ;;  %v928_v51 = vsel %vm522_vm1, %v912_v16, %v5912_v61  ;;  %1812 = vmatpush1.msra.mxu1 %v6808_v37  ;;  %v189_v21 = vld [vmem:[%s11513_s0 + $0x20] sm:$0xff] }
  0x98   :  { %v5920_v8 = vpop.permute.xlu0 %5919  ;;  %v543_v42 = vsel %vm539_vm2, %v526_v25, %v5916_v53  ;;  %v944_v0 = vsel %vm539_vm2, %v928_v51, %v5917_v35  ;;  %1412 = vmatprep.subr.mxu0 %v6821_v40  ;;  %1813 = vmatprep.subr.mxu1 %v6821_v40  ;;  %v6223_v40 = vpack.i.bf16 %v7442_v20, %v7035_v46 }
  0x99   :  { %v5922_v29 = vunpack.i.h.bf16 %v5920_v8  ;;  %v5921_v37 = vunpack.i.l.bf16 %v5920_v8  ;;  %v5925_v2 = vpop.permute.xlu1 %5924  ;;  %687 = vmatmul.mubr.f32.gmra.mxu0 %v543_v42  ;;  %1088 = vmatmul.mubr.f32.gmra.mxu1 %v944_v0 }
  0x9a   :  { %v5927_v13 = vunpack.i.h.bf16 %v5925_v2  ;;  %v5926_v31 = vunpack.i.l.bf16 %v5925_v2  ;;  %6209 = vrot.lane.b32.xlu0 %v6208_v23, %s6567_s22  ;;  %5464 = vmatprep.mubr.msk.f32.mxu0 %vm505_vm0, %v6815_v39 }
  0x9b   :  { %6214 = vrot.lane.b32.xlu1 %v6213_v44, %s6566_s28  ;;  %5480 = vmatprep.mubr.msk.f32.mxu1 %vm505_vm0, %v7320_v4  ;;  %v510_v30 = vsel %vm505_vm0, %v189_v21, %v5921_v37  ;;  %v913_v12 = vsel %vm505_vm0, %v6764_v28, %v5922_v29  ;;  %v7523_v21 = vld [vmem:[%s11512_s6 + $0x50] sm:$0xff] }
  0x9c   :  { %v5930_v18 = vpop.permute.xlu0 %5929  ;;  %1413 = vmatpush1.msra.mxu0 %v6838_v43  ;;  %1814 = vmatpush1.msra.mxu1 %v6838_v43  ;;  %v527_v28 = vsel %vm522_vm1, %v510_v30, %v5926_v31  ;;  %v929_v33 = vsel %vm522_vm1, %v913_v12, %v5927_v13  ;;  %v7475_v43 = vld [vmem:[%s11511_s5 + $0x48] sm:$0xff] }
  0x9d   :  { %v5932_v39 = vunpack.i.h.bf16 %v5930_v18  ;;  %v5931_v10 = vunpack.i.l.bf16 %v5930_v18  ;;  %v5935_v47 = vpop.permute.xlu1 %5934  ;;  %1414 = vmatprep.subr.mxu0 %v6848_v45  ;;  %1815 = vmatprep.subr.mxu1 %v6848_v45  ;;  %v6238_v11 = vpack.i.bf16 %v7475_v43, %v7072_v17  ;;  %v6243_v9 = vpack.i.bf16 %v290_v22, %v7475_v43  ;;  %v11641_v22 = vld [vmem:[#allocation2_spill] sm:$0xff] }
  0x9e   :  { %v5937_v4 = vunpack.i.h.bf16 %v5935_v47  ;;  %v5936_v34 = vunpack.i.l.bf16 %v5935_v47  ;;  %6219 = vrot.lane.b32.xlu0 %v7056_v59, %s6565_s27  ;;  %1415 = vmatpush1.msra.mxu0 %v6859_v48  ;;  %v190_v59 = vld [vmem:[%s11513_s0 + $0x28] sm:$0xff] }
  0x9f   :  { %6224 = vrot.lane.b32.xlu1 %v6223_v40, %s6567_s22  ;;  %v544_v45 = vsel %vm539_vm2, %v527_v28, %v5931_v10  ;;  %v945_v26 = vsel %vm539_vm2, %v929_v33, %v5932_v39  ;;  %1816 = vmatpush1.msra.mxu1 %v6859_v48  ;;  %v7559_v39 = vld [vmem:[%s11512_s6 + $0x58] sm:$0xff] }
  0xa0   :  { %v5940_v6 = vpop.permute.xlu0 %5939  ;;  %693 = vmatmul.mubr.f32.gmra.mxu0 %v544_v45  ;;  %1094 = vmatmul.mubr.f32.gmra.mxu1 %v945_v26  ;;  %v511_v35 = vsel %vm505_vm0, %v190_v59, %v5936_v34  ;;  %v914_v53 = vsel %vm505_vm0, %v6826_v41, %v5937_v4  ;;  %v7510_v41 = vld [vmem:[%s11511_s5 + $0x50] sm:$0xff] }
  0xa1   :  { %v5942_v36 = vunpack.i.h.bf16 %v5940_v6  ;;  %v5941_v61 = vunpack.i.l.bf16 %v5940_v6  ;;  %v5945_v7 = vpop.permute.xlu1 %5944  ;;  %5465 = vmatprep.mubr.msk.f32.mxu0 %vm505_vm0, %v6864_v49  ;;  %5481 = vmatprep.mubr.msk.f32.mxu1 %vm505_vm0, %v7341_v3  ;;  %v6258_v19 = vpack.i.bf16 %v7523_v21, %v7510_v41 }
  0xa2   :  { %v5947_v48 = vunpack.i.h.bf16 %v5945_v7  ;;  %v5946_v23 = vunpack.i.l.bf16 %v5945_v7  ;;  %6229 = vrot.lane.b32.xlu0 %v6228_v14, %s6566_s28  ;;  %1416 = vmatprep.subr.mxu0 %v6873_v50 }
  0xa3   :  { %6234 = vrot.lane.b32.xlu1 %v7084_v38, %s6565_s27  ;;  %v528_v49 = vsel %vm522_vm1, %v511_v35, %v5941_v61  ;;  %v930_v3 = vsel %vm522_vm1, %v914_v53, %v5942_v36  ;;  %1817 = vmatprep.subr.mxu1 %v6873_v50  ;;  %v191_v38 = vld [vmem:[%s11513_s0 + $0x30] sm:$0xff] }
  0xa4   :  { %v5950_v16 = vpop.permute.xlu0 %5949  ;;  %v545_v25 = vsel %vm539_vm2, %v528_v49, %v5946_v23  ;;  %v946_v51 = vsel %vm539_vm2, %v930_v3, %v5947_v48  ;;  %1417 = vmatpush1.msra.mxu0 %v6881_v52  ;;  %1818 = vmatpush1.msra.mxu1 %v6881_v52  ;;  %v6253_v52 = vpack.i.bf16 %v7510_v41, %v7113_v24  ;;  %v7597_v48 = vld [vmem:[%s11512_s6 + $0x60] sm:$0xff]  ;;  %v11643_v49 = vld [vmem:[#allocation7_spill] sm:$0xff] }
  0xa5   :  { %v5952_v44 = vunpack.i.h.bf16 %v5950_v16  ;;  %v5951_v50 = vunpack.i.l.bf16 %v5950_v16  ;;  %v5955_v8 = vpop.permute.xlu1 %5954  ;;  %699 = vmatmul.mubr.f32.gmra.mxu0 %v545_v25  ;;  %1100 = vmatmul.mubr.f32.gmra.mxu1 %v946_v51  ;;  %v11642_v23 = vld [vmem:[#allocation14_spill] sm:$0xff] }
  0xa6   :  { %v5957_v42 = vunpack.i.h.bf16 %v5955_v8  ;;  %v5956_v0 = vunpack.i.l.bf16 %v5955_v8  ;;  %6239 = vrot.lane.b32.xlu0 %v6238_v11, %s6567_s22  ;;  %5466 = vmatprep.mubr.msk.f32.mxu0 %vm505_vm0, %v6926_v62  ;;  %v11646_v8 = vld [vmem:[#allocation16_spill] sm:$0xff] }
  0xa7   :  { %6244 = vrot.lane.b32.xlu1 %v6243_v9, %s6566_s28  ;;  %5482 = vmatprep.mubr.msk.f32.mxu1 %vm505_vm0, %v7374_v5  ;;  %v512_v29 = vsel %vm505_vm0, %v191_v38, %v5951_v50  ;;  %v915_v37 = vsel %vm505_vm0, %v6890_v54, %v5952_v44  ;;  %v11645_v44 = vld [vmem:[#allocation4_spill] sm:$0xff] }
  0xa8   :  { %v5960_v2 = vpop.permute.xlu0 %5959  ;;  %1418 = vmatprep.subr.mxu0 %v6899_v56  ;;  %1819 = vmatprep.subr.mxu1 %v6899_v56  ;;  %v529_v54 = vsel %vm522_vm1, %v512_v29, %v5956_v0  ;;  %v931_v30 = vsel %vm522_vm1, %v915_v37, %v5957_v42  ;;  %v7546_v56 = vld [vmem:[%s11511_s5 + $0x58] sm:$0xff] }
  0xa9   :  { %v5962_v62 = vunpack.i.h.bf16 %v5960_v2  ;;  %v5961_v13 = vunpack.i.l.bf16 %v5960_v2  ;;  %v5965_v31 = vpop.permute.xlu1 %5964  ;;  %1419 = vmatpush1.msra.mxu0 %v6911_v58  ;;  %1820 = vmatpush1.msra.mxu1 %v6911_v58  ;;  %v6273_v45 = vpack.i.bf16 %v7559_v39, %v7546_v56  ;;  %v11647_v29 = vld [vmem:[#allocation5_spill] sm:$0xff] }
  0xaa   :  { %v5967_v5 = vunpack.i.h.bf16 %v5965_v31  ;;  %v5966_v40 = vunpack.i.l.bf16 %v5965_v31  ;;  %6249 = vrot.lane.b32.xlu0 %v7131_v55, %s6565_s27  ;;  %1420 = vmatprep.subr.mxu0 %v6919_v60  ;;  %v192_v55 = vld [vmem:[%s11513_s0 + $0x38] sm:$0xff]  ;;  %v7633_v31 = vld [vmem:[%s11512_s6 + $0x68] sm:$0xff] }
  0xab   :  { %6254 = vrot.lane.b32.xlu1 %v6253_v52, %s6567_s22  ;;  %v546_v58 = vsel %vm539_vm2, %v529_v54, %v5961_v13  ;;  %v947_v12 = vsel %vm539_vm2, %v931_v30, %v5962_v62  ;;  %1821 = vmatprep.subr.mxu1 %v6919_v60  ;;  %v6268_v60 = vpack.i.bf16 %v7546_v56, %v7147_v57  ;;  %v7620_v52 = vld [vmem:[%s11511_s5 + $0x68] sm:$0xff]  ;;  %v11648_v54 = vld [vmem:[#allocation17_spill] sm:$0xff] }
  0xac   :  { %v5970_v18 = vpop.permute.xlu0 %5969  ;;  %705 = vmatmul.mubr.f32.gmra.mxu0 %v546_v58  ;;  %1106 = vmatmul.mubr.f32.gmra.mxu1 %v947_v12  ;;  %v513_v28 = vsel %vm505_vm0, %v192_v55, %v5966_v40  ;;  %v916_v33 = vsel %vm505_vm0, %v6937_v1, %v5967_v5  ;;  %v7584_v1 = vld [vmem:[%s11511_s5 + $0x60] sm:$0xff]  ;;  %v194_v62 = vld [vmem:[%s11513_s0 + $0x48] sm:$0xff]  ;;  %v6298_v30 = vpack.i.bf16 %v7620_v52, %v11648_v54 }
  0xad   :  { %v5972_v10 = vunpack.i.h.bf16 %v5970_v18  ;;  %v5971_v47 = vunpack.i.l.bf16 %v5970_v18  ;;  %v5975_v14 = vpop.permute.xlu1 %5974  ;;  %5467 = vmatprep.mubr.msk.f32.mxu0 %vm505_vm0, %v6975_v15  ;;  %5483 = vmatprep.mubr.msk.f32.mxu1 %vm505_vm0, %v7407_v32  ;;  %v6283_v35 = vpack.i.bf16 %v7584_v1, %v11642_v23  ;;  %v6288_v38 = vpack.i.bf16 %v7597_v48, %v7584_v1  ;;  %v11649_v18 = vld [vmem:[#allocation10_spill] sm:$0xff] }
  0xae   :  { %v5977_v4 = vunpack.i.h.bf16 %v5975_v14  ;;  %v5976_v34 = vunpack.i.l.bf16 %v5975_v14  ;;  %6259 = vrot.lane.b32.xlu0 %v6258_v19, %s6566_s28  ;;  %1421 = vmatpush1.msra.mxu0 %v6932_v63  ;;  %v11651_v14 = vld [vmem:[#allocation18_spill] sm:$0xff] }
  0xaf   :  { %6264 = vrot.lane.b32.xlu1 %v7159_v27, %s6565_s27  ;;  %v530_v15 = vsel %vm522_vm1, %v513_v28, %v5971_v47  ;;  %v932_v32 = vsel %vm522_vm1, %v916_v33, %v5972_v10  ;;  %1822 = vmatpush1.msra.mxu1 %v6932_v63  ;;  %v193_v27 = vld [vmem:[%s11513_s0 + $0x40] sm:$0xff]  ;;  %v7658_v33 = vld [vmem:[%s11511_s5 + $0x70] sm:$0xff] }
  0xb0   :  { %v5980_v26 = vpop.permute.xlu0 %5979  ;;  %v547_v59 = vsel %vm539_vm2, %v530_v15, %v5976_v34  ;;  %v948_v6 = vsel %vm539_vm2, %v932_v32, %v5977_v4  ;;  %1422 = vmatprep.subr.mxu0 %v11641_v22  ;;  %1823 = vmatprep.subr.mxu1 %v11641_v22  ;;  %v11650_v47 = vld [vmem:[#allocation6_spill] sm:$0xff]  ;;  %v195_v15 = vld [vmem:[%s11513_s0 + $0x50] sm:$0xff] }
  0xb1   :  { %v5982_v36 = vunpack.i.h.bf16 %v5980_v26  ;;  %v5981_v63 = vunpack.i.l.bf16 %v5980_v26  ;;  %v5985_v61 = vpop.permute.xlu1 %5984  ;;  %711 = vmatmul.mubr.f32.gmra.mxu0 %v547_v59  ;;  %1112 = vmatmul.mubr.f32.gmra.mxu1 %v948_v6  ;;  %v11652_v32 = vld [vmem:[#allocation8_spill] sm:$0xff] }
  0xb2   :  { %v5987_v7 = vunpack.i.h.bf16 %v5985_v61  ;;  %v5986_v11 = vunpack.i.l.bf16 %v5985_v61  ;;  %6269 = vrot.lane.b32.xlu0 %v6268_v60, %s6567_s22  ;;  %5468 = vmatprep.mubr.msk.f32.mxu0 %vm505_vm0, %v7035_v46  ;;  %v11644_v46 = vld [vmem:[#allocation3_spill] sm:$0xff]  ;;  %v6303_v60 = vpack.i.bf16 %v7633_v31, %v7620_v52  ;;  %v7671_v22 = vld [vmem:[%s11512_s6 + $0x70] sm:$0xff] }
  0xb3   :  { %6274 = vrot.lane.b32.xlu1 %v6273_v45, %s6566_s28  ;;  %5484 = vmatprep.mubr.msk.f32.mxu1 %vm505_vm0, %v7442_v20  ;;  %v514_v53 = vsel %vm505_vm0, %v193_v27, %v5981_v63  ;;  %v917_v3 = vsel %vm505_vm0, %v11643_v49, %v5982_v36  ;;  %v11653_v36 = vld [vmem:[#allocation20_spill] sm:$0xff] }
  0xb4   :  { %v5990_v9 = vpop.permute.xlu0 %5989  ;;  %1423 = vmatpush1.msra.mxu0 %v11644_v46  ;;  %1824 = vmatpush1.msra.mxu1 %v11644_v46  ;;  %v531_v42 = vsel %vm522_vm1, %v514_v53, %v5986_v11  ;;  %v933_v0 = vsel %vm522_vm1, %v917_v3, %v5987_v7  ;;  %v6313_v63 = vpack.i.bf16 %v7658_v33, %v11653_v36  ;;  %v11654_v7 = vld [vmem:[#allocation11_spill] sm:$0xff] }
  0xb5   :  { %v5992_v16 = vunpack.i.h.bf16 %v5990_v9  ;;  %v5991_v25 = vunpack.i.l.bf16 %v5990_v9  ;;  %v5995_v51 = vpop.permute.xlu1 %5994  ;;  %1424 = vmatprep.subr.mxu0 %v11645_v44  ;;  %1825 = vmatprep.subr.mxu1 %v11645_v44  ;;  %v6466_v53 = vld [vmem:[%s11510_s8 + $0x48] sm:$0xff]  ;;  %v6318_v46 = vpack.i.bf16 %v7671_v22, %v7658_v33 }
  0xb6   :  { %v5997_v20 = vunpack.i.h.bf16 %v5995_v51  ;;  %v5996_v50 = vunpack.i.l.bf16 %v5995_v51  ;;  %6279 = vrot.lane.b32.xlu0 %v11646_v8, %s6565_s27  ;;  %1425 = vmatpush1.msra.mxu0 %v11647_v29  ;;  %v11656_v51 = vld [vmem:[#allocation21_spill] sm:$0xff] }
  0xb7   :  { %6284 = vrot.lane.b32.xlu1 %v6283_v35, %s6567_s22  ;;  %v548_v37 = vsel %vm539_vm2, %v531_v42, %v5991_v25  ;;  %v949_v2 = vsel %vm539_vm2, %v933_v0, %v5992_v16  ;;  %1826 = vmatpush1.msra.mxu1 %v11647_v29  ;;  %v196_v0 = vld [vmem:[%s11513_s0 + $0x58] sm:$0xff] }
  0xb8   :  { %v6000_v13 = vpop.permute.xlu0 %5999  ;;  %717 = vmatmul.mubr.f32.gmra.mxu0 %v548_v37  ;;  %1118 = vmatmul.mubr.f32.gmra.mxu1 %v949_v2  ;;  %v515_v55 = vsel %vm505_vm0, %v194_v62, %v5996_v50  ;;  %v918_v10 = vsel %vm505_vm0, %v11649_v18, %v5997_v20  ;;  %v7697_v20 = vld [vmem:[%s11511_s5 + $0x78] sm:$0xff]  ;;  %v6469_v18 = vld [vmem:[%s11510_s8 + $0x30] sm:$0xff] }
  0xb9   :  { %v6002_v19 = vunpack.i.h.bf16 %v6000_v13  ;;  %v6001_v5 = vunpack.i.l.bf16 %v6000_v13  ;;  %v6005_v40 = vpop.permute.xlu1 %6004  ;;  %5469 = vmatprep.mubr.msk.f32.mxu0 %vm505_vm0, %v7072_v17  ;;  %5485 = vmatprep.mubr.msk.f32.mxu1 %vm505_vm0, %v7475_v43  ;;  %v6468_v50 = vld [vmem:[%s11510_s8 + $0x38] sm:$0xff] }
  0xba   :  { %v6007_v58 = vunpack.i.h.bf16 %v6005_v40  ;;  %v6006_v12 = vunpack.i.l.bf16 %v6005_v40  ;;  %6289 = vrot.lane.b32.xlu0 %v6288_v38, %s6566_s28  ;;  %1426 = vmatprep.subr.mxu0 %v11650_v47  ;;  %v7711_v37 = vld [vmem:[%s11512_s6 + $0x78] sm:$0xff] }
  0xbb   :  { %6294 = vrot.lane.b32.xlu1 %v11651_v14, %s6565_s27  ;;  %v532_v17 = vsel %vm522_vm1, %v515_v55, %v6001_v5  ;;  %v934_v43 = vsel %vm522_vm1, %v918_v10, %v6002_v19  ;;  %1827 = vmatprep.subr.mxu1 %v11650_v47  ;;  %v11657_v19 = vld [vmem:[#allocation22_spill] sm:$0xff]  ;;  %v6333_v47 = vpack.i.bf16 %v7711_v37, %v7697_v20 }
  0xbc   :  { %v6010_v4 = vpop.permute.xlu0 %6009  ;;  %v549_v34 = vsel %vm539_vm2, %v532_v17, %v6006_v12  ;;  %v950_v28 = vsel %vm539_vm2, %v934_v43, %v6007_v58  ;;  %1427 = vmatpush1.msra.mxu0 %v11652_v32  ;;  %1828 = vmatpush1.msra.mxu1 %v11652_v32  ;;  %v6328_v5 = vpack.i.bf16 %v7697_v20, %v11657_v19  ;;  %v11658_v12 = vld [vmem:[#allocation12_spill] sm:$0xff] }
  0xbd   :  { %v6012_v45 = vunpack.i.h.bf16 %v6010_v4  ;;  %v6011_v26 = vunpack.i.l.bf16 %v6010_v4  ;;  %v6015_v59 = vpop.permute.xlu1 %6014  ;;  %723 = vmatmul.mubr.f32.gmra.mxu0 %v549_v34  ;;  %1124 = vmatmul.mubr.f32.gmra.mxu1 %v950_v28  ;;  %v6470_v4 = vld [vmem:[%s11510_s8 + $0x28] sm:$0xff] }
  0xbe   :  { %v6017_v6 = vunpack.i.h.bf16 %v6015_v59  ;;  %v6016_v27 = vunpack.i.l.bf16 %v6015_v59  ;;  %6299 = vrot.lane.b32.xlu0 %v6298_v30, %s6567_s22  ;;  %5470 = vmatprep.mubr.msk.f32.mxu0 %vm505_vm0, %v7113_v24  ;;  %v11655_v24 = vld [vmem:[#allocation9_spill] sm:$0xff] }
  0xbf   :  { %6304 = vrot.lane.b32.xlu1 %v6303_v60, %s6566_s28  ;;  %5486 = vmatprep.mubr.msk.f32.mxu1 %vm505_vm0, %v7510_v41  ;;  %v516_v61 = vsel %vm505_vm0, %v195_v15, %v6011_v26  ;;  %v919_v11 = vsel %vm505_vm0, %v11654_v7, %v6012_v45  ;;  %v6467_v41 = vld [vmem:[%s11510_s8 + $0x40] sm:$0xff]  ;;  %v11660_v59 = vld [vmem:[#allocation13_spill] sm:$0xff] }
  0xc0   :  { %v6020_v35 = vpop.permute.xlu0 %6019  ;;  %1428 = vmatprep.subr.mxu0 %v11655_v24  ;;  %1829 = vmatprep.subr.mxu1 %v6466_v53  ;;  %v533_v38 = vsel %vm522_vm1, %v516_v61, %v6016_v27  ;;  %v935_v44 = vsel %vm522_vm1, %v919_v11, %v6017_v6  ;;  %v197_v60 = vld [vmem:[%s11513_s0 + $0x60] sm:$0xff]  ;;  %v6472_v11 = vld [vmem:[%s11510_s8 + $0x18] sm:$0xff] }
  0xc1   :  { %v6022_v49 = vunpack.i.h.bf16 %v6020_v35  ;;  %v6021_v3 = vunpack.i.l.bf16 %v6020_v35  ;;  %v6025_v9 = vpop.permute.xlu1 %6024  ;;  %1429 = vmatpush1.msra.mxu0 %v6467_v41  ;;  %1830 = vmatpush1.msra.mxu1 %v6467_v41  ;;  %v6474_v41 = vld [vmem:[%s11510_s8 + $0x8] sm:$0xff] }
  0xc2   :  { %v6027_v16 = vunpack.i.h.bf16 %v6025_v9  ;;  %v6026_v25 = vunpack.i.l.bf16 %v6025_v9  ;;  %6309 = vrot.lane.b32.xlu0 %v11656_v51, %s6565_s27  ;;  %1430 = vmatprep.subr.mxu0 %v6468_v50 }
  0xc3   :  { %6314 = vrot.lane.b32.xlu1 %v6313_v63, %s6567_s22  ;;  %v550_v8 = vsel %vm539_vm2, %v533_v38, %v6021_v3  ;;  %v951_v42 = vsel %vm539_vm2, %v935_v44, %v6022_v49  ;;  %1831 = vmatprep.subr.mxu1 %v6468_v50  ;;  %v6471_v63 = vld [vmem:[%s11510_s8 + $0x20] sm:$0xff]  ;;  %v6473_v49 = vld [vmem:[%s11510_s8 + $0x10] sm:$0xff] }
  0xc4   :  { %v6030_v29 = vpop.permute.xlu0 %6029  ;;  %729 = vmatmul.mubr.f32.gmra.mxu0 %v550_v8  ;;  %1130 = vmatmul.mubr.f32.gmra.mxu1 %v951_v42  ;;  %v517_v58 = vsel %vm505_vm0, %v196_v0, %v6026_v25  ;;  %v920_v55 = vsel %vm505_vm0, %v11658_v12, %v6027_v16  ;;  %v11661_v42 = vld [vmem:[#allocation15_spill] sm:$0xff] }
  0xc5   :  { %v6032_v2 = vunpack.i.h.bf16 %v6030_v29  ;;  %v6031_v62 = vunpack.i.l.bf16 %v6030_v29  ;;  %v6035_v13 = vpop.permute.xlu1 %6034  ;;  %5471 = vmatprep.mubr.msk.f32.mxu0 %vm505_vm0, %v7147_v57  ;;  %5487 = vmatprep.mubr.msk.f32.mxu1 %vm505_vm0, %v7546_v56  ;;  %v11659_v57 = vld [vmem:[#allocation23_spill] sm:$0xff]  ;;  %v6475_v29 = vld [vmem:[%s11510_s8] sm:$0xff] }
  0xc6   :  { %v6037_v40 = vunpack.i.h.bf16 %v6035_v13  ;;  %v6036_v30 = vunpack.i.l.bf16 %v6035_v13  ;;  %6319 = vrot.lane.b32.xlu0 %v6318_v46, %s6566_s28  ;;  %1431 = vmatpush1.msra.mxu0 %v6469_v18  ;;  %v198_v46 = vld [vmem:[%s11513_s0 + $0x68] sm:$0xff] }
  0xc7   :  { %6324 = vrot.lane.b32.xlu1 %v11659_v57, %s6565_s27  ;;  %v534_v56 = vsel %vm522_vm1, %v517_v58, %v6031_v62  ;;  %v936_v10 = vsel %vm522_vm1, %v920_v55, %v6032_v2  ;;  %1832 = vmatpush1.msra.mxu1 %v6469_v18 }
  0xc8   :  { %v6040_v14 = vpop.permute.xlu0 %6039  ;;  %v551_v17 = vsel %vm539_vm2, %v534_v56, %v6036_v30  ;;  %v952_v43 = vsel %vm539_vm2, %v936_v10, %v6037_v40  ;;  %1432 = vmatprep.subr.mxu0 %v6470_v4  ;;  %1833 = vmatprep.subr.mxu1 %v6470_v4  ;;  %v6477_v40 = vld [vmem:[%s11510_s8 + $0x130] sm:$0xff]  ;;  %v11662_v56 = vld [vmem:[#allocation19_spill] sm:$0xff] }
  0xc9   :  { %v6042_v34 = vunpack.i.h.bf16 %v6040_v14  ;;  %v6041_v28 = vunpack.i.l.bf16 %v6040_v14  ;;  %v6045_v15 = vpop.permute.xlu1 %6044  ;;  %735 = vmatmul.mubr.f32.gmra.mxu0 %v551_v17  ;;  %1136 = vmatmul.mubr.f32.gmra.mxu1 %v952_v43  ;;  %v6479_v17 = vld [vmem:[%s11510_s8 + $0x120] sm:$0xff] }
  0xca   :  { %v6047_v32 = vunpack.i.h.bf16 %v6045_v15  ;;  %v6046_v45 = vunpack.i.l.bf16 %v6045_v15  ;;  %6329 = vrot.lane.b32.xlu0 %v6328_v5, %s6567_s22  ;;  %5472 = vmatprep.mubr.msk.f32.mxu0 %vm505_vm0, %v11642_v23  ;;  %v199_v5 = vld [vmem:[%s11513_s0 + $0x70] sm:$0xff] }
  0xcb   :  { %6334 = vrot.lane.b32.xlu1 %v6333_v47, %s6566_s28  ;;  %5488 = vmatprep.mubr.msk.f32.mxu1 %vm505_vm0, %v7584_v1  ;;  %v518_v26 = vsel %vm505_vm0, %v197_v60, %v6041_v28  ;;  %v921_v6 = vsel %vm505_vm0, %v11660_v59, %v6042_v34  ;;  %v6478_v47 = vld [vmem:[%s11510_s8 + $0x128] sm:$0xff]  ;;  %v6480_v60 = vld [vmem:[%s11510_s8 + $0x118] sm:$0xff] }
  0xcc   :  { %v6050_v27 = vpop.permute.xlu0 %6049  ;;  %1433 = vmatpush1.msra.mxu0 %v6471_v63  ;;  %1834 = vmatpush1.msra.mxu1 %v6471_v63  ;;  %v535_v24 = vsel %vm522_vm1, %v518_v26, %v6046_v45  ;;  %v937_v53 = vsel %vm522_vm1, %v921_v6, %v6047_v32  ;;  %v6481_v32 = vld [vmem:[%s11510_s8 + $0x110] sm:$0xff]  ;;  %v200_v59 = vld [vmem:[%s11513_s0 + $0x78] sm:$0xff]  ;;  %v6482_v6 = vld [vmem:[%s11510_s8 + $0x108] sm:$0xff] }
  0xcd   :  { %v6052_v61 = vunpack.i.h.bf16 %v6050_v27  ;;  %v6051_v7 = vunpack.i.l.bf16 %v6050_v27  ;;  %v6055_v23 = vpop.permute.xlu1 %6054  ;;  %1434 = vmatprep.subr.mxu0 %v6472_v11  ;;  %1835 = vmatprep.subr.mxu1 %v6472_v11 }
  0xce   :  { %v6057_v1 = vunpack.i.h.bf16 %v6055_v23  ;;  %v6056_v35 = vunpack.i.l.bf16 %v6055_v23  ;;  %1435 = vmatpush1.msra.mxu0 %v6473_v49  ;;  %1836 = vmatpush1.msra.mxu1 %v6473_v49  ;;  %v6483_v23 = vld [vmem:[%s11509_s4 + $0x78] sm:$0xff]  ;;  %v6485_v49 = vld [vmem:[%s11510_s8 + $0x100] sm:$0xff] }
  0xcf   :  { %v552_v3 = vsel %vm539_vm2, %v535_v24, %v6051_v7  ;;  %v953_v9 = vsel %vm539_vm2, %v937_v53, %v6052_v61  ;;  %1436 = vmatprep.subr.mxu0 %v6474_v41  ;;  %1837 = vmatprep.subr.mxu1 %v6474_v41  ;;  %v6484_v24 = vld [vmem:[%s11616_s29 + $0x78] sm:$0xff] }
  0xd0   :  { %v6060_v16 = vpop.permute.xlu0 %6059  ;;  %741 = vmatmul.mubr.f32.gmra.mxu0 %v552_v3  ;;  %1142 = vmatmul.mubr.f32.gmra.mxu1 %v953_v9  ;;  %v519_v8 = vsel %vm505_vm0, %v198_v46, %v6056_v35  ;;  %v922_v0 = vsel %vm505_vm0, %v11661_v42, %v6057_v1  ;;  %v297_v9 = vld [vmem:[%s11514_s7] sm:$0xff] }
  0xd1   :  { %v6062_v25 = vunpack.i.h.bf16 %v6060_v16  ;;  %v6061_v51 = vunpack.i.l.bf16 %v6060_v16  ;;  %v6065_v38 = vpop.permute.xlu1 %6064  ;;  %5473 = vmatprep.mubr.msk.f32.mxu0 %vm505_vm0, %v11648_v54  ;;  %5489 = vmatprep.mubr.msk.f32.mxu1 %vm505_vm0, %v7620_v52  ;;  %v6476_v52 = vld [vmem:[%s11510_s8 + $0x138] sm:$0xff]  ;;  %v6487_v42 = vld [vmem:[%s11618_s21] sm:$0xff] }
  0xd2   :  { %v6067_v44 = vunpack.i.h.bf16 %v6065_v38  ;;  %v6066_v50 = vunpack.i.l.bf16 %v6065_v38  ;;  %1437 = vmatpush1.msra.mxu0 %v6475_v29  ;;  %1838 = vmatpush1.msra.mxu1 %v6475_v29  ;;  %v6488_v29 = vld [vmem:[%s11617_s19] sm:$0xff] }
  0xd3   :  { %v536_v2 = vsel %vm522_vm1, %v519_v8, %v6061_v51  ;;  %v938_v54 = vsel %vm522_vm1, %v922_v0, %v6062_v25  ;;  %1462 = vmatprep.subr.mxu0 %v6476_v52  ;;  %1863 = vmatprep.subr.mxu1 %v6476_v52  ;;  %v6486_v8 = vld [vmem:[%s11512_s6] sm:$0xff] }
  0xd4   :  { %v6070_v62 = vpop.permute.xlu0 %6069  ;;  %v553_v13 = vsel %vm539_vm2, %v536_v2, %v6066_v50  ;;  %v954_v19 = vsel %vm539_vm2, %v938_v54, %v6067_v44  ;;  %1463 = vmatpush2.msra.mxu0 %v6477_v40  ;;  %1864 = vmatpush2.msra.mxu1 %v6477_v40 }
  0xd5   :  { %v6072_v30 = vunpack.i.h.bf16 %v6070_v62  ;;  %v6071_v58 = vunpack.i.l.bf16 %v6070_v62  ;;  %v6075_v12 = vpop.permute.xlu1 %6074  ;;  %747 = vmatmul.mubr.f32.gmra.mxu0 %v553_v13  ;;  %1148 = vmatmul.mubr.f32.gmra.mxu1 %v954_v19 }
  0xd6   :  { %v6077_v55 = vunpack.i.h.bf16 %v6075_v12  ;;  %v6076_v18 = vunpack.i.l.bf16 %v6075_v12  ;;  %5474 = vmatprep.mubr.msk.f32.mxu0 %vm505_vm0, %v11653_v36  ;;  %5490 = vmatprep.mubr.msk.f32.mxu1 %vm505_vm0, %v7658_v33 }
  0xd7   :  { %v520_v57 = vsel %vm505_vm0, %v199_v5, %v6071_v58  ;;  %v923_v10 = vsel %vm505_vm0, %v11662_v56, %v6072_v30  ;;  %1464 = vmatprep.subr.mxu0 %v6478_v47  ;;  %1865 = vmatprep.subr.mxu1 %v6478_v47  ;;  %v298_v58 = vld [vmem:[%s11514_s7 + $0x8] sm:$0xff] }
  0xd8   :  { %v6080_v14 = vpop.permute.xlu0 %6079  ;;  %1465 = vmatpush2.msra.mxu0 %v6479_v17  ;;  %1866 = vmatpush2.msra.mxu1 %v6479_v17  ;;  %v537_v28 = vsel %vm522_vm1, %v520_v57, %v6076_v18  ;;  %v939_v15 = vsel %vm522_vm1, %v923_v10, %v6077_v55  ;;  %v6489_v47 = vld [vmem:[%s11512_s6 + $0x8] sm:$0xff] }
  0xd9   :  { %v6082_v36 = vunpack.i.h.bf16 %v6080_v14  ;;  %v6081_v33 = vunpack.i.l.bf16 %v6080_v14  ;;  %v6085_v43 = vpop.permute.xlu1 %6084  ;;  %1466 = vmatprep.subr.mxu0 %v6480_v60  ;;  %1867 = vmatprep.subr.mxu1 %v6480_v60 }
  0xda   :  { %v6087_v4 = vunpack.i.h.bf16 %v6085_v43  ;;  %v6086_v34 = vunpack.i.l.bf16 %v6085_v43  ;;  %1467 = vmatpush2.msra.mxu0 %v6481_v32  ;;  %1868 = vmatpush2.msra.mxu1 %v6481_v32  ;;  %v6491_v43 = vld [vmem:[%s11618_s21 + $0x8] sm:$0xff] }
  0xdb   :  { %v554_v45 = vsel %vm539_vm2, %v537_v28, %v6081_v33  ;;  %v955_v26 = vsel %vm539_vm2, %v939_v15, %v6082_v36  ;;  %1468 = vmatprep.subr.mxu0 %v6482_v6  ;;  %1869 = vmatprep.subr.mxu1 %v6482_v6  ;;  %v6490_v36 = vld [vmem:[%s11617_s19 + $0x8] sm:$0xff]  ;;  %v299_v28 = vld [vmem:[%s11514_s7 + $0x10] sm:$0xff] }
  0xdc   :  { %v6090_v27 = vpop.permute.xlu0 %6089  ;;  %753 = vmatmul.mubr.f32.gmra.mxu0 %v554_v45  ;;  %1154 = vmatmul.mubr.f32.gmra.mxu1 %v955_v26  ;;  %v521_v35 = vsel %vm505_vm0, %v200_v59, %v6086_v34  ;;  %v924_v53 = vsel %vm505_vm0, %v6484_v24, %v6087_v4 }
  0xdd   :  { %v6092_v63 = vunpack.i.h.bf16 %v6090_v27  ;;  %v6091_v61 = vunpack.i.l.bf16 %v6090_v27  ;;  %v6095_v7 = vpop.permute.xlu1 %6094  ;;  %5475 = vmatprep.mubr.msk.f32.mxu0 %vm505_vm0, %v6483_v23  ;;  %5491 = vmatprep.mubr.msk.f32.mxu1 %vm505_vm0, %v7697_v20 }
  0xde   :  { %v6097_v11 = vunpack.i.h.bf16 %v6095_v7  ;;  %v6096_v1 = vunpack.i.l.bf16 %v6095_v7  ;;  %1469 = vmatpush2.msra.mxu0 %v6485_v49  ;;  %1870 = vmatpush2.msra.mxu1 %v6485_v49  ;;  %v6493_v7 = vld [vmem:[%s11617_s19 + $0x10] sm:$0xff] }
  0xdf   :  { %v538_v3 = vsel %vm522_vm1, %v521_v35, %v6091_v61  ;;  %v940_v20 = vsel %vm522_vm1, %v924_v53, %v6092_v63  ;;  %v6492_v61 = vld [vmem:[%s11512_s6 + $0x10] sm:$0xff] }
  0xe0   :  { %v6100_v46 = vpop.permute.xlu0 %6099  ;;  %v555_v41 = vsel %vm539_vm2, %v538_v3, %v6096_v1  ;;  %v956_v16 = vsel %vm539_vm2, %v940_v20, %v6097_v11  ;;  %v6494_v11 = vld [vmem:[%s11618_s21 + $0x10] sm:$0xff] }
  0xe1   :  { %v6102_v25 = vunpack.i.h.bf16 %v6100_v46  ;;  %v6101_v51 = vunpack.i.l.bf16 %v6100_v46  ;;  %v6105_v38 = vpop.permute.xlu1 %6104  ;;  %759 = vmatmul.mubr.f32.gmra.mxu0 %v555_v41  ;;  %1160 = vmatmul.mubr.f32.gmra.mxu1 %v956_v16  ;;  %v300_v41 = vld [vmem:[%s11514_s7 + $0x18] sm:$0xff] }
  0xe2   :  { %v6107_v44 = vunpack.i.h.bf16 %v6105_v38  ;;  %v6106_v50 = vunpack.i.l.bf16 %v6105_v38  ;;  %5492 = vmatprep.mubr.msk.f32.mxu0 %vm505_vm0, %v6486_v8  ;;  %5508 = vmatprep.mubr.msk.f32.mxu1 %vm505_vm0, %v297_v9  ;;  %v6495_v8 = vld [vmem:[%s11512_s6 + $0x18] sm:$0xff] }
  0xe3   :  { %v1711_v0 = vsel %vm505_vm0, %v6487_v42, %v6102_v25  ;;  %v1310_v2 = vsel %vm505_vm0, %v6488_v29, %v6101_v51  ;;  %v6496_v29 = vld [vmem:[%s11617_s19 + $0x18] sm:$0xff] }
  0xe4   :  { %v6110_v54 = vpop.permute.xlu0 %6109  ;;  %v1326_v40 = vsel %vm522_vm1, %v1310_v2, %v6106_v50  ;;  %v1727_v30 = vsel %vm522_vm1, %v1711_v0, %v6107_v44 }
  0xe5   :  { %v6112_v52 = vunpack.i.h.bf16 %v6110_v54  ;;  %v6111_v62 = vunpack.i.l.bf16 %v6110_v54  ;;  %v6115_v13 = vpop.permute.xlu1 %6114  ;;  %v6497_v54 = vld [vmem:[%s11618_s21 + $0x18] sm:$0xff] }
  0xe6   :  { %v6117_v19 = vunpack.i.h.bf16 %v6115_v13  ;;  %v6116_v5 = vunpack.i.l.bf16 %v6115_v13 }
  0xe7   :  { %v1342_v12 = vsel %vm539_vm2, %v1326_v40, %v6111_v62  ;;  %v1743_v55 = vsel %vm539_vm2, %v1727_v30, %v6112_v52 }
  0xe8   :  { %v6120_v18 = vpop.permute.xlu0 %6119  ;;  %1471 = vmatmul.mubr.f32.vlgmr.msra.gmra.mxu0 %v1342_v12  ;;  %1872 = vmatmul.mubr.f32.vlgmr.msra.gmra.mxu1 %v1743_v55  ;;  %v1311_v33 = vsel %vm505_vm0, %v6490_v36, %v6116_v5  ;;  %v1712_v60 = vsel %vm505_vm0, %v6491_v43, %v6117_v19  ;;  %v301_v19 = vld [vmem:[%s11514_s7 + $0x20] sm:$0xff] }
  0xe9   :  { %v6122_v57 = vunpack.i.h.bf16 %v6120_v18  ;;  %v6121_v56 = vunpack.i.l.bf16 %v6120_v18  ;;  %v6125_v10 = vpop.permute.xlu1 %6124  ;;  %5493 = vmatprep.mubr.msk.f32.mxu0 %vm505_vm0, %v6489_v47  ;;  %5509 = vmatprep.mubr.msk.f32.mxu1 %vm505_vm0, %v298_v58 }
  0xea   :  { %v6127_v14 = vunpack.i.h.bf16 %v6125_v10  ;;  %v6126_v17 = vunpack.i.l.bf16 %v6125_v10  ;;  %v6499_v10 = vld [vmem:[%s11617_s19 + $0x20] sm:$0xff] }
  0xeb   :  { %v1327_v4 = vsel %vm522_vm1, %v1311_v33, %v6121_v56  ;;  %v1728_v34 = vsel %vm522_vm1, %v1712_v60, %v6122_v57  ;;  %v6498_v56 = vld [vmem:[%s11512_s6 + $0x20] sm:$0xff] }
  0xec   :  { %v6130_v15 = vpop.permute.xlu0 %6129  ;;  %v1343_v32 = vsel %vm539_vm2, %v1327_v4, %v6126_v17  ;;  %v1744_v45 = vsel %vm539_vm2, %v1728_v34, %v6127_v14  ;;  %v6500_v14 = vld [vmem:[%s11618_s21 + $0x20] sm:$0xff] }
  0xed   :  { %v6132_v26 = vunpack.i.h.bf16 %v6130_v15  ;;  %v6131_v59 = vunpack.i.l.bf16 %v6130_v15  ;;  %v6135_v6 = vpop.permute.xlu1 %6134  ;;  %1477 = vmatmul.mubr.f32.gmra.mxu0 %v1343_v32  ;;  %1878 = vmatmul.mubr.f32.gmra.mxu1 %v1744_v45  ;;  %v302_v32 = vld [vmem:[%s11514_s7 + $0x28] sm:$0xff] }
  0xee   :  { %v6137_v27 = vunpack.i.h.bf16 %v6135_v6  ;;  %v6136_v63 = vunpack.i.l.bf16 %v6135_v6  ;;  %5494 = vmatprep.mubr.msk.f32.mxu0 %vm505_vm0, %v6492_v61  ;;  %5510 = vmatprep.mubr.msk.f32.mxu1 %vm505_vm0, %v299_v28  ;;  %v6501_v61 = vld [vmem:[%s11512_s6 + $0x28] sm:$0xff] }
  0xef   :  { %v1312_v23 = vsel %vm505_vm0, %v6493_v7, %v6131_v59  ;;  %v1713_v1 = vsel %vm505_vm0, %v6494_v11, %v6132_v26  ;;  %v6502_v11 = vld [vmem:[%s11617_s19 + $0x28] sm:$0xff] }
  0xf0   :  { %v6140_v35 = vpop.permute.xlu0 %6139  ;;  %v1328_v9 = vsel %vm522_vm1, %v1312_v23, %v6136_v63  ;;  %v1729_v46 = vsel %vm522_vm1, %v1713_v1, %v6137_v27 }
  0xf1   :  { %v6142_v24 = vunpack.i.h.bf16 %v6140_v35  ;;  %v6141_v53 = vunpack.i.l.bf16 %v6140_v35  ;;  %v6145_v49 = vpop.permute.xlu1 %6144  ;;  %v6503_v35 = vld [vmem:[%s11618_s21 + $0x28] sm:$0xff] }
  0xf2   :  { %v6147_v3 = vunpack.i.h.bf16 %v6145_v49  ;;  %v6146_v20 = vunpack.i.l.bf16 %v6145_v49 }
  0xf3   :  { %v1344_v16 = vsel %vm539_vm2, %v1328_v9, %v6141_v53  ;;  %v1745_v25 = vsel %vm539_vm2, %v1729_v46, %v6142_v24 }
  0xf4   :  { %v6150_v51 = vpop.permute.xlu0 %6149  ;;  %1483 = vmatmul.mubr.f32.gmra.mxu0 %v1344_v16  ;;  %1884 = vmatmul.mubr.f32.gmra.mxu1 %v1745_v25  ;;  %v1313_v2 = vsel %vm505_vm0, %v6496_v29, %v6146_v20  ;;  %v1714_v52 = vsel %vm505_vm0, %v6497_v54, %v6147_v3  ;;  %v303_v3 = vld [vmem:[%s11514_s7 + $0x30] sm:$0xff] }
  0xf5   :  { %v6152_v38 = vunpack.i.h.bf16 %v6150_v51  ;;  %v6151_v44 = vunpack.i.l.bf16 %v6150_v51  ;;  %v6155_v50 = vpop.permute.xlu1 %6154  ;;  %5495 = vmatprep.mubr.msk.f32.mxu0 %vm505_vm0, %v6495_v8  ;;  %5511 = vmatprep.mubr.msk.f32.mxu1 %vm505_vm0, %v300_v41 }
  0xf6   :  { %v6157_v42 = vunpack.i.h.bf16 %v6155_v50  ;;  %v6156_v0 = vunpack.i.l.bf16 %v6155_v50  ;;  %v6505_v50 = vld [vmem:[%s11617_s19 + $0x30] sm:$0xff] }
  0xf7   :  { %v1329_v62 = vsel %vm522_vm1, %v1313_v2, %v6151_v44  ;;  %v1730_v13 = vsel %vm522_vm1, %v1714_v52, %v6152_v38  ;;  %v6504_v44 = vld [vmem:[%s11512_s6 + $0x30] sm:$0xff] }
  0xf8   :  { %v6160_v5 = vpop.permute.xlu0 %6159  ;;  %v1345_v40 = vsel %vm539_vm2, %v1329_v62, %v6156_v0  ;;  %v1746_v30 = vsel %vm539_vm2, %v1730_v13, %v6157_v42  ;;  %v6506_v42 = vld [vmem:[%s11618_s21 + $0x30] sm:$0xff] }
  0xf9   :  { %v6162_v58 = vunpack.i.h.bf16 %v6160_v5  ;;  %v6161_v12 = vunpack.i.l.bf16 %v6160_v5  ;;  %v6165_v55 = vpop.permute.xlu1 %6164  ;;  %1489 = vmatmul.mubr.f32.gmra.mxu0 %v1345_v40  ;;  %1890 = vmatmul.mubr.f32.gmra.mxu1 %v1746_v30  ;;  %v304_v40 = vld [vmem:[%s11514_s7 + $0x38] sm:$0xff] }
  0xfa   :  { %v6167_v18 = vunpack.i.h.bf16 %v6165_v55  ;;  %v6166_v57 = vunpack.i.l.bf16 %v6165_v55  ;;  %5496 = vmatprep.mubr.msk.f32.mxu0 %vm505_vm0, %v6498_v56  ;;  %5512 = vmatprep.mubr.msk.f32.mxu1 %vm505_vm0, %v301_v19  ;;  %v6507_v56 = vld [vmem:[%s11512_s6 + $0x38] sm:$0xff] }
  0xfb   :  { %v1314_v47 = vsel %vm505_vm0, %v6499_v10, %v6161_v12  ;;  %v1715_v17 = vsel %vm505_vm0, %v6500_v14, %v6162_v58  ;;  %v6508_v14 = vld [vmem:[%s11617_s19 + $0x38] sm:$0xff] }
  0xfc   :  { %v6170_v36 = vpop.permute.xlu0 %6169  ;;  %v1330_v28 = vsel %vm522_vm1, %v1314_v47, %v6166_v57  ;;  %v1731_v15 = vsel %vm522_vm1, %v1715_v17, %v6167_v18 }
  0xfd   :  { %v6172_v33 = vunpack.i.h.bf16 %v6170_v36  ;;  %v6171_v43 = vunpack.i.l.bf16 %v6170_v36  ;;  %v6175_v60 = vpop.permute.xlu1 %6174  ;;  %v6509_v36 = vld [vmem:[%s11618_s21 + $0x38] sm:$0xff] }
  0xfe   :  { %v6177_v4 = vunpack.i.h.bf16 %v6175_v60  ;;  %v6176_v34 = vunpack.i.l.bf16 %v6175_v60 }
  0xff   :  { %v1346_v45 = vsel %vm539_vm2, %v1330_v28, %v6171_v43  ;;  %v1747_v26 = vsel %vm539_vm2, %v1731_v15, %v6172_v33 }
 0x100   :  { %v6180_v59 = vpop.permute.xlu0 %6179  ;;  %1495 = vmatmul.mubr.f32.gmra.mxu0 %v1346_v45  ;;  %1896 = vmatmul.mubr.f32.gmra.mxu1 %v1747_v26  ;;  %v1315_v1 = vsel %vm505_vm0, %v6502_v11, %v6176_v34  ;;  %v1716_v24 = vsel %vm505_vm0, %v6503_v35, %v6177_v4  ;;  %v305_v4 = vld [vmem:[%s11514_s7 + $0x40] sm:$0xff] }
 0x101   :  { %v6182_v6 = vunpack.i.h.bf16 %v6180_v59  ;;  %v6181_v27 = vunpack.i.l.bf16 %v6180_v59  ;;  %v6185_v63 = vpop.permute.xlu1 %6184  ;;  %5497 = vmatprep.mubr.msk.f32.mxu0 %vm505_vm0, %v6501_v61  ;;  %5513 = vmatprep.mubr.msk.f32.mxu1 %vm505_vm0, %v302_v32 }
 0x102   :  { %v6187_v7 = vunpack.i.h.bf16 %v6185_v63  ;;  %v6186_v23 = vunpack.i.l.bf16 %v6185_v63  ;;  %v6511_v63 = vld [vmem:[%s11617_s19 + $0x40] sm:$0xff] }
 0x103   :  { %v1331_v53 = vsel %vm522_vm1, %v1315_v1, %v6181_v27  ;;  %v1732_v49 = vsel %vm522_vm1, %v1716_v24, %v6182_v6  ;;  %v6510_v27 = vld [vmem:[%s11512_s6 + $0x40] sm:$0xff] }
 0x104   :  { %v6190_v20 = vpop.permute.xlu0 %6189  ;;  %v1347_v9 = vsel %vm539_vm2, %v1331_v53, %v6186_v23  ;;  %v1748_v46 = vsel %vm539_vm2, %v1732_v49, %v6187_v7  ;;  %v6512_v7 = vld [vmem:[%s11618_s21 + $0x40] sm:$0xff] }
 0x105   :  { %v6192_v41 = vunpack.i.h.bf16 %v6190_v20  ;;  %v6191_v16 = vunpack.i.l.bf16 %v6190_v20  ;;  %v6195_v25 = vpop.permute.xlu1 %6194  ;;  %1501 = vmatmul.mubr.f32.gmra.mxu0 %v1347_v9  ;;  %1902 = vmatmul.mubr.f32.gmra.mxu1 %v1748_v46  ;;  %v306_v9 = vld [vmem:[%s11514_s7 + $0x48] sm:$0xff] }
 0x106   :  { %v6197_v51 = vunpack.i.h.bf16 %v6195_v25  ;;  %v6196_v38 = vunpack.i.l.bf16 %v6195_v25  ;;  %5498 = vmatprep.mubr.msk.f32.mxu0 %vm505_vm0, %v6504_v44  ;;  %5514 = vmatprep.mubr.msk.f32.mxu1 %vm505_vm0, %v303_v3  ;;  %v6513_v44 = vld [vmem:[%s11512_s6 + $0x48] sm:$0xff] }
 0x107   :  { %v1316_v8 = vsel %vm505_vm0, %v6505_v50, %v6191_v16  ;;  %v1717_v0 = vsel %vm505_vm0, %v6506_v42, %v6192_v41  ;;  %v6514_v42 = vld [vmem:[%s11617_s19 + $0x48] sm:$0xff] }
 0x108   :  { %v6200_v29 = vpop.permute.xlu0 %6199  ;;  %v1332_v19 = vsel %vm522_vm1, %v1316_v8, %v6196_v38  ;;  %v1733_v5 = vsel %vm522_vm1, %v1717_v0, %v6197_v51 }
 0x109   :  { %v6202_v2 = vunpack.i.h.bf16 %v6200_v29  ;;  %v6201_v54 = vunpack.i.l.bf16 %v6200_v29  ;;  %v6205_v52 = vpop.permute.xlu1 %6204  ;;  %v6515_v29 = vld [vmem:[%s11618_s21 + $0x48] sm:$0xff] }
 0x10a   :  { %v6207_v62 = vunpack.i.h.bf16 %v6205_v52  ;;  %v6206_v13 = vunpack.i.l.bf16 %v6205_v52 }
 0x10b   :  { %v1348_v30 = vsel %vm539_vm2, %v1332_v19, %v6201_v54  ;;  %v1749_v58 = vsel %vm539_vm2, %v1733_v5, %v6202_v2 }
 0x10c   :  { %v6210_v12 = vpop.permute.xlu0 %6209  ;;  %1507 = vmatmul.mubr.f32.gmra.mxu0 %v1348_v30  ;;  %1908 = vmatmul.mubr.f32.gmra.mxu1 %v1749_v58  ;;  %v1317_v17 = vsel %vm505_vm0, %v6508_v14, %v6206_v13  ;;  %v1718_v33 = vsel %vm505_vm0, %v6509_v36, %v6207_v62  ;;  %v307_v62 = vld [vmem:[%s11514_s7 + $0x50] sm:$0xff] }
 0x10d   :  { %v6212_v55 = vunpack.i.h.bf16 %v6210_v12  ;;  %v6211_v18 = vunpack.i.l.bf16 %v6210_v12  ;;  %v6215_v57 = vpop.permute.xlu1 %6214  ;;  %5499 = vmatprep.mubr.msk.f32.mxu0 %vm505_vm0, %v6507_v56  ;;  %5515 = vmatprep.mubr.msk.f32.mxu1 %vm505_vm0, %v304_v40  ;;  %v6517_v56 = vld [vmem:[%s11618_s21 + $0x50] sm:$0xff] }
 0x10e   :  { %v6217_v10 = vunpack.i.h.bf16 %v6215_v57  ;;  %v6216_v47 = vunpack.i.l.bf16 %v6215_v57 }
 0x10f   :  { %v1333_v43 = vsel %vm522_vm1, %v1317_v17, %v6211_v18  ;;  %v1734_v60 = vsel %vm522_vm1, %v1718_v33, %v6212_v55  ;;  %v6516_v18 = vld [vmem:[%s11617_s19 + $0x50] sm:$0xff] }
 0x110   :  { %v6220_v34 = vpop.permute.xlu0 %6219  ;;  %v1349_v28 = vsel %vm539_vm2, %v1333_v43, %v6216_v47  ;;  %v1750_v15 = vsel %vm539_vm2, %v1734_v60, %v6217_v10 }
 0x111   :  { %v6222_v32 = vunpack.i.h.bf16 %v6220_v34  ;;  %v6221_v45 = vunpack.i.l.bf16 %v6220_v34  ;;  %v6225_v26 = vpop.permute.xlu1 %6224  ;;  %1513 = vmatmul.mubr.f32.gmra.mxu0 %v1349_v28  ;;  %1914 = vmatmul.mubr.f32.gmra.mxu1 %v1750_v15 }
 0x112   :  { %v6227_v59 = vunpack.i.h.bf16 %v6225_v26  ;;  %v6226_v6 = vunpack.i.l.bf16 %v6225_v26  ;;  %5500 = vmatprep.mubr.msk.f32.mxu0 %vm505_vm0, %v6510_v27  ;;  %5516 = vmatprep.mubr.msk.f32.mxu1 %vm505_vm0, %v305_v4  ;;  %v308_v4 = vld [vmem:[%s11514_s7 + $0x58] sm:$0xff] }
 0x113   :  { %v1318_v61 = vsel %vm505_vm0, %v6511_v63, %v6221_v45  ;;  %v1719_v23 = vsel %vm505_vm0, %v6512_v7, %v6222_v32  ;;  %v6518_v27 = vld [vmem:[%s11617_s19 + $0x58] sm:$0xff] }
 0x114   :  { %v6230_v11 = vpop.permute.xlu0 %6229  ;;  %v1334_v3 = vsel %vm522_vm1, %v1318_v61, %v6226_v6  ;;  %v1735_v20 = vsel %vm522_vm1, %v1719_v23, %v6227_v59  ;;  %v6519_v61 = vld [vmem:[%s11618_s21 + $0x58] sm:$0xff] }
 0x115   :  { %v6232_v1 = vunpack.i.h.bf16 %v6230_v11  ;;  %v6231_v35 = vunpack.i.l.bf16 %v6230_v11  ;;  %v6235_v24 = vpop.permute.xlu1 %6234  ;;  %v309_v11 = vld [vmem:[%s11514_s7 + $0x60] sm:$0xff] }
 0x116   :  { %v6237_v53 = vunpack.i.h.bf16 %v6235_v24  ;;  %v6236_v49 = vunpack.i.l.bf16 %v6235_v24 }
 0x117   :  { %v1350_v46 = vsel %vm539_vm2, %v1334_v3, %v6231_v35  ;;  %v1751_v41 = vsel %vm539_vm2, %v1735_v20, %v6232_v1 }
 0x118   :  { %v6240_v16 = vpop.permute.xlu0 %6239  ;;  %1519 = vmatmul.mubr.f32.gmra.mxu0 %v1350_v46  ;;  %1920 = vmatmul.mubr.f32.gmra.mxu1 %v1751_v41  ;;  %v1319_v0 = vsel %vm505_vm0, %v6514_v42, %v6236_v49  ;;  %v1720_v2 = vsel %vm505_vm0, %v6515_v29, %v6237_v53  ;;  %v6520_v46 = vld [vmem:[%s11617_s19 + $0x60] sm:$0xff]  ;;  %v310_v29 = vld [vmem:[%s11514_s7 + $0x68] sm:$0xff] }
 0x119   :  { %v6242_v25 = vunpack.i.h.bf16 %v6240_v16  ;;  %v6241_v51 = vunpack.i.l.bf16 %v6240_v16  ;;  %v6245_v38 = vpop.permute.xlu1 %6244  ;;  %5501 = vmatprep.mubr.msk.f32.mxu0 %vm505_vm0, %v6513_v44  ;;  %5517 = vmatprep.mubr.msk.f32.mxu1 %vm505_vm0, %v306_v9  ;;  %v6521_v16 = vld [vmem:[%s11618_s21 + $0x60] sm:$0xff] }
 0x11a   :  { %v6247_v50 = vunpack.i.h.bf16 %v6245_v38  ;;  %v6246_v8 = vunpack.i.l.bf16 %v6245_v38 }
 0x11b   :  { %v1335_v54 = vsel %vm522_vm1, %v1319_v0, %v6241_v51  ;;  %v1736_v52 = vsel %vm522_vm1, %v1720_v2, %v6242_v25 }
 0x11c   :  { %v6250_v13 = vpop.permute.xlu0 %6249  ;;  %v1351_v19 = vsel %vm539_vm2, %v1335_v54, %v6246_v8  ;;  %v1752_v5 = vsel %vm539_vm2, %v1736_v52, %v6247_v50 }
 0x11d   :  { %v6252_v40 = vunpack.i.h.bf16 %v6250_v13  ;;  %v6251_v30 = vunpack.i.l.bf16 %v6250_v13  ;;  %v6255_v58 = vpop.permute.xlu1 %6254  ;;  %1525 = vmatmul.mubr.f32.gmra.mxu0 %v1351_v19  ;;  %1926 = vmatmul.mubr.f32.gmra.mxu1 %v1752_v5 }
 0x11e   :  { %v6257_v12 = vunpack.i.h.bf16 %v6255_v58  ;;  %v6256_v55 = vunpack.i.l.bf16 %v6255_v58  ;;  %5502 = vmatprep.mubr.msk.f32.mxu0 %vm505_vm0, %v7523_v21  ;;  %5518 = vmatprep.mubr.msk.f32.mxu1 %vm505_vm0, %v307_v62 }
 0x11f   :  { %v1320_v57 = vsel %vm505_vm0, %v6516_v18, %v6251_v30  ;;  %v1721_v10 = vsel %vm505_vm0, %v6517_v56, %v6252_v40  ;;  %v6522_v30 = vld [vmem:[%s11617_s19 + $0x68] sm:$0xff] }
 0x120   :  { %v6260_v47 = vpop.permute.xlu0 %6259  ;;  %v1336_v43 = vsel %vm522_vm1, %v1320_v57, %v6256_v55  ;;  %v1737_v60 = vsel %vm522_vm1, %v1721_v10, %v6257_v12  ;;  %v6523_v12 = vld [vmem:[%s11618_s21 + $0x68] sm:$0xff]  ;;  %v311_v57 = vld [vmem:[%s11514_s7 + $0x70] sm:$0xff] }
 0x121   :  { %v6262_v14 = vunpack.i.h.bf16 %v6260_v47  ;;  %v6261_v17 = vunpack.i.l.bf16 %v6260_v47  ;;  %v6265_v36 = vpop.permute.xlu1 %6264 }
 0x122   :  { %v6267_v33 = vunpack.i.h.bf16 %v6265_v36  ;;  %v6266_v21 = vunpack.i.l.bf16 %v6265_v36 }
 0x123   :  { %v1352_v34 = vsel %vm539_vm2, %v1336_v43, %v6261_v17  ;;  %v1753_v28 = vsel %vm539_vm2, %v1737_v60, %v6262_v14  ;;  %v6524_v43 = vld [vmem:[%s11617_s19 + $0x70] sm:$0xff] }
 0x124   :  { %v6270_v15 = vpop.permute.xlu0 %6269  ;;  %1531 = vmatmul.mubr.f32.gmra.mxu0 %v1352_v34  ;;  %1932 = vmatmul.mubr.f32.gmra.mxu1 %v1753_v28  ;;  %v1321_v63 = vsel %vm505_vm0, %v6518_v27, %v6266_v21  ;;  %v1722_v7 = vsel %vm505_vm0, %v6519_v61, %v6267_v33  ;;  %v8138_v61 = vld [vmem:[%s11515_s10 + $0x290] sm:$0xff] }
 0x125   :  { %v6272_v32 = vunpack.i.h.bf16 %v6270_v15  ;;  %v6271_v45 = vunpack.i.l.bf16 %v6270_v15  ;;  %v6275_v26 = vpop.permute.xlu1 %6274  ;;  %5503 = vmatprep.mubr.msk.f32.mxu0 %vm505_vm0, %v7559_v39  ;;  %5519 = vmatprep.mubr.msk.f32.mxu1 %vm505_vm0, %v308_v4  ;;  %v6525_v4 = vld [vmem:[%s11618_s21 + $0x70] sm:$0xff] }
 0x126   :  { %v6277_v59 = vunpack.i.h.bf16 %v6275_v26  ;;  %v6276_v6 = vunpack.i.l.bf16 %v6275_v26 }
 0x127   :  { %v1337_v23 = vsel %vm522_vm1, %v1321_v63, %v6271_v45  ;;  %v1738_v39 = vsel %vm522_vm1, %v1722_v7, %v6272_v32  ;;  %v312_v63 = vld [vmem:[%s11514_s7 + $0x78] sm:$0xff] }
 0x128   :  { %v6280_v1 = vpop.permute.xlu0 %6279  ;;  %v1353_v35 = vsel %vm539_vm2, %v1337_v23, %v6276_v6  ;;  %v1754_v24 = vsel %vm539_vm2, %v1738_v39, %v6277_v59  ;;  %v8146_v39 = vld [vmem:[%s11515_s10 + $0x288] sm:$0xff] }
 0x129   :  { %v6282_v53 = vunpack.i.h.bf16 %v6280_v1  ;;  %v6281_v49 = vunpack.i.l.bf16 %v6280_v1  ;;  %v6285_v3 = vpop.permute.xlu1 %6284  ;;  %1537 = vmatmul.mubr.f32.gmra.mxu0 %v1353_v35  ;;  %1938 = vmatmul.mubr.f32.gmra.mxu1 %v1754_v24  ;;  %v8151_v1 = vld [vmem:[%s11515_s10 + $0x280] sm:$0xff] }
 0x12a   :  { %v6287_v20 = vunpack.i.h.bf16 %v6285_v3  ;;  %v6286_v9 = vunpack.i.l.bf16 %v6285_v3  ;;  %5504 = vmatprep.mubr.msk.f32.mxu0 %vm505_vm0, %v7597_v48  ;;  %5520 = vmatprep.mubr.msk.f32.mxu1 %vm505_vm0, %v309_v11 }
 0x12b   :  { %v1322_v41 = vsel %vm505_vm0, %v6520_v46, %v6281_v49  ;;  %v1723_v25 = vsel %vm505_vm0, %v6521_v16, %v6282_v53  ;;  %v8159_v49 = vld [vmem:[%s11515_s10 + $0x278] sm:$0xff] }
 0x12c   :  { %v6290_v51 = vpop.permute.xlu0 %6289  ;;  %v1338_v42 = vsel %vm522_vm1, %v1322_v41, %v6286_v9  ;;  %v1739_v0 = vsel %vm522_vm1, %v1723_v25, %v6287_v20  ;;  %v6526_v9 = vld [vmem:[%s11617_s19 + $0x78] sm:$0xff] }
 0x12d   :  { %v6292_v38 = vunpack.i.h.bf16 %v6290_v51  ;;  %v6291_v44 = vunpack.i.l.bf16 %v6290_v51  ;;  %v6295_v50 = vpop.permute.xlu1 %6294  ;;  %v6527_v41 = vld [vmem:[%s11618_s21 + $0x78] sm:$0xff]  ;;  %v8176_v51 = vld [vmem:[%s11515_s10 + $0x270] sm:$0xff] }
 0x12e   :  { %v6297_v8 = vunpack.i.h.bf16 %v6295_v50  ;;  %v6296_v48 = vunpack.i.l.bf16 %v6295_v50  ;;  %v8184_v50 = vld [vmem:[%s11515_s10 + $0x268] sm:$0xff] }
 0x12f   :  { %v1354_v2 = vsel %vm539_vm2, %v1338_v42, %v6291_v44  ;;  %v1755_v54 = vsel %vm539_vm2, %v1739_v0, %v6292_v38  ;;  %v8201_v42 = vld [vmem:[%s11515_s10 + $0x250] sm:$0xff]  ;;  %v8207_v0 = vld [vmem:[%s11515_s10 + $0x248] sm:$0xff] }
 0x130   :  { %v6300_v52 = vpop.permute.xlu0 %6299  ;;  %1543 = vmatmul.mubr.f32.gmra.mxu0 %v1354_v2  ;;  %1944 = vmatmul.mubr.f32.gmra.mxu1 %v1755_v54  ;;  %v1323_v58 = vsel %vm505_vm0, %v6522_v30, %v6296_v48  ;;  %v1724_v55 = vsel %vm505_vm0, %v6523_v12, %v6297_v8  ;;  %v8189_v8 = vld [vmem:[%s11515_s10 + $0x260] sm:$0xff]  ;;  %v8195_v48 = vld [vmem:[%s11515_s10 + $0x258] sm:$0xff]  ;;  %v8225_v54 = vld [vmem:[%s11515_s10 + $0x230] sm:$0xff] }
 0x131   :  { %v6302_v62 = vunpack.i.h.bf16 %v6300_v52  ;;  %v6301_v13 = vunpack.i.l.bf16 %v6300_v52  ;;  %v6305_v19 = vpop.permute.xlu1 %6304  ;;  %5505 = vmatprep.mubr.msk.f32.mxu0 %vm505_vm0, %v7633_v31  ;;  %5521 = vmatprep.mubr.msk.f32.mxu1 %vm505_vm0, %v310_v29  ;;  %v8213_v29 = vld [vmem:[%s11515_s10 + $0x240] sm:$0xff]  ;;  %v8219_v2 = vld [vmem:[%s11515_s10 + $0x238] sm:$0xff]  ;;  %v8231_v52 = vld [vmem:[%s11515_s10 + $0x228] sm:$0xff] }
 0x132   :  { %v6307_v5 = vunpack.i.h.bf16 %v6305_v19  ;;  %v6306_v40 = vunpack.i.l.bf16 %v6305_v19  ;;  %v8237_v19 = vld [vmem:[%s11515_s10 + $0x220] sm:$0xff] }
 0x133   :  { %v1339_v18 = vsel %vm522_vm1, %v1323_v58, %v6301_v13  ;;  %v1740_v31 = vsel %vm522_vm1, %v1724_v55, %v6302_v62  ;;  %v8249_v58 = vld [vmem:[%s11515_s10 + $0x210] sm:$0xff] }
 0x134   :  { %v6310_v56 = vpop.permute.xlu0 %6309  ;;  %v1355_v10 = vsel %vm539_vm2, %v1339_v18, %v6306_v40  ;;  %v1756_v47 = vsel %vm539_vm2, %v1740_v31, %v6307_v5  ;;  %v8243_v5 = vld [vmem:[%s11515_s10 + $0x218] sm:$0xff]  ;;  %v8255_v18 = vld [vmem:[%s11515_s10 + $0x208] sm:$0xff]  ;;  %v8260_v31 = vld [vmem:[%s11516_s9] ss:$0 sm:$0xff] }
 0x135   :  { %v6312_v14 = vunpack.i.h.bf16 %v6310_v56  ;;  %v6311_v17 = vunpack.i.l.bf16 %v6310_v56  ;;  %v6315_v36 = vpop.permute.xlu1 %6314  ;;  %1549 = vmatmul.mubr.f32.gmra.mxu0 %v1355_v10  ;;  %1950 = vmatmul.mubr.f32.gmra.mxu1 %v1756_v47  ;;  %v8266_v10 = vld [vmem:[%s11515_s10 + $0x200] sm:$0xff]  ;;  %v11571_v47 = vmov 0.0  }
 0x136   :  { %v6317_v33 = vunpack.i.h.bf16 %v6315_v36  ;;  %v6316_v21 = vunpack.i.l.bf16 %v6315_v36  ;;  %5506 = vmatprep.mubr.msk.f32.mxu0 %vm505_vm0, %v7671_v22  ;;  %5522 = vmatprep.mubr.msk.f32.mxu1 %vm505_vm0, %v311_v57  ;;  %v8127_v22 = vld [vmem:[%s11515_s10 + $0x298] sm:$0xff] }
 0x137   :  { %v1324_v60 = vsel %vm505_vm0, %v6524_v43, %v6311_v17  ;;  %v1725_v34 = vsel %vm505_vm0, %v6525_v4, %v6312_v14  ;;  %2698 = vmatprep.subr.mxu1 %v8127_v22 }
 0x138   :  { %v6320_v28 = vpop.permute.xlu0 %6319  ;;  %v1340_v6 = vsel %vm522_vm1, %v1324_v60, %v6316_v21  ;;  %v1741_v27 = vsel %vm522_vm1, %v1725_v34, %v6317_v33  ;;  %2699 = vmatpush1.msra.mxu1 %v8138_v61 }
 0x139   :  { %v6322_v15 = vunpack.i.h.bf16 %v6320_v28  ;;  %v6321_v32 = vunpack.i.l.bf16 %v6320_v28  ;;  %v6325_v45 = vpop.permute.xlu1 %6324  ;;  %2700 = vmatprep.subr.mxu1 %v8146_v39 }
 0x13a   :  { %v6327_v26 = vunpack.i.h.bf16 %v6325_v45  ;;  %v6326_v59 = vunpack.i.l.bf16 %v6325_v45  ;;  %2701 = vmatpush1.msra.mxu1 %v8151_v1 }
 0x13b   :  { %v1356_v7 = vsel %vm539_vm2, %v1340_v6, %v6321_v32  ;;  %v1757_v23 = vsel %vm539_vm2, %v1741_v27, %v6322_v15  ;;  %2702 = vmatprep.subr.mxu1 %v8159_v49 }
 0x13c   :  { %v6330_v11 = vpop.permute.xlu0 %6329  ;;  %1555 = vmatmul.mubr.f32.gmra.mxu0 %v1356_v7  ;;  %1956 = vmatmul.mubr.f32.gmra.mxu1 %v1757_v23  ;;  %v1325_v46 = vsel %vm505_vm0, %v6526_v9, %v6326_v59 }
 0x13d   :  { %v6332_v35 = vunpack.i.h.bf16 %v6330_v11  ;;  %v6331_v24 = vunpack.i.l.bf16 %v6330_v11  ;;  %v6335_v53 = vpop.permute.xlu1 %6334  ;;  %5507 = vmatprep.mubr.msk.f32.mxu0 %vm505_vm0, %v7711_v37  ;;  %5523 = vmatprep.mubr.msk.f32.mxu1 %vm505_vm0, %v312_v63  ;;  %v1726_v37 = vsel %vm505_vm0, %v6527_v41, %v6327_v26 }
 0x13e   :  { %v6337_v3 = vunpack.i.h.bf16 %v6335_v53  ;;  %v6336_v20 = vunpack.i.l.bf16 %v6335_v53  ;;  %2703 = vmatpush1.msra.mxu1 %v8176_v51 }
 0x13f   :  { %v1341_v16 = vsel %vm522_vm1, %v1325_v46, %v6331_v24  ;;  %v1742_v25 = vsel %vm522_vm1, %v1726_v37, %v6332_v35  ;;  %2704 = vmatprep.subr.mxu1 %v8184_v50 }
 0x140   :  { %v1357_v38 = vsel %vm539_vm2, %v1341_v16, %v6336_v20  ;;  %v1758_v44 = vsel %vm539_vm2, %v1742_v25, %v6337_v3  ;;  %2705 = vmatpush1.msra.mxu1 %v8189_v8 }
 0x141   :  { %1561 = vmatmul.mubr.f32.gmra.mxu0 %v1357_v38  ;;  %1962 = vmatmul.mubr.f32.gmra.mxu1 %v1758_v44 }
 0x142   :  { %2706 = vmatprep.subr.mxu1 %v8195_v48  ;;  %2750 = vmatprep.mubr.f32.mxu1 %v11571_v47 }
 0x143   :  { %2707 = vmatpush1.msra.mxu1 %v8201_v42 }
 0x144   :  { %2708 = vmatprep.subr.mxu1 %v8207_v0 }
 0x145   :  { %2709 = vmatpush1.msra.mxu1 %v8213_v29 }
 0x146   :  { %2710 = vmatprep.subr.mxu1 %v8219_v2 }
 0x147   :  { %2711 = vmatpush1.msra.mxu1 %v8225_v54 }
 0x148   :  { %2712 = vmatprep.subr.mxu1 %v8231_v52 }
 0x149   :  { %v670_v62 = vpop.f32.mrf.mxu0  ;;  %v1071_v13 = vpop.f32.mrf.mxu1  ;;  %2713 = vmatpush1.msra.mxu1 %v8237_v19 }
 0x14a   :  { %2714 = vmatprep.subr.mxu1 %v8243_v5 }
 0x14b   :  { %v672_v40 = vpop.f32.mrf.mxu0  ;;  %v1073_v30 = vpop.f32.mrf.mxu1  ;;  %2715 = vmatpush1.msra.mxu1 %v8249_v58 }
 0x14c   :  { %v1968_v12 = vmax.f32 %v670_v62, %v672_v40  ;;  %v1984_v55 = vmax.f32 %v1071_v13, %v1073_v30  ;;  %2716 = vmatprep.subr.mxu1 %v8255_v18 }
 0x14d   :  { %v676_v57 = vpop.f32.mrf.mxu0  ;;  %v1077_v56 = vpop.f32.mrf.mxu1  ;;  %2717 = vmatpush1.msra.mxu1 %v8266_v10 }
 0x14e   :  { %v2000_v14 = vmax.f32 %v1968_v12, %v1984_v55  ;;  %3052 = vmatprep.subr.mxu1 %v8127_v22 }
 0x14f   :  { %v678_v17 = vpop.f32.mrf.mxu0  ;;  %v1079_v36 = vpop.f32.mrf.mxu1 }
 0x150   :  { %v8272_v33 = vadd.f32 %v8260_v31, %v2000_v14  ;;  %v1969_v21 = vmax.f32 %v676_v57, %v678_v17  ;;  %v1985_v43 = vmax.f32 %v1077_v56, %v1079_v36 }
 0x152   :  { %v2001_v60 = vmax.f32 %v1969_v21, %v1985_v43  ;;  %v11570_v4 = vmax.f32 %v8272_v33, 0.0  ;;  %v8318_v43 = vld [vmem:[%s11515_s10 + $0xf8] sm:$0xff] }
 0x153   :  { %2525 = vmatprep.subr.mxu0 %v8318_v43 }
 0x154   :  { %v8278_v34 = vadd.f32 %v8260_v31, %v2001_v60  ;;  %v682_v28 = vpop.f32.mrf.mxu0  ;;  %v1083_v15 = vpop.f32.mrf.mxu1  ;;  %v2151_v27 = vrot.slane %v11570_v4, 1 }
 0x156   :  { %v11568_v32 = vmax.f32 %v8278_v34, 0.0  ;;  %v684_v45 = vpop.f32.mrf.mxu0  ;;  %v1085_v26 = vpop.f32.mrf.mxu1 }
 0x157   :  { %v1970_v59 = vmax.f32 %v682_v28, %v684_v45  ;;  %v1986_v6 = vmax.f32 %v1083_v15, %v1085_v26  ;;  %v129_v15 = vld [vmem:[%s11515_s10 + $0xf0] sm:$0xff]  ;;  %v128_v26 = vld [vmem:[%s11515_s10 + $0xe8] sm:$0xff] }
 0x158   :  { %v2152_v22 = vrot.slane %v11568_v32, 1  ;;  %2526 = vmatpush1.msra.mxu0 %v129_v15 }
 0x159   :  { %v2002_v63 = vmax.f32 %v1970_v59, %v1986_v6  ;;  %v688_v7 = vpop.f32.mrf.mxu0  ;;  %v1089_v23 = vpop.f32.mrf.mxu1  ;;  %2527 = vmatprep.subr.mxu0 %v128_v26  ;;  %v127_v6 = vld [vmem:[%s11515_s10 + $0xe0] sm:$0xff]  ;;  %v118_v26 = vld [vmem:[%s11515_s10 + $0x98] sm:$0xff] }
 0x15a   :  { %v8286_v11 = vsel %vm2150_vm3, %v2151_v27, %v2152_v22  ;;  %2528 = vmatpush1.msra.mxu0 %v127_v6 }
 0x15b   :  { %v8289_v35 = vadd.f32 %v8260_v31, %v2002_v63  ;;  %v1091_v24 = vpop.f32.mrf.mxu1  ;;  %2282 = vrot.lane.b32.xlu1 %v8286_v11, %s6566_s28  ;;  %v690_v53 = vpop.f32.mrf.mxu0 }
 0x15c   :  { %v1987_v3 = vmax.f32 %v1089_v23, %v1091_v24  ;;  %v1971_v20 = vmax.f32 %v688_v7, %v690_v53  ;;  %v125_v24 = vld [vmem:[%s11515_s10 + $0xd0] sm:$0xff] }
 0x15d   :  { %v11567_v9 = vmax.f32 %v8289_v35, 0.0 }
 0x15e   :  { %v2003_v46 = vmax.f32 %v1971_v20, %v1987_v3  ;;  %v124_v3 = vld [vmem:[%s11515_s10 + $0xc8] sm:$0xff] }
 0x15f   :  { %v2154_v41 = vrot.slane %v11567_v9, 1  ;;  %v8560_v9 = vld [vmem:[%s11515_s10 + $0x190] sm:$0xff] }
 0x160   :  { %v8297_v37 = vadd.f32 %v8260_v31, %v2003_v46  ;;  %v694_v16 = vpop.f32.mrf.mxu0  ;;  %v1095_v25 = vpop.f32.mrf.mxu1  ;;  %11673 = vst [vmem:[#allocation18_spill] sm:$0xff] %v8560_v9 }
 0x161   :  { %v8300_v38 = vsel %vm2150_vm3, %v2152_v22, %v2154_v41  ;;  %v126_v22 = vld [vmem:[%s11515_s10 + $0xd8] sm:$0xff] }
 0x162   :  { %v11566_v44 = vmax.f32 %v8297_v37, 0.0  ;;  %v1097_v62 = vpop.f32.mrf.mxu1  ;;  %2284 = vrot.lane.b32.xlu1 %v8300_v38, %s6566_s28  ;;  %v696_v13 = vpop.f32.mrf.mxu0  ;;  %2529 = vmatprep.subr.mxu0 %v126_v22 }
 0x163   :  { %v1988_v40 = vmax.f32 %v1095_v25, %v1097_v62  ;;  %v1972_v30 = vmax.f32 %v694_v16, %v696_v13  ;;  %2530 = vmatpush1.msra.mxu0 %v125_v24  ;;  %v123_v16 = vld [vmem:[%s11515_s10 + $0xc0] sm:$0xff]  ;;  %v122_v13 = vld [vmem:[%s11515_s10 + $0xb8] sm:$0xff] }
 0x164   :  { %v2156_v12 = vrot.slane %v11566_v44, 1  ;;  %2531 = vmatprep.subr.mxu0 %v124_v3  ;;  %v115_v24 = vld [vmem:[%s11515_s10 + $0x80] sm:$0xff] }
 0x165   :  { %v2004_v55 = vmax.f32 %v1972_v30, %v1988_v40  ;;  %v700_v57 = vpop.f32.mrf.mxu0  ;;  %v1101_v56 = vpop.f32.mrf.mxu1  ;;  %2532 = vmatpush1.msra.mxu0 %v123_v16  ;;  %v121_v30 = vld [vmem:[%s11515_s10 + $0xb0] sm:$0xff] }
 0x166   :  { %v8308_v14 = vsel %vm2150_vm3, %v2154_v41, %v2156_v12  ;;  %2533 = vmatprep.subr.mxu0 %v122_v13 }
 0x167   :  { %v8311_v17 = vadd.f32 %v8260_v31, %v2004_v55  ;;  %v1103_v36 = vpop.f32.mrf.mxu1  ;;  %2286 = vrot.lane.b32.xlu1 %v8308_v14, %s6566_s28  ;;  %v702_v21 = vpop.f32.mrf.mxu0  ;;  %2534 = vmatpush1.msra.mxu0 %v121_v30  ;;  %v112_v30 = vld [vmem:[%s11515_s10 + $0x68] sm:$0xff] }
 0x168   :  { %v1989_v60 = vmax.f32 %v1101_v56, %v1103_v36  ;;  %v1973_v28 = vmax.f32 %v700_v57, %v702_v21  ;;  %v120_v56 = vld [vmem:[%s11515_s10 + $0xa8] sm:$0xff]  ;;  %v119_v21 = vld [vmem:[%s11515_s10 + $0xa0] sm:$0xff] }
 0x169   :  { %v11565_v45 = vmax.f32 %v8311_v17, 0.0  ;;  %2535 = vmatprep.subr.mxu0 %v120_v56  ;;  %v111_v56 = vld [vmem:[%s11515_s10 + $0x60] sm:$0xff] }
 0x16a   :  { %v2005_v59 = vmax.f32 %v1973_v28, %v1989_v60  ;;  %2536 = vmatpush1.msra.mxu0 %v119_v21 }
 0x16b   :  { %v2158_v27 = vrot.slane %v11565_v45, 1  ;;  %2537 = vmatprep.subr.mxu0 %v118_v26  ;;  %v109_v26 = vld [vmem:[%s11515_s10 + $0x50] sm:$0xff]  ;;  %v8552_v45 = vld [vmem:[%s11515_s10 + $0x198] sm:$0xff] }
 0x16c   :  { %v8337_v63 = vadd.f32 %v8260_v31, %v2005_v59  ;;  %v706_v7 = vpop.f32.mrf.mxu0  ;;  %v1107_v23 = vpop.f32.mrf.mxu1  ;;  %11672 = vst [vmem:[#allocation6_spill] sm:$0xff] %v8552_v45 }
 0x16d   :  { %v8343_v53 = vsel %vm2150_vm3, %v2156_v12, %v2158_v27 }
 0x16e   :  { %v11564_v20 = vmax.f32 %v8337_v63, 0.0  ;;  %v1109_v46 = vpop.f32.mrf.mxu1  ;;  %2288 = vrot.lane.b32.xlu1 %v8343_v53, %s6566_s28  ;;  %v708_v41 = vpop.f32.mrf.mxu0 }
 0x16f   :  { %v1990_v25 = vmax.f32 %v1107_v23, %v1109_v46  ;;  %v1974_v62 = vmax.f32 %v706_v7, %v708_v41  ;;  %v116_v7 = vld [vmem:[%s11515_s10 + $0x88] sm:$0xff]  ;;  %v114_v46 = vld [vmem:[%s11515_s10 + $0x78] sm:$0xff] }
 0x170   :  { %v2160_v40 = vrot.slane %v11564_v20, 1 }
 0x171   :  { %v2006_v12 = vmax.f32 %v1974_v62, %v1990_v25  ;;  %v712_v55 = vpop.f32.mrf.mxu0  ;;  %v1113_v57 = vpop.f32.mrf.mxu1  ;;  %v113_v62 = vld [vmem:[%s11515_s10 + $0x70] sm:$0xff] }
 0x172   :  { %v8366_v36 = vsel %vm2150_vm3, %v2158_v27, %v2160_v40  ;;  %v117_v27 = vld [vmem:[%s11515_s10 + $0x90] sm:$0xff] }
 0x173   :  { %v8372_v60 = vadd.f32 %v8260_v31, %v2006_v12  ;;  %v1115_v28 = vpop.f32.mrf.mxu1  ;;  %2290 = vrot.lane.b32.xlu1 %v8366_v36, %s6566_s28  ;;  %v714_v15 = vpop.f32.mrf.mxu0  ;;  %2538 = vmatpush1.msra.mxu0 %v117_v27 }
 0x174   :  { %v1991_v59 = vmax.f32 %v1113_v57, %v1115_v28  ;;  %v1975_v6 = vmax.f32 %v712_v55, %v714_v15  ;;  %2539 = vmatprep.subr.mxu0 %v116_v7  ;;  %v110_v28 = vld [vmem:[%s11515_s10 + $0x58] sm:$0xff]  ;;  %v108_v7 = vld [vmem:[%s11515_s10 + $0x48] sm:$0xff] }
 0x175   :  { %v11563_v22 = vmax.f32 %v8372_v60, 0.0  ;;  %2540 = vmatpush1.msra.mxu0 %v115_v24  ;;  %v107_v24 = vld [vmem:[%s11515_s10 + $0x40] sm:$0xff] }
 0x176   :  { %v2007_v23 = vmax.f32 %v1975_v6, %v1991_v59  ;;  %2541 = vmatprep.subr.mxu0 %v114_v46 }
 0x177   :  { %v2162_v3 = vrot.slane %v11563_v22, 1  ;;  %2542 = vmatpush1.msra.mxu0 %v113_v62  ;;  %v106_v62 = vld [vmem:[%s11515_s10 + $0x38] sm:$0xff] }
 0x178   :  { %v8395_v41 = vadd.f32 %v8260_v31, %v2007_v23  ;;  %v718_v16 = vpop.f32.mrf.mxu0  ;;  %v1119_v25 = vpop.f32.mrf.mxu1  ;;  %2543 = vmatprep.subr.mxu0 %v112_v30 }
 0x179   :  { %v8401_v13 = vsel %vm2150_vm3, %v2160_v40, %v2162_v3  ;;  %2544 = vmatpush1.msra.mxu0 %v111_v56  ;;  %v104_v56 = vld [vmem:[%s11515_s10 + $0x28] sm:$0xff] }
 0x17a   :  { %v11562_v12 = vmax.f32 %v8395_v41, 0.0  ;;  %v1121_v55 = vpop.f32.mrf.mxu1  ;;  %2292 = vrot.lane.b32.xlu1 %v8401_v13, %s6566_s28  ;;  %v720_v57 = vpop.f32.mrf.mxu0  ;;  %2545 = vmatprep.subr.mxu0 %v110_v28 }
 0x17b   :  { %v1992_v21 = vmax.f32 %v1119_v25, %v1121_v55  ;;  %v1976_v40 = vmax.f32 %v718_v16, %v720_v57  ;;  %2546 = vmatpush1.msra.mxu0 %v109_v26  ;;  %v105_v55 = vld [vmem:[%s11515_s10 + $0x30] sm:$0xff]  ;;  %v102_v26 = vld [vmem:[%s11515_s10 + $0x18] sm:$0xff] }
 0x17c   :  { %v2164_v15 = vrot.slane %v11562_v12, 1  ;;  %2547 = vmatprep.subr.mxu0 %v108_v7  ;;  %v101_v7 = vld [vmem:[%s11515_s10 + $0x10] sm:$0xff] }
 0x17d   :  { %v2008_v59 = vmax.f32 %v1976_v40, %v1992_v21  ;;  %v724_v6 = vpop.f32.mrf.mxu0  ;;  %v1125_v27 = vpop.f32.mrf.mxu1  ;;  %2548 = vmatpush1.msra.mxu0 %v107_v24  ;;  %v103_v40 = vld [vmem:[%s11515_s10 + $0x20] sm:$0xff] }
 0x17e   :  { %v8424_v23 = vsel %vm2150_vm3, %v2162_v3, %v2164_v15  ;;  %2549 = vmatprep.subr.mxu0 %v106_v62 }
 0x17f   :  { %v8430_v46 = vadd.f32 %v8260_v31, %v2008_v59  ;;  %v1127_v16 = vpop.f32.mrf.mxu1  ;;  %2294 = vrot.lane.b32.xlu1 %v8424_v23, %s6566_s28  ;;  %v726_v25 = vpop.f32.mrf.mxu0  ;;  %2550 = vmatpush1.msra.mxu0 %v105_v55 }
 0x180   :  { %v1993_v3 = vmax.f32 %v1125_v27, %v1127_v16  ;;  %v1977_v30 = vmax.f32 %v724_v6, %v726_v25  ;;  %2551 = vmatprep.subr.mxu0 %v104_v56  ;;  %v100_v16 = vld [vmem:[%s11515_s10 + $0x8] sm:$0xff]  ;;  %v162_v56 = vld [vmem:[%s11515_s10 + $0x1f8] sm:$0xff] }
 0x181   :  { %11663 = vst [vmem:[#allocation2_spill] sm:$0xff] %v8430_v46  ;;  %v11561_v57 = vmax.f32 %v8430_v46, 0.0  ;;  %2552 = vmatpush1.msra.mxu0 %v103_v40  ;;  %v161_v40 = vld [vmem:[%s11515_s10 + $0x1f0] sm:$0xff] }
 0x182   :  { %v2009_v21 = vmax.f32 %v1977_v30, %v1993_v3  ;;  %2553 = vmatprep.subr.mxu0 %v102_v26  ;;  %v99_v30 = vld [vmem:[%s11515_s10] sm:$0xff] }
 0x183   :  { %v2166_v28 = vrot.slane %v11561_v57, 1  ;;  %2554 = vmatpush1.msra.mxu0 %v101_v7 }
 0x184   :  { %v8453_v59 = vadd.f32 %v8260_v31, %v2009_v21  ;;  %v730_v6 = vpop.f32.mrf.mxu0  ;;  %v1131_v27 = vpop.f32.mrf.mxu1  ;;  %2555 = vmatprep.subr.mxu0 %v100_v16 }
 0x185   :  { %v8459_v24 = vsel %vm2150_vm3, %v2164_v15, %v2166_v28  ;;  %2556 = vmatpush1.msra.mxu0 %v99_v30 }
 0x186   :  { %11664 = vst [vmem:[#allocation14_spill] sm:$0xff] %v8453_v59  ;;  %v11559_v25 = vmax.f32 %v8453_v59, 0.0  ;;  %v1133_v62 = vpop.f32.mrf.mxu1  ;;  %2296 = vrot.lane.b32.xlu1 %v8459_v24, %s6566_s28  ;;  %v732_v3 = vpop.f32.mrf.mxu0  ;;  %2557 = vmatprep.subr.mxu0 %v162_v56 }
 0x187   :  { %v1994_v55 = vmax.f32 %v1131_v27, %v1133_v62  ;;  %v1978_v15 = vmax.f32 %v730_v6, %v732_v3  ;;  %2558 = vmatpush2.msra.mxu0 %v161_v40  ;;  %v160_v6 = vld [vmem:[%s11515_s10 + $0x1e8] sm:$0xff]  ;;  %v159_v62 = vld [vmem:[%s11515_s10 + $0x1e0] sm:$0xff]  ;;  %v158_v3 = vld [vmem:[%s11515_s10 + $0x1d8] sm:$0xff] }
 0x188   :  { %v2168_v21 = vrot.slane %v11559_v25, 1  ;;  %2559 = vmatprep.subr.mxu0 %v160_v6  ;;  %v8498_v40 = vld [vmem:[%s11515_s10 + $0x1d0] sm:$0xff]  ;;  %v8503_v6 = vld [vmem:[%s11515_s10 + $0x1c8] sm:$0xff] }
 0x189   :  { %v2010_v26 = vmax.f32 %v1978_v15, %v1994_v55  ;;  %v736_v7 = vpop.f32.mrf.mxu0  ;;  %v1137_v16 = vpop.f32.mrf.mxu1  ;;  %2560 = vmatpush2.msra.mxu0 %v159_v62 }
 0x18a   :  { %v8482_v27 = vsel %vm2150_vm3, %v2166_v28, %v2168_v21  ;;  %2561 = vmatprep.subr.mxu0 %v158_v3  ;;  %v8519_v3 = vld [vmem:[%s11515_s10 + $0x1b8] sm:$0xff] }
 0x18b   :  { %v8491_v30 = vadd.f32 %v8260_v31, %v2010_v26  ;;  %v1139_v55 = vpop.f32.mrf.mxu1  ;;  %2298 = vrot.lane.b32.xlu1 %v8482_v27, %s6566_s28  ;;  %v738_v15 = vpop.f32.mrf.mxu0  ;;  %v8508_v26 = vld [vmem:[%s11515_s10 + $0x1c0] sm:$0xff]  ;;  %2562 = vmatpush2.msra.mxu0 %v8498_v40  ;;  %11667 = vst [vmem:[#allocation4_spill] sm:$0xff] %v8519_v3 }
 0x18c   :  { %v1995_v28 = vmax.f32 %v1137_v16, %v1139_v55  ;;  %v1979_v56 = vmax.f32 %v736_v7, %v738_v15  ;;  %11666 = vst [vmem:[#allocation3_spill] sm:$0xff] %v8508_v26  ;;  %2563 = vmatprep.subr.mxu0 %v8503_v6 }
 0x18d   :  { %11665 = vst [vmem:[#allocation7_spill] sm:$0xff] %v8491_v30  ;;  %v11560_v62 = vmax.f32 %v8491_v30, 0.0  ;;  %2564 = vmatpush2.msra.mxu0 %v8508_v26  ;;  %v8592_v30 = vld [vmem:[%s11515_s10 + $0x170] sm:$0xff] }
 0x18e   :  { %v2011_v7 = vmax.f32 %v1979_v56, %v1995_v28  ;;  %2565 = vmatprep.subr.mxu0 %v8519_v3  ;;  %v8528_v28 = vld [vmem:[%s11515_s10 + $0x1b0] sm:$0xff]  ;;  %11678 = vst [vmem:[#allocation21_spill] sm:$0xff] %v8592_v30 }
 0x18f   :  { %v2170_v16 = vrot.slane %v11560_v62, 1  ;;  %11669 = vst [vmem:[#allocation5_spill] sm:$0xff] %v8528_v28  ;;  %2566 = vmatpush2.msra.mxu0 %v8528_v28  ;;  %v8537_v62 = vld [vmem:[%s11515_s10 + $0x1a8] sm:$0xff] }
 0x190   :  { %v8522_v55 = vadd.f32 %v8260_v31, %v2011_v7  ;;  %v742_v15 = vpop.f32.mrf.mxu0  ;;  %v1143_v25 = vpop.f32.mrf.mxu1  ;;  %11670 = vst [vmem:[#allocation17_spill] sm:$0xff] %v8537_v62  ;;  %v8542_v7 = vld [vmem:[%s11515_s10 + $0x1a0] sm:$0xff]  ;;  %2567 = vmatprep.subr.mxu0 %v8537_v62 }
 0x191   :  { %v8531_v56 = vsel %vm2150_vm3, %v2168_v21, %v2170_v16  ;;  %11671 = vst [vmem:[#allocation10_spill] sm:$0xff] %v8542_v7  ;;  %2568 = vmatpush2.msra.mxu0 %v8542_v7 }
 0x192   :  { %11668 = vst [vmem:[#allocation16_spill] sm:$0xff] %v8522_v55  ;;  %v11569_v57 = vmax.f32 %v8522_v55, 0.0  ;;  %v1145_v12 = vpop.f32.mrf.mxu1  ;;  %2300 = vrot.lane.b32.xlu1 %v8531_v56, %s6566_s28  ;;  %v744_v21 = vpop.f32.mrf.mxu0  ;;  %2569 = vmatprep.subr.mxu0 %v8552_v45  ;;  %v8654_v45 = vld [vmem:[%s11515_s10 + $0x130] sm:$0xff] }
 0x193   :  { %v1996_v22 = vmax.f32 %v1143_v25, %v1145_v12  ;;  %v1980_v20 = vmax.f32 %v742_v15, %v744_v21  ;;  %2570 = vmatpush2.msra.mxu0 %v8560_v9  ;;  %v8566_v15 = vld [vmem:[%s11515_s10 + $0x188] sm:$0xff]  ;;  %11687 = vst [vmem:[#allocation26_spill] sm:$0xff] %v8654_v45 }
 0x194   :  { %v2172_v44 = vrot.slane %v11569_v57, 1  ;;  %11674 = vst [vmem:[#allocation8_spill] sm:$0xff] %v8566_v15  ;;  %2571 = vmatprep.subr.mxu0 %v8566_v15  ;;  %v8575_v57 = vld [vmem:[%s11515_s10 + $0x180] sm:$0xff] }
 0x195   :  { %v2012_v32 = vmax.f32 %v1980_v20, %v1996_v22  ;;  %v748_v12 = vpop.f32.mrf.mxu0  ;;  %v1149_v25 = vpop.f32.mrf.mxu1  ;;  %11675 = vst [vmem:[#allocation20_spill] sm:$0xff] %v8575_v57  ;;  %v8580_v20 = vld [vmem:[%s11515_s10 + $0x178] sm:$0xff]  ;;  %2572 = vmatpush2.msra.mxu0 %v8575_v57  ;;  %v8602_v15 = vld [vmem:[%s11515_s10 + $0x160] sm:$0xff] }
 0x196   :  { %v8569_v21 = vsel %vm2150_vm3, %v2170_v16, %v2172_v44  ;;  %11676 = vst [vmem:[#allocation11_spill] sm:$0xff] %v8580_v20  ;;  %2573 = vmatprep.subr.mxu0 %v8580_v20  ;;  %11680 = vst [vmem:[#allocation12_spill] sm:$0xff] %v8602_v15 }
 0x197   :  { %v8583_v22 = vadd.f32 %v8260_v31, %v2012_v32  ;;  %v1151_v4 = vpop.f32.mrf.mxu1  ;;  %2302 = vrot.lane.b32.xlu1 %v8569_v21, %s6566_s28  ;;  %v750_v16 = vpop.f32.mrf.mxu0  ;;  %v8597_v32 = vld [vmem:[%s11515_s10 + $0x168] sm:$0xff]  ;;  %2574 = vmatpush2.msra.mxu0 %v8592_v30  ;;  %v8622_v30 = vld [vmem:[%s11515_s10 + $0x150] sm:$0xff] }
 0x198   :  { %v1997_v47 = vmax.f32 %v1149_v25, %v1151_v4  ;;  %v1981_v55 = vmax.f32 %v748_v12, %v750_v16  ;;  %11679 = vst [vmem:[#allocation22_spill] sm:$0xff] %v8597_v32  ;;  %v8609_v12 = vld [vmem:[%s11515_s10 + $0x158] sm:$0xff]  ;;  %2575 = vmatprep.subr.mxu0 %v8597_v32  ;;  %11683 = vst [vmem:[#allocation15_spill] sm:$0xff] %v8622_v30 }
 0x199   :  { %11677 = vst [vmem:[#allocation9_spill] sm:$0xff] %v8583_v22  ;;  %v11580_v4 = vmax.f32 %v8583_v22, 0.0  ;;  %11681 = vst [vmem:[#allocation23_spill] sm:$0xff] %v8609_v12  ;;  %2576 = vmatpush2.msra.mxu0 %v8602_v15 }
 0x19a   :  { %v2013_v25 = vmax.f32 %v1981_v55, %v1997_v47  ;;  %2577 = vmatprep.subr.mxu0 %v8609_v12  ;;  %v8631_v55 = vld [vmem:[%s11515_s10 + $0x148] sm:$0xff] }
 0x19b   :  { %v2174_v16 = vrot.slane %v11580_v4, 1  ;;  %2578 = vmatpush2.msra.mxu0 %v8622_v30  ;;  %11684 = vst [vmem:[#allocation19_spill] sm:$0xff] %v8631_v55  ;;  %v8641_v4 = vld [vmem:[%s11515_s10 + $0x138] sm:$0xff] }
 0x19c   :  { %v8616_v20 = vadd.f32 %v8260_v31, %v2013_v25  ;;  %v754_v57 = vpop.f32.mrf.mxu0  ;;  %v1155_v9 = vpop.f32.mrf.mxu1  ;;  %v8636_v25 = vld [vmem:[%s11515_s10 + $0x140] sm:$0xff]  ;;  %11686 = vst [vmem:[#allocation25_spill] sm:$0xff] %v8641_v4  ;;  %2579 = vmatprep.subr.mxu0 %v8631_v55 }
 0x19d   :  { %v8625_v47 = vsel %vm2150_vm3, %v2172_v44, %v2174_v16  ;;  %11685 = vst [vmem:[#allocation24_spill] sm:$0xff] %v8636_v25  ;;  %2580 = vmatpush2.msra.mxu0 %v8636_v25 }
 0x19e   :  { %11682 = vst [vmem:[#allocation13_spill] sm:$0xff] %v8616_v20  ;;  %v11590_v44 = vmax.f32 %v8616_v20, 0.0  ;;  %v1157_v22 = vpop.f32.mrf.mxu1  ;;  %2304 = vrot.lane.b32.xlu1 %v8625_v47, %s6566_s28  ;;  %v756_v30 = vpop.f32.mrf.mxu0  ;;  %2581 = vmatprep.subr.mxu0 %v8641_v4 }
 0x19f   :  { %v1998_v12 = vmax.f32 %v1155_v9, %v1157_v22  ;;  %v1982_v15 = vmax.f32 %v754_v57, %v756_v30  ;;  %2582 = vmatpush2.msra.mxu0 %v8654_v45  ;;  %v8660_v9 = vld [vmem:[%s11515_s10 + $0x128] sm:$0xff]  ;;  %v8669_v30 = vld [vmem:[%s11515_s10 + $0x120] sm:$0xff] }
 0x1a0   :  { %v2176_v32 = vrot.slane %v11590_v44, 1  ;;  %11688 = vst [vmem:[#allocation27_spill] sm:$0xff] %v8660_v9  ;;  %2583 = vmatprep.subr.mxu0 %v8660_v9  ;;  %11689 = vst [vmem:[#allocation28_spill] sm:$0xff] %v8669_v30  ;;  %v8686_v9 = vld [vmem:[%s11515_s10 + $0x110] sm:$0xff] }
 0x1a1   :  { %v2014_v7 = vmax.f32 %v1982_v15, %v1998_v12  ;;  %v760_v59 = vpop.f32.mrf.mxu0  ;;  %v1161_v62 = vpop.f32.mrf.mxu1  ;;  %v8674_v15 = vld [vmem:[%s11515_s10 + $0x118] sm:$0xff]  ;;  %2584 = vmatpush2.msra.mxu0 %v8669_v30  ;;  %11692 = vst [vmem:[#allocation31_spill] sm:$0xff] %v8686_v9 }
 0x1a2   :  { %v8663_v57 = vsel %vm2150_vm3, %v2174_v16, %v2176_v32  ;;  %11690 = vst [vmem:[#allocation29_spill] sm:$0xff] %v8674_v15  ;;  %2585 = vmatprep.subr.mxu0 %v8674_v15 }
 0x1a3   :  { %v8677_v22 = vadd.f32 %v8260_v31, %v2014_v7  ;;  %v1163_v12 = vpop.f32.mrf.mxu1  ;;  %2306 = vrot.lane.b32.xlu1 %v8663_v57, %s6566_s28  ;;  %v762_v16 = vpop.f32.mrf.mxu0  ;;  %2586 = vmatpush2.msra.mxu0 %v8686_v9  ;;  %v8693_v7 = vld [vmem:[%s11515_s10 + $0x108] sm:$0xff] }
 0x1a4   :  { %v1999_v44 = vmax.f32 %v1161_v62, %v1163_v12  ;;  %v1983_v20 = vmax.f32 %v760_v59, %v762_v16  ;;  %11693 = vst [vmem:[#allocation32_spill] sm:$0xff] %v8693_v7  ;;  %2587 = vmatprep.subr.mxu0 %v8693_v7  ;;  %v8699_v59 = vld [vmem:[%s11515_s10 + $0x100] sm:$0xff] }
 0x1a5   :  { %11691 = vst [vmem:[#allocation30_spill] sm:$0xff] %v8677_v22  ;;  %v11598_v45 = vmax.f32 %v8677_v22, 0.0  ;;  %11694 = vst [vmem:[#allocation33_spill] sm:$0xff] %v8699_v59  ;;  %2588 = vmatpush2.msra.mxu0 %v8699_v59 }
 0x1a6   :  { %v2015_v4 = vmax.f32 %v1983_v20, %v1999_v44  ;;  %2879 = vmatprep.subr.mxu0 %v8318_v43 }
 0x1a7   :  { %v2178_v62 = vrot.slane %v11598_v45, 1 }
 0x1a8   :  { %v8705_v12 = vadd.f32 %v8260_v31, %v2015_v4  ;;  %v1472_v16 = vpop.f32.mrf.mxu0  ;;  %v1873_v9 = vpop.f32.mrf.mxu1 }
 0x1a9   :  { %v8709_v20 = vsel %vm2150_vm3, %v2176_v32, %v2178_v62 }
 0x1aa   :  { %11695 = vst [vmem:[#allocation34_spill] sm:$0xff] %v8705_v12  ;;  %v11607_v44 = vmax.f32 %v8705_v12, 0.0  ;;  %v1875_v7 = vpop.f32.mrf.mxu1  ;;  %2308 = vrot.lane.b32.xlu1 %v8709_v20, %s6566_s28  ;;  %v1474_v22 = vpop.f32.mrf.mxu0 }
 0x1ab   :  { %v2070_v45 = vmax.f32 %v1873_v9, %v1875_v7  ;;  %v2054_v15 = vmax.f32 %v1472_v16, %v1474_v22 }
 0x1ac   :  { %v2180_v4 = vrot.slane %v11607_v44, 1 }
 0x1ad   :  { %v2086_v59 = vmax.f32 %v2054_v15, %v2070_v45  ;;  %v1478_v30 = vpop.f32.mrf.mxu0  ;;  %v1879_v25 = vpop.f32.mrf.mxu1 }
 0x1ae   :  { %v8717_v43 = vsel %vm2150_vm3, %v2178_v62, %v2180_v4  ;;  %v8725_v7 = vsel %vm2150_vm3, %v2180_v4, 0.0 }
 0x1af   :  { %v1881_v32 = vpop.f32.mrf.mxu1  ;;  %2310 = vrot.lane.b32.xlu1 %v8717_v43, %s6566_s28  ;;  %v1480_v55 = vpop.f32.mrf.mxu0  ;;  %v2102_v28 = vadd.f32 %v8260_v31, %v2086_v59 }
 0x1b0   :  { %v2071_v3 = vmax.f32 %v1879_v25, %v1881_v32  ;;  %v2055_v26 = vmax.f32 %v1478_v30, %v1480_v55 }
 0x1b1   :  { %v8722_v9 = vmax.f32 %v2102_v28, 0.0 }
 0x1b2   :  { %v2087_v22 = vmax.f32 %v2055_v26, %v2071_v3 }
 0x1b3   :  { %11696 = vst [vmem:[#allocation35_spill] sm:$0xff] %v8722_v9  ;;  %2312 = vrot.lane.b32.xlu1 %v8725_v7, %s6566_s28  ;;  %2233 = vrot.lane.b32.xlu0 %v8722_v9, %s6569_s25  ;;  %v2200_v3 = vrot.slane %v8722_v9, 1 }
 0x1b4   :  { %v2103_v45 = vadd.f32 %v8260_v31, %v2087_v22  ;;  %v1484_v15 = vpop.f32.mrf.mxu0  ;;  %v1885_v62 = vpop.f32.mrf.mxu1 }
 0x1b6   :  { %v8732_v59 = vmax.f32 %v2103_v45, 0.0  ;;  %v1486_v55 = vpop.f32.mrf.mxu0  ;;  %v1887_v28 = vpop.f32.mrf.mxu1 }
 0x1b7   :  { %v2056_v25 = vmax.f32 %v1484_v15, %v1486_v55  ;;  %v2072_v26 = vmax.f32 %v1885_v62, %v1887_v28 }
 0x1b8   :  { %11697 = vst [vmem:[#allocation36_spill] sm:$0xff] %v8732_v59  ;;  %2235 = vrot.lane.b32.xlu0 %v8732_v59, %s6569_s25  ;;  %v2201_v30 = vrot.slane %v8732_v59, 1 }
 0x1b9   :  { %v2088_v16 = vmax.f32 %v2056_v25, %v2072_v26  ;;  %v1490_v4 = vpop.f32.mrf.mxu0  ;;  %v1891_v32 = vpop.f32.mrf.mxu1 }
 0x1ba   :  { %v2202_v22 = vsel %vm2150_vm3, %v2200_v3, %v2201_v30 }
 0x1bb   :  { %v2104_v44 = vadd.f32 %v8260_v31, %v2088_v16  ;;  %v1893_v45 = vpop.f32.mrf.mxu1  ;;  %2412 = vrot.lane.b32.xlu1 %v2202_v22, %s6566_s28  ;;  %v1492_v12 = vpop.f32.mrf.mxu0 }
 0x1bc   :  { %v2073_v15 = vmax.f32 %v1891_v32, %v1893_v45  ;;  %v2057_v62 = vmax.f32 %v1490_v4, %v1492_v12 }
 0x1bd   :  { %v8741_v55 = vmax.f32 %v2104_v44, 0.0 }
 0x1be   :  { %v2089_v28 = vmax.f32 %v2057_v62, %v2073_v15 }
 0x1bf   :  { %11698 = vst [vmem:[#allocation37_spill] sm:$0xff] %v8741_v55  ;;  %2237 = vrot.lane.b32.xlu0 %v8741_v55, %s6569_s25  ;;  %v2203_v25 = vrot.slane %v8741_v55, 1 }
 0x1c0   :  { %v2105_v26 = vadd.f32 %v8260_v31, %v2089_v28  ;;  %v1496_v59 = vpop.f32.mrf.mxu0  ;;  %v1897_v3 = vpop.f32.mrf.mxu1 }
 0x1c1   :  { %v2204_v16 = vsel %vm2150_vm3, %v2201_v30, %v2203_v25 }
 0x1c2   :  { %v8748_v9 = vmax.f32 %v2105_v26, 0.0  ;;  %v1899_v22 = vpop.f32.mrf.mxu1  ;;  %2414 = vrot.lane.b32.xlu1 %v2204_v16, %s6566_s28  ;;  %v1498_v12 = vpop.f32.mrf.mxu0 }
 0x1c3   :  { %v2074_v44 = vmax.f32 %v1897_v3, %v1899_v22  ;;  %v2058_v4 = vmax.f32 %v1496_v59, %v1498_v12 }
 0x1c4   :  { %2239 = vrot.lane.b32.xlu0 %v8748_v9, %s6569_s25  ;;  %v2205_v32 = vrot.slane %v8748_v9, 1 }
 0x1c5   :  { %v2090_v45 = vmax.f32 %v2058_v4, %v2074_v44  ;;  %v1502_v15 = vpop.f32.mrf.mxu0  ;;  %v1903_v62 = vpop.f32.mrf.mxu1 }
 0x1c6   :  { %v2206_v28 = vsel %vm2150_vm3, %v2203_v25, %v2205_v32 }
 0x1c7   :  { %v2106_v30 = vadd.f32 %v8260_v31, %v2090_v45  ;;  %v1905_v26 = vpop.f32.mrf.mxu1  ;;  %2416 = vrot.lane.b32.xlu1 %v2206_v28, %s6566_s28  ;;  %v1504_v55 = vpop.f32.mrf.mxu0 }
 0x1c8   :  { %v2075_v16 = vmax.f32 %v1903_v62, %v1905_v26  ;;  %v2059_v46 = vmax.f32 %v1502_v15, %v1504_v55 }
 0x1c9   :  { %v8757_v3 = vmax.f32 %v2106_v30, 0.0  ;;  %v11699_v30 = vmov 0.0  }
 0x1ca   :  { %v2091_v59 = vmax.f32 %v2059_v46, %v2075_v16 }
 0x1cb   :  { %2241 = vrot.lane.b32.xlu0 %v8757_v3, %s6569_s25  ;;  %v2207_v22 = vrot.slane %v8757_v3, 1 }
 0x1cc   :  { %v2107_v12 = vadd.f32 %v8260_v31, %v2091_v59  ;;  %v1508_v25 = vpop.f32.mrf.mxu0  ;;  %v1909_v44 = vpop.f32.mrf.mxu1 }
 0x1cd   :  { %v8763_v4 = vpop.permute.xlu1 %2282  ;;  %v2208_v45 = vsel %vm2150_vm3, %v2205_v32, %v2207_v22 }
 0x1ce   :  { %v8766_v28 = vmax.f32 %v2107_v12, 0.0  ;;  %v1911_v55 = vpop.f32.mrf.mxu1  ;;  %5525 = vmatmul.mubr.msk.f32.vlgmr.msra.gmra.mxu1 %vm2492_vm4, %v8763_v4  ;;  %2418 = vrot.lane.b32.xlu1 %v2208_v45, %s6566_s28  ;;  %v1510_v46 = vpop.f32.mrf.mxu0 }
 0x1cf   :  { %v2076_v15 = vmax.f32 %v1909_v44, %v1911_v55  ;;  %v2060_v62 = vmax.f32 %v1508_v25, %v1510_v46  ;;  %2756 = vmatprep.mubr.f32.mxu1 %v11699_v30  ;;  %3053 = vmatpush1.msra.mxu1 %v8138_v61 }
 0x1d0   :  { %2243 = vrot.lane.b32.xlu0 %v8766_v28, %s6569_s25  ;;  %v2209_v32 = vrot.slane %v8766_v28, 1  ;;  %3054 = vmatprep.subr.mxu1 %v8146_v39 }
 0x1d1   :  { %v2092_v26 = vmax.f32 %v2060_v62, %v2076_v15  ;;  %v1514_v16 = vpop.f32.mrf.mxu0  ;;  %v1915_v59 = vpop.f32.mrf.mxu1  ;;  %3055 = vmatpush1.msra.mxu1 %v8151_v1 }
 0x1d2   :  { %v2210_v12 = vsel %vm2150_vm3, %v2207_v22, %v2209_v32  ;;  %3056 = vmatprep.subr.mxu1 %v8159_v49 }
 0x1d3   :  { %v2108_v25 = vadd.f32 %v8260_v31, %v2092_v26  ;;  %v1917_v44 = vpop.f32.mrf.mxu1  ;;  %2420 = vrot.lane.b32.xlu1 %v2210_v12, %s6566_s28  ;;  %v1516_v61 = vpop.f32.mrf.mxu0  ;;  %3057 = vmatpush1.msra.mxu1 %v8176_v51 }
 0x1d4   :  { %v2077_v45 = vmax.f32 %v1915_v59, %v1917_v44  ;;  %v2061_v55 = vmax.f32 %v1514_v16, %v1516_v61  ;;  %v8783_v39 = vpop.permute.xlu1 %2284  ;;  %3058 = vmatprep.subr.mxu1 %v8184_v50 }
 0x1d5   :  { %v8786_v46 = vmax.f32 %v2108_v25, 0.0  ;;  %5526 = vmatmul.mubr.msk.f32.gmra.mxu1 %vm2492_vm4, %v8783_v39 }
 0x1d6   :  { %v2093_v1 = vmax.f32 %v2061_v55, %v2077_v45  ;;  %2762 = vmatprep.mubr.f32.mxu1 %v11699_v30  ;;  %3059 = vmatpush1.msra.mxu1 %v8189_v8 }
 0x1d7   :  { %2245 = vrot.lane.b32.xlu0 %v8786_v46, %s6569_s25  ;;  %v2211_v49 = vrot.slane %v8786_v46, 1  ;;  %3060 = vmatprep.subr.mxu1 %v8195_v48 }
 0x1d8   :  { %v2109_v51 = vadd.f32 %v8260_v31, %v2093_v1  ;;  %v1520_v50 = vpop.f32.mrf.mxu0  ;;  %v1921_v22 = vpop.f32.mrf.mxu1  ;;  %3061 = vmatpush1.msra.mxu1 %v8201_v42 }
 0x1d9   :  { %v8798_v15 = vpop.permute.xlu1 %2286  ;;  %v2212_v62 = vsel %vm2150_vm3, %v2209_v32, %v2211_v49  ;;  %3062 = vmatprep.subr.mxu1 %v8207_v0 }
 0x1da   :  { %v8802_v8 = vmax.f32 %v2109_v51, 0.0  ;;  %v1923_v26 = vpop.f32.mrf.mxu1  ;;  %5527 = vmatmul.mubr.msk.f32.gmra.mxu1 %vm2492_vm4, %v8798_v15  ;;  %2422 = vrot.lane.b32.xlu1 %v2212_v62, %s6566_s28  ;;  %v1522_v48 = vpop.f32.mrf.mxu0 }
 0x1db   :  { %v2078_v16 = vmax.f32 %v1921_v22, %v1923_v26  ;;  %v2062_v59 = vmax.f32 %v1520_v50, %v1522_v48  ;;  %2768 = vmatprep.mubr.f32.mxu1 %v11699_v30  ;;  %3063 = vmatpush1.msra.mxu1 %v8213_v29 }
 0x1dc   :  { %2247 = vrot.lane.b32.xlu0 %v8802_v8, %s6569_s25  ;;  %v2213_v42 = vrot.slane %v8802_v8, 1  ;;  %3064 = vmatprep.subr.mxu1 %v8219_v2 }
 0x1dd   :  { %v2094_v0 = vmax.f32 %v2062_v59, %v2078_v16  ;;  %v1526_v32 = vpop.f32.mrf.mxu0  ;;  %v1927_v12 = vpop.f32.mrf.mxu1  ;;  %3065 = vmatpush1.msra.mxu1 %v8225_v54 }
 0x1de   :  { %v2214_v25 = vsel %vm2150_vm3, %v2211_v49, %v2213_v42  ;;  %3066 = vmatprep.subr.mxu1 %v8231_v52 }
 0x1df   :  { %v2110_v44 = vadd.f32 %v8260_v31, %v2094_v0  ;;  %v1929_v61 = vpop.f32.mrf.mxu1  ;;  %2424 = vrot.lane.b32.xlu1 %v2214_v25, %s6566_s28  ;;  %v1528_v29 = vpop.f32.mrf.mxu0  ;;  %3067 = vmatpush1.msra.mxu1 %v8237_v19 }
 0x1e0   :  { %v2079_v45 = vmax.f32 %v1927_v12, %v1929_v61  ;;  %v2063_v55 = vmax.f32 %v1526_v32, %v1528_v29  ;;  %v8819_v2 = vpop.permute.xlu1 %2288  ;;  %3068 = vmatprep.subr.mxu1 %v8243_v5 }
 0x1e1   :  { %v8822_v1 = vmax.f32 %v2110_v44, 0.0  ;;  %5528 = vmatmul.mubr.msk.f32.gmra.mxu1 %vm2492_vm4, %v8819_v2 }
 0x1e2   :  { %v2095_v54 = vmax.f32 %v2063_v55, %v2079_v45  ;;  %2774 = vmatprep.mubr.f32.mxu1 %v11699_v30  ;;  %3069 = vmatpush1.msra.mxu1 %v8249_v58 }
 0x1e3   :  { %2249 = vrot.lane.b32.xlu0 %v8822_v1, %s6569_s25  ;;  %v2215_v52 = vrot.slane %v8822_v1, 1  ;;  %3070 = vmatprep.subr.mxu1 %v8255_v18 }
 0x1e4   :  { %v2111_v19 = vadd.f32 %v8260_v31, %v2095_v54  ;;  %v1532_v5 = vpop.f32.mrf.mxu0  ;;  %v1933_v49 = vpop.f32.mrf.mxu1  ;;  %3071 = vmatpush1.msra.mxu1 %v8266_v10 }
 0x1e5   :  { %v8834_v51 = vpop.permute.xlu1 %2290  ;;  %v2216_v50 = vsel %vm2150_vm3, %v2213_v42, %v2215_v52 }
 0x1e6   :  { %v8837_v22 = vmax.f32 %v2111_v19, 0.0  ;;  %v1935_v58 = vpop.f32.mrf.mxu1  ;;  %5529 = vmatmul.mubr.msk.f32.gmra.mxu1 %vm2492_vm4, %v8834_v51  ;;  %2426 = vrot.lane.b32.xlu1 %v2216_v50, %s6566_s28  ;;  %v1534_v62 = vpop.f32.mrf.mxu0 }
 0x1e7   :  { %v2080_v18 = vmax.f32 %v1933_v49, %v1935_v58  ;;  %v2064_v26 = vmax.f32 %v1532_v5, %v1534_v62  ;;  %2780 = vmatprep.mubr.f32.mxu1 %v11699_v30 }
 0x1e8   :  { %2251 = vrot.lane.b32.xlu0 %v8837_v22, %s6569_s25  ;;  %v2217_v10 = vrot.slane %v8837_v22, 1 }
 0x1e9   :  { %v2096_v48 = vmax.f32 %v2064_v26, %v2080_v18  ;;  %v1538_v16 = vpop.f32.mrf.mxu0  ;;  %v1939_v59 = vpop.f32.mrf.mxu1 }
 0x1ea   :  { %v2218_v42 = vsel %vm2150_vm3, %v2215_v52, %v2217_v10 }
 0x1eb   :  { %v2112_v0 = vadd.f32 %v8260_v31, %v2096_v48  ;;  %v1941_v32 = vpop.f32.mrf.mxu1  ;;  %2428 = vrot.lane.b32.xlu1 %v2218_v42, %s6566_s28  ;;  %v1540_v12 = vpop.f32.mrf.mxu0  ;;  %v6528_v42 = vld [vmem:[%s11516_s9] ss:$0 sm:$0xff] }
 0x1ec   :  { %v2081_v25 = vmax.f32 %v1939_v59, %v1941_v32  ;;  %v2065_v44 = vmax.f32 %v1538_v16, %v1540_v12  ;;  %v8849_v61 = vpop.permute.xlu1 %2292 }
 0x1ed   :  { %v8851_v29 = vmax.f32 %v2112_v0, 0.0  ;;  %5530 = vmatmul.mubr.msk.f32.gmra.mxu1 %vm2492_vm4, %v8849_v61 }
 0x1ee   :  { %v2097_v45 = vmax.f32 %v2065_v44, %v2081_v25  ;;  %2786 = vmatprep.mubr.f32.mxu1 %v11699_v30 }
 0x1ef   :  { %2253 = vrot.lane.b32.xlu0 %v8851_v29, %s6569_s25  ;;  %v2219_v55 = vrot.slane %v8851_v29, 1 }
 0x1f0   :  { %v2113_v54 = vadd.f32 %v8260_v31, %v2097_v45  ;;  %v1544_v52 = vpop.f32.mrf.mxu0  ;;  %v1945_v19 = vpop.f32.mrf.mxu1 }
 0x1f1   :  { %v8860_v5 = vpop.permute.xlu1 %2294  ;;  %v2220_v49 = vsel %vm2150_vm3, %v2217_v10, %v2219_v55 }
 0x1f2   :  { %v8863_v50 = vmax.f32 %v2113_v54, 0.0  ;;  %v1947_v58 = vpop.f32.mrf.mxu1  ;;  %5531 = vmatmul.mubr.msk.f32.gmra.mxu1 %vm2492_vm4, %v8860_v5  ;;  %2430 = vrot.lane.b32.xlu1 %v2220_v49, %s6566_s28  ;;  %v1546_v62 = vpop.f32.mrf.mxu0 }
 0x1f3   :  { %v2082_v18 = vmax.f32 %v1945_v19, %v1947_v58  ;;  %v2066_v26 = vmax.f32 %v1544_v52, %v1546_v62  ;;  %2792 = vmatprep.mubr.f32.mxu1 %v11699_v30 }
 0x1f4   :  { %2255 = vrot.lane.b32.xlu0 %v8863_v50, %s6569_s25  ;;  %v2221_v31 = vrot.slane %v8863_v50, 1 }
 0x1f5   :  { %v2098_v48 = vmax.f32 %v2066_v26, %v2082_v18  ;;  %v1550_v10 = vpop.f32.mrf.mxu0  ;;  %v1951_v16 = vpop.f32.mrf.mxu1 }
 0x1f6   :  { %v2222_v59 = vsel %vm2150_vm3, %v2219_v55, %v2221_v31 }
 0x1f7   :  { %v2114_v0 = vadd.f32 %v6528_v42, %v2098_v48  ;;  %v1953_v32 = vpop.f32.mrf.mxu1  ;;  %2432 = vrot.lane.b32.xlu1 %v2222_v59, %s6566_s28  ;;  %v1552_v12 = vpop.f32.mrf.mxu0 }
 0x1f8   :  { %v2083_v25 = vmax.f32 %v1951_v16, %v1953_v32  ;;  %v2067_v44 = vmax.f32 %v1550_v10, %v1552_v12  ;;  %v8877_v45 = vpop.permute.xlu1 %2296 }
 0x1f9   :  { %v8879_v54 = vmax.f32 %v2114_v0, 0.0  ;;  %5532 = vmatmul.mubr.msk.f32.gmra.mxu1 %vm2492_vm4, %v8877_v45 }
 0x1fa   :  { %v2099_v52 = vmax.f32 %v2067_v44, %v2083_v25  ;;  %2798 = vmatprep.mubr.f32.mxu1 %v11699_v30 }
 0x1fb   :  { %2257 = vrot.lane.b32.xlu0 %v8879_v54, %s6569_s25  ;;  %v2223_v55 = vrot.slane %v8879_v54, 1 }
 0x1fc   :  { %v2115_v19 = vadd.f32 %v6528_v42, %v2099_v52  ;;  %v1556_v49 = vpop.f32.mrf.mxu0  ;;  %v1957_v58 = vpop.f32.mrf.mxu1 }
 0x1fd   :  { %v8887_v62 = vpop.permute.xlu1 %2298  ;;  %v2224_v18 = vsel %vm2150_vm3, %v2221_v31, %v2223_v55 }
 0x1fe   :  { %v8890_v26 = vmax.f32 %v2115_v19, 0.0  ;;  %v1959_v48 = vpop.f32.mrf.mxu1  ;;  %5533 = vmatmul.mubr.msk.f32.gmra.mxu1 %vm2492_vm4, %v8887_v62  ;;  %2434 = vrot.lane.b32.xlu1 %v2224_v18, %s6566_s28  ;;  %v1558_v10 = vpop.f32.mrf.mxu0 }
 0x1ff   :  { %v2084_v16 = vmax.f32 %v1957_v58, %v1959_v48  ;;  %v2068_v59 = vmax.f32 %v1556_v49, %v1558_v10  ;;  %2804 = vmatprep.mubr.f32.mxu1 %v11699_v30 }
 0x200   :  { %2259 = vrot.lane.b32.xlu0 %v8890_v26, %s6569_s25  ;;  %v2225_v0 = vrot.slane %v8890_v26, 1 }
 0x201   :  { %v2100_v32 = vmax.f32 %v2068_v59, %v2084_v16  ;;  %v1562_v31 = vpop.f32.mrf.mxu0  ;;  %v1963_v12 = vpop.f32.mrf.mxu1 }
 0x202   :  { %v2226_v25 = vsel %vm2150_vm3, %v2223_v55, %v2225_v0 }
 0x203   :  { %v2116_v44 = vadd.f32 %v6528_v42, %v2100_v32  ;;  %v1965_v52 = vpop.f32.mrf.mxu1  ;;  %2436 = vrot.lane.b32.xlu1 %v2226_v25, %s6566_s28  ;;  %v1564_v19 = vpop.f32.mrf.mxu0 }
 0x204   :  { %v2085_v18 = vmax.f32 %v1963_v12, %v1965_v52  ;;  %v2069_v58 = vmax.f32 %v1562_v31, %v1564_v19  ;;  %v8901_v49 = vpop.permute.xlu1 %2300  ;;  %v11700_v52 = vmax.f32 %v8272_v33, 0.0 }
 0x205   :  { %v8903_v48 = vmax.f32 %v2116_v44, 0.0  ;;  %5534 = vmatmul.mubr.msk.f32.gmra.mxu1 %vm2492_vm4, %v8901_v49 }
 0x206   :  { %v2101_v10 = vmax.f32 %v2069_v58, %v2085_v18  ;;  %2810 = vmatprep.mubr.f32.mxu1 %v11699_v30  ;;  %v6530_v18 = vld [vmem:[%s11515_s10 + $0xe8] sm:$0xff]  ;;  %v11701_v58 = vmax.f32 %v8278_v34, 0.0  ;;  %v6533_v34 = vld [vmem:[%s11515_s10 + $0xd0] sm:$0xff] }
 0x207   :  { %2261 = vrot.lane.b32.xlu0 %v8903_v48, %s6569_s25  ;;  %v2227_v55 = vrot.slane %v8903_v48, 1 }
 0x208   :  { %v2117_v16 = vadd.f32 %v6528_v42, %v2101_v10 }
 0x209   :  { %v8911_v59 = vpop.permute.xlu1 %2302  ;;  %v2228_v32 = vsel %vm2150_vm3, %v2225_v0, %v2227_v55 }
 0x20a   :  { %v8914_v31 = vmax.f32 %v2117_v16, 0.0  ;;  %5535 = vmatmul.mubr.msk.f32.gmra.mxu1 %vm2492_vm4, %v8911_v59  ;;  %2438 = vrot.lane.b32.xlu1 %v2228_v32, %s6566_s28  ;;  %v6535_v16 = vld [vmem:[%s11515_s10 + $0xc0] sm:$0xff] }
 0x20b   :  { %2816 = vmatprep.mubr.f32.mxu1 %v11699_v30 }
 0x20c   :  { %2263 = vrot.lane.b32.xlu0 %v8914_v31, %s6569_s25  ;;  %v2229_v12 = vrot.slane %v8914_v31, 1 }
 0x20e   :  { %v2230_v42 = vsel %vm2150_vm3, %v2227_v55, %v2229_v12  ;;  %v2232_v0 = vsel %vm2150_vm3, %v2229_v12, 0.0  ;;  %v6536_v12 = vld [vmem:[%s11515_s10 + $0xb8] sm:$0xff] }
 0x20f   :  { %2440 = vrot.lane.b32.xlu1 %v2230_v42, %s6566_s28 }
 0x210   :  { %v8925_v25 = vpop.permute.xlu1 %2304  ;;  %2363 = vrot.lane.b32.xlu0 %v8286_v11, %s6569_s25 }
 0x211   :  { %5536 = vmatmul.mubr.msk.f32.gmra.mxu1 %vm2492_vm4, %v8925_v25 }
 0x212   :  { %2822 = vmatprep.mubr.f32.mxu1 %v11699_v30 }
 0x213   :  { %2442 = vrot.lane.b32.xlu1 %v2232_v0, %s6566_s28  ;;  %v11702_v0 = vmax.f32 %v8289_v35, 0.0  ;;  %v6539_v35 = vld [vmem:[%s11515_s10 + $0xa0] sm:$0xff] }
 0x214   :  { %2365 = vrot.lane.b32.xlu0 %v8300_v38, %s6569_s25 }
 0x215   :  { %v8936_v44 = vpop.permute.xlu1 %2306 }
 0x216   :  { %5537 = vmatmul.mubr.msk.f32.gmra.mxu1 %vm2492_vm4, %v8936_v44 }
 0x217   :  { %2828 = vmatprep.mubr.f32.mxu1 %v11699_v30 }
 0x218   :  { %2367 = vrot.lane.b32.xlu0 %v8308_v14, %s6569_s25 }
 0x21c   :  { %v8943_v11 = vpop.permute.xlu1 %2308  ;;  %2369 = vrot.lane.b32.xlu0 %v8343_v53, %s6569_s25 }
 0x21d   :  { %5538 = vmatmul.mubr.msk.f32.gmra.mxu1 %vm2492_vm4, %v8943_v11 }
 0x21e   :  { %2834 = vmatprep.mubr.f32.mxu1 %v11699_v30 }
 0x220   :  { %2371 = vrot.lane.b32.xlu0 %v8366_v36, %s6569_s25 }
 0x221   :  { %v8952_v38 = vpop.permute.xlu1 %2310 }
 0x222   :  { %5539 = vmatmul.mubr.msk.f32.gmra.mxu1 %vm2492_vm4, %v8952_v38 }
 0x223   :  { %2840 = vmatprep.mubr.f32.mxu1 %v11699_v30 }
 0x224   :  { %2373 = vrot.lane.b32.xlu0 %v8401_v13, %s6569_s25  ;;  %v6529_v13 = vld [vmem:[%s11515_s10 + $0xf0] sm:$0xff] }
 0x225   :  { %v8959_v14 = vpop.permute.xlu1 %2312  ;;  %v2234_v53 = vpop.permute.xlu0 %2233 }
 0x226   :  { %v2331_v19 = vsel %vm2330_vm5, %v11700_v52, %v2234_v53  ;;  %5540 = vmatmul.mubr.msk.f32.gmra.mxu1 %vm2492_vm4, %v8959_v14  ;;  %v2347_v36 = vsel %vm539_vm2, %v2234_v53, %v8763_v4  ;;  %v6538_v52 = vld [vmem:[%s11515_s10 + $0xa8] sm:$0xff] }
 0x227   :  { %2589 = vmatprep.mubr.f32.mxu0 %v2347_v36  ;;  %3104 = vmatprep.mubr.f32.mxu1 %v11699_v30  ;;  %v6540_v36 = vld [vmem:[%s11515_s10 + $0x98] sm:$0xff] }
 0x228   :  { %2590 = vmatmul.mubr.f32.vlgmr.msra.gmra.mxu0 %v2331_v19  ;;  %2375 = vrot.lane.b32.xlu0 %v8424_v23, %s6569_s25  ;;  %v6531_v23 = vld [vmem:[%s11515_s10 + $0xe0] sm:$0xff] }
 0x229   :  { %2880 = vmatpush1.msra.mxu0 %v6529_v13 }
 0x22a   :  { %v2236_v33 = vpop.permute.xlu0 %2235  ;;  %2881 = vmatprep.subr.mxu0 %v6530_v18  ;;  %v6541_v18 = vld [vmem:[%s11515_s10 + $0x90] sm:$0xff] }
 0x22b   :  { %v2348_v4 = vsel %vm539_vm2, %v2236_v33, %v8783_v39  ;;  %v2332_v10 = vsel %vm2330_vm5, %v11701_v58, %v2236_v33  ;;  %2882 = vmatpush1.msra.mxu0 %v6531_v23  ;;  %v6532_v39 = vld [vmem:[%s11515_s10 + $0xd8] sm:$0xff]  ;;  %v6545_v58 = vld [vmem:[%s11515_s10 + $0x70] sm:$0xff]  ;;  %v6546_v23 = vld [vmem:[%s11515_s10 + $0x68] sm:$0xff] }
 0x22c   :  { %2595 = vmatprep.mubr.f32.mxu0 %v2348_v4  ;;  %2377 = vrot.lane.b32.xlu0 %v8459_v24, %s6569_s25  ;;  %v6534_v24 = vld [vmem:[%s11515_s10 + $0xc8] sm:$0xff] }
 0x22d   :  { %2596 = vmatmul.mubr.f32.gmra.mxu0 %v2332_v10  ;;  %v8987_v55 = vpop.permute.xlu1 %2412  ;;  %2883 = vmatprep.subr.mxu0 %v6532_v39 }
 0x22e   :  { %5541 = vmatmul.mubr.msk.f32.vlgmr.msra.gmra.mxu1 %vm2492_vm4, %v8987_v55  ;;  %2884 = vmatpush1.msra.mxu0 %v6533_v34  ;;  %v11704_v34 = vmax.f32 %v8311_v17, 0.0  ;;  %v6549_v17 = vld [vmem:[%s11515_s10 + $0x50] sm:$0xff] }
 0x22f   :  { %3110 = vmatprep.mubr.f32.mxu1 %v11699_v30  ;;  %2885 = vmatprep.subr.mxu0 %v6534_v24 }
 0x230   :  { %2379 = vrot.lane.b32.xlu0 %v8482_v27, %s6569_s25  ;;  %2886 = vmatpush1.msra.mxu0 %v6535_v16  ;;  %v6537_v27 = vld [vmem:[%s11515_s10 + $0xb0] sm:$0xff]  ;;  %v6548_v16 = vld [vmem:[%s11515_s10 + $0x58] sm:$0xff] }
 0x231   :  { %v2238_v32 = vpop.permute.xlu0 %2237  ;;  %2887 = vmatprep.subr.mxu0 %v6536_v12  ;;  %v6550_v12 = vld [vmem:[%s11515_s10 + $0x48] sm:$0xff] }
 0x232   :  { %v2349_v42 = vsel %vm539_vm2, %v2238_v32, %v8798_v15  ;;  %v2333_v53 = vsel %vm2330_vm5, %v11702_v0, %v2238_v32  ;;  %2888 = vmatpush1.msra.mxu0 %v6537_v27 }
 0x233   :  { %2601 = vmatprep.mubr.f32.mxu0 %v2349_v42  ;;  %2889 = vmatprep.subr.mxu0 %v6538_v52  ;;  %v6555_v52 = vld [vmem:[%s11515_s10 + $0x20] sm:$0xff] }
 0x234   :  { %2602 = vmatmul.mubr.f32.gmra.mxu0 %v2333_v53  ;;  %v9020_v19 = vpop.permute.xlu1 %2414  ;;  %2381 = vrot.lane.b32.xlu0 %v8531_v56, %s6569_s25  ;;  %v11703_v56 = vmax.f32 %v8297_v37, 0.0  ;;  %v6543_v37 = vld [vmem:[%s11515_s10 + $0x80] sm:$0xff] }
 0x235   :  { %5542 = vmatmul.mubr.msk.f32.gmra.mxu1 %vm2492_vm4, %v9020_v19  ;;  %2890 = vmatpush1.msra.mxu0 %v6539_v35  ;;  %v6551_v53 = vld [vmem:[%s11515_s10 + $0x40] sm:$0xff] }
 0x236   :  { %v2240_v15 = vpop.permute.xlu0 %2239  ;;  %3116 = vmatprep.mubr.f32.mxu1 %v11699_v30  ;;  %2891 = vmatprep.subr.mxu0 %v6540_v36 }
 0x237   :  { %v2350_v13 = vsel %vm539_vm2, %v2240_v15, %v8819_v2  ;;  %v2334_v33 = vsel %vm2330_vm5, %v11703_v56, %v2240_v15  ;;  %2892 = vmatpush1.msra.mxu0 %v6541_v18  ;;  %v6542_v2 = vld [vmem:[%s11515_s10 + $0x88] sm:$0xff]  ;;  %v6556_v15 = vld [vmem:[%s11515_s10 + $0x18] sm:$0xff] }
 0x238   :  { %2607 = vmatprep.mubr.f32.mxu0 %v2350_v13  ;;  %2383 = vrot.lane.b32.xlu0 %v8569_v21, %s6569_s25  ;;  %v6544_v21 = vld [vmem:[%s11515_s10 + $0x78] sm:$0xff]  ;;  %v11706_v13 = vmax.f32 %v8372_v60, 0.0  ;;  %v6559_v60 = vld [vmem:[%s11515_s10] sm:$0xff] }
 0x239   :  { %2608 = vmatmul.mubr.f32.gmra.mxu0 %v2334_v33  ;;  %v9043_v4 = vpop.permute.xlu1 %2416  ;;  %2893 = vmatprep.subr.mxu0 %v6542_v2  ;;  %v6558_v33 = vld [vmem:[%s11515_s10 + $0x8] sm:$0xff]  ;;  %v6560_v2 = vld [vmem:[%s11515_s10 + $0x1f8] sm:$0xff] }
 0x23a   :  { %5543 = vmatmul.mubr.msk.f32.gmra.mxu1 %vm2492_vm4, %v9043_v4  ;;  %2894 = vmatpush1.msra.mxu0 %v6543_v37 }
 0x23b   :  { %3122 = vmatprep.mubr.f32.mxu1 %v11699_v30  ;;  %2895 = vmatprep.subr.mxu0 %v6544_v21 }
 0x23c   :  { %2385 = vrot.lane.b32.xlu0 %v8625_v47, %s6569_s25  ;;  %2896 = vmatpush1.msra.mxu0 %v6545_v58  ;;  %v6547_v47 = vld [vmem:[%s11515_s10 + $0x60] sm:$0xff]  ;;  %v6561_v58 = vld [vmem:[%s11515_s10 + $0x1f0] sm:$0xff] }
 0x23d   :  { %v2242_v10 = vpop.permute.xlu0 %2241  ;;  %2897 = vmatprep.subr.mxu0 %v6546_v23 }
 0x23e   :  { %v2351_v39 = vsel %vm539_vm2, %v2242_v10, %v8834_v51  ;;  %v2335_v24 = vsel %vm2330_vm5, %v11704_v34, %v2242_v10  ;;  %2898 = vmatpush1.msra.mxu0 %v6547_v47  ;;  %v6562_v10 = vld [vmem:[%s11515_s10 + $0x1e8] sm:$0xff] }
 0x23f   :  { %2613 = vmatprep.mubr.f32.mxu0 %v2351_v39  ;;  %2899 = vmatprep.subr.mxu0 %v6548_v16 }
 0x240   :  { %2614 = vmatmul.mubr.f32.gmra.mxu0 %v2335_v24  ;;  %v9076_v32 = vpop.permute.xlu1 %2418  ;;  %2387 = vrot.lane.b32.xlu0 %v8663_v57, %s6569_s25  ;;  %v11705_v57 = vmax.f32 %v8337_v63, 0.0  ;;  %v6553_v63 = vld [vmem:[%s11515_s10 + $0x30] sm:$0xff]  ;;  %v11708_v24 = vld [vmem:[#allocation2_spill] sm:$0xff] }
 0x241   :  { %5544 = vmatmul.mubr.msk.f32.gmra.mxu1 %vm2492_vm4, %v9076_v32  ;;  %2900 = vmatpush1.msra.mxu0 %v6549_v17  ;;  %v11709_v47 = vmax.f32 %v11708_v24, 0.0  ;;  %v11710_v17 = vld [vmem:[#allocation3_spill] sm:$0xff]  ;;  %v11732_v24 = vld [vmem:[#allocation24_spill] sm:$0xff] }
 0x242   :  { %v2244_v51 = vpop.permute.xlu0 %2243  ;;  %3128 = vmatprep.mubr.f32.mxu1 %v11699_v30  ;;  %2901 = vmatprep.subr.mxu0 %v6550_v12 }
 0x243   :  { %v2352_v42 = vsel %vm539_vm2, %v2244_v51, %v8849_v61  ;;  %v2336_v0 = vsel %vm2330_vm5, %v11705_v57, %v2244_v51  ;;  %2902 = vmatpush1.msra.mxu0 %v6551_v53  ;;  %v6552_v61 = vld [vmem:[%s11515_s10 + $0x38] sm:$0xff]  ;;  %v11711_v51 = vld [vmem:[#allocation4_spill] sm:$0xff]  ;;  %v11714_v57 = vld [vmem:[#allocation14_spill] sm:$0xff] }
 0x244   :  { %2619 = vmatprep.mubr.f32.mxu0 %v2352_v42  ;;  %2389 = vrot.lane.b32.xlu0 %v8709_v20, %s6569_s25  ;;  %v6554_v20 = vld [vmem:[%s11515_s10 + $0x28] sm:$0xff] }
 0x245   :  { %2620 = vmatmul.mubr.f32.gmra.mxu0 %v2336_v0  ;;  %v9099_v27 = vpop.permute.xlu1 %2420  ;;  %2903 = vmatprep.subr.mxu0 %v6552_v61  ;;  %v11715_v0 = vmax.f32 %v11714_v57, 0.0  ;;  %v11716_v61 = vld [vmem:[#allocation10_spill] sm:$0xff]  ;;  %v11739_v57 = vld [vmem:[#allocation29_spill] sm:$0xff] }
 0x246   :  { %5545 = vmatmul.mubr.msk.f32.gmra.mxu1 %vm2492_vm4, %v9099_v27  ;;  %2904 = vmatpush1.msra.mxu0 %v6553_v63  ;;  %v11717_v63 = vld [vmem:[#allocation6_spill] sm:$0xff] }
 0x247   :  { %3134 = vmatprep.mubr.f32.mxu1 %v11699_v30  ;;  %2905 = vmatprep.subr.mxu0 %v6554_v20 }
 0x248   :  { %2391 = vrot.lane.b32.xlu0 %v8717_v43, %s6569_s25  ;;  %2906 = vmatpush1.msra.mxu0 %v6555_v52  ;;  %v6557_v43 = vld [vmem:[%s11515_s10 + $0x10] sm:$0xff]  ;;  %v11718_v52 = vld [vmem:[#allocation18_spill] sm:$0xff] }
 0x249   :  { %v2246_v35 = vpop.permute.xlu0 %2245  ;;  %2907 = vmatprep.subr.mxu0 %v6556_v15 }
 0x24a   :  { %v2353_v36 = vsel %vm539_vm2, %v2246_v35, %v8860_v5  ;;  %v2337_v56 = vsel %vm2330_vm5, %v11706_v13, %v2246_v35  ;;  %2908 = vmatpush1.msra.mxu0 %v6557_v43  ;;  %v11720_v35 = vld [vmem:[#allocation20_spill] sm:$0xff] }
 0x24b   :  { %2625 = vmatprep.mubr.f32.mxu0 %v2353_v36  ;;  %2909 = vmatprep.subr.mxu0 %v6558_v33  ;;  %v11721_v36 = vld [vmem:[#allocation11_spill] sm:$0xff] }
 0x24c   :  { %2626 = vmatmul.mubr.f32.gmra.mxu0 %v2337_v56  ;;  %v9132_v18 = vpop.permute.xlu1 %2422  ;;  %2393 = vrot.lane.b32.xlu0 %v8725_v7, %s6569_s25  ;;  %v11707_v7 = vmax.f32 %v8395_v41, 0.0  ;;  %v6563_v41 = vld [vmem:[%s11515_s10 + $0x1e0] sm:$0xff]  ;;  %v11722_v56 = vld [vmem:[#allocation7_spill] sm:$0xff] }
 0x24d   :  { %5546 = vmatmul.mubr.msk.f32.gmra.mxu1 %vm2492_vm4, %v9132_v18  ;;  %2910 = vmatpush1.msra.mxu0 %v6559_v60  ;;  %v11723_v43 = vmax.f32 %v11722_v56, 0.0  ;;  %v11724_v60 = vld [vmem:[#allocation21_spill] sm:$0xff] }
 0x24e   :  { %v2248_v5 = vpop.permute.xlu0 %2247  ;;  %3140 = vmatprep.mubr.f32.mxu1 %v11699_v30  ;;  %2911 = vmatprep.subr.mxu0 %v6560_v2 }
 0x24f   :  { %v2354_v37 = vsel %vm539_vm2, %v2248_v5, %v8877_v45  ;;  %v2338_v21 = vsel %vm2330_vm5, %v11707_v7, %v2248_v5  ;;  %2912 = vmatpush2.msra.mxu0 %v6561_v58  ;;  %v6564_v45 = vld [vmem:[%s11515_s10 + $0x1d8] sm:$0xff]  ;;  %v11725_v5 = vld [vmem:[#allocation22_spill] sm:$0xff]  ;;  %v11728_v58 = vld [vmem:[#allocation16_spill] sm:$0xff] }
 0x250   :  { %2631 = vmatprep.mubr.f32.mxu0 %v2354_v37  ;;  %2913 = vmatprep.subr.mxu0 %v6562_v10  ;;  %v11726_v37 = vld [vmem:[#allocation12_spill] sm:$0xff]  ;;  %v11729_v10 = vmax.f32 %v11728_v58, 0.0 }
 0x251   :  { %2632 = vmatmul.mubr.f32.gmra.mxu0 %v2338_v21  ;;  %v9156_v23 = vpop.permute.xlu1 %2424 }
 0x252   :  { %5547 = vmatmul.mubr.msk.f32.gmra.mxu1 %vm2492_vm4, %v9156_v23  ;;  %2914 = vmatpush2.msra.mxu0 %v6563_v41 }
 0x253   :  { %3146 = vmatprep.mubr.f32.mxu1 %v11699_v30  ;;  %2915 = vmatprep.subr.mxu0 %v6564_v45  ;;  %v11730_v45 = vld [vmem:[#allocation15_spill] sm:$0xff] }
 0x254   :  { %2916 = vmatpush2.msra.mxu0 %v8498_v40  ;;  %v11712_v40 = vld [vmem:[#allocation5_spill] sm:$0xff] }
 0x255   :  { %v2250_v39 = vpop.permute.xlu0 %2249  ;;  %2917 = vmatprep.subr.mxu0 %v8503_v6 }
 0x256   :  { %v2355_v34 = vsel %vm539_vm2, %v2250_v39, %v8887_v62  ;;  %v2339_v16 = vsel %vm2330_vm5, %v11709_v47, %v2250_v39  ;;  %2918 = vmatpush2.msra.mxu0 %v11710_v17  ;;  %v11713_v62 = vld [vmem:[#allocation17_spill] sm:$0xff]  ;;  %v11731_v39 = vld [vmem:[#allocation19_spill] sm:$0xff]  ;;  %v11734_v47 = vld [vmem:[#allocation26_spill] sm:$0xff] }
 0x257   :  { %2637 = vmatprep.mubr.f32.mxu0 %v2355_v34  ;;  %2919 = vmatprep.subr.mxu0 %v11711_v51  ;;  %v11735_v17 = vld [vmem:[#allocation27_spill] sm:$0xff] }
 0x258   :  { %2638 = vmatmul.mubr.f32.gmra.mxu0 %v2339_v16  ;;  %v9176_v12 = vpop.permute.xlu1 %2426 }
 0x259   :  { %5548 = vmatmul.mubr.msk.f32.gmra.mxu1 %vm2492_vm4, %v9176_v12  ;;  %2920 = vmatpush2.msra.mxu0 %v11712_v40  ;;  %v11736_v40 = vld [vmem:[#allocation9_spill] sm:$0xff] }
 0x25a   :  { %v2252_v6 = vpop.permute.xlu0 %2251  ;;  %3152 = vmatprep.mubr.f32.mxu1 %v11699_v30  ;;  %2921 = vmatprep.subr.mxu0 %v11713_v62 }
 0x25b   :  { %v2356_v42 = vsel %vm539_vm2, %v2252_v6, %v8901_v49  ;;  %v2340_v53 = vsel %vm2330_vm5, %v11715_v0, %v2252_v6  ;;  %2922 = vmatpush2.msra.mxu0 %v11716_v61  ;;  %v11719_v49 = vld [vmem:[#allocation8_spill] sm:$0xff]  ;;  %v11737_v6 = vmax.f32 %v11736_v40, 0.0 }
 0x25c   :  { %2643 = vmatprep.mubr.f32.mxu0 %v2356_v42  ;;  %2923 = vmatprep.subr.mxu0 %v11717_v63  ;;  %v11738_v42 = vld [vmem:[#allocation28_spill] sm:$0xff] }
 0x25d   :  { %2644 = vmatmul.mubr.f32.gmra.mxu0 %v2340_v53  ;;  %v9190_v20 = vpop.permute.xlu1 %2428  ;;  %v11740_v53 = vld [vmem:[#allocation31_spill] sm:$0xff] }
 0x25e   :  { %5549 = vmatmul.mubr.msk.f32.gmra.mxu1 %vm2492_vm4, %v9190_v20  ;;  %2924 = vmatpush2.msra.mxu0 %v11718_v52  ;;  %v11742_v52 = vld [vmem:[#allocation13_spill] sm:$0xff] }
 0x25f   :  { %3158 = vmatprep.mubr.f32.mxu1 %v11699_v30  ;;  %2925 = vmatprep.subr.mxu0 %v11719_v49  ;;  %v11743_v49 = vmax.f32 %v11742_v52, 0.0 }
 0x260   :  { %2926 = vmatpush2.msra.mxu0 %v11720_v35 }
 0x261   :  { %v2254_v15 = vpop.permute.xlu0 %2253  ;;  %2927 = vmatprep.subr.mxu0 %v11721_v36 }
 0x262   :  { %v2357_v13 = vsel %vm539_vm2, %v2254_v15, %v8911_v59  ;;  %v2341_v33 = vsel %vm2330_vm5, %v11723_v43, %v2254_v15  ;;  %2928 = vmatpush2.msra.mxu0 %v11724_v60  ;;  %v11727_v59 = vld [vmem:[#allocation23_spill] sm:$0xff]  ;;  %v11744_v15 = vld [vmem:[#allocation33_spill] sm:$0xff] }
 0x263   :  { %2649 = vmatprep.mubr.f32.mxu0 %v2357_v13  ;;  %2929 = vmatprep.subr.mxu0 %v11725_v5 }
 0x264   :  { %2650 = vmatmul.mubr.f32.gmra.mxu0 %v2341_v33  ;;  %v9206_v2 = vpop.permute.xlu1 %2430 }
 0x265   :  { %5550 = vmatmul.mubr.msk.f32.gmra.mxu1 %vm2492_vm4, %v9206_v2  ;;  %2930 = vmatpush2.msra.mxu0 %v11726_v37 }
 0x266   :  { %v2256_v7 = vpop.permute.xlu0 %2255  ;;  %3164 = vmatprep.mubr.f32.mxu1 %v11699_v30  ;;  %2931 = vmatprep.subr.mxu0 %v11727_v59 }
 0x267   :  { %v2358_v21 = vsel %vm539_vm2, %v2256_v7, %v8925_v25  ;;  %v2342_v41 = vsel %vm2330_vm5, %v11729_v10, %v2256_v7  ;;  %2932 = vmatpush2.msra.mxu0 %v11730_v45  ;;  %v11733_v25 = vld [vmem:[#allocation25_spill] sm:$0xff]  ;;  %v11747_v7 = vld [vmem:[#allocation34_spill] sm:$0xff]  ;;  %v11749_v10 = vld [vmem:[#allocation35_spill] sm:$0xff] }
 0x268   :  { %2655 = vmatprep.mubr.f32.mxu0 %v2358_v21  ;;  %2933 = vmatprep.subr.mxu0 %v11731_v39  ;;  %v11748_v59 = vmax.f32 %v11747_v7, 0.0 }
 0x269   :  { %2656 = vmatmul.mubr.f32.gmra.mxu0 %v2342_v41  ;;  %v9220_v34 = vpop.permute.xlu1 %2432 }
 0x26a   :  { %5551 = vmatmul.mubr.msk.f32.gmra.mxu1 %vm2492_vm4, %v9220_v34  ;;  %2934 = vmatpush2.msra.mxu0 %v11732_v24 }
 0x26b   :  { %3170 = vmatprep.mubr.f32.mxu1 %v11699_v30  ;;  %2935 = vmatprep.subr.mxu0 %v11733_v25  ;;  %v11750_v25 = vld [vmem:[#allocation36_spill] sm:$0xff] }
 0x26c   :  { %2936 = vmatpush2.msra.mxu0 %v11734_v47 }
 0x26d   :  { %v2258_v16 = vpop.permute.xlu0 %2257  ;;  %2937 = vmatprep.subr.mxu0 %v11735_v17  ;;  %v11751_v17 = vld [vmem:[#allocation37_spill] sm:$0xff] }
 0x26e   :  { %v2359_v51 = vsel %vm539_vm2, %v2258_v16, %v8936_v44  ;;  %v2343_v62 = vsel %vm2330_vm5, %v11737_v6, %v2258_v16  ;;  %2938 = vmatpush2.msra.mxu0 %v11738_v42  ;;  %v11741_v44 = vld [vmem:[#allocation32_spill] sm:$0xff] }
 0x26f   :  { %2661 = vmatprep.mubr.f32.mxu0 %v2359_v51  ;;  %2939 = vmatprep.subr.mxu0 %v11739_v57 }
 0x270   :  { %2662 = vmatmul.mubr.f32.gmra.mxu0 %v2343_v62  ;;  %v9236_v0 = vpop.permute.xlu1 %2434 }
 0x271   :  { %5552 = vmatmul.mubr.msk.f32.gmra.mxu1 %vm2492_vm4, %v9236_v0  ;;  %2940 = vmatpush2.msra.mxu0 %v11740_v53 }
 0x272   :  { %v2260_v61 = vpop.permute.xlu0 %2259  ;;  %3176 = vmatprep.mubr.f32.mxu1 %v11699_v30  ;;  %2941 = vmatprep.subr.mxu0 %v11741_v44 }
 0x273   :  { %v2360_v63 = vsel %vm539_vm2, %v2260_v61, %v8943_v11  ;;  %v2344_v35 = vsel %vm2330_vm5, %v11743_v49, %v2260_v61  ;;  %2942 = vmatpush2.msra.mxu0 %v11744_v15  ;;  %v11745_v11 = vld [vmem:[#allocation30_spill] sm:$0xff] }
 0x274   :  { %2667 = vmatprep.mubr.f32.mxu0 %v2360_v63  ;;  %v11746_v43 = vmax.f32 %v11745_v11, 0.0 }
 0x275   :  { %2668 = vmatmul.mubr.f32.gmra.mxu0 %v2344_v35  ;;  %v9249_v36 = vpop.permute.xlu1 %2436 }
 0x276   :  { %5553 = vmatmul.mubr.msk.f32.gmra.mxu1 %vm2492_vm4, %v9249_v36 }
 0x277   :  { %3182 = vmatprep.mubr.f32.mxu1 %v11699_v30 }
 0x279   :  { %v2262_v13 = vpop.permute.xlu0 %2261 }
 0x27a   :  { %v2361_v56 = vsel %vm539_vm2, %v2262_v13, %v8952_v38  ;;  %v2345_v33 = vsel %vm2330_vm5, %v11746_v43, %v2262_v13 }
 0x27b   :  { %2673 = vmatprep.mubr.f32.mxu0 %v2361_v56 }
 0x27c   :  { %2674 = vmatmul.mubr.f32.gmra.mxu0 %v2345_v33  ;;  %v9259_v60 = vpop.permute.xlu1 %2438 }
 0x27d   :  { %5554 = vmatmul.mubr.msk.f32.gmra.mxu1 %vm2492_vm4, %v9259_v60 }
 0x27e   :  { %v2264_v5 = vpop.permute.xlu0 %2263  ;;  %3188 = vmatprep.mubr.f32.mxu1 %v11699_v30 }
 0x27f   :  { %v2362_v37 = vsel %vm539_vm2, %v2264_v5, %v8959_v14  ;;  %v2346_v38 = vsel %vm2330_vm5, %v11748_v59, %v2264_v5 }
 0x280   :  { %2679 = vmatprep.mubr.f32.mxu0 %v2362_v37 }
 0x281   :  { %2680 = vmatmul.mubr.f32.gmra.mxu0 %v2346_v38  ;;  %v9269_v21 = vpop.permute.xlu1 %2440 }
 0x282   :  { %v2364_v58 = vpop.permute.xlu0 %2363  ;;  %5555 = vmatmul.mubr.msk.f32.gmra.mxu1 %vm2492_vm4, %v9269_v21 }
 0x283   :  { %v2460_v41 = vsel %vm2330_vm5, %v11749_v10, %v2364_v58  ;;  %v2476_v45 = vsel %vm539_vm2, %v2364_v58, %v8987_v55  ;;  %3194 = vmatprep.mubr.f32.mxu1 %v11699_v30 }
 0x284   :  { %2943 = vmatprep.mubr.f32.mxu0 %v2476_v45 }
 0x285   :  { %2944 = vmatmul.mubr.f32.vlgmr.msra.gmra.mxu0 %v2460_v41  ;;  %v9278_v14 = vpop.permute.xlu1 %2442 }
 0x286   :  { %v2366_v39 = vpop.permute.xlu0 %2365  ;;  %5556 = vmatmul.mubr.msk.f32.gmra.mxu1 %vm2492_vm4, %v9278_v14 }
 0x287   :  { %v2477_v24 = vsel %vm539_vm2, %v2366_v39, %v9020_v19  ;;  %v2461_v47 = vsel %vm2330_vm5, %v11750_v25, %v2366_v39 }
 0x288   :  { %2949 = vmatprep.mubr.f32.mxu0 %v2477_v24 }
 0x289   :  { %2950 = vmatmul.mubr.f32.gmra.mxu0 %v2461_v47 }
 0x28a   :  { %v2368_v16 = vpop.permute.xlu0 %2367 }
 0x28b   :  { %v2478_v55 = vsel %vm539_vm2, %v2368_v16, %v9043_v4  ;;  %v2462_v51 = vsel %vm2330_vm5, %v11751_v17, %v2368_v16 }
 0x28c   :  { %2955 = vmatprep.mubr.f32.mxu0 %v2478_v55 }
 0x28d   :  { %2956 = vmatmul.mubr.f32.gmra.mxu0 %v2462_v51 }
 0x28e   :  { %v2370_v40 = vpop.permute.xlu0 %2369 }
 0x28f   :  { %v2479_v6 = vsel %vm539_vm2, %v2370_v40, %v9076_v32  ;;  %v2463_v19 = vsel %vm2330_vm5, %v8748_v9, %v2370_v40 }
 0x290   :  { %2961 = vmatprep.mubr.f32.mxu0 %v2479_v6 }
 0x291   :  { %2962 = vmatmul.mubr.f32.gmra.mxu0 %v2463_v19 }
 0x292   :  { %v2372_v62 = vpop.permute.xlu0 %2371 }
 0x293   :  { %v2480_v42 = vsel %vm539_vm2, %v2372_v62, %v9099_v27  ;;  %v2464_v4 = vsel %vm2330_vm5, %v8757_v3, %v2372_v62 }
 0x294   :  { %2967 = vmatprep.mubr.f32.mxu0 %v2480_v42 }
 0x295   :  { %2968 = vmatmul.mubr.f32.gmra.mxu0 %v2464_v4 }
 0x296   :  { %v2374_v57 = vpop.permute.xlu0 %2373 }
 0x297   :  { %v2481_v53 = vsel %vm539_vm2, %v2374_v57, %v9132_v18  ;;  %v2465_v32 = vsel %vm2330_vm5, %v8766_v28, %v2374_v57 }
 0x298   :  { %2973 = vmatprep.mubr.f32.mxu0 %v2481_v53 }
 0x299   :  { %2974 = vmatmul.mubr.f32.gmra.mxu0 %v2465_v32 }
 0x29a   :  { %v2376_v9 = vpop.permute.xlu0 %2375 }
 0x29b   :  { %v2482_v61 = vsel %vm539_vm2, %v2376_v9, %v9156_v23  ;;  %v2466_v27 = vsel %vm2330_vm5, %v8786_v46, %v2376_v9  ;;  %v2752_v46 = vpop.f32.mrf.mxu1 }
 0x29c   :  { %2979 = vmatprep.mubr.f32.mxu0 %v2482_v61 }
 0x29d   :  { %2980 = vmatmul.mubr.f32.gmra.mxu0 %v2466_v27 }
 0x29e   :  { %v2378_v3 = vpop.permute.xlu0 %2377 }
 0x29f   :  { %v2483_v44 = vsel %vm539_vm2, %v2378_v3, %v9176_v12  ;;  %v2467_v18 = vsel %vm2330_vm5, %v8802_v8, %v2378_v3  ;;  %v2754_v8 = vpop.f32.mrf.mxu1 }
 0x2a0   :  { %2985 = vmatprep.mubr.f32.mxu0 %v2483_v44 }
 0x2a1   :  { %2986 = vmatmul.mubr.f32.gmra.mxu0 %v2467_v18  ;;  %v2758_v15 = vpop.f32.mrf.mxu1 }
 0x2a2   :  { %v2380_v28 = vpop.permute.xlu0 %2379 }
 0x2a3   :  { %v2468_v63 = vsel %vm2330_vm5, %v8822_v1, %v2380_v28  ;;  %v2484_v23 = vsel %vm539_vm2, %v2380_v28, %v9190_v20  ;;  %v2760_v56 = vpop.f32.mrf.mxu1 }
 0x2a4   :  { %2991 = vmatprep.mubr.f32.mxu0 %v2484_v23 }
 0x2a5   :  { %2992 = vmatmul.mubr.f32.gmra.mxu0 %v2468_v63  ;;  %v2764_v43 = vpop.f32.mrf.mxu1 }
 0x2a6   :  { %v2382_v52 = vpop.permute.xlu0 %2381 }
 0x2a7   :  { %v2469_v49 = vsel %vm2330_vm5, %v8837_v22, %v2382_v52  ;;  %v2485_v12 = vsel %vm539_vm2, %v2382_v52, %v9206_v2  ;;  %v2766_v5 = vpop.f32.mrf.mxu1 }
 0x2a8   :  { %2997 = vmatprep.mubr.f32.mxu0 %v2485_v12 }
 0x2a9   :  { %2998 = vmatmul.mubr.f32.gmra.mxu0 %v2469_v49  ;;  %v2770_v37 = vpop.f32.mrf.mxu1 }
 0x2aa   :  { %v2384_v35 = vpop.permute.xlu0 %2383 }
 0x2ab   :  { %v2470_v1 = vsel %vm2330_vm5, %v8851_v29, %v2384_v35  ;;  %v2486_v20 = vsel %vm539_vm2, %v2384_v35, %v9220_v34  ;;  %v2772_v59 = vpop.f32.mrf.mxu1 }
 0x2ac   :  { %3003 = vmatprep.mubr.f32.mxu0 %v2486_v20 }
 0x2ad   :  { %3004 = vmatmul.mubr.f32.gmra.mxu0 %v2470_v1  ;;  %v2776_v58 = vpop.f32.mrf.mxu1 }
 0x2ae   :  { %v2386_v13 = vpop.permute.xlu0 %2385 }
 0x2af   :  { %v2471_v22 = vsel %vm2330_vm5, %v8863_v50, %v2386_v13  ;;  %v2487_v2 = vsel %vm539_vm2, %v2386_v13, %v9236_v0  ;;  %v2778_v10 = vpop.f32.mrf.mxu1 }
 0x2b0   :  { %3009 = vmatprep.mubr.f32.mxu0 %v2487_v2 }
 0x2b1   :  { %3010 = vmatmul.mubr.f32.gmra.mxu0 %v2471_v22  ;;  %v2782_v41 = vpop.f32.mrf.mxu1 }
 0x2b2   :  { %v2388_v11 = vpop.permute.xlu0 %2387 }
 0x2b3   :  { %v2472_v29 = vsel %vm2330_vm5, %v8879_v54, %v2388_v11  ;;  %v2488_v34 = vsel %vm539_vm2, %v2388_v11, %v9249_v36  ;;  %v2784_v45 = vpop.f32.mrf.mxu1 }
 0x2b4   :  { %3015 = vmatprep.mubr.f32.mxu0 %v2488_v34 }
 0x2b5   :  { %3016 = vmatmul.mubr.f32.gmra.mxu0 %v2472_v29 }
 0x2b6   :  { %v2390_v33 = vpop.permute.xlu0 %2389 }
 0x2b7   :  { %v2473_v50 = vsel %vm2330_vm5, %v8890_v26, %v2390_v33  ;;  %v2489_v0 = vsel %vm539_vm2, %v2390_v33, %v9259_v60 }
 0x2b8   :  { %3021 = vmatprep.mubr.f32.mxu0 %v2489_v0 }
 0x2b9   :  { %3022 = vmatmul.mubr.f32.gmra.mxu0 %v2473_v50 }
 0x2ba   :  { %v2392_v7 = vpop.permute.xlu0 %2391 }
 0x2bb   :  { %v2474_v54 = vsel %vm2330_vm5, %v8903_v48, %v2392_v7  ;;  %v2490_v36 = vsel %vm539_vm2, %v2392_v7, %v9269_v21  ;;  %v2788_v48 = vpop.f32.mrf.mxu1 }
 0x2bc   :  { %3027 = vmatprep.mubr.f32.mxu0 %v2490_v36 }
 0x2bd   :  { %3028 = vmatmul.mubr.f32.gmra.mxu0 %v2474_v54  ;;  %v2790_v39 = vpop.f32.mrf.mxu1 }
 0x2be   :  { %v2394_v38 = vpop.permute.xlu0 %2393 }
 0x2bf   :  { %v2475_v26 = vsel %vm2330_vm5, %v8914_v31, %v2394_v38  ;;  %v2491_v60 = vsel %vm539_vm2, %v2394_v38, %v9278_v14  ;;  %v2794_v24 = vpop.f32.mrf.mxu1 }
 0x2c0   :  { %3033 = vmatprep.mubr.f32.mxu0 %v2491_v60 }
 0x2c1   :  { %3034 = vmatmul.mubr.f32.gmra.mxu0 %v2475_v26  ;;  %v2796_v21 = vpop.f32.mrf.mxu1 }
 0x2c3   :  { %v2800_v25 = vpop.f32.mrf.mxu1 }
 0x2c5   :  { %v2802_v47 = vpop.f32.mrf.mxu1 }
 0x2c7   :  { %v9342_v16 = vpop.f32.mrf.mxu1 }
 0x2c9   :  { %v9344_v55 = vpop.f32.mrf.mxu1 }
 0x2cb   :  { %v9346_v51 = vpop.f32.mrf.mxu1 }
 0x2cd   :  { %v9354_v62 = vpop.f32.mrf.mxu1 }
 0x2d1   :  { %v9360_v53 = vpop.f32.mrf.mxu1 }
 0x2d3   :  { %v9364_v61 = vpop.f32.mrf.mxu1 }
 0x2d6   :  { %v9370_v18 = vpop.f32.mrf.mxu1 }
 0x2d8   :  { %v9378_v49 = vpop.f32.mrf.mxu1 }
 0x2e8   :  { %v2591_v31 = vpop.f32.mrf.mxu0 }
 0x2e9   :  { %v9348_v14 = vadd.f32 %v2752_v46, %v2591_v31 }
 0x2ea   :  { %v2593_v17 = vpop.f32.mrf.mxu0 }
 0x2eb   :  { %v9350_v40 = vadd.f32 %v2754_v8, %v2593_v17  ;;  %v9382_v8 = vpop.f32.mrf.mxu1 }
 0x2ed   :  { %v3201_v6 = vmax.f32 %v9348_v14, %v9350_v40  ;;  %v2597_v19 = vpop.f32.mrf.mxu0  ;;  %v9384_v1 = vpop.f32.mrf.mxu1  ;;  %v3943_v14 = vld [vmem:[%s11517_s12 + $0x80] sm:$0xff]  ;;  %v4108_v40 = vld [vmem:[%s11517_s12 + $0x5a8] sm:$0xff] }
 0x2ee   :  { %v9356_v4 = vadd.f32 %v2758_v15, %v2597_v19 }
 0x2ef   :  { %v2599_v42 = vpop.f32.mrf.mxu0  ;;  %v9392_v2 = vpop.f32.mrf.mxu1 }
 0x2f0   :  { %v9358_v57 = vadd.f32 %v2760_v56, %v2599_v42 }
 0x2f1   :  { %v9400_v33 = vpop.f32.mrf.mxu1 }
 0x2f2   :  { %v3202_v32 = vmax.f32 %v9356_v4, %v9358_v57  ;;  %v4098_v4 = vld [vmem:[%s11517_s12 + $0x558] sm:$0xff] }
 0x2f3   :  { %v9402_v0 = vpop.f32.mrf.mxu1 }
 0x2f4   :  { %v2603_v9 = vpop.f32.mrf.mxu0 }
 0x2f5   :  { %v9366_v3 = vadd.f32 %v2764_v43, %v2603_v9 }
 0x2f6   :  { %v2605_v27 = vpop.f32.mrf.mxu0 }
 0x2f7   :  { %v9368_v44 = vadd.f32 %v2766_v5, %v2605_v27 }
 0x2f9   :  { %v3203_v28 = vmax.f32 %v9366_v3, %v9368_v44  ;;  %v2609_v63 = vpop.f32.mrf.mxu0  ;;  %v4083_v3 = vld [vmem:[%s11517_s12 + $0x4e0] sm:$0xff]  ;;  %v4088_v44 = vld [vmem:[%s11517_s12 + $0x508] sm:$0xff] }
 0x2fa   :  { %v9374_v46 = vadd.f32 %v2770_v37, %v2609_v63 }
 0x2fb   :  { %v2611_v23 = vpop.f32.mrf.mxu0 }
 0x2fc   :  { %v9376_v52 = vadd.f32 %v2772_v59, %v2611_v23  ;;  %v9410_v59 = vpop.f32.mrf.mxu1 }
 0x2fe   :  { %v3204_v12 = vmax.f32 %v9374_v46, %v9376_v52  ;;  %v4073_v46 = vld [vmem:[%s11517_s12 + $0x490] sm:$0xff]  ;;  %v4238_v52 = vld [vmem:[%s11517_s12 + $0x9b8] sm:$0xff] }
 0x300   :  { %v2615_v35 = vpop.f32.mrf.mxu0 }
 0x301   :  { %v9386_v20 = vadd.f32 %v2776_v58, %v2615_v35  ;;  %v9416_v58 = vpop.f32.mrf.mxu1 }
 0x302   :  { %v2617_v15 = vpop.f32.mrf.mxu0 }
 0x303   :  { %v9388_v13 = vadd.f32 %v2778_v10, %v2617_v15 }
 0x305   :  { %v2621_v22 = vpop.f32.mrf.mxu0 }
 0x306   :  { %v9394_v43 = vadd.f32 %v2782_v41, %v2621_v22 }
 0x307   :  { %v2623_v11 = vpop.f32.mrf.mxu0 }
 0x308   :  { %v9396_v29 = vadd.f32 %v2784_v45, %v2623_v11  ;;  %v9420_v45 = vpop.f32.mrf.mxu1 }
 0x30c   :  { %v2627_v5 = vpop.f32.mrf.mxu0 }
 0x30d   :  { %v9404_v37 = vadd.f32 %v2788_v48, %v2627_v5 }
 0x30e   :  { %v2629_v50 = vpop.f32.mrf.mxu0 }
 0x30f   :  { %v9406_v7 = vadd.f32 %v2790_v39, %v2629_v50  ;;  %v9422_v39 = vpop.f32.mrf.mxu1  ;;  %v4003_v50 = vld [vmem:[%s11517_s12 + $0x260] sm:$0xff] }
 0x310   :  { %4320 = vmatprep.subr.mxu0 %v4003_v50  ;;  %v3988_v50 = vld [vmem:[%s11517_s12 + $0x1e8] sm:$0xff] }
 0x311   :  { %v2633_v36 = vpop.f32.mrf.mxu0  ;;  %v9430_v19 = vpop.f32.mrf.mxu1 }
 0x312   :  { %v9412_v26 = vadd.f32 %v2794_v24, %v2633_v36  ;;  %v4002_v36 = vld [vmem:[%s11517_s12 + $0x258] sm:$0xff] }
 0x313   :  { %v2635_v38 = vpop.f32.mrf.mxu0  ;;  %4321 = vmatpush1.msra.mxu0 %v4002_v36  ;;  %v4152_v36 = vld [vmem:[%s11517_s12 + $0x708] sm:$0xff] }
 0x314   :  { %v9414_v60 = vadd.f32 %v2796_v21, %v2635_v38 }
 0x318   :  { %v2639_v41 = vpop.f32.mrf.mxu0 }
 0x319   :  { %v9424_v31 = vadd.f32 %v2800_v25, %v2639_v41  ;;  %v9440_v25 = vpop.f32.mrf.mxu1  ;;  %v4163_v41 = vld [vmem:[%s11517_s12 + $0x760] sm:$0xff] }
 0x31a   :  { %v2641_v48 = vpop.f32.mrf.mxu0  ;;  %4397 = vmatprep.subr.mxu1 %v4163_v41  ;;  %v3987_v41 = vld [vmem:[%s11517_s12 + $0x1e0] sm:$0xff] }
 0x31b   :  { %v9426_v17 = vadd.f32 %v2802_v47, %v2641_v48  ;;  %v9442_v35 = vpop.f32.mrf.mxu1  ;;  %v3997_v48 = vld [vmem:[%s11517_s12 + $0x230] sm:$0xff] }
 0x31d   :  { %v2645_v21 = vpop.f32.mrf.mxu0 }
 0x31e   :  { %v9433_v9 = vadd.f32 %v9342_v16, %v2645_v21  ;;  %v9450_v16 = vpop.f32.mrf.mxu1  ;;  %v4162_v21 = vld [vmem:[%s11517_s12 + $0x758] sm:$0xff] }
 0x31f   :  { %v2647_v42 = vpop.f32.mrf.mxu0  ;;  %4398 = vmatpush1.msra.mxu1 %v4162_v21 }
 0x320   :  { %v9436_v27 = vadd.f32 %v9344_v55, %v2647_v42  ;;  %v9478_v42 = vpop.f32.mrf.mxu1  ;;  %v3968_v55 = vld [vmem:[%s11517_s12 + $0x148] sm:$0xff] }
 0x322   :  { %v9509_v21 = vpop.f32.mrf.mxu1 }
 0x324   :  { %v2651_v47 = vpop.f32.mrf.mxu0 }
 0x325   :  { %v9445_v15 = vadd.f32 %v9346_v51, %v2651_v47  ;;  %v3998_v51 = vld [vmem:[%s11517_s12 + $0x238] sm:$0xff] }
 0x326   :  { %v2653_v23 = vpop.f32.mrf.mxu0  ;;  %4322 = vmatprep.subr.mxu0 %v3998_v51  ;;  %v3982_v47 = vld [vmem:[%s11517_s12 + $0x1b8] sm:$0xff] }
 0x327   :  { %v9448_v22 = vadd.f32 %v9354_v62, %v2653_v23  ;;  %v3992_v23 = vld [vmem:[%s11517_s12 + $0x208] sm:$0xff]  ;;  %4323 = vmatpush1.msra.mxu0 %v3997_v48 }
 0x328   :  { %v4148_v48 = vld [vmem:[%s11517_s12 + $0x6e8] sm:$0xff] }
 0x329   :  { %v2657_v11 = vpop.f32.mrf.mxu0 }
 0x32a   :  { %v9464_v62 = vadd.f32 %v9360_v53, %v2657_v11  ;;  %v3993_v53 = vld [vmem:[%s11517_s12 + $0x210] sm:$0xff] }
 0x32b   :  { %v2659_v5 = vpop.f32.mrf.mxu0  ;;  %v4157_v11 = vld [vmem:[%s11517_s12 + $0x730] sm:$0xff]  ;;  %4324 = vmatprep.subr.mxu0 %v3993_v53  ;;  %v4147_v53 = vld [vmem:[%s11517_s12 + $0x6e0] sm:$0xff] }
 0x32c   :  { %v9467_v38 = vadd.f32 %v9364_v61, %v2659_v5  ;;  %v4158_v61 = vld [vmem:[%s11517_s12 + $0x738] sm:$0xff]  ;;  %v4153_v5 = vld [vmem:[%s11517_s12 + $0x710] sm:$0xff]  ;;  %4325 = vmatpush1.msra.mxu0 %v3992_v23  ;;  %v4143_v23 = vld [vmem:[%s11517_s12 + $0x6c0] sm:$0xff] }
 0x32d   :  { %4399 = vmatprep.subr.mxu1 %v4158_v61  ;;  %v3983_v61 = vld [vmem:[%s11517_s12 + $0x1c0] sm:$0xff]  ;;  %4326 = vmatprep.subr.mxu0 %v3988_v50  ;;  %v3978_v50 = vld [vmem:[%s11517_s12 + $0x198] sm:$0xff] }
 0x32e   :  { %4400 = vmatpush1.msra.mxu1 %v4157_v11  ;;  %4327 = vmatpush1.msra.mxu0 %v3987_v41  ;;  %v4133_v41 = vld [vmem:[%s11517_s12 + $0x670] sm:$0xff] }
 0x32f   :  { %4401 = vmatprep.subr.mxu1 %v4153_v5  ;;  %4328 = vmatprep.subr.mxu0 %v3983_v61  ;;  %v3973_v61 = vld [vmem:[%s11517_s12 + $0x170] sm:$0xff] }
 0x330   :  { %v2663_v51 = vpop.f32.mrf.mxu0  ;;  %4402 = vmatpush1.msra.mxu1 %v4152_v36  ;;  %v4142_v36 = vld [vmem:[%s11517_s12 + $0x6b8] sm:$0xff]  ;;  %4329 = vmatpush1.msra.mxu0 %v3982_v47 }
 0x331   :  { %v9524_v5 = vadd.f32 %v9370_v18, %v2663_v51  ;;  %4403 = vmatprep.subr.mxu1 %v4148_v48  ;;  %v3977_v18 = vld [vmem:[%s11517_s12 + $0x190] sm:$0xff]  ;;  %v9541_v51 = vpop.f32.mrf.mxu1  ;;  %4330 = vmatprep.subr.mxu0 %v3978_v50  ;;  %v4132_v50 = vld [vmem:[%s11517_s12 + $0x668] sm:$0xff] }
 0x332   :  { %v2665_v11 = vpop.f32.mrf.mxu0  ;;  %4404 = vmatpush1.msra.mxu1 %v4147_v53  ;;  %v4137_v53 = vld [vmem:[%s11517_s12 + $0x690] sm:$0xff]  ;;  %4331 = vmatpush1.msra.mxu0 %v3977_v18  ;;  %v3967_v18 = vld [vmem:[%s11517_s12 + $0x140] sm:$0xff] }
 0x333   :  { %v9527_v24 = vadd.f32 %v9378_v49, %v2665_v11  ;;  %v4138_v49 = vld [vmem:[%s11517_s12 + $0x698] sm:$0xff]  ;;  %4405 = vmatprep.subr.mxu1 %v4143_v23  ;;  %v3972_v11 = vld [vmem:[%s11517_s12 + $0x168] sm:$0xff]  ;;  %v9557_v47 = vpop.f32.mrf.mxu1  ;;  %4332 = vmatprep.subr.mxu0 %v3973_v61 }
 0x334   :  { %4406 = vmatpush1.msra.mxu1 %v4142_v36  ;;  %4333 = vmatpush1.msra.mxu0 %v3972_v11  ;;  %v3962_v61 = vld [vmem:[%s11517_s12 + $0x118] sm:$0xff] }
 0x335   :  { %v2669_v48 = vpop.f32.mrf.mxu0  ;;  %4407 = vmatprep.subr.mxu1 %v4138_v49  ;;  %v4128_v49 = vld [vmem:[%s11517_s12 + $0x648] sm:$0xff]  ;;  %4334 = vmatprep.subr.mxu0 %v3968_v55 }
 0x336   :  { %v9566_v36 = vadd.f32 %v9382_v8, %v2669_v48  ;;  %4408 = vmatpush1.msra.mxu1 %v4137_v53  ;;  %v3963_v8 = vld [vmem:[%s11517_s12 + $0x120] sm:$0xff]  ;;  %v9588_v53 = vpop.f32.mrf.mxu1  ;;  %4335 = vmatpush1.msra.mxu0 %v3967_v18 }
 0x337   :  { %v2671_v23 = vpop.f32.mrf.mxu0  ;;  %4409 = vmatprep.subr.mxu1 %v4133_v41  ;;  %4336 = vmatprep.subr.mxu0 %v3963_v8 }
 0x338   :  { %v9569_v63 = vadd.f32 %v9384_v1, %v2671_v23  ;;  %v4127_v1 = vld [vmem:[%s11517_s12 + $0x640] sm:$0xff]  ;;  %4410 = vmatpush1.msra.mxu1 %v4132_v50  ;;  %4337 = vmatpush1.msra.mxu0 %v3962_v61  ;;  %v9590_v23 = vpop.f32.mrf.mxu1  ;;  %v4118_v50 = vld [vmem:[%s11517_s12 + $0x5f8] sm:$0xff] }
 0x339   :  { %4411 = vmatprep.subr.mxu1 %v4128_v49 }
 0x33a   :  { %4412 = vmatpush1.msra.mxu1 %v4127_v1  ;;  %v9600_v10 = vpop.f32.mrf.mxu1 }
 0x33c   :  { %v2675_v41 = vpop.f32.mrf.mxu0  ;;  %v9608_v1 = vpop.f32.mrf.mxu1 }
 0x33d   :  { %v9593_v54 = vadd.f32 %v9392_v2, %v2675_v41  ;;  %v3958_v41 = vld [vmem:[%s11517_s12 + $0xf8] sm:$0xff] }
 0x33e   :  { %v2677_v11 = vpop.f32.mrf.mxu0  ;;  %4338 = vmatprep.subr.mxu0 %v3958_v41  ;;  %v9632_v34 = vpop.f32.mrf.mxu1 }
 0x33f   :  { %v9596_v55 = vadd.f32 %v9400_v33, %v2677_v11  ;;  %v4123_v11 = vld [vmem:[%s11517_s12 + $0x620] sm:$0xff]  ;;  %v3953_v33 = vld [vmem:[%s11517_s12 + $0xd0] sm:$0xff] }
 0x340   :  { %4413 = vmatprep.subr.mxu1 %v4123_v11  ;;  %v3948_v11 = vld [vmem:[%s11517_s12 + $0xa8] sm:$0xff] }
 0x341   :  { %v2681_v48 = vpop.f32.mrf.mxu0 }
 0x342   :  { %v9603_v49 = vadd.f32 %v9402_v0, %v2681_v48  ;;  %v3957_v0 = vld [vmem:[%s11517_s12 + $0xf0] sm:$0xff] }
 0x343   :  { %v2683_v18 = vpop.f32.mrf.mxu0  ;;  %4339 = vmatpush1.msra.mxu0 %v3957_v0  ;;  %v4113_v0 = vld [vmem:[%s11517_s12 + $0x5d0] sm:$0xff] }
 0x344   :  { %v9606_v8 = vadd.f32 %v9410_v59, %v2683_v18  ;;  %v4122_v18 = vld [vmem:[%s11517_s12 + $0x618] sm:$0xff]  ;;  %4340 = vmatprep.subr.mxu0 %v3953_v33 }
 0x345   :  { %v2945_v2 = vpop.f32.mrf.mxu0  ;;  %4414 = vmatpush1.msra.mxu1 %v4122_v18  ;;  %v4112_v18 = vld [vmem:[%s11517_s12 + $0x5c8] sm:$0xff] }
 0x346   :  { %v3107_v59 = vadd.f32 %v9416_v58, %v2945_v2  ;;  %v3952_v58 = vld [vmem:[%s11517_s12 + $0xc8] sm:$0xff]  ;;  %4415 = vmatprep.subr.mxu1 %v4118_v50 }
 0x347   :  { %v2947_v61 = vpop.f32.mrf.mxu0  ;;  %4341 = vmatpush1.msra.mxu0 %v3952_v58  ;;  %v9662_v58 = vpop.f32.mrf.mxu1 }
 0x348   :  { %v3109_v48 = vadd.f32 %v9420_v45, %v2947_v61  ;;  %v4117_v45 = vld [vmem:[%s11517_s12 + $0x5f0] sm:$0xff]  ;;  %v9643_v61 = vld [vmem:[%s11518_s11] ss:$0 sm:$0xff]  ;;  %4342 = vmatprep.subr.mxu0 %v3948_v11 }
 0x349   :  { %v2951_v56 = vpop.f32.mrf.mxu0  ;;  %4416 = vmatpush1.msra.mxu1 %v4117_v45  ;;  %v4103_v11 = vld [vmem:[%s11517_s12 + $0x580] sm:$0xff] }
 0x34a   :  { %v3217_v2 = vmax.f32 %v3107_v59, %v3109_v48  ;;  %v3113_v33 = vadd.f32 %v9422_v39, %v2951_v56  ;;  %4417 = vmatprep.subr.mxu1 %v4113_v0  ;;  %v3947_v48 = vld [vmem:[%s11517_s12 + $0xa0] sm:$0xff]  ;;  %v3942_v39 = vld [vmem:[%s11517_s12 + $0x78] sm:$0xff]  ;;  %v3937_v0 = vld [vmem:[%s11517_s12 + $0x50] sm:$0xff] }
 0x34b   :  { %v2953_v41 = vpop.f32.mrf.mxu0  ;;  %4343 = vmatpush1.msra.mxu0 %v3947_v48  ;;  %4418 = vmatpush1.msra.mxu1 %v4112_v18 }
 0x34c   :  { %v3233_v50 = vmax.f32 %v3201_v6, %v3217_v2  ;;  %v3115_v59 = vadd.f32 %v9430_v19, %v2953_v41  ;;  %4344 = vmatprep.subr.mxu0 %v3943_v14  ;;  %4419 = vmatprep.subr.mxu1 %v4108_v40  ;;  %v4107_v19 = vld [vmem:[%s11517_s12 + $0x5a0] sm:$0xff]  ;;  %v3938_v2 = vld [vmem:[%s11517_s12 + $0x58] sm:$0xff]  ;;  %v9696_v14 = vpop.f32.mrf.mxu1 }
 0x34d   :  { %v2957_v45 = vpop.f32.mrf.mxu0  ;;  %4345 = vmatpush1.msra.mxu0 %v3942_v39  ;;  %4420 = vmatpush1.msra.mxu1 %v4107_v19  ;;  %v3928_v19 = vld [vmem:[%s11517_s12 + $0x8] sm:$0xff] }
 0x34e   :  { %v3255_v6 = vadd.f32 %v9643_v61, %v3233_v50  ;;  %v3218_v56 = vmax.f32 %v3113_v33, %v3115_v59  ;;  %v4102_v50 = vld [vmem:[%s11517_s12 + $0x578] sm:$0xff]  ;;  %v3119_v48 = vadd.f32 %v9440_v25, %v2957_v45  ;;  %4346 = vmatprep.subr.mxu0 %v3938_v2  ;;  %4421 = vmatprep.subr.mxu1 %v4103_v11  ;;  %v4097_v45 = vld [vmem:[%s11517_s12 + $0x550] sm:$0xff] }
 0x34f   :  { %v2959_v41 = vpop.f32.mrf.mxu0  ;;  %4347 = vmatpush1.msra.mxu0 %v3937_v0  ;;  %4422 = vmatpush1.msra.mxu1 %v4102_v50  ;;  %v4093_v2 = vld [vmem:[%s11517_s12 + $0x530] sm:$0xff] }
 0x350   :  { %v9689_v33 = vmax.f32 %v3255_v6, 0.0  ;;  %v3234_v59 = vmax.f32 %v3202_v32, %v3218_v56  ;;  %v3121_v18 = vadd.f32 %v9442_v35, %v2959_v41  ;;  %v3933_v6 = vld [vmem:[%s11517_s12 + $0x30] sm:$0xff]  ;;  %4423 = vmatprep.subr.mxu1 %v4098_v4  ;;  %v3932_v35 = vld [vmem:[%s11517_s12 + $0x28] sm:$0xff]  ;;  %v9712_v56 = vpop.f32.mrf.mxu1 }
 0x351   :  { %v2963_v40 = vpop.f32.mrf.mxu0  ;;  %4348 = vmatprep.subr.mxu0 %v3933_v6  ;;  %4424 = vmatpush1.msra.mxu1 %v4097_v45  ;;  %v4087_v6 = vld [vmem:[%s11517_s12 + $0x500] sm:$0xff] }
 0x352   :  { %v3256_v57 = vadd.f32 %v9643_v61, %v3234_v59  ;;  %v3219_v32 = vmax.f32 %v3119_v48, %v3121_v18  ;;  %v3302_v25 = vrot.slane %v9689_v33, 5  ;;  %4349 = vmatpush1.msra.mxu0 %v3932_v35  ;;  %v3125_v0 = vadd.f32 %v9450_v16, %v2963_v40  ;;  %v3927_v59 = vld [vmem:[%s11517_s12] sm:$0xff]  ;;  %v4092_v48 = vld [vmem:[%s11517_s12 + $0x528] sm:$0xff]  ;;  %4425 = vmatprep.subr.mxu1 %v4093_v2  ;;  %v4082_v40 = vld [vmem:[%s11517_s12 + $0x4d8] sm:$0xff]  ;;  %v9748_v4 = vpop.f32.mrf.mxu1 }
 0x353   :  { %v2965_v39 = vpop.f32.mrf.mxu0  ;;  %4350 = vmatprep.subr.mxu0 %v3928_v19  ;;  %4426 = vmatpush1.msra.mxu1 %v4092_v48  ;;  %v4077_v19 = vld [vmem:[%s11517_s12 + $0x4b0] sm:$0xff]  ;;  %v4242_v2 = vld [vmem:[%s11517_s12 + $0x9d8] sm:$0xff] }
 0x354   :  { %v9720_v41 = vmax.f32 %v3256_v57, 0.0  ;;  %v3235_v11 = vmax.f32 %v3203_v28, %v3219_v32  ;;  %v3127_v50 = vadd.f32 %v9478_v42, %v2965_v39  ;;  %3303 = vrot.lane.b32.xlu1 %v3302_v25, %s6566_s28  ;;  %4351 = vmatpush1.msra.mxu0 %v3927_v59  ;;  %v4078_v32 = vld [vmem:[%s11517_s12 + $0x4b8] sm:$0xff]  ;;  %v4243_v25 = vld [vmem:[%s11517_s12 + $0x9e0] sm:$0xff]  ;;  %v4237_v59 = vld [vmem:[%s11517_s12 + $0x9b0] sm:$0xff]  ;;  %v9785_v48 = vpop.f32.mrf.mxu1 }
 0x355   :  { %v2969_v18 = vpop.f32.mrf.mxu0  ;;  %4352 = vmatprep.subr.mxu0 %v4083_v3  ;;  %4427 = vmatprep.subr.mxu1 %v4088_v44 }
 0x356   :  { %v3257_v28 = vadd.f32 %v9643_v61, %v3235_v11  ;;  %v3220_v16 = vmax.f32 %v3125_v0, %v3127_v50  ;;  %v3325_v42 = vrot.slane %v9720_v41, 5  ;;  %4353 = vmatpush2.msra.mxu0 %v4082_v40  ;;  %4428 = vmatpush1.msra.mxu1 %v4087_v6  ;;  %v3131_v11 = vadd.f32 %v9509_v21, %v2969_v18  ;;  %v4072_v21 = vld [vmem:[%s11517_s12 + $0x488] sm:$0xff] }
 0x357   :  { %v2971_v57 = vpop.f32.mrf.mxu0  ;;  %4354 = vmatprep.subr.mxu0 %v4078_v32  ;;  %4429 = vmatprep.subr.mxu1 %v4243_v25  ;;  %v3315_v44 = vrot.slane %v9720_v41, 2  ;;  %v4067_v25 = vld [vmem:[%s11517_s12 + $0x460] sm:$0xff] }
 0x358   :  { %v9756_v35 = vmax.f32 %v3257_v28, 0.0  ;;  %v3236_v45 = vmax.f32 %v3204_v12, %v3220_v16  ;;  %v3133_v39 = vadd.f32 %v9541_v51, %v2971_v57  ;;  %3326 = vrot.lane.b32.xlu0 %v3325_v42, %s6566_s28  ;;  %v3311_v51 = vrot.slane %v9720_v41, 1  ;;  %4355 = vmatpush2.msra.mxu0 %v4077_v19  ;;  %v4068_v16 = vld [vmem:[%s11517_s12 + $0x468] sm:$0xff]  ;;  %v4233_v42 = vld [vmem:[%s11517_s12 + $0x990] sm:$0xff] }
 0x359   :  { %v2975_v0 = vpop.f32.mrf.mxu0  ;;  %4430 = vmatpush2.msra.mxu1 %v4242_v2  ;;  %4356 = vmatprep.subr.mxu0 %v4073_v46  ;;  %v11752_v46 = vmax.f32 %v9386_v20, %v9388_v13 }
 0x35a   :  { %v3258_v12 = vadd.f32 %v9643_v61, %v3236_v45  ;;  %v3334_v50 = vrot.slane %v9756_v35, 1  ;;  %v3221_v18 = vmax.f32 %v3131_v11, %v3133_v39  ;;  %v3338_v28 = vrot.slane %v9756_v35, 2  ;;  %4431 = vmatprep.subr.mxu1 %v4238_v52  ;;  %4357 = vmatpush2.msra.mxu0 %v4072_v21  ;;  %v4232_v45 = vld [vmem:[%s11517_s12 + $0x988] sm:$0xff]  ;;  %v4227_v21 = vld [vmem:[%s11517_s12 + $0x960] sm:$0xff] }
 0x35b   :  { %v2977_v3 = vpop.f32.mrf.mxu0  ;;  %v3137_v6 = vadd.f32 %v9557_v47, %v2975_v0  ;;  %4432 = vmatpush2.msra.mxu1 %v4237_v59  ;;  %v3342_v2 = vrot.slane %v9756_v35, 3  ;;  %4358 = vmatprep.subr.mxu0 %v4068_v16  ;;  %v4228_v11 = vld [vmem:[%s11517_s12 + $0x968] sm:$0xff]  ;;  %v9813_v0 = vpop.f32.mrf.mxu1  ;;  %v11753_v59 = vmax.f32 %v9394_v43, %v9396_v29  ;;  %v3348_v20 = vrot.slane %v9756_v35, 5 }
 0x35c   :  { %v9795_v40 = vmax.f32 %v3258_v12, 0.0  ;;  %v3139_v57 = vadd.f32 %v9588_v53, %v2977_v3  ;;  %v6338_v32 = vpack.i.bf16 %v3334_v50, %v3311_v51  ;;  %v6343_v19 = vpack.i.bf16 %v3338_v28, %v3315_v44  ;;  %4433 = vmatprep.subr.mxu1 %v4233_v42  ;;  %4359 = vmatpush2.msra.mxu0 %v4067_v25  ;;  %v4063_v53 = vld [vmem:[%s11517_s12 + $0x440] sm:$0xff]  ;;  %v4062_v50 = vld [vmem:[%s11517_s12 + $0x438] sm:$0xff]  ;;  %v4053_v25 = vld [vmem:[%s11517_s12 + $0x3f0] sm:$0xff] }
 0x35d   :  { %v2981_v39 = vpop.f32.mrf.mxu0  ;;  %v3237_v52 = vmax.f32 %v11752_v46, %v3221_v18  ;;  %v3319_v51 = vrot.slane %v9720_v41, 3  ;;  %4434 = vmatpush2.msra.mxu1 %v4232_v45  ;;  %4360 = vmatprep.subr.mxu0 %v4063_v53  ;;  %v4058_v18 = vld [vmem:[%s11517_s12 + $0x418] sm:$0xff]  ;;  %v4223_v44 = vld [vmem:[%s11517_s12 + $0x940] sm:$0xff]  ;;  %v9837_v28 = vpop.f32.mrf.mxu1  ;;  %v3292_v53 = vrot.slane %v9689_v33, 2 }
 0x35e   :  { %v3222_v47 = vmax.f32 %v3137_v6, %v3139_v57  ;;  %6339 = vrot.lane.b32.xlu0 %v6338_v32, %s6566_s28  ;;  %6344 = vrot.lane.b32.xlu1 %v6343_v19, %s6567_s22  ;;  %v3357_v13 = vrot.slane %v9795_v40, 1  ;;  %v3361_v42 = vrot.slane %v9795_v40, 2  ;;  %v4057_v6 = vld [vmem:[%s11517_s12 + $0x410] sm:$0xff]  ;;  %v4222_v57 = vld [vmem:[%s11517_s12 + $0x938] sm:$0xff] }
 0x35f   :  { %v2983_v12 = vpop.f32.mrf.mxu0  ;;  %4435 = vmatprep.subr.mxu1 %v4228_v11  ;;  %v6348_v29 = vpack.i.bf16 %v3342_v2, %v3319_v51  ;;  %4361 = vmatpush2.msra.mxu0 %v4062_v50  ;;  %v4218_v45 = vld [vmem:[%s11517_s12 + $0x918] sm:$0xff]  ;;  %v3259_v19 = vadd.f32 %v9643_v61, %v3237_v52  ;;  %v3143_v2 = vadd.f32 %v9590_v23, %v2981_v39  ;;  %v4052_v11 = vld [vmem:[%s11517_s12 + $0x3e8] sm:$0xff]  ;;  %v4217_v23 = vld [vmem:[%s11517_s12 + $0x910] sm:$0xff]  ;;  %v9868_v39 = vpop.f32.mrf.mxu1 }
 0x360   :  { %v3238_v3 = vmax.f32 %v11753_v59, %v3222_v47  ;;  %v3145_v16 = vadd.f32 %v9600_v10, %v2983_v12  ;;  %4436 = vmatpush2.msra.mxu1 %v4227_v21  ;;  %v3288_v10 = vrot.slane %v9689_v33, 1  ;;  %4362 = vmatprep.subr.mxu0 %v4058_v18  ;;  %v6358_v59 = vpack.i.bf16 %v3361_v42, %v3292_v53  ;;  %v4212_v18 = vld [vmem:[%s11517_s12 + $0x8e8] sm:$0xff] }
 0x361   :  { %v2987_v43 = vpop.f32.mrf.mxu0  ;;  %4437 = vmatprep.subr.mxu1 %v4223_v44  ;;  %4363 = vmatpush2.msra.mxu0 %v4057_v6  ;;  %v9888_v44 = vmax.f32 %v3259_v19, 0.0  ;;  %v11754_v42 = vmax.f32 %v9412_v26, %v9414_v60  ;;  %v4042_v26 = vld [vmem:[%s11517_s12 + $0x398] sm:$0xff]  ;;  %v4207_v60 = vld [vmem:[%s11517_s12 + $0x8c0] sm:$0xff] }
 0x362   :  { %v3260_v32 = vadd.f32 %v9643_v61, %v3238_v3  ;;  %3349 = vrot.lane.b32.xlu0 %v3348_v20, %s6566_s28  ;;  %6349 = vrot.lane.b32.xlu1 %v6348_v29, %s6565_s27  ;;  %v3149_v46 = vadd.f32 %v9608_v1, %v2987_v43  ;;  %v6353_v51 = vpack.i.bf16 %v3357_v13, %v3288_v10  ;;  %v3365_v3 = vrot.slane %v9795_v40, 3  ;;  %v4213_v1 = vld [vmem:[%s11517_s12 + $0x8f0] sm:$0xff]  ;;  %v4047_v13 = vld [vmem:[%s11517_s12 + $0x3c0] sm:$0xff]  ;;  %v9902_v10 = vpop.f32.mrf.mxu1 }
 0x363   :  { %v2989_v47 = vpop.f32.mrf.mxu0  ;;  %4438 = vmatpush2.msra.mxu1 %v4222_v57  ;;  %v3223_v50 = vmax.f32 %v3143_v2, %v3145_v16  ;;  %4364 = vmatprep.subr.mxu0 %v4053_v25  ;;  %v3296_v43 = vrot.slane %v9689_v33, 3  ;;  %v4043_v29 = vld [vmem:[%s11517_s12 + $0x3a0] sm:$0xff]  ;;  %v3371_v57 = vrot.slane %v9795_v40, 5  ;;  %v11755_v25 = vmax.f32 %v9404_v37, %v9406_v7  ;;  %v4038_v37 = vld [vmem:[%s11517_s12 + $0x378] sm:$0xff] }
 0x364   :  { %v3151_v12 = vadd.f32 %v9632_v34, %v2989_v47  ;;  %v9870_v52 = vmax.f32 %v3260_v32, 0.0  ;;  %4439 = vmatprep.subr.mxu1 %v4218_v45  ;;  %v4048_v34 = vld [vmem:[%s11517_s12 + $0x3c8] sm:$0xff]  ;;  %4365 = vmatpush2.msra.mxu0 %v4052_v11  ;;  %v4203_v7 = vld [vmem:[%s11517_s12 + $0x8a0] sm:$0xff] }
 0x365   :  { %v9872_v21 = vpop.f32.mrf.mxu0  ;;  %4440 = vmatpush2.msra.mxu1 %v4217_v23  ;;  %4366 = vmatprep.subr.mxu0 %v4048_v34  ;;  %v4208_v32 = vld [vmem:[%s11517_s12 + $0x8c8] sm:$0xff]  ;;  %v3239_v45 = vmax.f32 %v11755_v25, %v3223_v50  ;;  %v6363_v2 = vpack.i.bf16 %v3365_v3, %v3296_v43  ;;  %v3394_v50 = vrot.slane %v9888_v44, 5  ;;  %v4202_v3 = vld [vmem:[%s11517_s12 + $0x898] sm:$0xff]  ;;  %v9934_v34 = vpop.f32.mrf.mxu1 }
 0x366   :  { %v3224_v20 = vmax.f32 %v3149_v46, %v3151_v12  ;;  %6354 = vrot.lane.b32.xlu0 %v6353_v51, %s6566_s28  ;;  %6359 = vrot.lane.b32.xlu1 %v6358_v59, %s6567_s22  ;;  %v3407_v47 = vrot.slane %v9870_v52, 2  ;;  %v3384_v46 = vrot.slane %v9888_v44, 2  ;;  %v4037_v12 = vld [vmem:[%s11517_s12 + $0x370] sm:$0xff]  ;;  %v3403_v59 = vrot.slane %v9870_v52, 1  ;;  %v4198_v43 = vld [vmem:[%s11517_s12 + $0x878] sm:$0xff] }
 0x367   :  { %v2995_v16 = vpop.f32.mrf.mxu0  ;;  %4441 = vmatprep.subr.mxu1 %v4213_v1  ;;  %4367 = vmatpush2.msra.mxu0 %v4047_v13  ;;  %v3261_v1 = vadd.f32 %v9643_v61, %v3239_v45  ;;  %v3388_v45 = vrot.slane %v9888_v44, 3 }
 0x368   :  { %v3240_v6 = vmax.f32 %v11754_v42, %v3224_v20  ;;  %4442 = vmatpush2.msra.mxu1 %v4212_v18  ;;  %4368 = vmatprep.subr.mxu0 %v4043_v29  ;;  %v3157_v20 = vadd.f32 %v9696_v14, %v2995_v16  ;;  %v4033_v18 = vld [vmem:[%s11517_s12 + $0x350] sm:$0xff]  ;;  %v3380_v42 = vrot.slane %v9888_v44, 1  ;;  %v4032_v14 = vld [vmem:[%s11517_s12 + $0x348] sm:$0xff] }
 0x369   :  { %v2999_v19 = vpop.f32.mrf.mxu0  ;;  %4443 = vmatprep.subr.mxu1 %v4208_v32  ;;  %4369 = vmatpush2.msra.mxu0 %v4042_v26  ;;  %v4197_v16 = vld [vmem:[%s11517_s12 + $0x870] sm:$0xff]  ;;  %v3155_v32 = vadd.f32 %v9662_v58, %v9872_v21  ;;  %v9969_v21 = vmax.f32 %v3261_v1, 0.0 }
 0x36a   :  { %3372 = vrot.lane.b32.xlu0 %v3371_v57, %s6566_s28  ;;  %v3262_v53 = vadd.f32 %v9643_v61, %v3240_v6  ;;  %6364 = vrot.lane.b32.xlu1 %v6363_v2, %s6565_s27  ;;  %v3161_v51 = vadd.f32 %v9712_v56, %v2999_v19  ;;  %v6373_v56 = vpack.i.bf16 %v3407_v47, %v3384_v46  ;;  %v9953_v6 = vpop.f32.mrf.mxu1  ;;  %v4028_v19 = vld [vmem:[%s11517_s12 + $0x328] sm:$0xff]  ;;  %v4193_v58 = vld [vmem:[%s11517_s12 + $0x850] sm:$0xff] }
 0x36b   :  { %v3001_v11 = vpop.f32.mrf.mxu0  ;;  %4444 = vmatpush2.msra.mxu1 %v4207_v60  ;;  %4370 = vmatprep.subr.mxu0 %v4038_v37  ;;  %v6368_v26 = vpack.i.bf16 %v3403_v59, %v3380_v42  ;;  %v3225_v60 = vmax.f32 %v3155_v32, %v3157_v20  ;;  %v11757_v59 = vmax.f32 %v9445_v15, %v9448_v22  ;;  %v3440_v15 = vrot.slane %v9969_v21, 5 }
 0x36c   :  { %v3163_v23 = vadd.f32 %v9748_v4, %v3001_v11  ;;  %v3411_v4 = vrot.slane %v9870_v52, 3  ;;  %4445 = vmatprep.subr.mxu1 %v4203_v7  ;;  %4371 = vmatpush2.msra.mxu0 %v4037_v12  ;;  %v9955_v57 = vmax.f32 %v3262_v53, 0.0  ;;  %v11756_v53 = vmax.f32 %v9433_v9, %v9436_v27  ;;  %v4023_v12 = vld [vmem:[%s11517_s12 + $0x300] sm:$0xff]  ;;  %v4022_v27 = vld [vmem:[%s11517_s12 + $0x2f8] sm:$0xff] }
 0x36d   :  { %v3005_v13 = vpop.f32.mrf.mxu0  ;;  %4446 = vmatpush2.msra.mxu1 %v4202_v3  ;;  %4372 = vmatprep.subr.mxu0 %v4033_v18  ;;  %v3426_v22 = vrot.slane %v9969_v21, 1 }
 0x36e   :  { %v3226_v29 = vmax.f32 %v3161_v51, %v3163_v23  ;;  %3395 = vrot.lane.b32.xlu0 %v3394_v50, %s6566_s28  ;;  %6374 = vrot.lane.b32.xlu1 %v6373_v56, %s6567_s22  ;;  %v3167_v2 = vadd.f32 %v9785_v48, %v3005_v13  ;;  %v6378_v7 = vpack.i.bf16 %v3411_v4, %v3388_v45  ;;  %v4027_v48 = vld [vmem:[%s11517_s12 + $0x320] sm:$0xff]  ;;  %v4188_v51 = vld [vmem:[%s11517_s12 + $0x828] sm:$0xff]  ;;  %v9987_v23 = vpop.f32.mrf.mxu1  ;;  %v3449_v9 = vrot.slane %v9955_v57, 1 }
 0x36f   :  { %v3007_v25 = vpop.f32.mrf.mxu0  ;;  %4447 = vmatprep.subr.mxu1 %v4198_v43  ;;  %4373 = vmatpush2.msra.mxu0 %v4032_v14  ;;  %v3417_v13 = vrot.slane %v9870_v52, 5  ;;  %v4187_v56 = vld [vmem:[%s11517_s12 + $0x820] sm:$0xff]  ;;  %v11758_v4 = vmax.f32 %v9424_v31, %v9426_v17  ;;  %v4017_v14 = vld [vmem:[%s11517_s12 + $0x2d0] sm:$0xff] }
 0x370   :  { %v3169_v47 = vadd.f32 %v9813_v0, %v3007_v25  ;;  %4448 = vmatpush2.msra.mxu1 %v4197_v16  ;;  %v4192_v0 = vld [vmem:[%s11517_s12 + $0x848] sm:$0xff]  ;;  %v3242_v11 = vmax.f32 %v11756_v53, %v3226_v29  ;;  %4374 = vmatprep.subr.mxu0 %v4028_v19  ;;  %v4183_v29 = vld [vmem:[%s11517_s12 + $0x800] sm:$0xff]  ;;  %v4182_v16 = vld [vmem:[%s11517_s12 + $0x7f8] sm:$0xff]  ;;  %v10024_v32 = vpop.f32.mrf.mxu1  ;;  %v6383_v45 = vpack.i.bf16 %v3449_v9, %v3426_v22  ;;  %v3430_v19 = vrot.slane %v9969_v21, 2 }
 0x371   :  { %v3011_v37 = vpop.f32.mrf.mxu0  ;;  %4449 = vmatprep.subr.mxu1 %v4193_v58  ;;  %4375 = vmatpush2.msra.mxu0 %v4027_v48  ;;  %v3241_v18 = vmax.f32 %v11758_v4, %v3225_v60  ;;  %v11759_v58 = vmax.f32 %v9464_v62, %v9467_v38  ;;  %v4178_v48 = vld [vmem:[%s11517_s12 + $0x7d8] sm:$0xff]  ;;  %v4012_v62 = vld [vmem:[%s11517_s12 + $0x2a8] sm:$0xff]  ;;  %v4177_v38 = vld [vmem:[%s11517_s12 + $0x7d0] sm:$0xff]  ;;  %v3463_v22 = vrot.slane %v9955_v57, 5 }
 0x372   :  { %v3227_v46 = vmax.f32 %v3167_v2, %v3169_v47  ;;  %6369 = vrot.lane.b32.xlu0 %v6368_v26, %s6566_s28  ;;  %6379 = vrot.lane.b32.xlu1 %v6378_v7, %s6565_s27  ;;  %v3173_v1 = vadd.f32 %v9837_v28, %v3011_v37  ;;  %v3453_v28 = vrot.slane %v9955_v57, 2  ;;  %v3264_v31 = vadd.f32 %v9643_v61, %v3242_v11  ;;  %v4013_v47 = vld [vmem:[%s11517_s12 + $0x2b0] sm:$0xff]  ;;  %v3192_v9 = vpop.f32.mrf.mxu1 }
 0x373   :  { %v3013_v50 = vpop.f32.mrf.mxu0  ;;  %4450 = vmatpush2.msra.mxu1 %v4192_v0  ;;  %4376 = vmatprep.subr.mxu0 %v4023_v12  ;;  %v3457_v2 = vrot.slane %v9955_v57, 3  ;;  %v3263_v0 = vadd.f32 %v9643_v61, %v3241_v18 }
 0x374   :  { %v3243_v3 = vmax.f32 %v11757_v59, %v3227_v46  ;;  %v3175_v20 = vadd.f32 %v9868_v39, %v3013_v50  ;;  %4451 = vmatprep.subr.mxu1 %v4188_v51  ;;  %v4018_v39 = vld [vmem:[%s11517_s12 + $0x2d8] sm:$0xff]  ;;  %4377 = vmatpush2.msra.mxu0 %v4022_v27  ;;  %v6388_v11 = vpack.i.bf16 %v3453_v28, %v3430_v19  ;;  %v3434_v46 = vrot.slane %v9969_v21, 3  ;;  %v4008_v51 = vld [vmem:[%s11517_s12 + $0x288] sm:$0xff]  ;;  %v4173_v50 = vld [vmem:[%s11517_s12 + $0x7b0] sm:$0xff] }
 0x375   :  { %v3017_v43 = vpop.f32.mrf.mxu0  ;;  %4452 = vmatpush2.msra.mxu1 %v4187_v56  ;;  %4378 = vmatprep.subr.mxu0 %v4018_v39 }
 0x376   :  { %v3265_v17 = vadd.f32 %v9643_v61, %v3243_v3  ;;  %v3228_v42 = vmax.f32 %v3173_v1, %v3175_v20  ;;  %3418 = vrot.lane.b32.xlu0 %v3417_v13, %s6566_s28  ;;  %3441 = vrot.lane.b32.xlu1 %v3440_v15, %s6566_s28  ;;  %v3179_v37 = vadd.f32 %v9902_v10, %v3017_v43  ;;  %v10050_v10 = vmax.f32 %v3264_v31, 0.0  ;;  %v4007_v1 = vld [vmem:[%s11517_s12 + $0x280] sm:$0xff]  ;;  %v3196_v31 = vpop.f32.mrf.mxu1 }
 0x377   :  { %v3019_v25 = vpop.f32.mrf.mxu0  ;;  %4453 = vmatprep.subr.mxu1 %v4183_v29  ;;  %4379 = vmatpush2.msra.mxu0 %v4017_v14  ;;  %v6393_v3 = vpack.i.bf16 %v3457_v2, %v3434_v46  ;;  %v11760_v13 = vmax.f32 %v9524_v5, %v9527_v24  ;;  %v10075_v43 = vmax.f32 %v3263_v0, 0.0  ;;  %v4168_v24 = vld [vmem:[%s11517_s12 + $0x788] sm:$0xff]  ;;  %v4167_v29 = vld [vmem:[%s11517_s12 + $0x780] sm:$0xff] }
 0x378   :  { %v10032_v26 = vmax.f32 %v3265_v17, 0.0  ;;  %v3244_v60 = vmax.f32 %v11759_v58, %v3228_v42  ;;  %v3181_v7 = vadd.f32 %v9934_v34, %v3019_v25  ;;  %4454 = vmatpush2.msra.mxu1 %v4182_v16  ;;  %4380 = vmatprep.subr.mxu0 %v4013_v47  ;;  %v3499_v39 = vrot.slane %v10050_v10, 2  ;;  %v4005_v16 = vld [vmem:[%s11517_s12 + $0x270] sm:$0xff] }
 0x379   :  { %v3023_v53 = vpop.f32.mrf.mxu0  ;;  %4455 = vmatprep.subr.mxu1 %v4178_v48  ;;  %4381 = vmatpush2.msra.mxu0 %v4012_v62  ;;  %v3495_v42 = vrot.slane %v10050_v10, 1  ;;  %v11761_v25 = vmax.f32 %v9566_v36, %v9569_v63  ;;  %v4283_v63 = vld [vmem:[%s11517_s12 + $0xb20] sm:$0xff]  ;;  %v3198_v36 = vpop.f32.mrf.mxu1  ;;  %v3476_v46 = vrot.slane %v10075_v43, 2 }
 0x37a   :  { %v3266_v34 = vadd.f32 %v9643_v61, %v3244_v60  ;;  %v3229_v12 = vmax.f32 %v3179_v37, %v3181_v7  ;;  %6384 = vrot.lane.b32.xlu0 %v6383_v45, %s6566_s28  ;;  %v3185_v27 = vadd.f32 %v9953_v6, %v3023_v53  ;;  %6389 = vrot.lane.b32.xlu1 %v6388_v11, %s6567_s22  ;;  %v3522_v18 = vrot.slane %v10032_v26, 2  ;;  %v4172_v6 = vld [vmem:[%s11517_s12 + $0x7a8] sm:$0xff] }
 0x37b   :  { %v3025_v59 = vpop.f32.mrf.mxu0  ;;  %4456 = vmatpush2.msra.mxu1 %v4177_v38  ;;  %v3518_v28 = vrot.slane %v10032_v26, 1  ;;  %4382 = vmatprep.subr.mxu0 %v4008_v51  ;;  %v3472_v7 = vrot.slane %v10075_v43, 1  ;;  %v11762_v38 = vmax.f32 %v9593_v54, %v9596_v55  ;;  %v11763_v54 = vmax.f32 %v9603_v49, %v9606_v8 }
 0x37c   :  { %v10065_v20 = vmax.f32 %v3266_v34, 0.0  ;;  %v3245_v56 = vmax.f32 %v11760_v13, %v3229_v12  ;;  %v3187_v4 = vadd.f32 %v9987_v23, %v3025_v59  ;;  %4457 = vmatprep.subr.mxu1 %v4173_v50  ;;  %4383 = vmatpush2.msra.mxu0 %v4007_v1  ;;  %v6403_v47 = vpack.i.bf16 %v3522_v18, %v3499_v39 }
 0x37d   :  { %v3029_v15 = vpop.f32.mrf.mxu0  ;;  %4458 = vmatpush2.msra.mxu1 %v4172_v6  ;;  %v6398_v37 = vpack.i.bf16 %v3518_v28, %v3495_v42  ;;  %4490 = vmatprep.subr.mxu0 %v4283_v63 }
 0x37e   :  { %v3267_v5 = vadd.f32 %v9643_v61, %v3245_v56  ;;  %v3230_v23 = vmax.f32 %v3185_v27, %v3187_v4  ;;  %6394 = vrot.lane.b32.xlu0 %v6393_v3, %s6565_s27  ;;  %3464 = vrot.lane.b32.xlu1 %v3463_v22, %s6566_s28  ;;  %v3541_v14 = vrot.slane %v10065_v20, 1  ;;  %v3191_v19 = vadd.f32 %v10024_v32, %v3029_v15 }
 0x37f   :  { %v3031_v17 = vpop.f32.mrf.mxu0  ;;  %4459 = vmatprep.subr.mxu1 %v4168_v24  ;;  %v3545_v48 = vrot.slane %v10065_v20, 2  ;;  %v3549_v42 = vrot.slane %v10065_v20, 3 }
 0x380   :  { %v3246_v45 = vmax.f32 %v11761_v25, %v3230_v23  ;;  %v3193_v2 = vadd.f32 %v3192_v9, %v3031_v17  ;;  %v10098_v58 = vmax.f32 %v3267_v5, 0.0  ;;  %4460 = vmatpush2.msra.mxu1 %v4167_v29  ;;  %v6408_v11 = vpack.i.bf16 %v3541_v14, %v3472_v7 }
 0x381   :  { %v3035_v60 = vpop.f32.mrf.mxu0  ;;  %4551 = vmatprep.subr.mxu1 %v4005_v16  ;;  %v6413_v50 = vpack.i.bf16 %v3545_v48, %v3476_v46  ;;  %v3526_v23 = vrot.slane %v10032_v26, 3  ;;  %v3509_v29 = vrot.slane %v10050_v10, 5  ;;  %v3532_v17 = vrot.slane %v10032_v26, 5 }
 0x382   :  { %v3268_v0 = vadd.f32 %v9643_v61, %v3246_v45  ;;  %v3231_v53 = vmax.f32 %v3191_v19, %v3193_v2  ;;  %6404 = vrot.lane.b32.xlu0 %v6403_v47, %s6567_s22  ;;  %6399 = vrot.lane.b32.xlu1 %v6398_v37, %s6566_s28  ;;  %v3197_v12 = vadd.f32 %v3196_v31, %v3035_v60  ;;  %v3564_v9 = vrot.slane %v10098_v58, 1 }
 0x383   :  { %v3037_v32 = vpop.f32.mrf.mxu0  ;;  %v3568_v27 = vrot.slane %v10098_v58, 2  ;;  %v3486_v31 = vrot.slane %v10075_v43, 5  ;;  %v3480_v14 = vrot.slane %v10075_v43, 3  ;;  %v3555_v25 = vrot.slane %v10065_v20, 5 }
 0x384   :  { %v10109_v62 = vmax.f32 %v3268_v0, 0.0  ;;  %v3247_v34 = vmax.f32 %v11762_v38, %v3231_v53  ;;  %v3199_v51 = vadd.f32 %v3198_v36, %v3037_v32  ;;  %v3572_v19 = vrot.slane %v10098_v58, 3 }
 0x385   :  { %v6443_v16 = vpack.i.bf16 %v3549_v42, %v3480_v14  ;;  %v3578_v47 = vrot.slane %v10098_v58, 5  ;;  %v3323_v38 = vrot.slane %v9720_v41, 4 }
 0x386   :  { %v3269_v59 = vadd.f32 %v9643_v61, %v3247_v34  ;;  %v3232_v3 = vmax.f32 %v3197_v12, %v3199_v51  ;;  %6409 = vrot.lane.b32.xlu0 %v6408_v11, %s6566_s28  ;;  %v3587_v1 = vrot.slane %v10109_v62, 1  ;;  %v3591_v13 = vrot.slane %v10109_v62, 2  ;;  %6414 = vrot.lane.b32.xlu1 %v6413_v50, %s6567_s22 }
 0x387   :  { %v3595_v45 = vrot.slane %v10109_v62, 3  ;;  %v3601_v37 = vrot.slane %v10109_v62, 5  ;;  %v3300_v50 = vrot.slane %v9689_v33, 4 }
 0x388   :  { %v3248_v55 = vmax.f32 %v11763_v54, %v3232_v3  ;;  %v6418_v56 = vpack.i.bf16 %v3587_v1, %v3564_v9  ;;  %v6423_v4 = vpack.i.bf16 %v3591_v13, %v3568_v27  ;;  %v10124_v18 = vmax.f32 %v3269_v59, 0.0 }
 0x389   :  { %v6448_v2 = vpack.i.bf16 %v3595_v45, %v3572_v19  ;;  %v3346_v27 = vrot.slane %v9756_v35, 4  ;;  %v3369_v1 = vrot.slane %v9795_v40, 4 }
 0x38a   :  { %v3270_v6 = vadd.f32 %v9643_v61, %v3248_v55  ;;  %6419 = vrot.lane.b32.xlu0 %v6418_v56, %s6566_s28  ;;  %6424 = vrot.lane.b32.xlu1 %v6423_v4, %s6567_s22  ;;  %v3614_v22 = vrot.slane %v10124_v18, 2  ;;  %v3610_v24 = vrot.slane %v10124_v18, 1  ;;  %v3503_v61 = vrot.slane %v10050_v10, 3 }
 0x38b   :  { %v3624_v60 = vrot.slane %v10124_v18, 5  ;;  %v3618_v48 = vrot.slane %v10124_v18, 3  ;;  %v3392_v55 = vrot.slane %v9888_v44, 4  ;;  %v3415_v56 = vrot.slane %v9870_v52, 4 }
 0x38c   :  { %v10129_v15 = vmax.f32 %v3270_v6, 0.0  ;;  %v6438_v39 = vpack.i.bf16 %v3526_v23, %v3503_v61  ;;  %v3438_v23 = vrot.slane %v9969_v21, 4 }
 0x38e   :  { %v3637_v28 = vrot.slane %v10129_v15, 2  ;;  %v3633_v49 = vrot.slane %v10129_v15, 1  ;;  %v3641_v7 = vrot.slane %v10129_v15, 3  ;;  %v3647_v0 = vrot.slane %v10129_v15, 5 }
 0x390   :  { %v6433_v8 = vpack.i.bf16 %v3637_v28, %v3614_v22  ;;  %v6428_v5 = vpack.i.bf16 %v3633_v49, %v3610_v24  ;;  %v6453_v53 = vpack.i.bf16 %v3641_v7, %v3618_v48 }
 0x392   :  { %6434 = vrot.lane.b32.xlu1 %v6433_v8, %s6567_s22  ;;  %6429 = vrot.lane.b32.xlu0 %v6428_v5, %s6566_s28 }
 0x396   :  { %6439 = vrot.lane.b32.xlu1 %v6438_v39, %s6565_s27  ;;  %3510 = vrot.lane.b32.xlu0 %v3509_v29, %s6566_s28 }
 0x39a   :  { %3487 = vrot.lane.b32.xlu1 %v3486_v31, %s6566_s28  ;;  %3533 = vrot.lane.b32.xlu0 %v3532_v17, %s6566_s28 }
 0x39e   :  { %6444 = vrot.lane.b32.xlu1 %v6443_v16, %s6565_s27  ;;  %3556 = vrot.lane.b32.xlu0 %v3555_v25, %s6566_s28  ;;  %v3461_v16 = vrot.slane %v9955_v57, 4 }
 0x3a2   :  { %6449 = vrot.lane.b32.xlu1 %v6448_v2, %s6565_s27  ;;  %3579 = vrot.lane.b32.xlu0 %v3578_v47, %s6566_s28 }
 0x3a6   :  { %3625 = vrot.lane.b32.xlu1 %v3624_v60, %s6566_s28  ;;  %3602 = vrot.lane.b32.xlu0 %v3601_v37, %s6566_s28 }
 0x3aa   :  { %3648 = vrot.lane.b32.xlu1 %v3647_v0, %s6566_s28  ;;  %6454 = vrot.lane.b32.xlu0 %v6453_v53, %s6565_s27 }
 0x3c6   :  { %v10167_v36 = vpop.permute.xlu1 %3303 }
 0x3c7   :  { %v3309_v61 = vsel %vm539_vm2, %v3300_v50, %v10167_v36 }
 0x3ca   :  { %v10165_v63 = vpop.permute.xlu0 %3326 }
 0x3cb   :  { %v3332_v12 = vsel %vm539_vm2, %v3323_v38, %v10165_v63 }
 0x3cc   :  { %v3662_v13 = vrot.slane %v3332_v12, 7 }
 0x3ce   :  { %v3855_v17 = vsel %vm3851_vm6, %v3309_v61, %v3662_v13 }
 0x3d0   :  { %v6340_v32 = vpop.permute.xlu0 %6339  ;;  %v6345_v11 = vpop.permute.xlu1 %6344 }
 0x3d1   :  { %v6341_v51 = vunpack.i.l.bf16 %v6340_v32  ;;  %v6342_v54 = vunpack.i.h.bf16 %v6340_v32  ;;  %v6347_v6 = vunpack.i.h.bf16 %v6345_v11  ;;  %v6346_v22 = vunpack.i.l.bf16 %v6345_v11 }
 0x3d3   :  { %v3329_v4 = vsel %vm539_vm2, %v9720_v41, %v6341_v51  ;;  %v3352_v25 = vsel %vm539_vm2, %v9756_v35, %v6342_v54  ;;  %v3353_v45 = vsel %vm522_vm1, %v6342_v54, %v6347_v6  ;;  %v3330_v19 = vsel %vm522_vm1, %v6341_v51, %v6346_v22 }
 0x3d4   :  { %v10169_v46 = vpop.permute.xlu0 %3349  ;;  %v6350_v34 = vpop.permute.xlu1 %6349  ;;  %v3659_v42 = vrot.slane %v3329_v4, 7  ;;  %v3673_v11 = vrot.slane %v3352_v25, 6  ;;  %v3674_v38 = vrot.slane %v3353_v45, 6 }
 0x3d5   :  { %v3355_v28 = vsel %vm539_vm2, %v3346_v27, %v10169_v46  ;;  %v6352_v24 = vunpack.i.h.bf16 %v6350_v34  ;;  %v6351_v49 = vunpack.i.l.bf16 %v6350_v34  ;;  %v3660_v34 = vrot.slane %v3330_v19, 7 }
 0x3d6   :  { %v3676_v14 = vrot.slane %v3355_v28, 6 }
 0x3d7   :  { %v3331_v47 = vsel %vm505_vm0, %v6346_v22, %v6351_v49 }
 0x3d8   :  { %v6355_v9 = vpop.permute.xlu0 %6354  ;;  %v6360_v3 = vpop.permute.xlu1 %6359  ;;  %v3861_v12 = vsel %vm3857_vm7, %v3855_v17, %v3676_v14 }
 0x3d9   :  { %v6356_v59 = vunpack.i.l.bf16 %v6355_v9  ;;  %v6357_v8 = vunpack.i.h.bf16 %v6355_v9  ;;  %v6362_v41 = vunpack.i.h.bf16 %v6360_v3  ;;  %v6361_v29 = vunpack.i.l.bf16 %v6360_v3 }
 0x3db   :  { %v3306_v39 = vsel %vm539_vm2, %v9689_v33, %v6356_v59  ;;  %v3354_v33 = vsel %vm505_vm0, %v6347_v6, %v6352_v24  ;;  %v3375_v60 = vsel %vm539_vm2, %v9795_v40, %v6357_v8  ;;  %v3376_v48 = vsel %vm522_vm1, %v6357_v8, %v6362_v41 }
 0x3dc   :  { %v10183_v5 = vpop.permute.xlu0 %3372  ;;  %v6365_v31 = vpop.permute.xlu1 %6364  ;;  %v3852_v37 = vsel %vm3851_vm6, %v3306_v39, %v3659_v42  ;;  %v3307_v35 = vsel %vm522_vm1, %v6356_v59, %v6361_v29  ;;  %v3661_v40 = vrot.slane %v3331_v47, 7  ;;  %v3675_v51 = vrot.slane %v3354_v33, 6 }
 0x3dd   :  { %v6366_v2 = vunpack.i.l.bf16 %v6365_v31  ;;  %v3378_v0 = vsel %vm539_vm2, %v3369_v1, %v10183_v5  ;;  %v6367_v53 = vunpack.i.h.bf16 %v6365_v31  ;;  %v3687_v50 = vrot.slane %v3375_v60, 5 }
 0x3de   :  { %v3858_v27 = vsel %vm3857_vm7, %v3852_v37, %v3673_v11  ;;  %v3688_v59 = vrot.slane %v3376_v48, 5  ;;  %v3853_v3 = vsel %vm3851_vm6, %v3307_v35, %v3660_v34  ;;  %v3690_v1 = vrot.slane %v3378_v0, 5 }
 0x3df   :  { %v3308_v9 = vsel %vm505_vm0, %v6361_v29, %v6366_v2  ;;  %v3377_v54 = vsel %vm505_vm0, %v6362_v41, %v6367_v53  ;;  %v3864_v39 = vsel %vm3863_vm8, %v3858_v27, %v3687_v50  ;;  %v3859_v45 = vsel %vm3857_vm7, %v3853_v3, %v3674_v38 }
 0x3e0   :  { %v10201_v7 = vpop.permute.xlu0 %3395  ;;  %v6375_v32 = vpop.permute.xlu1 %6374  ;;  %v3854_v24 = vsel %vm3851_vm6, %v3308_v9, %v3661_v40  ;;  %v3689_v17 = vrot.slane %v3377_v54, 5  ;;  %v3867_v33 = vsel %vm3863_vm8, %v3861_v12, %v3690_v1  ;;  %v3865_v34 = vsel %vm3863_vm8, %v3859_v45, %v3688_v59 }
 0x3e1   :  { %v3401_v4 = vsel %vm539_vm2, %v3392_v55, %v10201_v7  ;;  %v6376_v49 = vunpack.i.l.bf16 %v6375_v32  ;;  %v6377_v29 = vunpack.i.h.bf16 %v6375_v32  ;;  %v3860_v19 = vsel %vm3857_vm7, %v3854_v24, %v3675_v51 }
 0x3e2   :  { %v3704_v42 = vrot.slane %v3401_v4, 4 }
 0x3e4   :  { %v6370_v13 = vpop.permute.xlu0 %6369  ;;  %v6380_v28 = vpop.permute.xlu1 %6379  ;;  %v3873_v32 = vsel %vm3869_vm9, %v3867_v33, %v3704_v42 }
 0x3e5   :  { %v6372_v6 = vunpack.i.h.bf16 %v6370_v13  ;;  %v6371_v22 = vunpack.i.l.bf16 %v6370_v13  ;;  %v6382_v8 = vunpack.i.h.bf16 %v6380_v28  ;;  %v6381_v61 = vunpack.i.l.bf16 %v6380_v28 }
 0x3e7   :  { %v3421_v31 = vsel %vm539_vm2, %v9870_v52, %v6372_v6  ;;  %v3398_v41 = vsel %vm539_vm2, %v9888_v44, %v6371_v22  ;;  %v3399_v55 = vsel %vm522_vm1, %v6371_v22, %v6376_v49  ;;  %v3422_v2 = vsel %vm522_vm1, %v6372_v6, %v6377_v29 }
 0x3e8   :  { %v3701_v14 = vrot.slane %v3398_v41, 4  ;;  %v10221_v25 = vpop.permute.xlu0 %3418  ;;  %v10230_v44 = vpop.permute.xlu1 %3441  ;;  %v3715_v60 = vrot.slane %v3421_v31, 3  ;;  %v3400_v37 = vsel %vm505_vm0, %v6376_v49, %v6381_v61  ;;  %v3423_v48 = vsel %vm505_vm0, %v6377_v29, %v6382_v8 }
 0x3e9   :  { %v3424_v47 = vsel %vm539_vm2, %v3415_v56, %v10221_v25  ;;  %v3702_v35 = vrot.slane %v3399_v55, 4  ;;  %v3447_v52 = vsel %vm539_vm2, %v3438_v23, %v10230_v44  ;;  %v3866_v56 = vsel %vm3863_vm8, %v3860_v19, %v3689_v17 }
 0x3ea   :  { %v3870_v0 = vsel %vm3869_vm9, %v3864_v39, %v3701_v14  ;;  %v3718_v53 = vrot.slane %v3424_v47, 3  ;;  %v3716_v11 = vrot.slane %v3422_v2, 3  ;;  %v3703_v12 = vrot.slane %v3400_v37, 4 }
 0x3eb   :  { %v3717_v40 = vrot.slane %v3423_v48, 3  ;;  %v3876_v27 = vsel %vm3875_vm10, %v3870_v0, %v3715_v60  ;;  %v3732_v3 = vrot.slane %v3447_v52, 2  ;;  %v3871_v4 = vsel %vm3869_vm9, %v3865_v34, %v3702_v35 }
 0x3ec   :  { %v6385_v38 = vpop.permute.xlu0 %6384  ;;  %v6390_v9 = vpop.permute.xlu1 %6389  ;;  %v3879_v59 = vsel %vm3875_vm10, %v3873_v32, %v3718_v53  ;;  %v3872_v41 = vsel %vm3869_vm9, %v3866_v56, %v3703_v12  ;;  %v3877_v17 = vsel %vm3875_vm10, %v3871_v4, %v3716_v11  ;;  %v4004_v32 = vld [vmem:[%s11517_s12 + $0x268] sm:$0xff]  ;;  %v4278_v11 = vld [vmem:[%s11517_s12 + $0xaf8] sm:$0xff] }
 0x3ed   :  { %v6387_v51 = vunpack.i.h.bf16 %v6385_v38  ;;  %v6386_v50 = vunpack.i.l.bf16 %v6385_v38  ;;  %v6392_v1 = vunpack.i.h.bf16 %v6390_v9  ;;  %v6391_v13 = vunpack.i.l.bf16 %v6390_v9 }
 0x3ee   :  { %v3878_v37 = vsel %vm3875_vm10, %v3872_v41, %v3717_v40  ;;  %v4000_v40 = vld [vmem:[%s11517_s12 + $0x248] sm:$0xff] }
 0x3ef   :  { %v3467_v23 = vsel %vm539_vm2, %v9955_v57, %v6387_v51  ;;  %v3444_v54 = vsel %vm539_vm2, %v9969_v21, %v6386_v50  ;;  %v3468_v28 = vsel %vm522_vm1, %v6387_v51, %v6392_v1  ;;  %v3445_v24 = vsel %vm522_vm1, %v6386_v50, %v6391_v13  ;;  %v4277_v51 = vld [vmem:[%s11517_s12 + $0xaf0] sm:$0xff] }
 0x3f0   :  { %v3743_v6 = vrot.slane %v3467_v23, 1  ;;  %v3729_v22 = vrot.slane %v3444_v54, 2  ;;  %v6395_v49 = vpop.permute.xlu0 %6394  ;;  %v3730_v8 = vrot.slane %v3445_v24, 2  ;;  %v10252_v29 = vpop.permute.xlu1 %3464  ;;  %v3744_v31 = vrot.slane %v3468_v28, 1  ;;  %v3995_v23 = vld [vmem:[%s11517_s12 + $0x220] sm:$0xff]  ;;  %v4272_v28 = vld [vmem:[%s11517_s12 + $0xac8] sm:$0xff] }
 0x3f1   :  { %v6397_v61 = vunpack.i.h.bf16 %v6395_v49  ;;  %v6396_v39 = vunpack.i.l.bf16 %v6395_v49  ;;  %v3470_v21 = vsel %vm539_vm2, %v3461_v16, %v10252_v29  ;;  %v3885_v57 = vsel %vm3881_vm11, %v3879_v59, %v3732_v3  ;;  %v4282_v16 = vld [vmem:[%s11517_s12 + $0xb18] sm:$0xff]  ;;  %v3999_v3 = vld [vmem:[%s11517_s12 + $0x240] sm:$0xff] }
 0x3f2   :  { %v3882_v42 = vsel %vm3881_vm11, %v3876_v27, %v3729_v22  ;;  %v3746_v45 = vrot.slane %v3470_v21, 1  ;;  %v3883_v19 = vsel %vm3881_vm11, %v3877_v17, %v3730_v8  ;;  %v3994_v22 = vld [vmem:[%s11517_s12 + $0x218] sm:$0xff] }
 0x3f3   :  { %v3446_v55 = vsel %vm505_vm0, %v6391_v13, %v6396_v39  ;;  %v3469_v14 = vsel %vm505_vm0, %v6392_v1, %v6397_v61  ;;  %v10267_v60 = vsel %vm2150_vm3, %v3883_v19, %v3744_v31  ;;  %v10277_v0 = vsel %vm2150_vm3, %v3882_v42, %v3743_v6  ;;  %v4273_v1 = vld [vmem:[%s11517_s12 + $0xad0] sm:$0xff]  ;;  %v3990_v39 = vld [vmem:[%s11517_s12 + $0x1f8] sm:$0xff]  ;;  %v4268_v31 = vld [vmem:[%s11517_s12 + $0xaa8] sm:$0xff] }
 0x3f4   :  { %v3731_v2 = vrot.slane %v3446_v55, 2  ;;  %v3745_v47 = vrot.slane %v3469_v14, 1  ;;  %v10264_v33 = vpop.permute.xlu0 %6404  ;;  %v6400_v35 = vpop.permute.xlu1 %6399  ;;  %4384 = vmatprep.mubr.f32.mxu0 %v10267_v60  ;;  %v10280_v53 = vsel %vm2150_vm3, %v3885_v57, %v3746_v45  ;;  %v3989_v55 = vld [vmem:[%s11517_s12 + $0x1f0] sm:$0xff]  ;;  %v4267_v14 = vld [vmem:[%s11517_s12 + $0xaa0] sm:$0xff]  ;;  %v3663_v45 = vrot.slane %v10165_v63, 7 }
 0x3f5   :  { %v6406_v48 = vunpack.i.l.bf16 %v10264_v33  ;;  %v6401_v52 = vunpack.i.l.bf16 %v6400_v35  ;;  %4385 = vmatmul.mubr.f32.vlgmr.msra.gmra.mxu0 %v10277_v0  ;;  %4461 = vmatprep.mubr.f32.mxu1 %v10280_v53  ;;  %v6407_v38 = vunpack.i.h.bf16 %v10264_v33  ;;  %v6402_v34 = vunpack.i.h.bf16 %v6400_v35  ;;  %v4263_v63 = vld [vmem:[%s11517_s12 + $0xa80] sm:$0xff] }
 0x3f6   :  { %v3884_v56 = vsel %vm3881_vm11, %v3878_v37, %v3731_v2  ;;  %4491 = vmatpush1.msra.mxu0 %v4282_v16  ;;  %v3985_v16 = vld [vmem:[%s11517_s12 + $0x1d0] sm:$0xff] }
 0x3f7   :  { %v10293_v12 = vsel %vm2150_vm3, %v3884_v56, %v3745_v47  ;;  %v3513_v50 = vsel %vm539_vm2, %v10050_v10, %v6401_v52  ;;  %v3514_v9 = vsel %vm522_vm1, %v6401_v52, %v6406_v48  ;;  %4492 = vmatprep.subr.mxu0 %v4278_v11  ;;  %v3536_v24 = vsel %vm539_vm2, %v10032_v26, %v6402_v34  ;;  %v4262_v11 = vld [vmem:[%s11517_s12 + $0xa78] sm:$0xff] }
 0x3f8   :  { %v6410_v27 = vpop.permute.xlu0 %6409  ;;  %4462 = vmatmul.mubr.f32.vlgmr.msra.gmra.mxu1 %v10293_v12  ;;  %v10313_v13 = vpop.permute.xlu1 %6414  ;;  %4493 = vmatpush1.msra.mxu0 %v4277_v51  ;;  %v3537_v49 = vsel %vm522_vm1, %v6402_v34, %v6407_v38  ;;  %v3757_v8 = vrot.slane %v3513_v50, 7  ;;  %v3758_v61 = vrot.slane %v3514_v9, 7  ;;  %v3771_v37 = vrot.slane %v3536_v24, 6  ;;  %v3980_v9 = vld [vmem:[%s11517_s12 + $0x1a8] sm:$0xff] }
 0x3f9   :  { %4552 = vmatpush1.msra.mxu1 %v4004_v32  ;;  %v6412_v54 = vunpack.i.h.bf16 %v6410_v27  ;;  %v6411_v4 = vunpack.i.l.bf16 %v6410_v27  ;;  %v6417_v59 = vunpack.i.h.bf16 %v10313_v13  ;;  %v6416_v6 = vunpack.i.l.bf16 %v10313_v13  ;;  %4494 = vmatprep.subr.mxu0 %v4273_v1  ;;  %v3984_v32 = vld [vmem:[%s11517_s12 + $0x1c8] sm:$0xff]  ;;  %v4258_v27 = vld [vmem:[%s11517_s12 + $0xa58] sm:$0xff] }
 0x3fa   :  { %4553 = vmatprep.subr.mxu1 %v4000_v40  ;;  %4495 = vmatpush1.msra.mxu0 %v4272_v28  ;;  %v3772_v35 = vrot.slane %v3537_v49, 6  ;;  %v3677_v34 = vrot.slane %v10169_v46, 6  ;;  %v3975_v49 = vld [vmem:[%s11517_s12 + $0x180] sm:$0xff] }
 0x3fb   :  { %4554 = vmatpush1.msra.mxu1 %v3999_v3  ;;  %v3559_v41 = vsel %vm539_vm2, %v10065_v20, %v6412_v54  ;;  %v3490_v21 = vsel %vm539_vm2, %v10075_v43, %v6411_v4  ;;  %v3491_v17 = vsel %vm522_vm1, %v6411_v4, %v6416_v6  ;;  %v3560_v2 = vsel %vm522_vm1, %v6412_v54, %v6417_v59  ;;  %v3979_v54 = vld [vmem:[%s11517_s12 + $0x1a0] sm:$0xff]  ;;  %v4257_v4 = vld [vmem:[%s11517_s12 + $0xa50] sm:$0xff] }
 0x3fc   :  { %4555 = vmatprep.subr.mxu1 %v3995_v23  ;;  %v6420_v42 = vpop.permute.xlu0 %6419  ;;  %v3892_v19 = vsel %vm3851_vm6, %v3490_v21, %v3757_v8  ;;  %v3893_v47 = vsel %vm3851_vm6, %v3491_v17, %v3758_v61  ;;  %v10356_v57 = vpop.permute.xlu1 %6424  ;;  %4496 = vmatprep.subr.mxu0 %v4268_v31  ;;  %v3785_v40 = vrot.slane %v3559_v41, 5  ;;  %v3786_v1 = vrot.slane %v3560_v2, 5  ;;  %v4253_v8 = vld [vmem:[%s11517_s12 + $0xa30] sm:$0xff]  ;;  %v3974_v41 = vld [vmem:[%s11517_s12 + $0x178] sm:$0xff]  ;;  %v4252_v21 = vld [vmem:[%s11517_s12 + $0xa28] sm:$0xff] }
 0x3fd   :  { %4556 = vmatpush1.msra.mxu1 %v3994_v22  ;;  %v6422_v52 = vunpack.i.h.bf16 %v6420_v42  ;;  %v6421_v56 = vunpack.i.l.bf16 %v6420_v42  ;;  %v6427_v51 = vunpack.i.h.bf16 %v10356_v57  ;;  %v6426_v50 = vunpack.i.l.bf16 %v10356_v57  ;;  %4497 = vmatpush1.msra.mxu0 %v4267_v14 }
 0x3fe   :  { %4557 = vmatprep.subr.mxu1 %v3990_v39  ;;  %v3897_v3 = vsel %vm3857_vm7, %v3892_v19, %v3771_v37  ;;  %v3898_v46 = vsel %vm3857_vm7, %v3893_v47, %v3772_v35  ;;  %4498 = vmatprep.subr.mxu0 %v4263_v63  ;;  %v3856_v61 = vsel %vm3851_vm6, %v10167_v36, %v3663_v45  ;;  %v3691_v42 = vrot.slane %v10183_v5, 5  ;;  %v3970_v36 = vld [vmem:[%s11517_s12 + $0x158] sm:$0xff]  ;;  %v3969_v5 = vld [vmem:[%s11517_s12 + $0x150] sm:$0xff] }
 0x3ff   :  { %4558 = vmatpush1.msra.mxu1 %v3989_v55  ;;  %v3582_v23 = vsel %vm539_vm2, %v10098_v58, %v6421_v56  ;;  %v10391_v22 = vsel %vm539_vm2, %v10109_v62, %v6422_v52  ;;  %v10396_v28 = vsel %vm522_vm1, %v6422_v52, %v6427_v51  ;;  %v3583_v24 = vsel %vm522_vm1, %v6421_v56, %v6426_v50  ;;  %v4248_v55 = vld [vmem:[%s11517_s12 + $0xa08] sm:$0xff]  ;;  %v3965_v56 = vld [vmem:[%s11517_s12 + $0x130] sm:$0xff] }
 0x400   :  { %4559 = vmatprep.subr.mxu1 %v3985_v16  ;;  %4499 = vmatpush1.msra.mxu0 %v4262_v11  ;;  %v3799_v39 = vrot.slane %v3582_v23, 4  ;;  %v3800_v31 = vrot.slane %v3583_v24, 4  ;;  %v3862_v17 = vsel %vm3857_vm7, %v3856_v61, %v3677_v34  ;;  %v3902_v14 = vsel %vm3863_vm8, %v3897_v3, %v3785_v40  ;;  %v3964_v40 = vld [vmem:[%s11517_s12 + $0x128] sm:$0xff]  ;;  %v4165_v3 = vld [vmem:[%s11517_s12 + $0x770] sm:$0xff] }
 0x401   :  { %4560 = vmatpush1.msra.mxu1 %v3984_v32  ;;  %4500 = vmatprep.subr.mxu0 %v4258_v27  ;;  %v3813_v45 = vrot.slane %v10391_v22, 3  ;;  %v3814_v19 = vrot.slane %v10396_v28, 3  ;;  %v3903_v16 = vsel %vm3863_vm8, %v3898_v46, %v3786_v1  ;;  %v4247_v32 = vld [vmem:[%s11517_s12 + $0xa00] sm:$0xff]  ;;  %v3705_v11 = vrot.slane %v10201_v7, 4  ;;  %v3960_v23 = vld [vmem:[%s11517_s12 + $0x108] sm:$0xff] }
 0x402   :  { %4561 = vmatprep.subr.mxu1 %v3980_v9  ;;  %4501 = vmatpush1.msra.mxu0 %v4257_v4  ;;  %v3719_v34 = vrot.slane %v10221_v25, 3  ;;  %v3908_v9 = vsel %vm3869_vm9, %v3903_v16, %v3800_v31  ;;  %v3907_v27 = vsel %vm3869_vm9, %v3902_v14, %v3799_v39  ;;  %v3868_v61 = vsel %vm3863_vm8, %v3862_v17, %v3691_v42  ;;  %v3955_v39 = vld [vmem:[%s11517_s12 + $0xe0] sm:$0xff]  ;;  %v3954_v17 = vld [vmem:[%s11517_s12 + $0xd8] sm:$0xff] }
 0x403   :  { %4562 = vmatpush1.msra.mxu1 %v3979_v54  ;;  %4502 = vmatprep.subr.mxu0 %v4253_v8  ;;  %v3913_v31 = vsel %vm3875_vm10, %v3908_v9, %v3814_v19  ;;  %v3733_v14 = vrot.slane %v10230_v44, 2  ;;  %v3747_v16 = vrot.slane %v10252_v29, 1  ;;  %v3945_v29 = vld [vmem:[%s11517_s12 + $0x90] sm:$0xff]  ;;  %v3944_v9 = vld [vmem:[%s11517_s12 + $0x88] sm:$0xff] }
 0x404   :  { %4563 = vmatprep.subr.mxu1 %v3975_v49  ;;  %v6430_v2 = vpop.permute.xlu0 %6429  ;;  %v10426_v47 = vpop.permute.xlu1 %6434  ;;  %4503 = vmatpush1.msra.mxu0 %v4252_v21  ;;  %v3959_v49 = vld [vmem:[%s11517_s12 + $0x100] sm:$0xff]  ;;  %v3874_v21 = vsel %vm3869_vm9, %v3868_v61, %v3705_v11  ;;  %v3530_v11 = vrot.slane %v10032_v26, 4 }
 0x405   :  { %v6432_v63 = vunpack.i.h.bf16 %v6430_v2  ;;  %v6431_v37 = vunpack.i.l.bf16 %v6430_v2  ;;  %v6437_v35 = vunpack.i.h.bf16 %v10426_v47  ;;  %v6436_v52 = vunpack.i.l.bf16 %v10426_v47  ;;  %4564 = vmatpush1.msra.mxu1 %v3974_v41  ;;  %4504 = vmatprep.subr.mxu0 %v4248_v55  ;;  %v4159_v61 = vld [vmem:[%s11517_s12 + $0x740] sm:$0xff]  ;;  %v4060_v47 = vld [vmem:[%s11517_s12 + $0x428] sm:$0xff] }
 0x406   :  { %4565 = vmatprep.subr.mxu1 %v3970_v36  ;;  %4505 = vmatpush1.msra.mxu0 %v4247_v32  ;;  %v3912_v41 = vsel %vm3875_vm10, %v3907_v27, %v3813_v45  ;;  %v3507_v36 = vrot.slane %v10050_v10, 4  ;;  %v3950_v10 = vld [vmem:[%s11517_s12 + $0xb8] sm:$0xff] }
 0x407   :  { %v3651_v1 = vsel %vm539_vm2, %v10129_v15, %v6432_v63  ;;  %v3628_v7 = vsel %vm539_vm2, %v10124_v18, %v6431_v37  ;;  %v3652_v25 = vsel %vm522_vm1, %v6432_v63, %v6437_v35  ;;  %v3629_v46 = vsel %vm522_vm1, %v6431_v37, %v6436_v52  ;;  %4566 = vmatpush1.msra.mxu1 %v3969_v5  ;;  %v3949_v37 = vld [vmem:[%s11517_s12 + $0xb0] sm:$0xff] }
 0x408   :  { %v3841_v54 = vrot.slane %v3651_v1, 1  ;;  %v3827_v4 = vrot.slane %v3628_v7, 2  ;;  %v3828_v22 = vrot.slane %v3629_v46, 2  ;;  %4567 = vmatprep.subr.mxu1 %v3965_v56  ;;  %v10463_v28 = vpop.permute.xlu0 %3510  ;;  %v6440_v24 = vpop.permute.xlu1 %6439  ;;  %v3842_v8 = vrot.slane %v3652_v25, 1  ;;  %4628 = vmatprep.subr.mxu0 %v4165_v3 }
 0x409   :  { %4568 = vmatpush1.msra.mxu1 %v3964_v40  ;;  %v6441_v2 = vunpack.i.l.bf16 %v6440_v24  ;;  %v3880_v5 = vsel %vm3875_vm10, %v3874_v21, %v3719_v34  ;;  %v3516_v56 = vsel %vm539_vm2, %v3507_v36, %v10463_v28  ;;  %v6442_v32 = vunpack.i.h.bf16 %v6440_v24  ;;  %v4155_v21 = vld [vmem:[%s11517_s12 + $0x720] sm:$0xff] }
 0x40a   :  { %4569 = vmatprep.subr.mxu1 %v3960_v23  ;;  %v3918_v55 = vsel %vm3881_vm11, %v3913_v31, %v3828_v22  ;;  %v3917_v42 = vsel %vm3881_vm11, %v3912_v41, %v3827_v4  ;;  %v3484_v34 = vrot.slane %v10075_v43, 4  ;;  %v3553_v40 = vrot.slane %v10065_v20, 4  ;;  %v3940_v20 = vld [vmem:[%s11517_s12 + $0x68] sm:$0xff]  ;;  %v3939_v4 = vld [vmem:[%s11517_s12 + $0x60] sm:$0xff]  ;;  %v3934_v41 = vld [vmem:[%s11517_s12 + $0x38] sm:$0xff] }
 0x40b   :  { %4570 = vmatpush1.msra.mxu1 %v3959_v49  ;;  %v10483_v45 = vsel %vm2150_vm3, %v3918_v55, %v3842_v8  ;;  %v10486_v19 = vsel %vm2150_vm3, %v3917_v42, %v3841_v54  ;;  %v3886_v26 = vsel %vm3881_vm11, %v3880_v5, %v3733_v14  ;;  %v3515_v27 = vsel %vm505_vm0, %v6406_v48, %v6441_v2  ;;  %v4164_v43 = vld [vmem:[%s11517_s12 + $0x768] sm:$0xff]  ;;  %v3935_v8 = vld [vmem:[%s11517_s12 + $0x40] sm:$0xff]  ;;  %v3930_v14 = vld [vmem:[%s11517_s12 + $0x18] sm:$0xff] }
 0x40c   :  { %4571 = vmatprep.subr.mxu1 %v3955_v39  ;;  %v10493_v63 = vpop.permute.xlu0 %3533  ;;  %v3488_v44 = vpop.permute.xlu1 %3487  ;;  %4390 = vmatprep.mubr.f32.mxu0 %v10483_v45  ;;  %v3576_v1 = vrot.slane %v10098_v58, 4  ;;  %v10526_v7 = vsel %vm2150_vm3, %v3886_v26, %v3747_v16  ;;  %v3760_v25 = vrot.slane %v3516_v56, 7  ;;  %v3761_v48 = vrot.slane %v10463_v28, 7  ;;  %v4160_v22 = vld [vmem:[%s11517_s12 + $0x748] sm:$0xff]  ;;  %v4154_v2 = vld [vmem:[%s11517_s12 + $0x718] sm:$0xff]  ;;  %v4145_v26 = vld [vmem:[%s11517_s12 + $0x6d0] sm:$0xff] }
 0x40d   :  { %4572 = vmatpush1.msra.mxu1 %v3954_v17  ;;  %4391 = vmatmul.mubr.f32.gmra.mxu0 %v10486_v19  ;;  %v3539_v3 = vsel %vm539_vm2, %v3530_v11, %v10493_v63  ;;  %v3493_v46 = vsel %vm539_vm2, %v3484_v34, %v3488_v44  ;;  %v3538_v58 = vsel %vm505_vm0, %v6407_v38, %v6442_v32  ;;  %v3759_v39 = vrot.slane %v3515_v27, 7  ;;  %v4085_v32 = vld [vmem:[%s11517_s12 + $0x4f0] sm:$0xff] }
 0x40e   :  { %4573 = vmatprep.subr.mxu1 %v3950_v10  ;;  %4538 = vmatprep.mubr.f32.mxu0 %v11699_v30  ;;  %v3774_v33 = vrot.slane %v3539_v3, 6  ;;  %v3775_v38 = vrot.slane %v10493_v63, 6  ;;  %v3896_v31 = vsel %vm3851_vm6, %v3488_v44, %v3761_v48  ;;  %v3895_v36 = vsel %vm3851_vm6, %v3493_v46, %v3760_v25  ;;  %v4150_v63 = vld [vmem:[%s11517_s12 + $0x6f8] sm:$0xff]  ;;  %v4149_v11 = vld [vmem:[%s11517_s12 + $0x6f0] sm:$0xff]  ;;  %v4144_v25 = vld [vmem:[%s11517_s12 + $0x6c8] sm:$0xff] }
 0x40f   :  { %4574 = vmatpush1.msra.mxu1 %v3949_v37  ;;  %v3599_v44 = vrot.slane %v10109_v62, 4 }
 0x410   :  { %4575 = vmatprep.subr.mxu1 %v3945_v29  ;;  %v3557_v23 = vpop.permute.xlu0 %3556  ;;  %v6445_v54 = vpop.permute.xlu1 %6444  ;;  %v3773_v29 = vrot.slane %v3538_v58, 6  ;;  %v3900_v34 = vsel %vm3857_vm7, %v3895_v36, %v3774_v33  ;;  %v3901_v62 = vsel %vm3857_vm7, %v3896_v31, %v3775_v38  ;;  %v4140_v58 = vld [vmem:[%s11517_s12 + $0x6a8] sm:$0xff]  ;;  %v4074_v38 = vld [vmem:[%s11517_s12 + $0x498] sm:$0xff]  ;;  %v4135_v31 = vld [vmem:[%s11517_s12 + $0x680] sm:$0xff]  ;;  %v3645_v36 = vrot.slane %v10129_v15, 4 }
 0x411   :  { %v3562_v24 = vsel %vm539_vm2, %v3553_v40, %v3557_v23  ;;  %v6447_v28 = vunpack.i.h.bf16 %v6445_v54  ;;  %v6446_v49 = vunpack.i.l.bf16 %v6445_v54  ;;  %4576 = vmatpush1.msra.mxu1 %v3944_v9  ;;  %5558 = vmatmul.mubr.msk.f32.vlgmr.msra.gmra.mxu0 %vm522_vm1, %v10526_v7  ;;  %v3789_v17 = vrot.slane %v3557_v23, 5  ;;  %v4084_v9 = vld [vmem:[%s11517_s12 + $0x4e8] sm:$0xff]  ;;  %v4069_v15 = vld [vmem:[%s11517_s12 + $0x470] sm:$0xff] }
 0x412   :  { %4577 = vmatprep.subr.mxu1 %v3940_v20  ;;  %4629 = vmatpush1.msra.mxu0 %v4164_v43  ;;  %v3788_v55 = vrot.slane %v3562_v24, 5  ;;  %v3622_v43 = vrot.slane %v10124_v18, 4 }
 0x413   :  { %v3492_v42 = vsel %vm505_vm0, %v6416_v6, %v6446_v49  ;;  %4578 = vmatpush1.msra.mxu1 %v3939_v4  ;;  %4630 = vmatprep.subr.mxu0 %v4160_v22  ;;  %v10569_v10 = vsel %vm505_vm0, %v6417_v59, %v6447_v28  ;;  %v3929_v6 = vld [vmem:[%s11517_s12 + $0x10] sm:$0xff]  ;;  %v3906_v3 = vsel %vm3863_vm8, %v3901_v62, %v3789_v17  ;;  %v4079_v22 = vld [vmem:[%s11517_s12 + $0x4c0] sm:$0xff]  ;;  %v4134_v17 = vld [vmem:[%s11517_s12 + $0x678] sm:$0xff] }
 0x414   :  { %4579 = vmatprep.subr.mxu1 %v3935_v8  ;;  %4631 = vmatpush1.msra.mxu0 %v4159_v61  ;;  %v3580_v5 = vpop.permute.xlu0 %3579  ;;  %v6450_v16 = vpop.permute.xlu1 %6449  ;;  %v3894_v37 = vsel %vm3851_vm6, %v3492_v42, %v3759_v39  ;;  %v3905_v27 = vsel %vm3863_vm8, %v3900_v34, %v3788_v55  ;;  %v3787_v48 = vrot.slane %v10569_v10, 5  ;;  %v4075_v8 = vld [vmem:[%s11517_s12 + $0x4a0] sm:$0xff]  ;;  %v4070_v55 = vld [vmem:[%s11517_s12 + $0x478] sm:$0xff] }
 0x415   :  { %v3585_v13 = vsel %vm539_vm2, %v3576_v1, %v3580_v5  ;;  %v3803_v59 = vrot.slane %v3580_v5, 4  ;;  %v6452_v56 = vunpack.i.h.bf16 %v6450_v16  ;;  %4580 = vmatpush1.msra.mxu1 %v3934_v41  ;;  %4632 = vmatprep.subr.mxu0 %v4155_v21  ;;  %v6451_v40 = vunpack.i.l.bf16 %v6450_v16  ;;  %v4080_v1 = vld [vmem:[%s11517_s12 + $0x4c8] sm:$0xff]  ;;  %v4139_v61 = vld [vmem:[%s11517_s12 + $0x6a0] sm:$0xff]  ;;  %v4130_v5 = vld [vmem:[%s11517_s12 + $0x658] sm:$0xff] }
 0x416   :  { %4581 = vmatprep.subr.mxu1 %v3930_v14  ;;  %4633 = vmatpush1.msra.mxu0 %v4154_v2  ;;  %v3802_v20 = vrot.slane %v3585_v13, 4  ;;  %v3899_v46 = vsel %vm3857_vm7, %v3894_v37, %v3773_v29  ;;  %v4065_v13 = vld [vmem:[%s11517_s12 + $0x450] sm:$0xff] }
 0x417   :  { %4582 = vmatpush1.msra.mxu1 %v3929_v6  ;;  %4634 = vmatprep.subr.mxu0 %v4150_v63  ;;  %v3911_v23 = vsel %vm3869_vm9, %v3906_v3, %v3803_v59  ;;  %v3584_v54 = vsel %vm505_vm0, %v6426_v50, %v6451_v40  ;;  %v10618_v24 = vsel %vm505_vm0, %v6427_v51, %v6452_v56 }
 0x418   :  { %4583 = vmatprep.subr.mxu1 %v4085_v32  ;;  %4635 = vmatpush1.msra.mxu0 %v4149_v11  ;;  %v3603_v18 = vpop.permute.xlu0 %3602  ;;  %v3626_v4 = vpop.permute.xlu1 %3625  ;;  %v3801_v39 = vrot.slane %v3584_v54, 4  ;;  %v3910_v41 = vsel %vm3869_vm9, %v3905_v27, %v3802_v20  ;;  %v3904_v42 = vsel %vm3863_vm8, %v3899_v46, %v3787_v48  ;;  %v3815_v14 = vrot.slane %v10618_v24, 3  ;;  %v4129_v32 = vld [vmem:[%s11517_s12 + $0x650] sm:$0xff]  ;;  %v4064_v11 = vld [vmem:[%s11517_s12 + $0x448] sm:$0xff]  ;;  %v4055_v48 = vld [vmem:[%s11517_s12 + $0x400] sm:$0xff] }
 0x419   :  { %v3608_v28 = vsel %vm539_vm2, %v3599_v44, %v3603_v18  ;;  %v3817_v50 = vrot.slane %v3603_v18, 3  ;;  %v3631_v49 = vsel %vm539_vm2, %v3622_v43, %v3626_v4  ;;  %4584 = vmatpush2.msra.mxu1 %v4084_v9  ;;  %4636 = vmatprep.subr.mxu0 %v4145_v26  ;;  %v3831_v51 = vrot.slane %v3626_v4, 2  ;;  %v4125_v26 = vld [vmem:[%s11517_s12 + $0x630] sm:$0xff]  ;;  %v4059_v43 = vld [vmem:[%s11517_s12 + $0x420] sm:$0xff]  ;;  %v4054_v18 = vld [vmem:[%s11517_s12 + $0x3f8] sm:$0xff] }
 0x41a   :  { %v3816_v57 = vrot.slane %v3608_v28, 3  ;;  %v3830_v33 = vrot.slane %v3631_v49, 2  ;;  %4585 = vmatprep.subr.mxu1 %v4080_v1  ;;  %4637 = vmatpush1.msra.mxu0 %v4144_v25  ;;  %v3909_v34 = vsel %vm3869_vm9, %v3904_v42, %v3801_v39  ;;  %v4120_v1 = vld [vmem:[%s11517_s12 + $0x608] sm:$0xff]  ;;  %v4119_v46 = vld [vmem:[%s11517_s12 + $0x600] sm:$0xff]  ;;  %v4050_v4 = vld [vmem:[%s11517_s12 + $0x3d8] sm:$0xff] }
 0x41b   :  { %v3916_v21 = vsel %vm3875_vm10, %v3911_v23, %v3817_v50  ;;  %4586 = vmatpush2.msra.mxu1 %v4079_v22  ;;  %4638 = vmatprep.subr.mxu0 %v4140_v58  ;;  %v3914_v20 = vsel %vm3875_vm10, %v3909_v34, %v3815_v14  ;;  %v4115_v54 = vld [vmem:[%s11517_s12 + $0x5e0] sm:$0xff]  ;;  %v4114_v22 = vld [vmem:[%s11517_s12 + $0x5d8] sm:$0xff]  ;;  %v4049_v58 = vld [vmem:[%s11517_s12 + $0x3d0] sm:$0xff] }
 0x41c   :  { %4587 = vmatprep.subr.mxu1 %v4075_v8  ;;  %4639 = vmatpush1.msra.mxu0 %v4139_v61  ;;  %v6455_v2 = vpop.permute.xlu0 %6454  ;;  %v3649_v10 = vpop.permute.xlu1 %3648  ;;  %v3915_v16 = vsel %vm3875_vm10, %v3910_v41, %v3816_v57  ;;  %v3921_v59 = vsel %vm3881_vm11, %v3916_v21, %v3831_v51  ;;  %v4110_v24 = vld [vmem:[%s11517_s12 + $0x5b8] sm:$0xff]  ;;  %v4045_v28 = vld [vmem:[%s11517_s12 + $0x3b0] sm:$0xff]  ;;  %v4044_v49 = vld [vmem:[%s11517_s12 + $0x3a8] sm:$0xff] }
 0x41d   :  { %v6457_v6 = vunpack.i.h.bf16 %v6455_v2  ;;  %v6456_v63 = vunpack.i.l.bf16 %v6455_v2  ;;  %v3654_v44 = vsel %vm539_vm2, %v3645_v36, %v3649_v10  ;;  %v3845_v37 = vrot.slane %v3649_v10, 1  ;;  %4588 = vmatpush2.msra.mxu1 %v4074_v38  ;;  %4640 = vmatprep.subr.mxu0 %v4135_v31  ;;  %v4109_v50 = vld [vmem:[%s11517_s12 + $0x5b0] sm:$0xff]  ;;  %v4040_v61 = vld [vmem:[%s11517_s12 + $0x388] sm:$0xff]  ;;  %v4039_v57 = vld [vmem:[%s11517_s12 + $0x380] sm:$0xff] }
 0x41e   :  { %v3844_v56 = vrot.slane %v3654_v44, 1  ;;  %4589 = vmatprep.subr.mxu1 %v4070_v55  ;;  %4641 = vmatpush1.msra.mxu0 %v4134_v17  ;;  %v3920_v29 = vsel %vm3881_vm11, %v3915_v16, %v3830_v33  ;;  %v4105_v8 = vld [vmem:[%s11517_s12 + $0x590] sm:$0xff]  ;;  %v4104_v39 = vld [vmem:[%s11517_s12 + $0x588] sm:$0xff]  ;;  %v4035_v51 = vld [vmem:[%s11517_s12 + $0x360] sm:$0xff] }
 0x41f   :  { %v3630_v62 = vsel %vm505_vm0, %v6436_v52, %v6456_v63  ;;  %v3653_v40 = vsel %vm505_vm0, %v6437_v35, %v6457_v6  ;;  %4590 = vmatpush2.msra.mxu1 %v4069_v15  ;;  %4642 = vmatprep.subr.mxu0 %v4130_v5  ;;  %v10672_v9 = vsel %vm2150_vm3, %v3921_v59, %v3845_v37  ;;  %v4124_v35 = vld [vmem:[%s11517_s12 + $0x628] sm:$0xff]  ;;  %v4099_v38 = vld [vmem:[%s11517_s12 + $0x560] sm:$0xff]  ;;  %v4034_v31 = vld [vmem:[%s11517_s12 + $0x358] sm:$0xff] }
 0x420   :  { %v3829_v27 = vrot.slane %v3630_v62, 2  ;;  %v3843_v3 = vrot.slane %v3653_v40, 1  ;;  %4544 = vmatprep.mubr.f32.mxu0 %v11699_v30  ;;  %4591 = vmatprep.subr.mxu1 %v4065_v13  ;;  %v10679_v52 = vsel %vm2150_vm3, %v3920_v29, %v3844_v56  ;;  %v4100_v33 = vld [vmem:[%s11517_s12 + $0x568] sm:$0xff]  ;;  %v4095_v41 = vld [vmem:[%s11517_s12 + $0x540] sm:$0xff]  ;;  %v4030_v21 = vld [vmem:[%s11517_s12 + $0x338] sm:$0xff] }
 0x421   :  { %4643 = vmatpush1.msra.mxu0 %v4129_v32  ;;  %4592 = vmatpush2.msra.mxu1 %v4064_v11  ;;  %v4094_v36 = vld [vmem:[%s11517_s12 + $0x538] sm:$0xff]  ;;  %v4029_v55 = vld [vmem:[%s11517_s12 + $0x330] sm:$0xff]  ;;  %v4024_v2 = vld [vmem:[%s11517_s12 + $0x308] sm:$0xff] }
 0x422   :  { %5559 = vmatmul.mubr.msk.f32.gmra.mxu0 %vm522_vm1, %v10672_v9  ;;  %4644 = vmatprep.subr.mxu0 %v4125_v26  ;;  %v3919_v25 = vsel %vm3881_vm11, %v3914_v20, %v3829_v27  ;;  %v4090_v17 = vld [vmem:[%s11517_s12 + $0x518] sm:$0xff]  ;;  %v4025_v42 = vld [vmem:[%s11517_s12 + $0x310] sm:$0xff]  ;;  %v4020_v15 = vld [vmem:[%s11517_s12 + $0x2e8] sm:$0xff] }
 0x423   :  { %4467 = vmatprep.mubr.f32.mxu1 %v10679_v52  ;;  %4593 = vmatprep.subr.mxu1 %v4060_v47  ;;  %v10706_v23 = vsel %vm2150_vm3, %v3919_v25, %v3843_v3  ;;  %v4089_v14 = vld [vmem:[%s11517_s12 + $0x510] sm:$0xff]  ;;  %v4244_v5 = vld [vmem:[%s11517_s12 + $0x9e8] sm:$0xff]  ;;  %v4019_v16 = vld [vmem:[%s11517_s12 + $0x2e0] sm:$0xff] }
 0x424   :  { %4645 = vmatpush1.msra.mxu0 %v4124_v35  ;;  %4692 = vmatprep.mubr.f32.mxu0 %v10280_v53  ;;  %v4245_v10 = vld [vmem:[%s11517_s12 + $0x9f0] sm:$0xff]  ;;  %v4240_v6 = vld [vmem:[%s11517_s12 + $0x9c8] sm:$0xff]  ;;  %v4015_v63 = vld [vmem:[%s11517_s12 + $0x2c0] sm:$0xff] }
 0x425   :  { %4594 = vmatpush2.msra.mxu1 %v4059_v43  ;;  %4646 = vmatprep.subr.mxu0 %v4120_v1  ;;  %v4239_v44 = vld [vmem:[%s11517_s12 + $0x9c0] sm:$0xff]  ;;  %v4014_v37 = vld [vmem:[%s11517_s12 + $0x2b8] sm:$0xff]  ;;  %v4009_v32 = vld [vmem:[%s11517_s12 + $0x290] sm:$0xff] }
 0x426   :  { %4595 = vmatprep.subr.mxu1 %v4055_v48  ;;  %4647 = vmatpush1.msra.mxu0 %v4119_v46  ;;  %v4235_v13 = vld [vmem:[%s11517_s12 + $0x9a0] sm:$0xff]  ;;  %v4010_v59 = vld [vmem:[%s11517_s12 + $0x298] sm:$0xff]  ;;  %v4229_v29 = vld [vmem:[%s11517_s12 + $0x970] sm:$0xff] }
 0x427   :  { %4468 = vmatmul.mubr.f32.gmra.mxu1 %v10706_v23  ;;  %4648 = vmatprep.subr.mxu0 %v4115_v54  ;;  %v4234_v56 = vld [vmem:[%s11517_s12 + $0x998] sm:$0xff]  ;;  %v4285_v34 = vld [vmem:[%s11517_s12 + $0xb30] sm:$0xff]  ;;  %v4284_v40 = vld [vmem:[%s11517_s12 + $0xb28] sm:$0xff] }
 0x428   :  { %4596 = vmatpush2.msra.mxu1 %v4054_v18  ;;  %4615 = vmatprep.mubr.f32.mxu1 %v10267_v60  ;;  %v4230_v11 = vld [vmem:[%s11517_s12 + $0x978] sm:$0xff]  ;;  %v4225_v62 = vld [vmem:[%s11517_s12 + $0x950] sm:$0xff]  ;;  %v4224_v26 = vld [vmem:[%s11517_s12 + $0x948] sm:$0xff] }
 0x429   :  { %4597 = vmatprep.subr.mxu1 %v4050_v4  ;;  %4649 = vmatpush1.msra.mxu0 %v4114_v22  ;;  %v4280_v27 = vld [vmem:[%s11517_s12 + $0xb08] sm:$0xff]  ;;  %v4279_v47 = vld [vmem:[%s11517_s12 + $0xb00] sm:$0xff]  ;;  %v4274_v1 = vld [vmem:[%s11517_s12 + $0xad8] sm:$0xff] }
 0x42a   :  { %4598 = vmatpush2.msra.mxu1 %v4049_v58  ;;  %4650 = vmatprep.subr.mxu0 %v4110_v24  ;;  %v4220_v3 = vld [vmem:[%s11517_s12 + $0x928] sm:$0xff]  ;;  %v4219_v35 = vld [vmem:[%s11517_s12 + $0x920] sm:$0xff]  ;;  %v4214_v25 = vld [vmem:[%s11517_s12 + $0x8f8] sm:$0xff] }
 0x42b   :  { %4599 = vmatprep.subr.mxu1 %v4045_v28  ;;  %4651 = vmatpush1.msra.mxu0 %v4109_v50  ;;  %v4275_v20 = vld [vmem:[%s11517_s12 + $0xae0] sm:$0xff]  ;;  %v4270_v48 = vld [vmem:[%s11517_s12 + $0xab8] sm:$0xff]  ;;  %v4269_v54 = vld [vmem:[%s11517_s12 + $0xab0] sm:$0xff] }
 0x42c   :  { %4600 = vmatpush2.msra.mxu1 %v4044_v49  ;;  %4652 = vmatprep.subr.mxu0 %v4105_v8  ;;  %v4215_v43 = vld [vmem:[%s11517_s12 + $0x900] sm:$0xff]  ;;  %v4210_v46 = vld [vmem:[%s11517_s12 + $0x8d8] sm:$0xff]  ;;  %v4209_v18 = vld [vmem:[%s11517_s12 + $0x8d0] sm:$0xff] }
 0x42d   :  { %4601 = vmatprep.subr.mxu1 %v4040_v61  ;;  %4653 = vmatpush1.msra.mxu0 %v4104_v39  ;;  %v4265_v4 = vld [vmem:[%s11517_s12 + $0xa90] sm:$0xff]  ;;  %v4264_v58 = vld [vmem:[%s11517_s12 + $0xa88] sm:$0xff]  ;;  %v4259_v49 = vld [vmem:[%s11517_s12 + $0xa60] sm:$0xff] }
 0x42e   :  { %4602 = vmatpush2.msra.mxu1 %v4039_v57  ;;  %4654 = vmatprep.subr.mxu0 %v4100_v33  ;;  %v4205_v22 = vld [vmem:[%s11517_s12 + $0x8b0] sm:$0xff]  ;;  %v4204_v24 = vld [vmem:[%s11517_s12 + $0x8a8] sm:$0xff]  ;;  %v4199_v8 = vld [vmem:[%s11517_s12 + $0x880] sm:$0xff] }
 0x42f   :  { %4603 = vmatprep.subr.mxu1 %v4035_v51  ;;  %4655 = vmatpush1.msra.mxu0 %v4099_v38  ;;  %v4260_v28 = vld [vmem:[%s11517_s12 + $0xa68] sm:$0xff]  ;;  %v4255_v61 = vld [vmem:[%s11517_s12 + $0xa40] sm:$0xff]  ;;  %v4254_v57 = vld [vmem:[%s11517_s12 + $0xa38] sm:$0xff] }
 0x430   :  { %4604 = vmatpush2.msra.mxu1 %v4034_v31  ;;  %4656 = vmatprep.subr.mxu0 %v4095_v41  ;;  %v4200_v50 = vld [vmem:[%s11517_s12 + $0x888] sm:$0xff]  ;;  %v4195_v39 = vld [vmem:[%s11517_s12 + $0x860] sm:$0xff]  ;;  %v4194_v33 = vld [vmem:[%s11517_s12 + $0x858] sm:$0xff] }
 0x431   :  { %4605 = vmatprep.subr.mxu1 %v4030_v21  ;;  %4657 = vmatpush1.msra.mxu0 %v4094_v36  ;;  %v4250_v51 = vld [vmem:[%s11517_s12 + $0xa18] sm:$0xff]  ;;  %v4249_v31 = vld [vmem:[%s11517_s12 + $0xa10] sm:$0xff] }
 0x432   :  { %4606 = vmatpush2.msra.mxu1 %v4029_v55  ;;  %4658 = vmatprep.subr.mxu0 %v4090_v17  ;;  %v4190_v38 = vld [vmem:[%s11517_s12 + $0x838] sm:$0xff]  ;;  %v4189_v41 = vld [vmem:[%s11517_s12 + $0x830] sm:$0xff]  ;;  %v4184_v17 = vld [vmem:[%s11517_s12 + $0x808] sm:$0xff] }
 0x433   :  { %4607 = vmatprep.subr.mxu1 %v4025_v42  ;;  %4659 = vmatpush1.msra.mxu0 %v4089_v14  ;;  %v4246_v21 = vld [vmem:[%s11517_s12 + $0x9f8] sm:$0xff]  ;;  %v4185_v36 = vld [vmem:[%s11517_s12 + $0x810] sm:$0xff]  ;;  %v4180_v14 = vld [vmem:[%s11517_s12 + $0x7e8] sm:$0xff] }
 0x434   :  { %4608 = vmatpush2.msra.mxu1 %v4024_v2  ;;  %4660 = vmatprep.subr.mxu0 %v4245_v10  ;;  %v4166_v55 = vld [vmem:[%s11517_s12 + $0x778] sm:$0xff]  ;;  %v4241_v42 = vld [vmem:[%s11517_s12 + $0x9d0] sm:$0xff]  ;;  %v4179_v10 = vld [vmem:[%s11517_s12 + $0x7e0] sm:$0xff] }
 0x435   :  { %4609 = vmatprep.subr.mxu1 %v4020_v15  ;;  %4661 = vmatpush2.msra.mxu0 %v4244_v5  ;;  %v4161_v2 = vld [vmem:[%s11517_s12 + $0x750] sm:$0xff]  ;;  %v4236_v15 = vld [vmem:[%s11517_s12 + $0x9a8] sm:$0xff]  ;;  %v4175_v5 = vld [vmem:[%s11517_s12 + $0x7c0] sm:$0xff] }
 0x436   :  { %4610 = vmatpush2.msra.mxu1 %v4019_v16  ;;  %4662 = vmatprep.subr.mxu0 %v4240_v6  ;;  %v4156_v16 = vld [vmem:[%s11517_s12 + $0x728] sm:$0xff]  ;;  %v4174_v6 = vld [vmem:[%s11517_s12 + $0x7b8] sm:$0xff] }
 0x437   :  { %4611 = vmatprep.subr.mxu1 %v4015_v63  ;;  %4663 = vmatpush2.msra.mxu0 %v4239_v44  ;;  %v4231_v63 = vld [vmem:[%s11517_s12 + $0x980] sm:$0xff] }
 0x438   :  { %4612 = vmatpush2.msra.mxu1 %v4014_v37  ;;  %4664 = vmatprep.subr.mxu0 %v4235_v13  ;;  %v4151_v44 = vld [vmem:[%s11517_s12 + $0x700] sm:$0xff]  ;;  %v4169_v37 = vld [vmem:[%s11517_s12 + $0x790] sm:$0xff]  ;;  %v4226_v13 = vld [vmem:[%s11517_s12 + $0x958] sm:$0xff] }
 0x439   :  { %4613 = vmatprep.subr.mxu1 %v4010_v59  ;;  %4665 = vmatpush2.msra.mxu0 %v4234_v56  ;;  %v4086_v59 = vld [vmem:[%s11517_s12 + $0x4f8] sm:$0xff] }
 0x43a   :  { %4614 = vmatpush2.msra.mxu1 %v4009_v32  ;;  %4666 = vmatprep.subr.mxu0 %v4230_v11  ;;  %v4006_v56 = vld [vmem:[%s11517_s12 + $0x278] sm:$0xff]  ;;  %v4221_v32 = vld [vmem:[%s11517_s12 + $0x930] sm:$0xff] }
 0x43b   :  { %4616 = vmatmul.mubr.f32.vlgmr.msra.gmra.mxu1 %v10277_v0  ;;  %4667 = vmatpush2.msra.mxu0 %v4229_v29  ;;  %v4081_v11 = vld [vmem:[%s11517_s12 + $0x4d0] sm:$0xff] }
 0x43c   :  { %4721 = vmatprep.subr.mxu1 %v4285_v34  ;;  %4621 = vmatprep.mubr.f32.mxu1 %v10483_v45  ;;  %v4141_v29 = vld [vmem:[%s11517_s12 + $0x6b0] sm:$0xff] }
 0x43d   :  { %4668 = vmatprep.subr.mxu0 %v4225_v62  ;;  %4722 = vmatpush1.msra.mxu1 %v4284_v40  ;;  %v4001_v34 = vld [vmem:[%s11517_s12 + $0x250] sm:$0xff]  ;;  %v4216_v62 = vld [vmem:[%s11517_s12 + $0x908] sm:$0xff] }
 0x43e   :  { %4669 = vmatpush2.msra.mxu0 %v4224_v26  ;;  %4723 = vmatprep.subr.mxu1 %v4280_v27  ;;  %v4076_v40 = vld [vmem:[%s11517_s12 + $0x4a8] sm:$0xff] }
 0x43f   :  { %4670 = vmatprep.subr.mxu0 %v4220_v3  ;;  %4724 = vmatpush1.msra.mxu1 %v4279_v47  ;;  %v4136_v26 = vld [vmem:[%s11517_s12 + $0x688] sm:$0xff]  ;;  %v4211_v3 = vld [vmem:[%s11517_s12 + $0x8e0] sm:$0xff] }
 0x440   :  { %4622 = vmatmul.mubr.f32.gmra.mxu1 %v10486_v19  ;;  %4671 = vmatpush2.msra.mxu0 %v4219_v35  ;;  %v3996_v27 = vld [vmem:[%s11517_s12 + $0x228] sm:$0xff]  ;;  %v4071_v47 = vld [vmem:[%s11517_s12 + $0x480] sm:$0xff] }
 0x441   :  { %4725 = vmatprep.subr.mxu1 %v4275_v20  ;;  %4672 = vmatprep.subr.mxu0 %v4215_v43  ;;  %v4131_v35 = vld [vmem:[%s11517_s12 + $0x660] sm:$0xff]  ;;  %v4206_v43 = vld [vmem:[%s11517_s12 + $0x8b8] sm:$0xff] }
 0x442   :  { %4726 = vmatpush1.msra.mxu1 %v4274_v1  ;;  %4673 = vmatpush2.msra.mxu0 %v4214_v25  ;;  %v3991_v20 = vld [vmem:[%s11517_s12 + $0x200] sm:$0xff]  ;;  %v4066_v1 = vld [vmem:[%s11517_s12 + $0x458] sm:$0xff] }
 0x443   :  { %4727 = vmatprep.subr.mxu1 %v4270_v48  ;;  %4674 = vmatprep.subr.mxu0 %v4210_v46  ;;  %v4126_v25 = vld [vmem:[%s11517_s12 + $0x638] sm:$0xff]  ;;  %v4201_v46 = vld [vmem:[%s11517_s12 + $0x890] sm:$0xff] }
 0x444   :  { %4728 = vmatpush1.msra.mxu1 %v4269_v54  ;;  %4675 = vmatpush2.msra.mxu0 %v4209_v18  ;;  %v3986_v48 = vld [vmem:[%s11517_s12 + $0x1d8] sm:$0xff]  ;;  %v4121_v54 = vld [vmem:[%s11517_s12 + $0x610] sm:$0xff] }
 0x445   :  { %4729 = vmatprep.subr.mxu1 %v4265_v4  ;;  %4676 = vmatprep.subr.mxu0 %v4205_v22  ;;  %v3981_v18 = vld [vmem:[%s11517_s12 + $0x1b0] sm:$0xff]  ;;  %v4196_v4 = vld [vmem:[%s11517_s12 + $0x868] sm:$0xff] }
 0x446   :  { %4730 = vmatpush1.msra.mxu1 %v4264_v58  ;;  %4677 = vmatpush2.msra.mxu0 %v4204_v24  ;;  %v4056_v22 = vld [vmem:[%s11517_s12 + $0x408] sm:$0xff] }
 0x447   :  { %4731 = vmatprep.subr.mxu1 %v4260_v28  ;;  %4678 = vmatprep.subr.mxu0 %v4200_v50  ;;  %v4116_v58 = vld [vmem:[%s11517_s12 + $0x5e8] sm:$0xff]  ;;  %v4191_v28 = vld [vmem:[%s11517_s12 + $0x840] sm:$0xff] }
 0x448   :  { %4732 = vmatpush1.msra.mxu1 %v4259_v49  ;;  %4679 = vmatpush2.msra.mxu0 %v4199_v8  ;;  %v3976_v24 = vld [vmem:[%s11517_s12 + $0x188] sm:$0xff]  ;;  %v4051_v50 = vld [vmem:[%s11517_s12 + $0x3e0] sm:$0xff] }
 0x449   :  { %4733 = vmatprep.subr.mxu1 %v4255_v61  ;;  %4680 = vmatprep.subr.mxu0 %v4195_v39  ;;  %v4111_v49 = vld [vmem:[%s11517_s12 + $0x5c0] sm:$0xff]  ;;  %v4186_v61 = vld [vmem:[%s11517_s12 + $0x818] sm:$0xff] }
 0x44a   :  { %4734 = vmatpush1.msra.mxu1 %v4254_v57  ;;  %4681 = vmatpush2.msra.mxu0 %v4194_v33  ;;  %v3971_v8 = vld [vmem:[%s11517_s12 + $0x160] sm:$0xff]  ;;  %v4046_v39 = vld [vmem:[%s11517_s12 + $0x3b8] sm:$0xff] }
 0x44b   :  { %4735 = vmatprep.subr.mxu1 %v4250_v51  ;;  %4682 = vmatprep.subr.mxu0 %v4190_v38  ;;  %v4106_v57 = vld [vmem:[%s11517_s12 + $0x598] sm:$0xff]  ;;  %v4181_v51 = vld [vmem:[%s11517_s12 + $0x7f0] sm:$0xff] }
 0x44c   :  { %4736 = vmatpush1.msra.mxu1 %v4249_v31  ;;  %4769 = vmatprep.mubr.f32.mxu1 %v11699_v30  ;;  %v3966_v33 = vld [vmem:[%s11517_s12 + $0x138] sm:$0xff]  ;;  %v4041_v38 = vld [vmem:[%s11517_s12 + $0x390] sm:$0xff] }
 0x44d   :  { %4683 = vmatpush2.msra.mxu0 %v4189_v41  ;;  %5560 = vmatmul.mubr.msk.f32.vlgmr.msra.gmra.mxu1 %vm522_vm1, %v10526_v7  ;;  %v4101_v31 = vld [vmem:[%s11517_s12 + $0x570] sm:$0xff] }
 0x44e   :  { %5604 = vmatprep.subr.mxu1 %v4246_v21  ;;  %4684 = vmatprep.subr.mxu0 %v4185_v36  ;;  %v3961_v41 = vld [vmem:[%s11517_s12 + $0x110] sm:$0xff]  ;;  %v4176_v21 = vld [vmem:[%s11517_s12 + $0x7c8] sm:$0xff] }
 0x44f   :  { %5605 = vmatpush3.msra.mxu1 %v4166_v55  ;;  %4685 = vmatpush2.msra.mxu0 %v4184_v17  ;;  %v4036_v36 = vld [vmem:[%s11517_s12 + $0x368] sm:$0xff] }
 0x450   :  { %5606 = vmatprep.subr.mxu1 %v4241_v42  ;;  %4686 = vmatprep.subr.mxu0 %v4180_v14  ;;  %v4096_v55 = vld [vmem:[%s11517_s12 + $0x548] sm:$0xff]  ;;  %v4171_v42 = vld [vmem:[%s11517_s12 + $0x7a0] sm:$0xff] }
 0x451   :  { %4775 = vmatprep.mubr.f32.mxu1 %v11699_v30  ;;  %5607 = vmatpush3.msra.mxu1 %v4161_v2  ;;  %v4170_v30 = vld [vmem:[%s11517_s12 + $0x798] sm:$0xff]  ;;  %v3956_v17 = vld [vmem:[%s11517_s12 + $0xe8] sm:$0xff]  ;;  %v4031_v14 = vld [vmem:[%s11517_s12 + $0x340] sm:$0xff] }
 0x452   :  { %4687 = vmatpush2.msra.mxu0 %v4179_v10  ;;  %5561 = vmatmul.mubr.msk.f32.gmra.mxu1 %vm522_vm1, %v10672_v9  ;;  %v4091_v2 = vld [vmem:[%s11517_s12 + $0x520] sm:$0xff] }
 0x453   :  { %5608 = vmatprep.subr.mxu1 %v4236_v15  ;;  %4688 = vmatprep.subr.mxu0 %v4175_v5  ;;  %v3951_v10 = vld [vmem:[%s11517_s12 + $0xc0] sm:$0xff]  ;;  %v4026_v15 = vld [vmem:[%s11517_s12 + $0x318] sm:$0xff] }
 0x454   :  { %5609 = vmatpush3.msra.mxu1 %v4156_v16  ;;  %4921 = vmatprep.mubr.f32.mxu1 %v10280_v53  ;;  %v4146_v53 = vld [vmem:[%s11517_s12 + $0x6d8] sm:$0xff] }
 0x455   :  { %4689 = vmatpush2.msra.mxu0 %v4174_v6  ;;  %5610 = vmatprep.subr.mxu1 %v4231_v63  ;;  %v3946_v5 = vld [vmem:[%s11517_s12 + $0x98] sm:$0xff]  ;;  %v4021_v6 = vld [vmem:[%s11517_s12 + $0x2f0] sm:$0xff] }
 0x456   :  { %4690 = vmatprep.subr.mxu0 %v4170_v30  ;;  %5611 = vmatpush3.msra.mxu1 %v4151_v44  ;;  %v5048_v16 = vld [vmem:[%s11519_s14 + $0xf8] sm:$0xff]  ;;  %v3941_v30 = vld [vmem:[%s11517_s12 + $0x70] sm:$0xff] }
 0x457   :  { %4691 = vmatpush2.msra.mxu0 %v4169_v37  ;;  %5612 = vmatprep.subr.mxu1 %v4226_v13  ;;  %v5032_v63 = vld [vmem:[%s11519_s14 + $0x78] sm:$0xff]  ;;  %v5047_v44 = vld [vmem:[%s11519_s14 + $0xf0] sm:$0xff]  ;;  %v3936_v37 = vld [vmem:[%s11517_s12 + $0x48] sm:$0xff] }
 0x458   :  { %4693 = vmatmul.mubr.f32.vlgmr.msra.gmra.mxu0 %v10293_v12  ;;  %5566 = vmatprep.subr.mxu0 %v4086_v59  ;;  %v4011_v13 = vld [vmem:[%s11517_s12 + $0x2a0] sm:$0xff]  ;;  %v5046_v59 = vld [vmem:[%s11519_s14 + $0xe8] sm:$0xff] }
 0x459   :  { %5613 = vmatpush3.msra.mxu1 %v4146_v53  ;;  %4698 = vmatprep.mubr.f32.mxu0 %v10679_v52  ;;  %v3931_v53 = vld [vmem:[%s11517_s12 + $0x20] sm:$0xff] }
 0x45a   :  { %5567 = vmatpush3.msra.mxu0 %v4006_v56  ;;  %5614 = vmatprep.subr.mxu1 %v4221_v32  ;;  %v5030_v56 = vld [vmem:[%s11519_s14 + $0x68] sm:$0xff]  ;;  %v4281_v32 = vld [vmem:[%s11517_s12 + $0xb10] sm:$0xff] }
 0x45b   :  { %5568 = vmatprep.subr.mxu0 %v4081_v11  ;;  %5615 = vmatpush3.msra.mxu1 %v4141_v29  ;;  %v5045_v11 = vld [vmem:[%s11519_s14 + $0xe0] sm:$0xff] }
 0x45c   :  { %5569 = vmatpush3.msra.mxu0 %v4001_v34  ;;  %5616 = vmatprep.subr.mxu1 %v4216_v62  ;;  %v5029_v29 = vld [vmem:[%s11519_s14 + $0x60] sm:$0xff]  ;;  %v4276_v34 = vld [vmem:[%s11517_s12 + $0xae8] sm:$0xff] }
 0x45d   :  { %4699 = vmatmul.mubr.f32.gmra.mxu0 %v10706_v23  ;;  %5570 = vmatprep.subr.mxu0 %v4076_v40  ;;  %v4271_v62 = vld [vmem:[%s11517_s12 + $0xac0] sm:$0xff]  ;;  %v4266_v40 = vld [vmem:[%s11517_s12 + $0xa98] sm:$0xff] }
 0x45e   :  { %5617 = vmatpush3.msra.mxu1 %v4136_v26  ;;  %5571 = vmatpush3.msra.mxu0 %v3996_v27  ;;  %v5043_v26 = vld [vmem:[%s11519_s14 + $0xd0] sm:$0xff] }
 0x45f   :  { %4846 = vmatprep.mubr.f32.mxu0 %v10267_v60  ;;  %5618 = vmatprep.subr.mxu1 %v4211_v3  ;;  %v4061_v60 = vld [vmem:[%s11517_s12 + $0x430] sm:$0xff]  ;;  %v5026_v3 = vld [vmem:[%s11519_s14 + $0x48] sm:$0xff] }
 0x460   :  { %5572 = vmatprep.subr.mxu0 %v4071_v47  ;;  %5619 = vmatpush3.msra.mxu1 %v4131_v35  ;;  %v4261_v27 = vld [vmem:[%s11517_s12 + $0xa70] sm:$0xff]  ;;  %v4256_v47 = vld [vmem:[%s11517_s12 + $0xa48] sm:$0xff]  ;;  %v5041_v35 = vld [vmem:[%s11519_s14 + $0xc0] sm:$0xff] }
 0x461   :  { %5573 = vmatpush3.msra.mxu0 %v3991_v20  ;;  %5620 = vmatprep.subr.mxu1 %v4206_v43  ;;  %v5025_v20 = vld [vmem:[%s11519_s14 + $0x40] sm:$0xff] }
 0x462   :  { %5574 = vmatprep.subr.mxu0 %v4066_v1  ;;  %5621 = vmatpush3.msra.mxu1 %v4126_v25  ;;  %v4251_v43 = vld [vmem:[%s11517_s12 + $0xa20] sm:$0xff]  ;;  %v5040_v1 = vld [vmem:[%s11519_s14 + $0xb8] sm:$0xff] }
 0x463   :  { %5575 = vmatpush3.msra.mxu0 %v3986_v48  ;;  %5622 = vmatprep.subr.mxu1 %v4201_v46  ;;  %v5024_v25 = vld [vmem:[%s11519_s14 + $0x38] sm:$0xff]  ;;  %v5039_v48 = vld [vmem:[%s11519_s14 + $0xb0] sm:$0xff] }
 0x464   :  { %5576 = vmatprep.subr.mxu0 %v4061_v60  ;;  %5623 = vmatpush3.msra.mxu1 %v4121_v54  ;;  %v5023_v46 = vld [vmem:[%s11519_s14 + $0x30] sm:$0xff]  ;;  %v5080_v60 = vld [vmem:[%s11519_s14 + $0x1f8] sm:$0xff]  ;;  %v5038_v54 = vld [vmem:[%s11519_s14 + $0xa8] sm:$0xff] }
 0x465   :  { %5577 = vmatpush3.msra.mxu0 %v3981_v18  ;;  %5624 = vmatprep.subr.mxu1 %v4196_v4  ;;  %v5064_v18 = vld [vmem:[%s11519_s14 + $0x178] sm:$0xff]  ;;  %v5022_v4 = vld [vmem:[%s11519_s14 + $0x28] sm:$0xff] }
 0x466   :  { %5578 = vmatprep.subr.mxu0 %v4056_v22  ;;  %5625 = vmatpush3.msra.mxu1 %v4116_v58  ;;  %v5079_v22 = vld [vmem:[%s11519_s14 + $0x1f0] sm:$0xff]  ;;  %v5037_v58 = vld [vmem:[%s11519_s14 + $0xa0] sm:$0xff] }
 0x467   :  { %5579 = vmatpush3.msra.mxu0 %v3976_v24  ;;  %5626 = vmatprep.subr.mxu1 %v4191_v28  ;;  %v5063_v24 = vld [vmem:[%s11519_s14 + $0x170] sm:$0xff]  ;;  %v5078_v28 = vld [vmem:[%s11519_s14 + $0x1e8] sm:$0xff] }
 0x468   :  { %5580 = vmatprep.subr.mxu0 %v4051_v50  ;;  %5627 = vmatpush3.msra.mxu1 %v4111_v49  ;;  %v5036_v50 = vld [vmem:[%s11519_s14 + $0x98] sm:$0xff]  ;;  %v5062_v49 = vld [vmem:[%s11519_s14 + $0x168] sm:$0xff] }
 0x469   :  { %5581 = vmatpush3.msra.mxu0 %v3971_v8  ;;  %5628 = vmatprep.subr.mxu1 %v4186_v61  ;;  %v5020_v8 = vld [vmem:[%s11519_s14 + $0x18] sm:$0xff]  ;;  %v5077_v61 = vld [vmem:[%s11519_s14 + $0x1e0] sm:$0xff] }
 0x46a   :  { %5582 = vmatprep.subr.mxu0 %v4046_v39  ;;  %5629 = vmatpush3.msra.mxu1 %v4106_v57  ;;  %v5035_v39 = vld [vmem:[%s11519_s14 + $0x90] sm:$0xff]  ;;  %v5061_v57 = vld [vmem:[%s11519_s14 + $0x160] sm:$0xff] }
 0x46b   :  { %5583 = vmatpush3.msra.mxu0 %v3966_v33  ;;  %5630 = vmatprep.subr.mxu1 %v4181_v51  ;;  %v5019_v33 = vld [vmem:[%s11519_s14 + $0x10] sm:$0xff]  ;;  %v5076_v51 = vld [vmem:[%s11519_s14 + $0x1d8] sm:$0xff] }
 0x46c   :  { %5584 = vmatprep.subr.mxu0 %v4041_v38  ;;  %5631 = vmatpush3.msra.mxu1 %v4101_v31  ;;  %v5034_v38 = vld [vmem:[%s11519_s14 + $0x88] sm:$0xff]  ;;  %v5060_v31 = vld [vmem:[%s11519_s14 + $0x158] sm:$0xff] }
 0x46d   :  { %5585 = vmatpush3.msra.mxu0 %v3961_v41  ;;  %5632 = vmatprep.subr.mxu1 %v4176_v21  ;;  %v5018_v41 = vld [vmem:[%s11519_s14 + $0x8] sm:$0xff]  ;;  %v5075_v21 = vld [vmem:[%s11519_s14 + $0x1d0] sm:$0xff] }
 0x46e   :  { %5586 = vmatprep.subr.mxu0 %v4036_v36  ;;  %5633 = vmatpush3.msra.mxu1 %v4096_v55  ;;  %v5033_v36 = vld [vmem:[%s11519_s14 + $0x80] sm:$0xff]  ;;  %v5059_v55 = vld [vmem:[%s11519_s14 + $0x150] sm:$0xff] }
 0x46f   :  { %5587 = vmatpush3.msra.mxu0 %v3956_v17  ;;  %5634 = vmatprep.subr.mxu1 %v4171_v42  ;;  %v5017_v17 = vld [vmem:[%s11519_s14] sm:$0xff]  ;;  %v5074_v42 = vld [vmem:[%s11519_s14 + $0x1c8] sm:$0xff] }
 0x470   :  { %5588 = vmatprep.subr.mxu0 %v4031_v14  ;;  %5635 = vmatpush3.msra.mxu1 %v4091_v2  ;;  %v5058_v14 = vld [vmem:[%s11519_s14 + $0x148] sm:$0xff]  ;;  %v5073_v2 = vld [vmem:[%s11519_s14 + $0x1c0] sm:$0xff] }
 0x471   :  { %5589 = vmatpush3.msra.mxu0 %v3951_v10  ;;  %4922 = vmatmul.mubr.f32.vlgmr.msra.gmra.mxu1 %v10293_v12  ;;  %v4016_v12 = vld [vmem:[%s11517_s12 + $0x2c8] sm:$0xff]  ;;  %v5057_v10 = vld [vmem:[%s11519_s14 + $0x140] sm:$0xff] }
 0x472   :  { %5590 = vmatprep.subr.mxu0 %v4026_v15  ;;  %4926 = vmatprep.mubr.f32.mxu1 %v10679_v52  ;;  %v5031_v52 = vld [vmem:[%s11519_s14 + $0x70] sm:$0xff]  ;;  %v5072_v15 = vld [vmem:[%s11519_s14 + $0x1b8] sm:$0xff] }
 0x473   :  { %5591 = vmatpush3.msra.mxu0 %v3946_v5  ;;  %5652 = vmatprep.subr.mxu1 %v5048_v16  ;;  %v5056_v5 = vld [vmem:[%s11519_s14 + $0x138] sm:$0xff]  ;;  %v5071_v16 = vld [vmem:[%s11519_s14 + $0x1b0] sm:$0xff] }
 0x474   :  { %5592 = vmatprep.subr.mxu0 %v4021_v6  ;;  %5653 = vmatpush3.msra.mxu1 %v5032_v63  ;;  %v5055_v6 = vld [vmem:[%s11519_s14 + $0x130] sm:$0xff]  ;;  %v5070_v63 = vld [vmem:[%s11519_s14 + $0x1a8] sm:$0xff] }
 0x475   :  { %5593 = vmatpush3.msra.mxu0 %v3941_v30  ;;  %4927 = vmatmul.mubr.f32.gmra.mxu1 %v10706_v23  ;;  %v4286_v23 = vld [vmem:[%s11517_s12 + $0xb38] sm:$0xff]  ;;  %v5054_v30 = vld [vmem:[%s11519_s14 + $0x128] sm:$0xff] }
 0x476   :  { %5594 = vmatprep.subr.mxu0 %v4016_v12  ;;  %5654 = vmatprep.subr.mxu1 %v5047_v44  ;;  %v5069_v12 = vld [vmem:[%s11519_s14 + $0x1a0] sm:$0xff] }
 0x477   :  { %5595 = vmatpush3.msra.mxu0 %v3936_v37  ;;  %5655 = vmatpush3.msra.mxu1 %v5031_v52  ;;  %v5053_v44 = vld [vmem:[%s11519_s14 + $0x120] sm:$0xff]  ;;  %v5068_v37 = vld [vmem:[%s11519_s14 + $0x198] sm:$0xff] }
 0x478   :  { %5596 = vmatprep.subr.mxu0 %v4011_v13  ;;  %5656 = vmatprep.subr.mxu1 %v5046_v59  ;;  %v5052_v52 = vld [vmem:[%s11519_s14 + $0x118] sm:$0xff]  ;;  %v5067_v13 = vld [vmem:[%s11519_s14 + $0x190] sm:$0xff] }
 0x479   :  { %5597 = vmatpush3.msra.mxu0 %v3931_v53  ;;  %5657 = vmatpush3.msra.mxu1 %v5030_v56  ;;  %v5051_v59 = vld [vmem:[%s11519_s14 + $0x110] sm:$0xff]  ;;  %v5066_v53 = vld [vmem:[%s11519_s14 + $0x188] sm:$0xff] }
 0x47a   :  { %4847 = vmatmul.mubr.f32.vlgmr.msra.gmra.mxu0 %v10277_v0  ;;  %5764 = vmatprep.subr.mxu0 %v4286_v23  ;;  %v5044_v0 = vld [vmem:[%s11519_s14 + $0xd8] sm:$0xff]  ;;  %v5050_v56 = vld [vmem:[%s11519_s14 + $0x108] sm:$0xff] }
 0x47b   :  { %4851 = vmatprep.mubr.f32.mxu0 %v10483_v45  ;;  %5765 = vmatpush3.msra.mxu0 %v4286_v23  ;;  %v5028_v45 = vld [vmem:[%s11519_s14 + $0x58] sm:$0xff]  ;;  %v5065_v23 = vld [vmem:[%s11519_s14 + $0x180] sm:$0xff] }
 0x47c   :  { %5766 = vmatprep.subr.mxu0 %v4281_v32  ;;  %5658 = vmatprep.subr.mxu1 %v5045_v11  ;;  %v5096_v11 = vld [vmem:[%s11519_s14 + $0x278] sm:$0xff] }
 0x47d   :  { %5767 = vmatpush3.msra.mxu0 %v4281_v32  ;;  %5659 = vmatpush3.msra.mxu1 %v5029_v29  ;;  %v5049_v32 = vld [vmem:[%s11519_s14 + $0x100] sm:$0xff]  ;;  %v4289_v29 = vlaneseq }
 0x47e   :  { %4852 = vmatmul.mubr.f32.gmra.mxu0 %v10486_v19  ;;  %5768 = vmatprep.subr.mxu0 %v4276_v34  ;;  %v5027_v19 = vld [vmem:[%s11519_s14 + $0x50] sm:$0xff] }
 0x47f   :  { %5769 = vmatpush3.msra.mxu0 %v4276_v34  ;;  %5780 = vmatprep.mubr.msk.f32.mxu0 %vm522_vm1, %v10526_v7  ;;  %v5042_v7 = vld [vmem:[%s11519_s14 + $0xc8] sm:$0xff]  ;;  %v11383_v34 = vshrl.u32 %v4289_v29, 7 }
 0x480   :  { %5770 = vmatprep.subr.mxu0 %v4271_v62  ;;  %5660 = vmatprep.subr.mxu1 %v5044_v0  ;;  %v11389_v0 = vld [vmem:[%s11520_s13] sm:$0x1f] }
 0x481   :  { %5771 = vmatpush3.msra.mxu0 %v4271_v62  ;;  %5661 = vmatpush3.msra.mxu1 %v5028_v45  ;;  %v4291_v62 = vsub.s32 0, %v11383_v34  ;;  %v4295_v45 = vsub.s32 1, %v11383_v34 }
 0x482   :  { %5772 = vmatprep.subr.mxu0 %v4266_v40  ;;  %5662 = vmatprep.subr.mxu1 %v5043_v26 }
 0x483   :  { %5773 = vmatpush3.msra.mxu0 %v4266_v40  ;;  %5663 = vmatpush3.msra.mxu1 %v5027_v19  ;;  %v4292_v26 = vrot.slane %v11389_v0, %v4291_v62  ;;  %v4296_v19 = vrot.slane %v11389_v0, %v4295_v45 }
 0x484   :  { %5774 = vmatprep.subr.mxu0 %v4261_v27  ;;  %5664 = vmatprep.subr.mxu1 %v5042_v7 }
 0x485   :  { %5775 = vmatpush3.msra.mxu0 %v4261_v27  ;;  %5665 = vmatpush3.msra.mxu1 %v5026_v3 }
 0x486   :  { %5776 = vmatprep.subr.mxu0 %v4256_v47  ;;  %5666 = vmatprep.subr.mxu1 %v5041_v35 }
 0x487   :  { %5777 = vmatpush3.msra.mxu0 %v4256_v47  ;;  %5667 = vmatpush3.msra.mxu1 %v5025_v20 }
 0x488   :  { %5778 = vmatprep.subr.mxu0 %v4251_v43  ;;  %5668 = vmatprep.subr.mxu1 %v5040_v1 }
 0x489   :  { %5779 = vmatpush3.msra.mxu0 %v4251_v43  ;;  %5669 = vmatpush3.msra.mxu1 %v5024_v25 }
 0x48a   :  { %5781 = vmatmul.mubr.msk.f32.vlgmr.msra.gmra.mxu0 %vm522_vm1, %v10672_v9  ;;  %5670 = vmatprep.subr.mxu1 %v5039_v48  ;;  %v5021_v9 = vld [vmem:[%s11519_s14 + $0x20] sm:$0xff] }
 0x48b   :  { %5671 = vmatpush3.msra.mxu1 %v5023_v46  ;;  %5690 = vmatprep.subr.mxu0 %v5080_v60 }
 0x48c   :  { %5672 = vmatprep.subr.mxu1 %v5038_v54  ;;  %5691 = vmatpush3.msra.mxu0 %v5064_v18 }
 0x48d   :  { %5673 = vmatpush3.msra.mxu1 %v5022_v4  ;;  %5692 = vmatprep.subr.mxu0 %v5079_v22  ;;  %v5095_v22 = vld [vmem:[%s11519_s14 + $0x270] sm:$0xff] }
 0x48e   :  { %5674 = vmatprep.subr.mxu1 %v5037_v58  ;;  %5693 = vmatpush3.msra.mxu0 %v5063_v24  ;;  %v5094_v58 = vld [vmem:[%s11519_s14 + $0x268] sm:$0xff]  ;;  %v5093_v24 = vld [vmem:[%s11519_s14 + $0x260] sm:$0xff] }
 0x48f   :  { %5675 = vmatpush3.msra.mxu1 %v5021_v9  ;;  %5694 = vmatprep.subr.mxu0 %v5078_v28  ;;  %v5092_v9 = vld [vmem:[%s11519_s14 + $0x258] sm:$0xff]  ;;  %v5091_v28 = vld [vmem:[%s11519_s14 + $0x250] sm:$0xff] }
 0x490   :  { %5676 = vmatprep.subr.mxu1 %v5036_v50  ;;  %5695 = vmatpush3.msra.mxu0 %v5062_v49  ;;  %v5090_v50 = vld [vmem:[%s11519_s14 + $0x248] sm:$0xff]  ;;  %v5089_v49 = vld [vmem:[%s11519_s14 + $0x240] sm:$0xff] }
 0x491   :  { %5677 = vmatpush3.msra.mxu1 %v5020_v8  ;;  %5696 = vmatprep.subr.mxu0 %v5077_v61  ;;  %v5088_v61 = vld [vmem:[%s11519_s14 + $0x238] sm:$0xff] }
 0x492   :  { %5678 = vmatprep.subr.mxu1 %v5035_v39  ;;  %5697 = vmatpush3.msra.mxu0 %v5061_v57 }
 0x493   :  { %5679 = vmatpush3.msra.mxu1 %v5019_v33  ;;  %5698 = vmatprep.subr.mxu0 %v5076_v51 }
 0x494   :  { %5680 = vmatprep.subr.mxu1 %v5034_v38  ;;  %5699 = vmatpush3.msra.mxu0 %v5060_v31  ;;  %v5087_v38 = vld [vmem:[%s11519_s14 + $0x230] sm:$0xff] }
 0x495   :  { %5681 = vmatpush3.msra.mxu1 %v5018_v41  ;;  %5700 = vmatprep.subr.mxu0 %v5075_v21  ;;  %v5086_v21 = vld [vmem:[%s11519_s14 + $0x228] sm:$0xff] }
 0x496   :  { %5682 = vmatprep.subr.mxu1 %v5033_v36  ;;  %5701 = vmatpush3.msra.mxu0 %v5059_v55 }
 0x497   :  { %5683 = vmatpush3.msra.mxu1 %v5017_v17  ;;  %5702 = vmatprep.subr.mxu0 %v5074_v42  ;;  %v5085_v42 = vld [vmem:[%s11519_s14 + $0x220] sm:$0xff] }
 0x498   :  { %5703 = vmatpush3.msra.mxu0 %v5058_v14  ;;  %5783 = vmatprep.subr.mxu1 %v5096_v11 }
 0x499   :  { %5704 = vmatprep.subr.mxu0 %v5073_v2  ;;  %v5084_v2 = vld [vmem:[%s11519_s14 + $0x218] sm:$0xff] }
 0x49a   :  { %5705 = vmatpush3.msra.mxu0 %v5057_v10 }
 0x49b   :  { %5706 = vmatprep.subr.mxu0 %v5072_v15  ;;  %v5083_v15 = vld [vmem:[%s11519_s14 + $0x210] sm:$0xff] }
 0x49c   :  { %5707 = vmatpush3.msra.mxu0 %v5056_v5  ;;  %v5082_v5 = vld [vmem:[%s11519_s14 + $0x208] sm:$0xff] }
 0x49d   :  { %5708 = vmatprep.subr.mxu0 %v5071_v16  ;;  %v5081_v16 = vld [vmem:[%s11519_s14 + $0x200] sm:$0xff] }
 0x49e   :  { %5709 = vmatpush3.msra.mxu0 %v5055_v6 }
 0x49f   :  { %5710 = vmatprep.subr.mxu0 %v5070_v63 }
 0x4a0   :  { %5711 = vmatpush3.msra.mxu0 %v5054_v30  ;;  %v4299_v30 = vsub.s32 2, %v11383_v34 }
 0x4a1   :  { %5712 = vmatprep.subr.mxu0 %v5069_v12 }
 0x4a2   :  { %5713 = vmatpush3.msra.mxu0 %v5053_v44  ;;  %v4303_v44 = vsub.s32 3, %v11383_v34 }
 0x4a3   :  { %5714 = vmatprep.subr.mxu0 %v5068_v37  ;;  %v4300_v37 = vrot.slane %v11389_v0, %v4299_v30  ;;  %v5337_v30 = vld [vmem:[%s11521_s16 + $0x30] sm:$0xff] }
 0x4a4   :  { %5715 = vmatpush3.msra.mxu0 %v5052_v52 }
 0x4a5   :  { %5716 = vmatprep.subr.mxu0 %v5067_v13  ;;  %v4304_v13 = vrot.slane %v11389_v0, %v4303_v44  ;;  %v5335_v44 = vld [vmem:[%s11521_s16 + $0x20] sm:$0xff] }
 0x4a6   :  { %5717 = vmatpush3.msra.mxu0 %v5051_v59 }
 0x4a7   :  { %5718 = vmatprep.subr.mxu0 %v5066_v53 }
 0x4a8   :  { %5719 = vmatpush3.msra.mxu0 %v5050_v56 }
 0x4a9   :  { %5720 = vmatprep.subr.mxu0 %v5065_v23 }
 0x4aa   :  { %5721 = vmatpush3.msra.mxu0 %v5049_v32 }
 0x4b5   :  { %v4386_v40 = vpop.f32.mrf.mxu0 }
 0x4b6   :  { %v4387_v3 = vadd.f32 %v4386_v40, %v4292_v26 }
 0x4b7   :  { %v4388_v27 = vpop.f32.mrf.mxu0 }
 0x4b8   :  { %v4463_v7 = vpop.f32.mrf.mxu1  ;;  %v4389_v35 = vadd.f32 %v4388_v27, %v4296_v19 }
 0x4b9   :  { %v4464_v1 = vadd.f32 %v4463_v7, %v4387_v3 }
 0x4ba   :  { %v4465_v20 = vpop.f32.mrf.mxu1 }
 0x4bb   :  { %v4466_v48 = vadd.f32 %v4465_v20, %v4389_v35 }
 0x4cd   :  { %v4392_v47 = vpop.f32.mrf.mxu0 }
 0x4ce   :  { %v4393_v8 = vadd.f32 %v4392_v47, %v4292_v26 }
 0x4cf   :  { %v4394_v43 = vpop.f32.mrf.mxu0 }
 0x4d0   :  { %v4395_v33 = vadd.f32 %v4394_v43, %v4296_v19 }
 0x4d1   :  { %v4540_v25 = vpop.f32.mrf.mxu0 }
 0x4d2   :  { %v4541_v46 = vadd.f32 %v4540_v25, %v4464_v1 }
 0x4d3   :  { %v4542_v60 = vpop.f32.mrf.mxu0 }
 0x4d4   :  { %v4543_v54 = vadd.f32 %v4542_v60, %v4466_v48  ;;  %v5007_v4 = vmax.f32 %v4541_v46, 0.0 }
 0x4d6   :  { %v5008_v18 = vmax.f32 %v4543_v54, 0.0 }
 0x4d8   :  { %5168 = vmatprep.mubr.f32.mxu1 %v5008_v18 }
 0x4d9   :  { %5169 = vmatmul.mubr.f32.vlgmr.msra.gmra.mxu1 %v5007_v4 }
 0x4da   :  { %5784 = vmatpush3.msra.mxu1 %v5096_v11 }
 0x4db   :  { %5785 = vmatprep.subr.mxu1 %v5095_v22 }
 0x4dc   :  { %5786 = vmatpush3.msra.mxu1 %v5095_v22 }
 0x4dd   :  { %5787 = vmatprep.subr.mxu1 %v5094_v58 }
 0x4de   :  { %5788 = vmatpush3.msra.mxu1 %v5094_v58 }
 0x4df   :  { %5789 = vmatprep.subr.mxu1 %v5093_v24 }
 0x4e0   :  { %5790 = vmatpush3.msra.mxu1 %v5093_v24 }
 0x4e1   :  { %5791 = vmatprep.subr.mxu1 %v5092_v9 }
 0x4e2   :  { %5792 = vmatpush3.msra.mxu1 %v5092_v9  ;;  %v4546_v39 = vpop.f32.mrf.mxu0  ;;  %v4307_v9 = vsub.s32 4, %v11383_v34  ;;  %v5346_v34 = vld [vmem:[%s11521_s16 + $0x78] sm:$0xff] }
 0x4e3   :  { %5793 = vmatprep.subr.mxu1 %v5091_v28  ;;  %5818 = vmatprep.subr.mxu0 %v5346_v34 }
 0x4e4   :  { %5794 = vmatpush3.msra.mxu1 %v5091_v28  ;;  %v4548_v36 = vpop.f32.mrf.mxu0 }
 0x4e5   :  { %5795 = vmatprep.subr.mxu1 %v5090_v50 }
 0x4e6   :  { %5796 = vmatpush3.msra.mxu1 %v5090_v50 }
 0x4e7   :  { %v4469_v57 = vpop.f32.mrf.mxu1  ;;  %5797 = vmatprep.subr.mxu1 %v5089_v49 }
 0x4e8   :  { %v4470_v51 = vadd.f32 %v4469_v57, %v4393_v8  ;;  %5798 = vmatpush3.msra.mxu1 %v5089_v49  ;;  %v4308_v8 = vrot.slane %v11389_v0, %v4307_v9  ;;  %v5345_v0 = vld [vmem:[%s11521_s16 + $0x70] sm:$0xff] }
 0x4e9   :  { %v4471_v31 = vpop.f32.mrf.mxu1  ;;  %5799 = vmatprep.subr.mxu1 %v5088_v61 }
 0x4ea   :  { %v4472_v41 = vadd.f32 %v4471_v31, %v4395_v33  ;;  %5800 = vmatpush3.msra.mxu1 %v5088_v61  ;;  %v4547_v55 = vadd.f32 %v4546_v39, %v4470_v51 }
 0x4eb   :  { %5801 = vmatprep.subr.mxu1 %v5087_v38 }
 0x4ec   :  { %v4549_v17 = vadd.f32 %v4548_v36, %v4472_v41  ;;  %5802 = vmatpush3.msra.mxu1 %v5087_v38  ;;  %v5012_v10 = vmax.f32 %v4547_v55, 0.0 }
 0x4ed   :  { %5803 = vmatprep.subr.mxu1 %v5086_v21 }
 0x4ee   :  { %v5013_v14 = vmax.f32 %v4549_v17, 0.0  ;;  %5804 = vmatpush3.msra.mxu1 %v5086_v21 }
 0x4ef   :  { %5805 = vmatprep.subr.mxu1 %v5085_v42 }
 0x4f0   :  { %5173 = vmatprep.mubr.f32.mxu1 %v5013_v14  ;;  %5806 = vmatpush3.msra.mxu1 %v5085_v42 }
 0x4f1   :  { %5174 = vmatmul.mubr.f32.gmra.mxu1 %v5012_v10  ;;  %5807 = vmatprep.subr.mxu1 %v5084_v2  ;;  %v5343_v10 = vld [vmem:[%s11521_s16 + $0x60] sm:$0xff] }
 0x4f2   :  { %5808 = vmatpush3.msra.mxu1 %v5084_v2  ;;  %v5344_v2 = vld [vmem:[%s11521_s16 + $0x68] sm:$0xff] }
 0x4f3   :  { %5809 = vmatprep.subr.mxu1 %v5083_v15 }
 0x4f4   :  { %5810 = vmatpush3.msra.mxu1 %v5083_v15  ;;  %v5342_v15 = vld [vmem:[%s11521_s16 + $0x58] sm:$0xff] }
 0x4f5   :  { %5811 = vmatprep.subr.mxu1 %v5082_v5 }
 0x4f6   :  { %5812 = vmatpush3.msra.mxu1 %v5082_v5  ;;  %v5341_v5 = vld [vmem:[%s11521_s16 + $0x50] sm:$0xff] }
 0x4f7   :  { %5813 = vmatprep.subr.mxu1 %v5081_v16 }
 0x4f8   :  { %5814 = vmatpush3.msra.mxu1 %v5081_v16  ;;  %v5340_v16 = vld [vmem:[%s11521_s16 + $0x48] sm:$0xff] }
 0x4fb   :  { %v4617_v6 = vpop.f32.mrf.mxu1 }
 0x4fc   :  { %v4618_v53 = vadd.f32 %v4617_v6, %v4300_v37  ;;  %v5339_v6 = vld [vmem:[%s11521_s16 + $0x40] sm:$0xff] }
 0x4fd   :  { %v4619_v63 = vpop.f32.mrf.mxu1 }
 0x4fe   :  { %v4620_v23 = vadd.f32 %v4619_v63, %v4304_v13  ;;  %v5338_v63 = vld [vmem:[%s11521_s16 + $0x38] sm:$0xff] }
 0x500   :  { %v4623_v12 = vpop.f32.mrf.mxu1 }
 0x501   :  { %v4624_v40 = vadd.f32 %v4623_v12, %v4300_v37  ;;  %v5336_v12 = vld [vmem:[%s11521_s16 + $0x28] sm:$0xff]  ;;  %v5334_v37 = vld [vmem:[%s11521_s16 + $0x18] sm:$0xff] }
 0x502   :  { %v4625_v52 = vpop.f32.mrf.mxu1 }
 0x503   :  { %v4626_v3 = vadd.f32 %v4625_v52, %v4304_v13  ;;  %v5333_v52 = vld [vmem:[%s11521_s16 + $0x10] sm:$0xff]  ;;  %v5332_v13 = vld [vmem:[%s11521_s16 + $0x8] sm:$0xff] }
 0x50d   :  { %v4771_v59 = vpop.f32.mrf.mxu1 }
 0x50f   :  { %v4773_v32 = vpop.f32.mrf.mxu1 }
 0x512   :  { %v4777_v19 = vpop.f32.mrf.mxu1 }
 0x514   :  { %v4779_v25 = vpop.f32.mrf.mxu1 }
 0x518   :  { %v4694_v56 = vpop.f32.mrf.mxu0 }
 0x519   :  { %v4695_v11 = vadd.f32 %v4694_v56, %v4618_v53 }
 0x51a   :  { %v4696_v62 = vpop.f32.mrf.mxu0 }
 0x51b   :  { %v4697_v45 = vadd.f32 %v4696_v62, %v4620_v23  ;;  %v4772_v26 = vadd.f32 %v4771_v59, %v4695_v11  ;;  %v5331_v59 = vld [vmem:[%s11521_s16] sm:$0xff] }
 0x51d   :  { %v4774_v27 = vadd.f32 %v4773_v32, %v4697_v45  ;;  %v4700_v7 = vpop.f32.mrf.mxu0  ;;  %v5009_v43 = vmax.f32 %v4772_v26, 0.0 }
 0x51e   :  { %v4701_v47 = vadd.f32 %v4700_v7, %v4624_v40 }
 0x51f   :  { %v5010_v35 = vmax.f32 %v4774_v27, 0.0  ;;  %v4702_v20 = vpop.f32.mrf.mxu0  ;;  %v5564_v27 = vld [vmem:[%s11522_s15] ss:$0 sm:$0xff] }
 0x520   :  { %v4703_v1 = vadd.f32 %v4702_v20, %v4626_v3  ;;  %v4778_v48 = vadd.f32 %v4777_v19, %v4701_v47 }
 0x521   :  { %5243 = vmatprep.mubr.f32.mxu0 %v5010_v35 }
 0x522   :  { %v4780_v46 = vadd.f32 %v4779_v25, %v4703_v1  ;;  %5244 = vmatmul.mubr.f32.vlgmr.msra.gmra.mxu0 %v5009_v43  ;;  %v5014_v54 = vmax.f32 %v4778_v48, 0.0 }
 0x523   :  { %5819 = vmatpush3.msra.mxu0 %v5346_v34 }
 0x524   :  { %v5015_v60 = vmax.f32 %v4780_v46, 0.0  ;;  %5820 = vmatprep.subr.mxu0 %v5345_v0 }
 0x525   :  { %5821 = vmatpush3.msra.mxu0 %v5345_v0 }
 0x526   :  { %5248 = vmatprep.mubr.f32.mxu0 %v5015_v60  ;;  %5822 = vmatprep.subr.mxu0 %v5344_v2 }
 0x527   :  { %5249 = vmatmul.mubr.f32.gmra.mxu0 %v5014_v54 }
 0x528   :  { %5823 = vmatpush3.msra.mxu0 %v5344_v2 }
 0x529   :  { %5824 = vmatprep.subr.mxu0 %v5343_v10 }
 0x52a   :  { %5825 = vmatpush3.msra.mxu0 %v5343_v10 }
 0x52b   :  { %5826 = vmatprep.subr.mxu0 %v5342_v15 }
 0x52c   :  { %5827 = vmatpush3.msra.mxu0 %v5342_v15 }
 0x52d   :  { %5828 = vmatprep.subr.mxu0 %v5341_v5 }
 0x52e   :  { %5829 = vmatpush3.msra.mxu0 %v5341_v5 }
 0x52f   :  { %5830 = vmatprep.subr.mxu0 %v5340_v16 }
 0x530   :  { %5831 = vmatpush3.msra.mxu0 %v5340_v16 }
 0x531   :  { %v5636_v18 = vpop.f32.mrf.mxu1  ;;  %5832 = vmatprep.subr.mxu0 %v5339_v6 }
 0x532   :  { %5833 = vmatpush3.msra.mxu0 %v5339_v6 }
 0x533   :  { %v5637_v58 = vpop.f32.mrf.mxu1  ;;  %5834 = vmatprep.subr.mxu0 %v5338_v63 }
 0x534   :  { %v5638_v38 = vadd.f32 %v5637_v58, %v5636_v18  ;;  %5835 = vmatpush3.msra.mxu0 %v5338_v63  ;;  %v5430_v18 = vand.u32 127, %v4289_v29 }
 0x535   :  { %v5639_v50 = vpop.f32.mrf.mxu1  ;;  %5836 = vmatprep.subr.mxu0 %v5337_v30 }
 0x536   :  { %5837 = vmatpush3.msra.mxu0 %v5337_v30  ;;  %vm5431_vm12 = vcmp.lt.s32.totalorder %v5430_v18, 10 }
 0x537   :  { %v5640_v39 = vpop.f32.mrf.mxu1  ;;  %5838 = vmatprep.subr.mxu0 %v5336_v12 }
 0x538   :  { %v5641_v51 = vadd.f32 %v5640_v39, %v5639_v50  ;;  %5839 = vmatpush3.msra.mxu0 %v5336_v12 }
 0x539   :  { %5840 = vmatprep.subr.mxu0 %v5335_v44 }
 0x53a   :  { %v5598_v4 = vpop.f32.mrf.mxu0  ;;  %5841 = vmatpush3.msra.mxu0 %v5335_v44 }
 0x53b   :  { %5842 = vmatprep.subr.mxu0 %v5334_v37 }
 0x53c   :  { %v5599_v22 = vpop.f32.mrf.mxu0  ;;  %5843 = vmatpush3.msra.mxu0 %v5334_v37 }
 0x53d   :  { %v5600_v61 = vadd.f32 %v5599_v22, %v5598_v4  ;;  %5844 = vmatprep.subr.mxu0 %v5333_v52  ;;  %v5565_v4 = vld [vmem:[%s11523_s17] ss:$0 sm:$0xff] }
 0x53e   :  { %v5601_v24 = vpop.f32.mrf.mxu0  ;;  %5845 = vmatpush3.msra.mxu0 %v5333_v52 }
 0x53f   :  { %v4849_v33 = vadd.f32 %v5600_v61, %v4308_v8  ;;  %5846 = vmatprep.subr.mxu0 %v5332_v13 }
 0x540   :  { %v5602_v28 = vpop.f32.mrf.mxu0  ;;  %5847 = vmatpush3.msra.mxu0 %v5332_v13 }
 0x541   :  { %v5603_v49 = vadd.f32 %v5602_v28, %v5601_v24  ;;  %v4924_v21 = vadd.f32 %v5638_v38, %v4849_v33  ;;  %5848 = vmatprep.subr.mxu0 %v5331_v59 }
 0x542   :  { %5849 = vmatpush3.msra.mxu0 %v5331_v59 }
 0x543   :  { %v4854_v57 = vadd.f32 %v5603_v49, %v4308_v8 }
 0x545   :  { %v4929_v31 = vadd.f32 %v5641_v51, %v4854_v57 }
 0x54a   :  { %v5782_v41 = vpop.f32.mrf.mxu0 }
 0x54b   :  { %v5004_v36 = vadd.f32 %v5782_v41, %v4929_v31 }
 0x54c   :  { %v4998_v55 = vpop.f32.mrf.mxu0 }
 0x54d   :  { %v4999_v17 = vadd.f32 %v4998_v55, %v4924_v21  ;;  %v5016_v14 = vmax.f32 %v5004_v36, 0.0 }
 0x54f   :  { %v5011_v42 = vmax.f32 %v4999_v17, 0.0 }
 0x551   :  { %5815 = vmatprep.mubr.f32.mxu1 %v5011_v42 }
 0x552   :  { %5816 = vmatmul.mubr.f32.vlgmr.msra.gmra.mxu1 %v5016_v14 }
 0x599   :  { %v5684_v53 = vpop.f32.mrf.mxu1 }
 0x59b   :  { %v5685_v23 = vpop.f32.mrf.mxu1 }
 0x59c   :  { %v5686_v19 = vadd.f32 %v5685_v23, %v5684_v53 }
 0x59e   :  { %v5171_v35 = vadd.f32 %v5686_v19, %v5564_v27 }
 0x5b1   :  { %v5687_v11 = vpop.f32.mrf.mxu1 }
 0x5b3   :  { %v5688_v45 = vpop.f32.mrf.mxu1 }
 0x5b4   :  { %v5689_v26 = vadd.f32 %v5688_v45, %v5687_v11 }
 0x5b6   :  { %v5176_v47 = vadd.f32 %v5689_v26, %v5564_v27 }
 0x5e2   :  { %v5722_v56 = vpop.f32.mrf.mxu0 }
 0x5e4   :  { %v5723_v32 = vpop.f32.mrf.mxu0 }
 0x5e5   :  { %v5724_v3 = vadd.f32 %v5723_v32, %v5722_v56 }
 0x5e7   :  { %v5725_v62 = vpop.f32.mrf.mxu0  ;;  %v5246_v1 = vadd.f32 %v5724_v3, %v5171_v35 }
 0x5e9   :  { %v5726_v40 = vpop.f32.mrf.mxu0 }
 0x5ea   :  { %v5727_v7 = vadd.f32 %v5726_v40, %v5725_v62 }
 0x5ec   :  { %v5251_v20 = vadd.f32 %v5727_v7, %v5176_v47 }
 0x612   :  { %v5817_v43 = vpop.f32.mrf.mxu1 }
 0x613   :  { %v5326_v25 = vadd.f32 %v5817_v43, %v5251_v20 }
 0x614   :  { %v5320_v48 = vpop.f32.mrf.mxu1 }
 0x615   :  { %v5321_v46 = vadd.f32 %v5320_v48, %v5246_v1  ;;  %v5330_v54 = vmax.f32 %v5326_v25, 0.0 }
 0x617   :  { %v5329_v60 = vmax.f32 %v5321_v46, 0.0 }
 0x619   :  { %5850 = vmatprep.mubr.f32.mxu0 %v5329_v60 }
 0x61a   :  { %5851 = vmatmul.mubr.f32.vlgmr.msra.gmra.mxu0 %v5330_v54 }
 0x6da   :  { %v5852_v22 = vpop.f32.mrf.mxu0 }
 0x6db   :  { %v5426_v58 = vadd.f32 %v5852_v22, %v5565_v4 }
 0x6dc   :  { %v5420_v24 = vpop.f32.mrf.mxu0 }
 0x6dd   :  { %v5421_v9 = vadd.f32 %v5565_v4, %v5420_v24  ;;  %v5433_v28 = vsel %vm5431_vm12, %v5426_v58, -1e+30 }
 0x6de   :  { %5436 = vmax.xlane.f32.xlu1 %v5433_v28 }
 0x6df   :  { %v5432_v50 = vsel %vm5431_vm12, %v5421_v9, -1e+30 }
 0x6e0   :  { %5434 = vmax.xlane.f32.xlu0 %v5432_v50 }
 0x767   :  { %v5437_v49 = vpop.xlane.xlu1 %5436 }
 0x768   :  { %v5439_v61 = vsub.f32 %v5433_v28, %v5437_v49 }
 0x769   :  { %v5435_v8 = vpop.xlane.xlu0 %5434 }
 0x76a   :  { %v5438_v39 = vsub.f32 %v5432_v50, %v5435_v8  ;;  %v5442_v33 = vmul.f32 1.442695, %v5439_v61 }
 0x76c   :  { %v5440_v57 = vmul.f32 1.442695, %v5438_v39 }
 0x76e   :  { %6458 = vpow2.f32 %v5440_v57 }
 0x76f   :  { %6460 = vpow2.f32 %v5442_v33 }
 0x77b   :  { %v6459_v29 = vpop.eup %6458 }
 0x77c   :  { %5444 = vadd.xlane.f32.xlu0 %v6459_v29  ;;  %v6461_v51 = vpop.eup %6460 }
 0x780   :  { %5446 = vadd.xlane.f32.xlu0 %v6461_v51 }
 0x805   :  { %v5445_v38 = vpop.xlane.xlu0 %5444 }
 0x806   :  { %6462 = vlog2.f32 %v5445_v38 }
 0x809   :  { %v5447_v31 = vpop.xlane.xlu0 %5446 }
 0x80a   :  { %6464 = vlog2.f32 %v5447_v31 }
 0x813   :  { %v6463_v41 = vpop.eup %6462 }
 0x814   :  { %v5449_v21 = vmul.f32 0.6931472, %v6463_v41 }
 0x816   :  { %v5452_v36 = vsub.f32 %v5438_v39, %v5449_v21 }
 0x817   :  { %v6465_v55 = vpop.eup %6464 }
 0x818   :  { %5454 = vst [vmem:[%s11524_s18] sm:$0xff] %v5452_v36  ;;  %v5451_v17 = vmul.f32 0.6931472, %v6465_v55 }
 0x81a   :  { %v5453_v42 = vsub.f32 %v5439_v61, %v5451_v17 }
 0x81c   :  { %5455 = vst [vmem:[%s11524_s18 + $0x8] sm:$0xff] %v5453_v42 }

</bundles_post_ra>
